<compile_context>
chip_gen: v7x
topology: tpu7x:2x2x1
jax: 0.10.0
libtpu: 0.0.40
codegen_flags: <defaults>
</compile_context>

<pallas_src>
import jax
import jax.numpy as jnp
from jax.experimental import pallas as pl
from jax.experimental.pallas import tpu as pltpu


# ---------------------------------------------------------------------------
# Small helpers
# ---------------------------------------------------------------------------

def _round_up(x, m):
    return (x + m - 1) // m * m


def _choose_row_tile(m_total):
    """Pick a row-tile size (multiple of 16) and the padded row count.

    <=256 rows per tile; for small problems split into 2 tiles so the v7x
    megacore ("parallel" grid axis) still has 2 steps to shard.
    """
    if m_total >= 512:
        tile = 256
    else:
        tile = max(16, _round_up(pl.cdiv(m_total, 2), 16))
    return tile, _round_up(m_total, tile)


# ---------------------------------------------------------------------------
# Pallas kernels
# ---------------------------------------------------------------------------

def _conv_bn_relu_kernel(x_ref, w_ref, b_ref, shift_ref, o_ref):
    # x_ref:     (TILE_M, K)    bf16 im2col patch rows (batch folded into M)
    # w_ref:     (K, Cout)      bf16 conv weight with BN scale pre-folded
    # b_ref:     (1, Cout)      f32 conv bias with BN scale pre-folded
    # shift_ref: (1, Cout)      f32 folded BN shift (beta - mean*scale)
    # o_ref:     (TILE_M, Cout) bf16
    y = jnp.dot(x_ref[...], w_ref[...], preferred_element_type=jnp.float32)
    y = jnp.maximum(y + b_ref[...], 0.0) + shift_ref[...]
    o_ref[...] = y.astype(o_ref.dtype)


def conv_bn_relu(patches, w2d, bias, shift):
    """patches: (M_total, K) bf16; w2d: (K, Cout) bf16 (BN scale folded).

    Returns (M_total, Cout) bf16.  Grids over row tiles so the MXU sees long,
    aligned M and the batch/row axis can be sharded across TensorCores.
    """
    m_total, K = patches.shape
    cout = w2d.shape[1]
    tile, m_pad = _choose_row_tile(m_total)
    if m_pad != m_total:
        patches = jnp.pad(patches, ((0, m_pad - m_total), (0, 0)))

    out = pl.pallas_call(
        _conv_bn_relu_kernel,
        out_shape=jax.ShapeDtypeStruct((m_pad, cout), jnp.bfloat16),
        grid_spec=pltpu.PrefetchScalarGridSpec(
            num_scalar_prefetch=0,
            grid=(m_pad // tile,),
            in_specs=[
                pl.BlockSpec((tile, K), lambda i: (i, 0)),
                pl.BlockSpec((K, cout), lambda i: (0, 0)),   # grid-invariant, stays resident
                pl.BlockSpec((1, cout), lambda i: (0, 0)),
                pl.BlockSpec((1, cout), lambda i: (0, 0)),
            ],
            out_specs=pl.BlockSpec((tile, cout), lambda i: (i, 0)),
        ),
        # Each row tile writes a distinct output block -> safe to parallelize
        # (v7x megacore splits the row tiles across its 2 TensorCores).
        compiler_params=pltpu.CompilerParams(
            dimension_semantics=("parallel",)),
    )(patches, w2d, bias, shift)
    return out[:m_total] if m_pad != m_total else out


def _linear_kernel(x_ref, w_ref, b_ref, o_ref):
    y = jnp.dot(x_ref[...], w_ref[...], preferred_element_type=jnp.float32)
    o_ref[...] = y + b_ref[...]


def linear(x, w, b):
    """x: (B, K) bf16; w: (K, Npad) bf16 (lane-padded); b: (1, Npad) f32.

    Returns (B, Npad) f32.  Row-tiled over the batch so VMEM use does not grow
    with B and the output stores are full-lane (Npad = 128).
    """
    B, K = x.shape
    n_pad = w.shape[1]
    tile_b = 128 if B >= 128 else max(16, _round_up(B, 16))
    b_pad = _round_up(B, tile_b)
    if b_pad != B:
        x = jnp.pad(x, ((0, b_pad - B), (0, 0)))

    out = pl.pallas_call(
        _linear_kernel,
        out_shape=jax.ShapeDtypeStruct((b_pad, n_pad), jnp.float32),
        grid_spec=pltpu.PrefetchScalarGridSpec(
            num_scalar_prefetch=0,
            grid=(b_pad // tile_b,),
            in_specs=[
                pl.BlockSpec((tile_b, K), lambda i: (i, 0)),
                pl.BlockSpec((K, n_pad), lambda i: (0, 0)),
                pl.BlockSpec((1, n_pad), lambda i: (0, 0)),
            ],
            out_specs=pl.BlockSpec((tile_b, n_pad), lambda i: (i, 0)),
        ),
        compiler_params=pltpu.CompilerParams(
            dimension_semantics=("parallel",)),
    )(x, w, b)
    return out[:B] if b_pad != B else out


# ---------------------------------------------------------------------------
# Plain-JAX glue: im2col, parameter setup / one-time prep, forward wrapper
# ---------------------------------------------------------------------------

def im2col(x, ksize, stride, pad):
    """x: (B, H, W, C) -> (B*Ho*Wo, K*K*C) with (kh, kw, cin) patch order."""
    B, H, W, C = x.shape
    xp = jnp.pad(x, ((0, 0), (pad, pad), (pad, pad), (0, 0)))
    Ho = (H + 2 * pad - ksize) // stride + 1
    Wo = (W + 2 * pad - ksize) // stride + 1
    cols = []
    for kh in range(ksize):
        for kw in range(ksize):
            cols.append(
                xp[:,
                   kh:kh + (Ho - 1) * stride + 1:stride,
                   kw:kw + (Wo - 1) * stride + 1:stride, :])
    patches = jnp.stack(cols, axis=3)                    # (B, Ho, Wo, K*K, C)
    return patches.reshape(B * Ho * Wo, ksize * ksize * C), Ho, Wo


# (cin, cout, kernel_size, stride, padding) for conv1..conv6
_CONV_CFG = [
    (1, 8, 3, 1, 1),
    (8, 16, 3, 1, 1),
    (16, 32, 5, 2, 1),
    (32, 64, 3, 1, 1),
    (64, 128, 3, 1, 1),
    (128, 256, 5, 2, 1),
]
_NUM_CLASSES = 10
_FC_OUT_PAD = 128          # lane-pad fc output columns -> unmasked full-lane stores
_FINAL_C = 256             # channels out of conv6
_FINAL_HW = 6              # spatial size out of conv6 for a 28x28 input
_FC_IN = _FINAL_C * _FINAL_HW * _FINAL_HW  # 9216
_BN_EPS = 1e-5


def init_params(key):
    """Raw torch-layout parameters (as nn.Module would hold them)."""
    params = {"convs": []}
    for (cin, cout, k, _, _) in _CONV_CFG:
        key, k1, k2, k3, k4, k5, k6 = jax.random.split(key, 7)
        bound = (cin * k * k) ** -0.5
        params["convs"].append(dict(
            w=jax.random.uniform(k1, (cout, cin, k, k), jnp.float32, -bound, bound),
            b=jax.random.uniform(k2, (cout,), jnp.float32, -bound, bound),
            gamma=jax.random.uniform(k3, (cout,), jnp.float32, 0.5, 1.5),
            beta=jax.random.uniform(k4, (cout,), jnp.float32, -0.5, 0.5),
            mean=jax.random.uniform(k5, (cout,), jnp.float32, -0.1, 0.1),
            var=jax.random.uniform(k6, (cout,), jnp.float32, 0.5, 1.5),
        ))
    key, k1, k2 = jax.random.split(key, 3)
    bound = _FC_IN ** -0.5
    params["fc"] = dict(
        w=jax.random.uniform(k1, (_NUM_CLASSES, _FC_IN), jnp.float32, -bound, bound),
        b=jax.random.uniform(k2, (_NUM_CLASSES,), jnp.float32, -bound, bound),
    )
    return params


def prepare_params(params):
    """One-time hoisted prep: reshape + bf16 cast, BN fold into W/b, fc permute+pad."""
    prepped = {"convs": []}
    for p, (cin, cout, k, _, _) in zip(params["convs"], _CONV_CFG):
        scale = p["gamma"] / jnp.sqrt(p["var"] + _BN_EPS)
        # relu(z)*s == relu(z*s) only when s > 0; folding BN scale into the conv
        # weight/bias requires strictly positive gamma (true for this init).
        assert bool(jnp.all(scale > 0)), "BN scale must be > 0 to fold into conv weights"
        shift = p["beta"] - p["mean"] * scale
        # torch (Cout, Cin, Kh, Kw) -> (Kh, Kw, Cin, Cout) -> (K*K*Cin, Cout), scale folded.
        w2d = jnp.transpose(p["w"], (2, 3, 1, 0)).reshape(k * k * cin, cout)
        w2d = w2d * scale[None, :]
        b = p["b"] * scale
        prepped["convs"].append(dict(
            w2d=w2d.astype(jnp.bfloat16),
            b=b.reshape(1, cout).astype(jnp.float32),
            shift=shift.reshape(1, cout).astype(jnp.float32),
        ))
    # fc weight: torch (num_classes, 9216) with NCHW flatten-order inputs.
    # Permute rows to NHWC flatten order (so forward needs no runtime transpose)
    # and lane-pad the output columns to 128 (zeros) for unmasked stores.
    wfc = params["fc"]["w"].reshape(_NUM_CLASSES, _FINAL_C, _FINAL_HW, _FINAL_HW)
    wfc = jnp.transpose(wfc, (2, 3, 1, 0)).reshape(_FC_IN, _NUM_CLASSES)
    wfc = jnp.pad(wfc, ((0, 0), (0, _FC_OUT_PAD - _NUM_CLASSES)))
    bfc = jnp.pad(params["fc"]["b"], (0, _FC_OUT_PAD - _NUM_CLASSES))
    prepped["fc"] = dict(
        w=wfc.astype(jnp.bfloat16),
        b=bfc.reshape(1, _FC_OUT_PAD).astype(jnp.float32),
    )
    return prepped


def cnn_forward(x_nchw, prepped):
    """x_nchw: (B, 1, 28, 28) float32 -> logits (B, 10) float32."""
    x = jnp.transpose(x_nchw, (0, 2, 3, 1)).astype(jnp.bfloat16)   # NCHW -> NHWC bf16
    B = x.shape[0]
    for p, (cin, cout, k, stride, pad) in zip(prepped["convs"], _CONV_CFG):
        patches, Ho, Wo = im2col(x, k, stride, pad)                 # (B*Ho*Wo, K) bf16
        out = conv_bn_relu(patches, p["w2d"], p["b"], p["shift"])   # (B*Ho*Wo, Cout) bf16
        x = out.reshape(B, Ho, Wo, cout)
    # Dropout layers are eval-mode identities.
    # NHWC flatten (free reshape); fc weight rows were pre-permuted to match.
    flat = x.reshape(B, -1)
    logits_pad = linear(flat, prepped["fc"]["w"], prepped["fc"]["b"])
    return logits_pad[:, :_NUM_CLASSES]


# ---------------------------------------------------------------------------
# Main
# ---------------------------------------------------------------------------

if __name__ == "__main__":
    key = jax.random.PRNGKey(0)
    pkey, xkey = jax.random.split(key)
    params = init_params(pkey)
    prepped = prepare_params(params)   # hoisted out of the forward pass
    # fc1 expects 9216 = 256 * 6 * 6, which pins the input to 1x28x28 (MNIST).
    x = jax.random.normal(xkey, (2, 1, 28, 28), dtype=jnp.float32)

    logits = jax.jit(cnn_forward)(x, prepped)
    logits = jax.block_until_ready(logits)

    assert logits.shape == (2, _NUM_CLASSES), logits.shape
    assert logits.dtype == jnp.float32
    assert bool(jnp.all(jnp.isfinite(logits)))
    print("KERNEL_OK")
</pallas_src>

<mosaic_0001>
module attributes {stable_mosaic.version = 11 : i64} {
  func.func @_conv_bn_relu_kernel(%arg0: i32, %arg1: memref<256x9xbf16, #tpu.memory_space<vmem>>, %arg2: memref<9x8xbf16, #tpu.memory_space<vmem>>, %arg3: memref<1x8xf32, #tpu.memory_space<vmem>>, %arg4: memref<1x8xf32, #tpu.memory_space<vmem>>, %arg5: memref<256x8xbf16, #tpu.memory_space<vmem>>) attributes {dimension_semantics = [#tpu.dimension_semantics<parallel>], iteration_bounds = array<i64: 7>, scalar_prefetch = 0 : i64, scratch_operands = 0 : i64, tpu.core_type = #tpu.core_type<tc>, window_params = [{transform_indices = @transform_0, window_bounds = array<i64: 256, 9>}, {pipeline_mode = #tpu.pipeline_mode<synchronous>, transform_indices = @transform_1, window_bounds = array<i64: 9, 8>}, {pipeline_mode = #tpu.pipeline_mode<synchronous>, transform_indices = @transform_2, window_bounds = array<i64: 1, 8>}, {pipeline_mode = #tpu.pipeline_mode<synchronous>, transform_indices = @transform_3, window_bounds = array<i64: 1, 8>}, {transform_indices = @transform_4, window_bounds = array<i64: 256, 8>}]} {
    %c0 = arith.constant 0 : index
    %c0_0 = arith.constant 0 : index
    %0 = vector.load %arg1[%c0, %c0_0] : memref<256x9xbf16, #tpu.memory_space<vmem>>, vector<256x9xbf16>
    %c0_1 = arith.constant 0 : index
    %c0_2 = arith.constant 0 : index
    %1 = vector.load %arg2[%c0_1, %c0_2] : memref<9x8xbf16, #tpu.memory_space<vmem>>, vector<9x8xbf16>
    %cst = arith.constant dense<0.000000e+00> : vector<256x8xf32>
    %2 = tpu.matmul %0, %1, %cst {dimension_numbers = #tpu.dot_dimension_numbers<[1], [0], [0], [1], [0, 0, 1, 1], [], []>} : vector<256x9xbf16>, vector<9x8xbf16>, vector<256x8xf32> -> vector<256x8xf32>
    %c0_3 = arith.constant 0 : index
    %c0_4 = arith.constant 0 : index
    %3 = vector.load %arg3[%c0_3, %c0_4] : memref<1x8xf32, #tpu.memory_space<vmem>>, vector<1x8xf32>
    %4 = vector.broadcast %3 : vector<1x8xf32> to vector<256x8xf32>
    %5 = arith.addf %2, %4 : vector<256x8xf32>
    %cst_5 = arith.constant 0.000000e+00 : f32
    %6 = vector.broadcast %cst_5 : f32 to vector<256x8xf32>
    %7 = arith.maximumf %5, %6 : vector<256x8xf32>
    %c0_6 = arith.constant 0 : index
    %c0_7 = arith.constant 0 : index
    %8 = vector.load %arg4[%c0_6, %c0_7] : memref<1x8xf32, #tpu.memory_space<vmem>>, vector<1x8xf32>
    %9 = vector.broadcast %8 : vector<1x8xf32> to vector<256x8xf32>
    %10 = arith.addf %7, %9 : vector<256x8xf32>
    %11 = arith.truncf %10 : vector<256x8xf32> to vector<256x8xbf16>
    %c0_8 = arith.constant 0 : index
    %c0_9 = arith.constant 0 : index
    %12 = vector.load %arg5[%c0_8, %c0_9] : memref<256x8xbf16, #tpu.memory_space<vmem>>, vector<256x8xbf16>
    tpu.vector_store %arg5[%c0_8, %c0_9], %11 {strides = array<i32>} : memref<256x8xbf16, #tpu.memory_space<vmem>>, vector<256x8xbf16>,
    return
  }
  func.func @transform_0(%arg0: i32) -> (i32, i32) {
    %c0_i32 = arith.constant 0 : i32
    %c0_i32_0 = arith.constant 0 : i32
    return %arg0, %c0_i32 : i32, i32
  }
  func.func @transform_1(%arg0: i32) -> (i32, i32) {
    %c0_i32 = arith.constant 0 : i32
    %c0_i32_0 = arith.constant 0 : i32
    %c0_i32_1 = arith.constant 0 : i32
    return %c0_i32, %c0_i32_0 : i32, i32
  }
  func.func @transform_2(%arg0: i32) -> (i32, i32) {
    %c0_i32 = arith.constant 0 : i32
    %c0_i32_0 = arith.constant 0 : i32
    %c0_i32_1 = arith.constant 0 : i32
    return %c0_i32, %c0_i32_0 : i32, i32
  }
  func.func @transform_3(%arg0: i32) -> (i32, i32) {
    %c0_i32 = arith.constant 0 : i32
    %c0_i32_0 = arith.constant 0 : i32
    %c0_i32_1 = arith.constant 0 : i32
    return %c0_i32, %c0_i32_0 : i32, i32
  }
  func.func @transform_4(%arg0: i32) -> (i32, i32) {
    %c0_i32 = arith.constant 0 : i32
    %c0_i32_0 = arith.constant 0 : i32
    return %arg0, %c0_i32 : i32, i32
  }
}

module attributes {stable_mosaic.version = 11 : i64} {
  func.func @_conv_bn_relu_kernel(%arg0: i32, %arg1: memref<256x72xbf16, #tpu.memory_space<vmem>>, %arg2: memref<72x16xbf16, #tpu.memory_space<vmem>>, %arg3: memref<1x16xf32, #tpu.memory_space<vmem>>, %arg4: memref<1x16xf32, #tpu.memory_space<vmem>>, %arg5: memref<256x16xbf16, #tpu.memory_space<vmem>>) attributes {dimension_semantics = [#tpu.dimension_semantics<parallel>], iteration_bounds = array<i64: 7>, scalar_prefetch = 0 : i64, scratch_operands = 0 : i64, tpu.core_type = #tpu.core_type<tc>, window_params = [{transform_indices = @transform_0, window_bounds = array<i64: 256, 72>}, {pipeline_mode = #tpu.pipeline_mode<synchronous>, transform_indices = @transform_1, window_bounds = array<i64: 72, 16>}, {pipeline_mode = #tpu.pipeline_mode<synchronous>, transform_indices = @transform_2, window_bounds = array<i64: 1, 16>}, {pipeline_mode = #tpu.pipeline_mode<synchronous>, transform_indices = @transform_3, window_bounds = array<i64: 1, 16>}, {transform_indices = @transform_4, window_bounds = array<i64: 256, 16>}]} {
    %c0 = arith.constant 0 : index
    %c0_0 = arith.constant 0 : index
    %0 = vector.load %arg1[%c0, %c0_0] : memref<256x72xbf16, #tpu.memory_space<vmem>>, vector<256x72xbf16>
    %c0_1 = arith.constant 0 : index
    %c0_2 = arith.constant 0 : index
    %1 = vector.load %arg2[%c0_1, %c0_2] : memref<72x16xbf16, #tpu.memory_space<vmem>>, vector<72x16xbf16>
    %cst = arith.constant dense<0.000000e+00> : vector<256x16xf32>
    %2 = tpu.matmul %0, %1, %cst {dimension_numbers = #tpu.dot_dimension_numbers<[1], [0], [0], [1], [0, 0, 1, 1], [], []>} : vector<256x72xbf16>, vector<72x16xbf16>, vector<256x16xf32> -> vector<256x16xf32>
    %c0_3 = arith.constant 0 : index
    %c0_4 = arith.constant 0 : index
    %3 = vector.load %arg3[%c0_3, %c0_4] : memref<1x16xf32, #tpu.memory_space<vmem>>, vector<1x16xf32>
    %4 = vector.broadcast %3 : vector<1x16xf32> to vector<256x16xf32>
    %5 = arith.addf %2, %4 : vector<256x16xf32>
    %cst_5 = arith.constant 0.000000e+00 : f32
    %6 = vector.broadcast %cst_5 : f32 to vector<256x16xf32>
    %7 = arith.maximumf %5, %6 : vector<256x16xf32>
    %c0_6 = arith.constant 0 : index
    %c0_7 = arith.constant 0 : index
    %8 = vector.load %arg4[%c0_6, %c0_7] : memref<1x16xf32, #tpu.memory_space<vmem>>, vector<1x16xf32>
    %9 = vector.broadcast %8 : vector<1x16xf32> to vector<256x16xf32>
    %10 = arith.addf %7, %9 : vector<256x16xf32>
    %11 = arith.truncf %10 : vector<256x16xf32> to vector<256x16xbf16>
    %c0_8 = arith.constant 0 : index
    %c0_9 = arith.constant 0 : index
    %12 = vector.load %arg5[%c0_8, %c0_9] : memref<256x16xbf16, #tpu.memory_space<vmem>>, vector<256x16xbf16>
    tpu.vector_store %arg5[%c0_8, %c0_9], %11 {strides = array<i32>} : memref<256x16xbf16, #tpu.memory_space<vmem>>, vector<256x16xbf16>,
    return
  }
  func.func @transform_0(%arg0: i32) -> (i32, i32) {
    %c0_i32 = arith.constant 0 : i32
    %c0_i32_0 = arith.constant 0 : i32
    return %arg0, %c0_i32 : i32, i32
  }
  func.func @transform_1(%arg0: i32) -> (i32, i32) {
    %c0_i32 = arith.constant 0 : i32
    %c0_i32_0 = arith.constant 0 : i32
    %c0_i32_1 = arith.constant 0 : i32
    return %c0_i32, %c0_i32_0 : i32, i32
  }
  func.func @transform_2(%arg0: i32) -> (i32, i32) {
    %c0_i32 = arith.constant 0 : i32
    %c0_i32_0 = arith.constant 0 : i32
    %c0_i32_1 = arith.constant 0 : i32
    return %c0_i32, %c0_i32_0 : i32, i32
  }
  func.func @transform_3(%arg0: i32) -> (i32, i32) {
    %c0_i32 = arith.constant 0 : i32
    %c0_i32_0 = arith.constant 0 : i32
    %c0_i32_1 = arith.constant 0 : i32
    return %c0_i32, %c0_i32_0 : i32, i32
  }
  func.func @transform_4(%arg0: i32) -> (i32, i32) {
    %c0_i32 = arith.constant 0 : i32
    %c0_i32_0 = arith.constant 0 : i32
    return %arg0, %c0_i32 : i32, i32
  }
}

module attributes {stable_mosaic.version = 11 : i64} {
  func.func @_conv_bn_relu_kernel(%arg0: i32, %arg1: memref<176x400xbf16, #tpu.memory_space<vmem>>, %arg2: memref<400x32xbf16, #tpu.memory_space<vmem>>, %arg3: memref<1x32xf32, #tpu.memory_space<vmem>>, %arg4: memref<1x32xf32, #tpu.memory_space<vmem>>, %arg5: memref<176x32xbf16, #tpu.memory_space<vmem>>) attributes {dimension_semantics = [#tpu.dimension_semantics<parallel>], iteration_bounds = array<i64: 2>, scalar_prefetch = 0 : i64, scratch_operands = 0 : i64, tpu.core_type = #tpu.core_type<tc>, window_params = [{transform_indices = @transform_0, window_bounds = array<i64: 176, 400>}, {pipeline_mode = #tpu.pipeline_mode<synchronous>, transform_indices = @transform_1, window_bounds = array<i64: 400, 32>}, {pipeline_mode = #tpu.pipeline_mode<synchronous>, transform_indices = @transform_2, window_bounds = array<i64: 1, 32>}, {pipeline_mode = #tpu.pipeline_mode<synchronous>, transform_indices = @transform_3, window_bounds = array<i64: 1, 32>}, {transform_indices = @transform_4, window_bounds = array<i64: 176, 32>}]} {
    %c0 = arith.constant 0 : index
    %c0_0 = arith.constant 0 : index
    %0 = vector.load %arg1[%c0, %c0_0] : memref<176x400xbf16, #tpu.memory_space<vmem>>, vector<176x400xbf16>
    %c0_1 = arith.constant 0 : index
    %c0_2 = arith.constant 0 : index
    %1 = vector.load %arg2[%c0_1, %c0_2] : memref<400x32xbf16, #tpu.memory_space<vmem>>, vector<400x32xbf16>
    %cst = arith.constant dense<0.000000e+00> : vector<176x32xf32>
    %2 = tpu.matmul %0, %1, %cst {dimension_numbers = #tpu.dot_dimension_numbers<[1], [0], [0], [1], [0, 0, 1, 1], [], []>} : vector<176x400xbf16>, vector<400x32xbf16>, vector<176x32xf32> -> vector<176x32xf32>
    %c0_3 = arith.constant 0 : index
    %c0_4 = arith.constant 0 : index
    %3 = vector.load %arg3[%c0_3, %c0_4] : memref<1x32xf32, #tpu.memory_space<vmem>>, vector<1x32xf32>
    %4 = vector.broadcast %3 : vector<1x32xf32> to vector<176x32xf32>
    %5 = arith.addf %2, %4 : vector<176x32xf32>
    %cst_5 = arith.constant 0.000000e+00 : f32
    %6 = vector.broadcast %cst_5 : f32 to vector<176x32xf32>
    %7 = arith.maximumf %5, %6 : vector<176x32xf32>
    %c0_6 = arith.constant 0 : index
    %c0_7 = arith.constant 0 : index
    %8 = vector.load %arg4[%c0_6, %c0_7] : memref<1x32xf32, #tpu.memory_space<vmem>>, vector<1x32xf32>
    %9 = vector.broadcast %8 : vector<1x32xf32> to vector<176x32xf32>
    %10 = arith.addf %7, %9 : vector<176x32xf32>
    %11 = arith.truncf %10 : vector<176x32xf32> to vector<176x32xbf16>
    %c0_8 = arith.constant 0 : index
    %c0_9 = arith.constant 0 : index
    %12 = vector.load %arg5[%c0_8, %c0_9] : memref<176x32xbf16, #tpu.memory_space<vmem>>, vector<176x32xbf16>
    tpu.vector_store %arg5[%c0_8, %c0_9], %11 {strides = array<i32>} : memref<176x32xbf16, #tpu.memory_space<vmem>>, vector<176x32xbf16>,
    return
  }
  func.func @transform_0(%arg0: i32) -> (i32, i32) {
    %c0_i32 = arith.constant 0 : i32
    %c0_i32_0 = arith.constant 0 : i32
    return %arg0, %c0_i32 : i32, i32
  }
  func.func @transform_1(%arg0: i32) -> (i32, i32) {
    %c0_i32 = arith.constant 0 : i32
    %c0_i32_0 = arith.constant 0 : i32
    %c0_i32_1 = arith.constant 0 : i32
    return %c0_i32, %c0_i32_0 : i32, i32
  }
  func.func @transform_2(%arg0: i32) -> (i32, i32) {
    %c0_i32 = arith.constant 0 : i32
    %c0_i32_0 = arith.constant 0 : i32
    %c0_i32_1 = arith.constant 0 : i32
    return %c0_i32, %c0_i32_0 : i32, i32
  }
  func.func @transform_3(%arg0: i32) -> (i32, i32) {
    %c0_i32 = arith.constant 0 : i32
    %c0_i32_0 = arith.constant 0 : i32
    %c0_i32_1 = arith.constant 0 : i32
    return %c0_i32, %c0_i32_0 : i32, i32
  }
  func.func @transform_4(%arg0: i32) -> (i32, i32) {
    %c0_i32 = arith.constant 0 : i32
    %c0_i32_0 = arith.constant 0 : i32
    return %arg0, %c0_i32 : i32, i32
  }
}

module attributes {stable_mosaic.version = 11 : i64} {
  func.func @_conv_bn_relu_kernel(%arg0: i32, %arg1: memref<176x288xbf16, #tpu.memory_space<vmem>>, %arg2: memref<288x64xbf16, #tpu.memory_space<vmem>>, %arg3: memref<1x64xf32, #tpu.memory_space<vmem>>, %arg4: memref<1x64xf32, #tpu.memory_space<vmem>>, %arg5: memref<176x64xbf16, #tpu.memory_space<vmem>>) attributes {dimension_semantics = [#tpu.dimension_semantics<parallel>], iteration_bounds = array<i64: 2>, scalar_prefetch = 0 : i64, scratch_operands = 0 : i64, tpu.core_type = #tpu.core_type<tc>, window_params = [{transform_indices = @transform_0, window_bounds = array<i64: 176, 288>}, {pipeline_mode = #tpu.pipeline_mode<synchronous>, transform_indices = @transform_1, window_bounds = array<i64: 288, 64>}, {pipeline_mode = #tpu.pipeline_mode<synchronous>, transform_indices = @transform_2, window_bounds = array<i64: 1, 64>}, {pipeline_mode = #tpu.pipeline_mode<synchronous>, transform_indices = @transform_3, window_bounds = array<i64: 1, 64>}, {transform_indices = @transform_4, window_bounds = array<i64: 176, 64>}]} {
    %c0 = arith.constant 0 : index
    %c0_0 = arith.constant 0 : index
    %0 = vector.load %arg1[%c0, %c0_0] : memref<176x288xbf16, #tpu.memory_space<vmem>>, vector<176x288xbf16>
    %c0_1 = arith.constant 0 : index
    %c0_2 = arith.constant 0 : index
    %1 = vector.load %arg2[%c0_1, %c0_2] : memref<288x64xbf16, #tpu.memory_space<vmem>>, vector<288x64xbf16>
    %cst = arith.constant dense<0.000000e+00> : vector<176x64xf32>
    %2 = tpu.matmul %0, %1, %cst {dimension_numbers = #tpu.dot_dimension_numbers<[1], [0], [0], [1], [0, 0, 1, 1], [], []>} : vector<176x288xbf16>, vector<288x64xbf16>, vector<176x64xf32> -> vector<176x64xf32>
    %c0_3 = arith.constant 0 : index
    %c0_4 = arith.constant 0 : index
    %3 = vector.load %arg3[%c0_3, %c0_4] : memref<1x64xf32, #tpu.memory_space<vmem>>, vector<1x64xf32>
    %4 = vector.broadcast %3 : vector<1x64xf32> to vector<176x64xf32>
    %5 = arith.addf %2, %4 : vector<176x64xf32>
    %cst_5 = arith.constant 0.000000e+00 : f32
    %6 = vector.broadcast %cst_5 : f32 to vector<176x64xf32>
    %7 = arith.maximumf %5, %6 : vector<176x64xf32>
    %c0_6 = arith.constant 0 : index
    %c0_7 = arith.constant 0 : index
    %8 = vector.load %arg4[%c0_6, %c0_7] : memref<1x64xf32, #tpu.memory_space<vmem>>, vector<1x64xf32>
    %9 = vector.broadcast %8 : vector<1x64xf32> to vector<176x64xf32>
    %10 = arith.addf %7, %9 : vector<176x64xf32>
    %11 = arith.truncf %10 : vector<176x64xf32> to vector<176x64xbf16>
    %c0_8 = arith.constant 0 : index
    %c0_9 = arith.constant 0 : index
    %12 = vector.load %arg5[%c0_8, %c0_9] : memref<176x64xbf16, #tpu.memory_space<vmem>>, vector<176x64xbf16>
    tpu.vector_store %arg5[%c0_8, %c0_9], %11 {strides = array<i32>} : memref<176x64xbf16, #tpu.memory_space<vmem>>, vector<176x64xbf16>,
    return
  }
  func.func @transform_0(%arg0: i32) -> (i32, i32) {
    %c0_i32 = arith.constant 0 : i32
    %c0_i32_0 = arith.constant 0 : i32
    return %arg0, %c0_i32 : i32, i32
  }
  func.func @transform_1(%arg0: i32) -> (i32, i32) {
    %c0_i32 = arith.constant 0 : i32
    %c0_i32_0 = arith.constant 0 : i32
    %c0_i32_1 = arith.constant 0 : i32
    return %c0_i32, %c0_i32_0 : i32, i32
  }
  func.func @transform_2(%arg0: i32) -> (i32, i32) {
    %c0_i32 = arith.constant 0 : i32
    %c0_i32_0 = arith.constant 0 : i32
    %c0_i32_1 = arith.constant 0 : i32
    return %c0_i32, %c0_i32_0 : i32, i32
  }
  func.func @transform_3(%arg0: i32) -> (i32, i32) {
    %c0_i32 = arith.constant 0 : i32
    %c0_i32_0 = arith.constant 0 : i32
    %c0_i32_1 = arith.constant 0 : i32
    return %c0_i32, %c0_i32_0 : i32, i32
  }
  func.func @transform_4(%arg0: i32) -> (i32, i32) {
    %c0_i32 = arith.constant 0 : i32
    %c0_i32_0 = arith.constant 0 : i32
    return %arg0, %c0_i32 : i32, i32
  }
}

module attributes {stable_mosaic.version = 11 : i64} {
  func.func @_conv_bn_relu_kernel(%arg0: i32, %arg1: memref<176x576xbf16, #tpu.memory_space<vmem>>, %arg2: memref<576x128xbf16, #tpu.memory_space<vmem>>, %arg3: memref<1x128xf32, #tpu.memory_space<vmem>>, %arg4: memref<1x128xf32, #tpu.memory_space<vmem>>, %arg5: memref<176x128xbf16, #tpu.memory_space<vmem>>) attributes {dimension_semantics = [#tpu.dimension_semantics<parallel>], iteration_bounds = array<i64: 2>, scalar_prefetch = 0 : i64, scratch_operands = 0 : i64, tpu.core_type = #tpu.core_type<tc>, window_params = [{transform_indices = @transform_0, window_bounds = array<i64: 176, 576>}, {pipeline_mode = #tpu.pipeline_mode<synchronous>, transform_indices = @transform_1, window_bounds = array<i64: 576, 128>}, {pipeline_mode = #tpu.pipeline_mode<synchronous>, transform_indices = @transform_2, window_bounds = array<i64: 1, 128>}, {pipeline_mode = #tpu.pipeline_mode<synchronous>, transform_indices = @transform_3, window_bounds = array<i64: 1, 128>}, {transform_indices = @transform_4, window_bounds = array<i64: 176, 128>}]} {
    %c0 = arith.constant 0 : index
    %c0_0 = arith.constant 0 : index
    %0 = vector.load %arg1[%c0, %c0_0] : memref<176x576xbf16, #tpu.memory_space<vmem>>, vector<176x576xbf16>
    %c0_1 = arith.constant 0 : index
    %c0_2 = arith.constant 0 : index
    %1 = vector.load %arg2[%c0_1, %c0_2] : memref<576x128xbf16, #tpu.memory_space<vmem>>, vector<576x128xbf16>
    %cst = arith.constant dense<0.000000e+00> : vector<176x128xf32>
    %2 = tpu.matmul %0, %1, %cst {dimension_numbers = #tpu.dot_dimension_numbers<[1], [0], [0], [1], [0, 0, 1, 1], [], []>} : vector<176x576xbf16>, vector<576x128xbf16>, vector<176x128xf32> -> vector<176x128xf32>
    %c0_3 = arith.constant 0 : index
    %c0_4 = arith.constant 0 : index
    %3 = vector.load %arg3[%c0_3, %c0_4] : memref<1x128xf32, #tpu.memory_space<vmem>>, vector<1x128xf32>
    %4 = vector.broadcast %3 : vector<1x128xf32> to vector<176x128xf32>
    %5 = arith.addf %2, %4 : vector<176x128xf32>
    %cst_5 = arith.constant 0.000000e+00 : f32
    %6 = vector.broadcast %cst_5 : f32 to vector<176x128xf32>
    %7 = arith.maximumf %5, %6 : vector<176x128xf32>
    %c0_6 = arith.constant 0 : index
    %c0_7 = arith.constant 0 : index
    %8 = vector.load %arg4[%c0_6, %c0_7] : memref<1x128xf32, #tpu.memory_space<vmem>>, vector<1x128xf32>
    %9 = vector.broadcast %8 : vector<1x128xf32> to vector<176x128xf32>
    %10 = arith.addf %7, %9 : vector<176x128xf32>
    %11 = arith.truncf %10 : vector<176x128xf32> to vector<176x128xbf16>
    %c0_8 = arith.constant 0 : index
    %c0_9 = arith.constant 0 : index
    %12 = vector.load %arg5[%c0_8, %c0_9] : memref<176x128xbf16, #tpu.memory_space<vmem>>, vector<176x128xbf16>
    tpu.vector_store %arg5[%c0_8, %c0_9], %11 {strides = array<i32>} : memref<176x128xbf16, #tpu.memory_space<vmem>>, vector<176x128xbf16>,
    return
  }
  func.func @transform_0(%arg0: i32) -> (i32, i32) {
    %c0_i32 = arith.constant 0 : i32
    %c0_i32_0 = arith.constant 0 : i32
    return %arg0, %c0_i32 : i32, i32
  }
  func.func @transform_1(%arg0: i32) -> (i32, i32) {
    %c0_i32 = arith.constant 0 : i32
    %c0_i32_0 = arith.constant 0 : i32
    %c0_i32_1 = arith.constant 0 : i32
    return %c0_i32, %c0_i32_0 : i32, i32
  }
  func.func @transform_2(%arg0: i32) -> (i32, i32) {
    %c0_i32 = arith.constant 0 : i32
    %c0_i32_0 = arith.constant 0 : i32
    %c0_i32_1 = arith.constant 0 : i32
    return %c0_i32, %c0_i32_0 : i32, i32
  }
  func.func @transform_3(%arg0: i32) -> (i32, i32) {
    %c0_i32 = arith.constant 0 : i32
    %c0_i32_0 = arith.constant 0 : i32
    %c0_i32_1 = arith.constant 0 : i32
    return %c0_i32, %c0_i32_0 : i32, i32
  }
  func.func @transform_4(%arg0: i32) -> (i32, i32) {
    %c0_i32 = arith.constant 0 : i32
    %c0_i32_0 = arith.constant 0 : i32
    return %arg0, %c0_i32 : i32, i32
  }
}

module attributes {stable_mosaic.version = 11 : i64} {
  func.func @_conv_bn_relu_kernel(%arg0: i32, %arg1: memref<48x3200xbf16, #tpu.memory_space<vmem>>, %arg2: memref<3200x256xbf16, #tpu.memory_space<vmem>>, %arg3: memref<1x256xf32, #tpu.memory_space<vmem>>, %arg4: memref<1x256xf32, #tpu.memory_space<vmem>>, %arg5: memref<48x256xbf16, #tpu.memory_space<vmem>>) attributes {dimension_semantics = [#tpu.dimension_semantics<parallel>], iteration_bounds = array<i64: 2>, scalar_prefetch = 0 : i64, scratch_operands = 0 : i64, tpu.core_type = #tpu.core_type<tc>, window_params = [{transform_indices = @transform_0, window_bounds = array<i64: 48, 3200>}, {pipeline_mode = #tpu.pipeline_mode<synchronous>, transform_indices = @transform_1, window_bounds = array<i64: 3200, 256>}, {pipeline_mode = #tpu.pipeline_mode<synchronous>, transform_indices = @transform_2, window_bounds = array<i64: 1, 256>}, {pipeline_mode = #tpu.pipeline_mode<synchronous>, transform_indices = @transform_3, window_bounds = array<i64: 1, 256>}, {transform_indices = @transform_4, window_bounds = array<i64: 48, 256>}]} {
    %c0 = arith.constant 0 : index
    %c0_0 = arith.constant 0 : index
    %0 = vector.load %arg1[%c0, %c0_0] : memref<48x3200xbf16, #tpu.memory_space<vmem>>, vector<48x3200xbf16>
    %c0_1 = arith.constant 0 : index
    %c0_2 = arith.constant 0 : index
    %1 = vector.load %arg2[%c0_1, %c0_2] : memref<3200x256xbf16, #tpu.memory_space<vmem>>, vector<3200x256xbf16>
    %cst = arith.constant dense<0.000000e+00> : vector<48x256xf32>
    %2 = tpu.matmul %0, %1, %cst {dimension_numbers = #tpu.dot_dimension_numbers<[1], [0], [0], [1], [0, 0, 1, 1], [], []>} : vector<48x3200xbf16>, vector<3200x256xbf16>, vector<48x256xf32> -> vector<48x256xf32>
    %c0_3 = arith.constant 0 : index
    %c0_4 = arith.constant 0 : index
    %3 = vector.load %arg3[%c0_3, %c0_4] : memref<1x256xf32, #tpu.memory_space<vmem>>, vector<1x256xf32>
    %4 = vector.broadcast %3 : vector<1x256xf32> to vector<48x256xf32>
    %5 = arith.addf %2, %4 : vector<48x256xf32>
    %cst_5 = arith.constant 0.000000e+00 : f32
    %6 = vector.broadcast %cst_5 : f32 to vector<48x256xf32>
    %7 = arith.maximumf %5, %6 : vector<48x256xf32>
    %c0_6 = arith.constant 0 : index
    %c0_7 = arith.constant 0 : index
    %8 = vector.load %arg4[%c0_6, %c0_7] : memref<1x256xf32, #tpu.memory_space<vmem>>, vector<1x256xf32>
    %9 = vector.broadcast %8 : vector<1x256xf32> to vector<48x256xf32>
    %10 = arith.addf %7, %9 : vector<48x256xf32>
    %11 = arith.truncf %10 : vector<48x256xf32> to vector<48x256xbf16>
    %c0_8 = arith.constant 0 : index
    %c0_9 = arith.constant 0 : index
    %12 = vector.load %arg5[%c0_8, %c0_9] : memref<48x256xbf16, #tpu.memory_space<vmem>>, vector<48x256xbf16>
    tpu.vector_store %arg5[%c0_8, %c0_9], %11 {strides = array<i32>} : memref<48x256xbf16, #tpu.memory_space<vmem>>, vector<48x256xbf16>,
    return
  }
  func.func @transform_0(%arg0: i32) -> (i32, i32) {
    %c0_i32 = arith.constant 0 : i32
    %c0_i32_0 = arith.constant 0 : i32
    return %arg0, %c0_i32 : i32, i32
  }
  func.func @transform_1(%arg0: i32) -> (i32, i32) {
    %c0_i32 = arith.constant 0 : i32
    %c0_i32_0 = arith.constant 0 : i32
    %c0_i32_1 = arith.constant 0 : i32
    return %c0_i32, %c0_i32_0 : i32, i32
  }
  func.func @transform_2(%arg0: i32) -> (i32, i32) {
    %c0_i32 = arith.constant 0 : i32
    %c0_i32_0 = arith.constant 0 : i32
    %c0_i32_1 = arith.constant 0 : i32
    return %c0_i32, %c0_i32_0 : i32, i32
  }
  func.func @transform_3(%arg0: i32) -> (i32, i32) {
    %c0_i32 = arith.constant 0 : i32
    %c0_i32_0 = arith.constant 0 : i32
    %c0_i32_1 = arith.constant 0 : i32
    return %c0_i32, %c0_i32_0 : i32, i32
  }
  func.func @transform_4(%arg0: i32) -> (i32, i32) {
    %c0_i32 = arith.constant 0 : i32
    %c0_i32_0 = arith.constant 0 : i32
    return %arg0, %c0_i32 : i32, i32
  }
}

module attributes {stable_mosaic.version = 11 : i64} {
  func.func @_linear_kernel(%arg0: i32, %arg1: memref<16x9216xbf16, #tpu.memory_space<vmem>>, %arg2: memref<9216x128xbf16, #tpu.memory_space<vmem>>, %arg3: memref<1x128xf32, #tpu.memory_space<vmem>>, %arg4: memref<16x128xf32, #tpu.memory_space<vmem>>) attributes {dimension_semantics = [#tpu.dimension_semantics<parallel>], iteration_bounds = array<i64: 1>, scalar_prefetch = 0 : i64, scratch_operands = 0 : i64, tpu.core_type = #tpu.core_type<tc>, window_params = [{transform_indices = @transform_0, window_bounds = array<i64: 16, 9216>}, {pipeline_mode = #tpu.pipeline_mode<synchronous>, transform_indices = @transform_1, window_bounds = array<i64: 9216, 128>}, {pipeline_mode = #tpu.pipeline_mode<synchronous>, transform_indices = @transform_2, window_bounds = array<i64: 1, 128>}, {transform_indices = @transform_3, window_bounds = array<i64: 16, 128>}]} {
    %c0 = arith.constant 0 : index
    %c0_0 = arith.constant 0 : index
    %0 = vector.load %arg1[%c0, %c0_0] : memref<16x9216xbf16, #tpu.memory_space<vmem>>, vector<16x9216xbf16>
    %c0_1 = arith.constant 0 : index
    %c0_2 = arith.constant 0 : index
    %1 = vector.load %arg2[%c0_1, %c0_2] : memref<9216x128xbf16, #tpu.memory_space<vmem>>, vector<9216x128xbf16>
    %cst = arith.constant dense<0.000000e+00> : vector<16x128xf32>
    %2 = tpu.matmul %0, %1, %cst {dimension_numbers = #tpu.dot_dimension_numbers<[1], [0], [0], [1], [0, 0, 1, 1], [], []>} : vector<16x9216xbf16>, vector<9216x128xbf16>, vector<16x128xf32> -> vector<16x128xf32>
    %c0_3 = arith.constant 0 : index
    %c0_4 = arith.constant 0 : index
    %3 = vector.load %arg3[%c0_3, %c0_4] : memref<1x128xf32, #tpu.memory_space<vmem>>, vector<1x128xf32>
    %4 = vector.broadcast %3 : vector<1x128xf32> to vector<16x128xf32>
    %5 = arith.addf %2, %4 : vector<16x128xf32>
    %c0_5 = arith.constant 0 : index
    %c0_6 = arith.constant 0 : index
    %6 = vector.load %arg4[%c0_5, %c0_6] : memref<16x128xf32, #tpu.memory_space<vmem>>, vector<16x128xf32>
    tpu.vector_store %arg4[%c0_5, %c0_6], %5 {strides = array<i32>} : memref<16x128xf32, #tpu.memory_space<vmem>>, vector<16x128xf32>,
    return
  }
  func.func @transform_0(%arg0: i32) -> (i32, i32) {
    %c0_i32 = arith.constant 0 : i32
    %c0_i32_0 = arith.constant 0 : i32
    return %arg0, %c0_i32 : i32, i32
  }
  func.func @transform_1(%arg0: i32) -> (i32, i32) {
    %c0_i32 = arith.constant 0 : i32
    %c0_i32_0 = arith.constant 0 : i32
    %c0_i32_1 = arith.constant 0 : i32
    return %c0_i32, %c0_i32_0 : i32, i32
  }
  func.func @transform_2(%arg0: i32) -> (i32, i32) {
    %c0_i32 = arith.constant 0 : i32
    %c0_i32_0 = arith.constant 0 : i32
    %c0_i32_1 = arith.constant 0 : i32
    return %c0_i32, %c0_i32_0 : i32, i32
  }
  func.func @transform_3(%arg0: i32) -> (i32, i32) {
    %c0_i32 = arith.constant 0 : i32
    %c0_i32_0 = arith.constant 0 : i32
    return %arg0, %c0_i32 : i32, i32
  }
}

</mosaic_0001>

<bundles_post_ra>
// kernel: cnn_forward.7
= control target key start
LH: loop header
LB: loop body
LE: loop exit
PB: predicated region body
PF: predicated region fallthrough
CT: control target
= control target key end

     0   :  { %9 = vsyncpa [#allocation3], 0  ;;  %s1470_s0 = inlined_call_operand.vmem [shape: bf16[1792,9], index: 0, kind: input, shape index: {}]   ;;  %s1471_s1 = inlined_call_operand.vmem [shape: bf16[9,8], index: 1, kind: input, shape index: {}]   ;;  %s1472_s2 = inlined_call_operand.hbm [shape: f32[1,8], index: 2, kind: input, shape index: {}]   ;;  %s1473_s3 = inlined_call_operand.hbm [shape: f32[1,8], index: 3, kind: input, shape index: {}]   ;;  %s1474_s4 = inlined_call_operand.vmem [shape: bf16[1792,8], index: 4, kind: output, shape index: {}]  }
   0x1   :  { %10 = vsyncpa [#allocation5], 0  ;;  %s1195_s15 = smov 0  }
   0x2 LB: > { %s881_s16 = sadd.s32 4294967295, %s1165_s15   ;;  %p883_p0 = scmp.ge.s32.totalorder %s1165_s15, 1  ;;  %s1165_s15 = sphi %s1195_s15, %s16_s15  }
   0x3   : > { %p136_p1 = scmp.lt.s32.totalorder %s1165_s15, 8  ;;  %p1205_p2 = scmp.eq.s32.totalorder %s881_s16, 0 }
   0x4   : > { %s1167_s19 = smov [#allocation2]   ;;  %s1168_s21 = smov [#allocation4]  }
   0x5   : > { %s1478_s17 = scalar_select %p1205_p2, 1, 0 }
   0x6   : > { %p1209_p3 = pnand %p883_p0, %p136_p1  ;;  %s152_s20 = sshll.u32 %s1167_s19, 4  ;;  %s153_s20 = int_to_ptr.vmem [resolvable:$true] %s152_s20 }
   0x7   : > { %s163_s22 = sshll.u32 %s1168_s21, 4  ;;  %s1095_s26 = scalar_lea.hbm %s1472_s2, 16  ;;  %s1221_s22 = int_to_ptr.vmem [resolvable:$true] %s163_s22 }
   0x8   : > { %s1479_s18 = scalar_select %p1209_p3, 1, 0 }
   0x9   : > { %p1056_p4 = pneg %p1209_p3  ;;  %p1096_p6 = scmp.ne.s32.totalorder %s1472_s2, %s1095_s26 }
   0xa   : > { %p1102_p10 = scmp.lt.u32.totalorder %s1095_s26, %s1472_s2 }
   0xb   : > { %p1217_p5 = pnand %p1205_p2, %p1056_p4 }
   0xd   : > { %p1097_p7 = pneg %p1217_p5 }
   0xf   : > { %p1098_p8 = pnand %p1097_p7, %p1096_p6 }
  0x11   : > { %p1099_p9 = pneg %p1098_p8 }
  0x13   : > { %p1104_p11 = pnand %p1102_p10, %p1099_p9 }
  0x15   : > { %1107 = shalt.err (!%p1104_p11)
}
  0x16   : > { %s1108_s5 = scalar_lea.vmem %s153_s20, 16  ;;  %s1115_s6 = scalar_lea.vmem %s153_s20, 32 }
  0x17   : > { %p1109_p12 = scmp.ne.s32.totalorder %s153_s20, %s1108_s5  ;;  %p1116_p1 = scmp.lt.s32.totalorder %s153_s20, %s153_s20 }
  0x18   : > { %p1117_p4 = scmp.lt.s32.totalorder %s1115_s6, %s1108_s5 }
  0x19   : > { %p1111_p13 = pnand %p1109_p12, %p1097_p7 }
  0x1a   : > { %p1118_p2 = por %p1117_p4, %p1116_p1 }
  0x1b   : > { %p1112_p0 = pneg %p1111_p13 }
  0x1d   : > { %p1119_p3 = pnand %p1118_p2, %p1112_p0 }
  0x1f   : > { %1122 = shalt.err (!%p1119_p3)
}
  0x20   : > { %1059 = dma.hbm_to_vmem [thread:$0]  (!%p1217_p5), %s1472_s2, 16, %s153_s20, [#allocation3]  }
  0x21   : > { %s1123_s11 = scalar_lea.hbm %s1473_s3, 16 }
  0x22   : > { %p1124_p6 = scmp.ne.s32.totalorder %s1473_s3, %s1123_s11  ;;  %p1130_p3 = scmp.lt.u32.totalorder %s1123_s11, %s1473_s3 }
  0x24   : > { %p1126_p8 = pnand %p1124_p6, %p1097_p7 }
  0x26   : > { %p1127_p2 = pneg %p1126_p8 }
  0x28   : > { %p1132_p9 = pnand %p1130_p3, %p1127_p2 }
  0x2a   : > { %1135 = shalt.err (!%p1132_p9)
}
  0x2b   : > { %s1136_s20 = scalar_lea.vmem %s1221_s22, 16  ;;  %s1143_s21 = scalar_lea.vmem %s1221_s22, 32 }
  0x2c   : > { %p1137_p10 = scmp.ne.s32.totalorder %s1221_s22, %s1136_s20  ;;  %p1144_p13 = scmp.lt.s32.totalorder %s1221_s22, %s1221_s22 }
  0x2d   : > { %p1145_p0 = scmp.lt.s32.totalorder %s1143_s21, %s1136_s20 }
  0x2e   : > { %p1139_p11 = pnand %p1137_p10, %p1097_p7 }
  0x2f   : > { %p1146_p1 = por %p1145_p0, %p1144_p13 }
  0x30   : > { %p1140_p12 = pneg %p1139_p11 }
  0x32   : > { %p1147_p4 = pnand %p1146_p1, %p1140_p12 }
  0x34   : > { %1150 = shalt.err (!%p1147_p4)
}
  0x35   : > { %1062 = dma.hbm_to_vmem [thread:$0]  (!%p1217_p5), %s1473_s3, 16, %s1221_s22, [#allocation5]  }
  0x36   : > { %p1481_p6 = scmp.ne.s32.totalorder %s1479_s18, 0 }
  0x37   : > { %p1482_p7 = scmp.ne.s32.totalorder (!%p1481_p6), %s1478_s17, 0 }
  0x38   : > { %185 = sbr.rel (%p1481_p6) target bundleno = 324 (0x144), region = 36 }
  0x3f   : > { %1156 = dma.done.wait (%p1482_p7), [#allocation3], 16  }
  0x40   : > { %1158 = vsyncadd (%p1482_p7), [#allocation3], 4294967280 }
  0x41   : > { %1160 = dma.done.wait (%p1482_p7), [#allocation5], 16  }
  0x42   : > { %1162 = vsyncadd (%p1482_p7), [#allocation5], 4294967280  ;;  %vm403_vm0 = vcmask 1043456   ;;  %s890_s23 = sshll.u32 %s881_s16, 5  ;;  %vm404_vm1 = vcmask 1044480   ;;  %v1169_v0 = vmov 65535  }
  0x43   : > { %p216_p5 = scmp.lt.s32.totalorder %s890_s23, 223  ;;  %v405_v1 = vsel %vm403_vm0, 4294967295, %v1169_v0  ;;  %vm354_vm2 = vcmask 72704   ;;  %v1078_v3 = vld [vmem:[%s1471_s1] sm:$0x1f]   ;;  %vm770_vm3 = vcmask 60416  }
  0x44   : > { %v406_v2 = vsel %vm404_vm1, %v405_v1, 0  ;;  %v1328_v21 = vld [vmem:[#allocation2] ss:$0 sm:$0xff]  ;;  %v1332_v28 = vld [vmem:[#allocation4] ss:$0 sm:$0xff] }
  0x45   : > { %s1484_s23 = smov (!%p216_p5, %s890_s23), 223  ;;  %v408_v5 = vand.u32 %v1078_v3, %v406_v2 }
  0x46   : > { %s891_s18 = sshll.u32 %s1484_s23, 2 }
  0x47   : > { %s1291_s17 = scalar_lea.vmem %s1470_s0, %s891_s18  ;;  %1012 = vmatprep.subr.bf16.mxu0 %v408_v5  ;;  %1046 = vmatprep.subr.bf16.mxu1 %v408_v5  ;;  %s1347_s30 = scalar_lea.vmem %s1474_s4, %s891_s18 }
  0x48   : > { %v1079_v4 = vld [vmem:[%s1291_s17] sm:$0xff]   ;;  %v1081_v7 = vld [vmem:[%s1291_s17 + $0x8] sm:$0xff]   ;;  %1013 = vmatpush3.bf16.msra.mxu0 %v408_v5  ;;  %1047 = vmatpush3.bf16.msra.mxu1 %v408_v5  ;;  %v1083_v9 = vld [vmem:[%s1291_s17 + $0x10] sm:$0xff]  }
  0x49   : > { %v1080_v6 = vld [vmem:[%s1291_s17 + $0x40] sm:$0xff]   ;;  %1014 = vmatprep.mubr.msk.bf16.mxu0 %vm354_vm2, %v1079_v4  ;;  %v1082_v8 = vld [vmem:[%s1291_s17 + $0x48] sm:$0xff]   ;;  %v1084_v10 = vld [vmem:[%s1291_s17 + $0x50] sm:$0xff]  }
  0x4a   : > { %1030 = vmatprep.mubr.msk.bf16.mxu1 %vm354_vm2, %v1080_v6  ;;  %v1085_v11 = vld [vmem:[%s1291_s17 + $0x18] sm:$0xff]   ;;  %v1087_v13 = vld [vmem:[%s1291_s17 + $0x20] sm:$0xff]   ;;  %v1089_v15 = vld [vmem:[%s1291_s17 + $0x28] sm:$0xff]  }
  0x4b   : > { %1015 = vmatmul.mubr.msk.bf16.vlgmr.msra.gmra.mrb[0].mxu0 %vm354_vm2, %v1081_v7  ;;  %1031 = vmatmul.mubr.msk.bf16.vlgmr.msra.gmra.mrb[0].mxu1 %vm354_vm2, %v1082_v8  ;;  %v1086_v12 = vld [vmem:[%s1291_s17 + $0x58] sm:$0xff]   ;;  %v1088_v14 = vld [vmem:[%s1291_s17 + $0x60] sm:$0xff]   ;;  %v1090_v16 = vld [vmem:[%s1291_s17 + $0x68] sm:$0xff]  }
  0x4c   : > { %1018 = vmatprep.mubr.msk.bf16.mxu0 %vm354_vm2, %v1083_v9  ;;  %1034 = vmatprep.mubr.msk.bf16.mxu1 %vm354_vm2, %v1084_v10  ;;  %v1091_v17 = vld [vmem:[%s1291_s17 + $0x30] sm:$0xff]   ;;  %v1093_v19 = vld [vmem:[%s1291_s17 + $0x38] sm:$0xff]  }
  0x4d   : > { %v1092_v18 = vld [vmem:[%s1291_s17 + $0x70] sm:$0xff]   ;;  %v1094_v20 = vld [vmem:[%s1291_s17 + $0x78] sm:$0xff]  }
  0x53   : > { %1019 = vmatmul.mubr.msk.bf16.gmra.mrb[4].mxu0 %vm354_vm2, %v1085_v11  ;;  %1035 = vmatmul.mubr.msk.bf16.gmra.mrb[4].mxu1 %vm354_vm2, %v1086_v12 }
  0x54   : > { %1022 = vmatprep.mubr.msk.bf16.mxu0 %vm354_vm2, %v1087_v13  ;;  %1038 = vmatprep.mubr.msk.bf16.mxu1 %vm354_vm2, %v1088_v14 }
  0x5b   : > { %1023 = vmatmul.mubr.msk.bf16.gmra.mrb[8].mxu0 %vm354_vm2, %v1089_v15  ;;  %1039 = vmatmul.mubr.msk.bf16.gmra.mrb[8].mxu1 %vm354_vm2, %v1090_v16 }
  0x5c   : > { %1026 = vmatprep.mubr.msk.bf16.mxu0 %vm354_vm2, %v1091_v17  ;;  %1042 = vmatprep.mubr.msk.bf16.mxu1 %vm354_vm2, %v1092_v18 }
  0x63   : > { %1027 = vmatmul.mubr.msk.bf16.gmra.mrb[12].mxu0 %vm354_vm2, %v1093_v19  ;;  %1043 = vmatmul.mubr.msk.bf16.gmra.mrb[12].mxu1 %vm354_vm2, %v1094_v20 }
 0x11e   : > { %v1016_v22 = vpop.f32.mrb[0].mxu0  ;;  %v1032_v23 = vpop.f32.mrb[0].mxu1 }
 0x11f   : > { %v453_v24 = vadd.f32 %v1016_v22, %v1328_v21  ;;  %v517_v25 = vadd.f32 %v1032_v23, %v1328_v21  ;;  %v444_v26 = vpop.f32.mrb[1].mxu0  ;;  %v508_v27 = vpop.f32.mrb[1].mxu1 }
 0x120   : > { %v445_v29 = vadd.f32 %v1328_v21, %v444_v26  ;;  %v509_v30 = vadd.f32 %v1328_v21, %v508_v27  ;;  %v1017_v31 = vpop.f32.mrb[2].mxu0  ;;  %v1033_v32 = vpop.f32.mrb[2].mxu1 }
 0x121   : > { %v573_v33 = vmax.f32 %v453_v24, 0.0  ;;  %v589_v34 = vmax.f32 %v517_v25, 0.0  ;;  %v456_v35 = vadd.f32 %v1017_v31, %v1328_v21  ;;  %v520_v36 = vadd.f32 %v1033_v32, %v1328_v21  ;;  %v447_v37 = vpop.f32.mrb[3].mxu0  ;;  %v511_v38 = vpop.f32.mrb[3].mxu1 }
 0x122   : > { %v571_v39 = vmax.f32 %v445_v29, 0.0  ;;  %v587_v40 = vmax.f32 %v509_v30, 0.0  ;;  %v448_v41 = vadd.f32 %v1328_v21, %v447_v37  ;;  %v512_v42 = vadd.f32 %v1328_v21, %v511_v38 }
 0x123   : > { %v612_v43 = vadd.f32 %v1332_v28, %v573_v33  ;;  %v628_v44 = vadd.f32 %v1332_v28, %v589_v34  ;;  %v574_v45 = vmax.f32 %v456_v35, 0.0  ;;  %v590_v46 = vmax.f32 %v520_v36, 0.0 }
 0x124   : > { %v610_v47 = vadd.f32 %v1332_v28, %v571_v39  ;;  %v626_v48 = vadd.f32 %v1332_v28, %v587_v40  ;;  %v572_v49 = vmax.f32 %v448_v41, 0.0  ;;  %v588_v50 = vmax.f32 %v512_v42, 0.0 }
 0x125   : > { %v965_v51 = vpack.c.bf16 %v612_v43, %v612_v43  ;;  %v981_v52 = vpack.c.bf16 %v628_v44, %v628_v44  ;;  %v613_v53 = vadd.f32 %v1332_v28, %v574_v45  ;;  %v629_v54 = vadd.f32 %v1332_v28, %v590_v46 }
 0x126   : > { %v963_v55 = vpack.c.bf16 %v610_v47, %v610_v47  ;;  %v979_v56 = vpack.c.bf16 %v626_v48, %v626_v48  ;;  %v611_v57 = vadd.f32 %v1332_v28, %v572_v49  ;;  %v627_v58 = vadd.f32 %v1332_v28, %v588_v50  ;;  %v1020_v59 = vpop.f32.mrb[4].mxu0  ;;  %v1036_v60 = vpop.f32.mrb[4].mxu1 }
 0x127   : > { %773 = vst.msk [vmem:[%s1347_s30 + $0x8] sm:$0xf] %vm770_vm3, %v965_v51  ;;  %789 = vst.msk [vmem:[%s1347_s30 + $0x48] sm:$0xf] %vm770_vm3, %v981_v52  ;;  %v966_v61 = vpack.c.bf16 %v613_v53, %v613_v53  ;;  %v982_v62 = vpack.c.bf16 %v629_v54, %v629_v54  ;;  %v469_v63 = vadd.f32 %v1020_v59, %v1328_v21  ;;  %v460_v1 = vpop.f32.mrb[5].mxu0  ;;  %v524_v2 = vpop.f32.mrb[5].mxu1 }
 0x128   : > { %v533_v0 = vadd.f32 %v1036_v60, %v1328_v21  ;;  %771 = vst.msk [vmem:[%s1347_s30] sm:$0xf] %vm770_vm3, %v963_v55  ;;  %787 = vst.msk [vmem:[%s1347_s30 + $0x40] sm:$0xf] %vm770_vm3, %v979_v56  ;;  %v964_v3 = vpack.c.bf16 %v611_v57, %v611_v57  ;;  %v980_v4 = vpack.c.bf16 %v627_v58, %v627_v58  ;;  %v1021_v7 = vpop.f32.mrb[6].mxu0  ;;  %v1037_v8 = vpop.f32.mrb[6].mxu1 }
 0x129   : > { %v461_v5 = vadd.f32 %v1328_v21, %v460_v1  ;;  %v525_v6 = vadd.f32 %v1328_v21, %v524_v2  ;;  %774 = vst.msk [vmem:[%s1347_s30 + $0xc] sm:$0xf] %vm770_vm3, %v966_v61  ;;  %790 = vst.msk [vmem:[%s1347_s30 + $0x4c] sm:$0xf] %vm770_vm3, %v982_v62  ;;  %v577_v9 = vmax.f32 %v469_v63, 0.0  ;;  %v472_v11 = vadd.f32 %v1021_v7, %v1328_v21  ;;  %v463_v13 = vpop.f32.mrb[7].mxu0 }
 0x12a   : > { %v593_v10 = vmax.f32 %v533_v0, 0.0  ;;  %v536_v12 = vadd.f32 %v1037_v8, %v1328_v21  ;;  %v527_v14 = vpop.f32.mrb[7].mxu1  ;;  %772 = vst.msk [vmem:[%s1347_s30 + $0x4] sm:$0xf] %vm770_vm3, %v964_v3  ;;  %788 = vst.msk [vmem:[%s1347_s30 + $0x44] sm:$0xf] %vm770_vm3, %v980_v4  ;;  %v464_v17 = vadd.f32 %v1328_v21, %v463_v13 }
 0x12b   : > { %v575_v15 = vmax.f32 %v461_v5, 0.0  ;;  %v591_v16 = vmax.f32 %v525_v6, 0.0  ;;  %v528_v18 = vadd.f32 %v1328_v21, %v527_v14  ;;  %v616_v19 = vadd.f32 %v1332_v28, %v577_v9 }
 0x12c   : > { %v632_v20 = vadd.f32 %v1332_v28, %v593_v10  ;;  %v578_v22 = vmax.f32 %v472_v11, 0.0  ;;  %v594_v23 = vmax.f32 %v536_v12, 0.0  ;;  %v576_v26 = vmax.f32 %v464_v17, 0.0 }
 0x12d   : > { %v614_v24 = vadd.f32 %v1332_v28, %v575_v15  ;;  %v630_v25 = vadd.f32 %v1332_v28, %v591_v16  ;;  %v592_v27 = vmax.f32 %v528_v18, 0.0  ;;  %v969_v29 = vpack.c.bf16 %v616_v19, %v616_v19 }
 0x12e   : > { %v985_v30 = vpack.c.bf16 %v632_v20, %v632_v20  ;;  %v617_v31 = vadd.f32 %v1332_v28, %v578_v22  ;;  %v633_v32 = vadd.f32 %v1332_v28, %v594_v23  ;;  %v615_v35 = vadd.f32 %v1332_v28, %v576_v26  ;;  %v1024_v37 = vpop.f32.mrb[8].mxu0  ;;  %v1040_v38 = vpop.f32.mrb[8].mxu1 }
 0x12f   : > { %v967_v33 = vpack.c.bf16 %v614_v24, %v614_v24  ;;  %v983_v34 = vpack.c.bf16 %v630_v25, %v630_v25  ;;  %v631_v36 = vadd.f32 %v1332_v28, %v592_v27  ;;  %777 = vst.msk [vmem:[%s1347_s30 + $0x18] sm:$0xf] %vm770_vm3, %v969_v29  ;;  %v485_v41 = vadd.f32 %v1024_v37, %v1328_v21  ;;  %v476_v43 = vpop.f32.mrb[9].mxu0  ;;  %v540_v44 = vpop.f32.mrb[9].mxu1 }
 0x130   : > { %793 = vst.msk [vmem:[%s1347_s30 + $0x58] sm:$0xf] %vm770_vm3, %v985_v30  ;;  %v970_v39 = vpack.c.bf16 %v617_v31, %v617_v31  ;;  %v986_v40 = vpack.c.bf16 %v633_v32, %v633_v32  ;;  %v549_v42 = vadd.f32 %v1040_v38, %v1328_v21  ;;  %v968_v45 = vpack.c.bf16 %v615_v35, %v615_v35  ;;  %v1025_v49 = vpop.f32.mrb[10].mxu0  ;;  %v1041_v50 = vpop.f32.mrb[10].mxu1 }
 0x131   : > { %775 = vst.msk [vmem:[%s1347_s30 + $0x10] sm:$0xf] %vm770_vm3, %v967_v33  ;;  %791 = vst.msk [vmem:[%s1347_s30 + $0x50] sm:$0xf] %vm770_vm3, %v983_v34  ;;  %v984_v46 = vpack.c.bf16 %v631_v36, %v631_v36  ;;  %v477_v47 = vadd.f32 %v1328_v21, %v476_v43  ;;  %v541_v48 = vadd.f32 %v1328_v21, %v540_v44  ;;  %v581_v51 = vmax.f32 %v485_v41, 0.0  ;;  %v479_v55 = vpop.f32.mrb[11].mxu0 }
 0x132   : > { %778 = vst.msk [vmem:[%s1347_s30 + $0x1c] sm:$0xf] %vm770_vm3, %v970_v39  ;;  %794 = vst.msk [vmem:[%s1347_s30 + $0x5c] sm:$0xf] %vm770_vm3, %v986_v40  ;;  %v597_v52 = vmax.f32 %v549_v42, 0.0  ;;  %v488_v53 = vadd.f32 %v1025_v49, %v1328_v21  ;;  %v552_v54 = vadd.f32 %v1041_v50, %v1328_v21  ;;  %v543_v56 = vpop.f32.mrb[11].mxu1  ;;  %v480_v59 = vadd.f32 %v1328_v21, %v479_v55 }
 0x133   : > { %776 = vst.msk [vmem:[%s1347_s30 + $0x14] sm:$0xf] %vm770_vm3, %v968_v45  ;;  %792 = vst.msk [vmem:[%s1347_s30 + $0x54] sm:$0xf] %vm770_vm3, %v984_v46  ;;  %v579_v57 = vmax.f32 %v477_v47, 0.0  ;;  %v595_v58 = vmax.f32 %v541_v48, 0.0  ;;  %v544_v60 = vadd.f32 %v1328_v21, %v543_v56  ;;  %v620_v61 = vadd.f32 %v1332_v28, %v581_v51 }
 0x134   : > { %v636_v62 = vadd.f32 %v1332_v28, %v597_v52  ;;  %v582_v63 = vmax.f32 %v488_v53, 0.0  ;;  %v598_v0 = vmax.f32 %v552_v54, 0.0  ;;  %v580_v3 = vmax.f32 %v480_v59, 0.0 }
 0x135   : > { %v618_v1 = vadd.f32 %v1332_v28, %v579_v57  ;;  %v634_v2 = vadd.f32 %v1332_v28, %v595_v58  ;;  %v596_v4 = vmax.f32 %v544_v60, 0.0  ;;  %v973_v5 = vpack.c.bf16 %v620_v61, %v620_v61 }
 0x136   : > { %v989_v6 = vpack.c.bf16 %v636_v62, %v636_v62  ;;  %v621_v7 = vadd.f32 %v1332_v28, %v582_v63  ;;  %v637_v8 = vadd.f32 %v1332_v28, %v598_v0  ;;  %v619_v11 = vadd.f32 %v1332_v28, %v580_v3  ;;  %v1028_v13 = vpop.f32.mrb[12].mxu0  ;;  %v1044_v14 = vpop.f32.mrb[12].mxu1 }
 0x137   : > { %v971_v9 = vpack.c.bf16 %v618_v1, %v618_v1  ;;  %v987_v10 = vpack.c.bf16 %v634_v2, %v634_v2  ;;  %v635_v12 = vadd.f32 %v1332_v28, %v596_v4  ;;  %781 = vst.msk [vmem:[%s1347_s30 + $0x28] sm:$0xf] %vm770_vm3, %v973_v5  ;;  %v501_v17 = vadd.f32 %v1028_v13, %v1328_v21  ;;  %v492_v19 = vpop.f32.mrb[13].mxu0  ;;  %v556_v20 = vpop.f32.mrb[13].mxu1 }
 0x138   : > { %797 = vst.msk [vmem:[%s1347_s30 + $0x68] sm:$0xf] %vm770_vm3, %v989_v6  ;;  %v974_v15 = vpack.c.bf16 %v621_v7, %v621_v7  ;;  %v990_v16 = vpack.c.bf16 %v637_v8, %v637_v8  ;;  %v565_v18 = vadd.f32 %v1044_v14, %v1328_v21  ;;  %v972_v22 = vpack.c.bf16 %v619_v11, %v619_v11  ;;  %v1029_v26 = vpop.f32.mrb[14].mxu0  ;;  %v1045_v27 = vpop.f32.mrb[14].mxu1 }
 0x139   : > { %779 = vst.msk [vmem:[%s1347_s30 + $0x20] sm:$0xf] %vm770_vm3, %v971_v9  ;;  %795 = vst.msk [vmem:[%s1347_s30 + $0x60] sm:$0xf] %vm770_vm3, %v987_v10  ;;  %v988_v23 = vpack.c.bf16 %v635_v12, %v635_v12  ;;  %v493_v24 = vadd.f32 %v1328_v21, %v492_v19  ;;  %v557_v25 = vadd.f32 %v1328_v21, %v556_v20  ;;  %v585_v29 = vmax.f32 %v501_v17, 0.0  ;;  %v495_v33 = vpop.f32.mrb[15].mxu0 }
 0x13a   : > { %782 = vst.msk [vmem:[%s1347_s30 + $0x2c] sm:$0xf] %vm770_vm3, %v974_v15  ;;  %798 = vst.msk [vmem:[%s1347_s30 + $0x6c] sm:$0xf] %vm770_vm3, %v990_v16  ;;  %v601_v30 = vmax.f32 %v565_v18, 0.0  ;;  %v504_v31 = vadd.f32 %v1029_v26, %v1328_v21  ;;  %v568_v32 = vadd.f32 %v1045_v27, %v1328_v21  ;;  %v559_v34 = vpop.f32.mrb[15].mxu1  ;;  %v496_v37 = vadd.f32 %v1328_v21, %v495_v33 }
 0x13b   : > { %780 = vst.msk [vmem:[%s1347_s30 + $0x24] sm:$0xf] %vm770_vm3, %v972_v22  ;;  %796 = vst.msk [vmem:[%s1347_s30 + $0x64] sm:$0xf] %vm770_vm3, %v988_v23  ;;  %v583_v35 = vmax.f32 %v493_v24, 0.0  ;;  %v599_v36 = vmax.f32 %v557_v25, 0.0  ;;  %v560_v38 = vadd.f32 %v1328_v21, %v559_v34  ;;  %v624_v39 = vadd.f32 %v1332_v28, %v585_v29 }
 0x13c   : > { %v640_v40 = vadd.f32 %v1332_v28, %v601_v30  ;;  %v586_v41 = vmax.f32 %v504_v31, 0.0  ;;  %v602_v42 = vmax.f32 %v568_v32, 0.0  ;;  %v584_v45 = vmax.f32 %v496_v37, 0.0 }
 0x13d   : > { %v622_v43 = vadd.f32 %v1332_v28, %v583_v35  ;;  %v638_v44 = vadd.f32 %v1332_v28, %v599_v36  ;;  %v600_v46 = vmax.f32 %v560_v38, 0.0  ;;  %v977_v47 = vpack.c.bf16 %v624_v39, %v624_v39 }
 0x13e   : > { %v993_v48 = vpack.c.bf16 %v640_v40, %v640_v40  ;;  %v625_v21 = vadd.f32 %v1332_v28, %v586_v41  ;;  %v641_v49 = vadd.f32 %v1332_v28, %v602_v42  ;;  %v623_v52 = vadd.f32 %v1332_v28, %v584_v45 }
 0x13f   : > { %v975_v50 = vpack.c.bf16 %v622_v43, %v622_v43  ;;  %v991_v51 = vpack.c.bf16 %v638_v44, %v638_v44  ;;  %v639_v53 = vadd.f32 %v1332_v28, %v600_v46  ;;  %785 = vst.msk [vmem:[%s1347_s30 + $0x38] sm:$0xf] %vm770_vm3, %v977_v47 }
 0x140   : > { %801 = vst.msk [vmem:[%s1347_s30 + $0x78] sm:$0xf] %vm770_vm3, %v993_v48  ;;  %v978_v54 = vpack.c.bf16 %v625_v21, %v625_v21  ;;  %v994_v55 = vpack.c.bf16 %v641_v49, %v641_v49  ;;  %v976_v56 = vpack.c.bf16 %v623_v52, %v623_v52 }
 0x141   : > { %783 = vst.msk [vmem:[%s1347_s30 + $0x30] sm:$0xf] %vm770_vm3, %v975_v50  ;;  %799 = vst.msk [vmem:[%s1347_s30 + $0x70] sm:$0xf] %vm770_vm3, %v991_v51  ;;  %v992_v57 = vpack.c.bf16 %v639_v53, %v639_v53 }
 0x142   : > { %786 = vst.msk [vmem:[%s1347_s30 + $0x3c] sm:$0xf] %vm770_vm3, %v978_v54  ;;  %802 = vst.msk [vmem:[%s1347_s30 + $0x7c] sm:$0xf] %vm770_vm3, %v994_v55 }
 0x143   : > { %784 = vst.msk [vmem:[%s1347_s30 + $0x34] sm:$0xf] %vm770_vm3, %v976_v56  ;;  %800 = vst.msk [vmem:[%s1347_s30 + $0x74] sm:$0xf] %vm770_vm3, %v992_v57 }
 0x144 PF: > { %s16_s15 = sadd.s32 1, %s1165_s15  }
 0x145   : > { %p13_p8 = scmp.ge.s32.totalorder %s16_s15, 9  }
 0x147   :  { %15 = sbr.rel (!%p13_p8) target bundleno = 2 (0x2), region = 75 }
 0x14e   :  { %825 = vsyncpa [#allocation3], 1 }
 0x14f   :  { %827 = vsyncpa [#allocation3 + $0x1], 1 }
 0x150   :  { %828 = vsyncpa [#allocation5], 1 }

// kernel: cnn_forward.8
= control target key start
LH: loop header
LB: loop body
LE: loop exit
PB: predicated region body
PF: predicated region fallthrough
CT: control target
= control target key end

     0   :  { %s1110_s15 = smov 0   ;;  %s1323_s0 = inlined_call_operand.vmem [shape: bf16[1792,72], index: 0, kind: input, shape index: {}]   ;;  %s1324_s1 = inlined_call_operand.vmem [shape: bf16[72,16], index: 1, kind: input, shape index: {}]   ;;  %s1325_s2 = inlined_call_operand.vmem [shape: f32[1,16], index: 2, kind: input, shape index: {}]   ;;  %s1326_s3 = inlined_call_operand.vmem [shape: f32[1,16], index: 3, kind: input, shape index: {}]   ;;  %s1327_s4 = inlined_call_operand.vmem [shape: bf16[1792,16], index: 4, kind: output, shape index: {}]  }
   0x1 LB: > { %s859_s16 = sadd.s32 4294967295, %s1083_s15   ;;  %p863_p0 = scmp.ge.s32.totalorder %s1083_s15, 1  ;;  %s1083_s15 = sphi %s1110_s15, %s14_s15  }
   0x2   : > { %p163_p1 = scmp.lt.s32.totalorder %s1083_s15, 8 }
   0x4   : > { %p164_p2 = pnand %p863_p0, %p163_p1 }
   0x5   : > { %v1056_v0 = vld [vmem:[%s1324_s1] sm:$0xff] (!%p164_p2)   ;;  %v1057_v1 = vld [vmem:[%s1324_s1 + $0x8] sm:$0xff] (!%p164_p2)   ;;  %s864_s21 = sshll.u32 (!%p164_p2), %s859_s16, 5  ;;  %v1058_v2 = vld [vmem:[%s1324_s1 + $0x10] sm:$0xff] (!%p164_p2)   ;;  %vm357_vm0 = vcmask (!%p164_p2), 588800   ;;  %vm406_vm1 = vcmask (!%p164_p2), 1043456  }
   0x6   : > { %167 = sbr.rel (%p164_p2) target bundleno = 275 (0x113), region = 36  ;;  %994 = vmatprep.subr.bf16.mxu0 (!%p164_p2), %v1056_v0  ;;  %1036 = vmatprep.subr.bf16.mxu1 (!%p164_p2), %v1056_v0  ;;  %p190_p3 = scmp.lt.s32.totalorder (!%p164_p2), %s864_s21, 223  ;;  %v1059_v3 = vld [vmem:[%s1324_s1 + $0x18] sm:$0xff] (!%p164_p2)   ;;  %v1060_v6 = vld [vmem:[%s1324_s1 + $0x20] ss:$0 sps:$4 sm:$0xff] (!%p164_p2)   ;;  %vm770_vm2 = vcmask (!%p164_p2), 125952  }
   0x7   : > { %995 = vmatpush3.bf16.msra.mxu0 (!%p164_p2), %v1056_v0  ;;  %1041 = vmatpush3.bf16.msra.mxu1 (!%p164_p2), %v1056_v0  ;;  %v408_v7 = vsel (!%p164_p2), %vm406_vm1, %v1060_v6, 0  ;;  %v1178_v22 = vld [vmem:[%s1325_s2] ss:$0 sm:$0xff] (!%p164_p2) }
   0x8   : > { %996 = vmatprep.subr.bf16.mxu0 (!%p164_p2), %v1057_v1  ;;  %1037 = vmatprep.subr.bf16.mxu1 (!%p164_p2), %v1057_v1  ;;  %v1185_v29 = vld [vmem:[%s1326_s3] ss:$0 sm:$0xff] (!%p164_p2) }
   0xb   : > { %997 = vmatpush3.bf16.msra.mxu0 (!%p164_p2), %v1057_v1  ;;  %1042 = vmatpush3.bf16.msra.mxu1 (!%p164_p2), %v1057_v1 }
   0xc   : > { %998 = vmatprep.subr.bf16.mxu0 (!%p164_p2), %v1058_v2  ;;  %1038 = vmatprep.subr.bf16.mxu1 (!%p164_p2), %v1058_v2 }
   0xd   : > { %s1329_s21 = smov (!%p190_p3, %s864_s21), 223 }
   0xe   : > { %s865_s24 = sshll.u32 %s1329_s21, 2 }
   0xf   : > { %s1138_s29 = scalar_lea.vmem %s1323_s0, %s865_s24  ;;  %999 = vmatpush3.bf16.msra.mxu0 %v1058_v2  ;;  %1043 = vmatpush3.bf16.msra.mxu1 %v1058_v2  ;;  %s1200_s12 = scalar_lea.vmem %s1327_s4, %s865_s24 }
  0x10   : > { %v1061_v4 = vld [vmem:[%s1138_s29] sm:$0xff]   ;;  %1000 = vmatprep.subr.bf16.mxu0 %v1059_v3  ;;  %1039 = vmatprep.subr.bf16.mxu1 %v1059_v3  ;;  %v1063_v8 = vld [vmem:[%s1138_s29 + $0x8] sm:$0xff]   ;;  %v1065_v10 = vld [vmem:[%s1138_s29 + $0x10] sm:$0xff]  }
  0x11   : > { %v1062_v5 = vld [vmem:[%s1138_s29 + $0x40] sm:$0xff]   ;;  %1004 = vmatprep.mubr.msk.bf16.mxu0 %vm357_vm0, %v1061_v4  ;;  %v1064_v9 = vld [vmem:[%s1138_s29 + $0x48] sm:$0xff]   ;;  %v1066_v11 = vld [vmem:[%s1138_s29 + $0x50] sm:$0xff]  }
  0x12   : > { %1020 = vmatprep.mubr.msk.bf16.mxu1 %vm357_vm0, %v1062_v5  ;;  %v1067_v12 = vld [vmem:[%s1138_s29 + $0x18] sm:$0xff]   ;;  %v1069_v14 = vld [vmem:[%s1138_s29 + $0x20] sm:$0xff]   ;;  %v1071_v16 = vld [vmem:[%s1138_s29 + $0x28] sm:$0xff]  }
  0x13   : > { %1001 = vmatpush3.bf16.msra.mxu0 %v1059_v3  ;;  %1044 = vmatpush3.bf16.msra.mxu1 %v1059_v3  ;;  %v1068_v13 = vld [vmem:[%s1138_s29 + $0x58] sm:$0xff]   ;;  %v1070_v15 = vld [vmem:[%s1138_s29 + $0x60] sm:$0xff]   ;;  %v1072_v17 = vld [vmem:[%s1138_s29 + $0x68] sm:$0xff]  }
  0x14   : > { %1046 = vmatprep.subr.msk.bf16.mxu0 %vm406_vm1, %v1060_v6  ;;  %1047 = vmatprep.subr.msk.bf16.mxu1 %vm406_vm1, %v1060_v6  ;;  %v1073_v18 = vld [vmem:[%s1138_s29 + $0x30] sm:$0xff]   ;;  %v1075_v20 = vld [vmem:[%s1138_s29 + $0x38] sm:$0xff]  }
  0x15   : > { %v1074_v19 = vld [vmem:[%s1138_s29 + $0x70] sm:$0xff]   ;;  %v1076_v21 = vld [vmem:[%s1138_s29 + $0x78] sm:$0xff]  }
  0x17   : > { %1003 = vmatpush3.bf16.msra.mxu0 %v408_v7  ;;  %1045 = vmatpush3.bf16.msra.mxu1 %v408_v7 }
  0x1a   : > { %1005 = vmatmul.mubr.msk.bf16.vlgmr.msra.gmra.mrb[0].mxu0 %vm357_vm0, %v1063_v8  ;;  %1021 = vmatmul.mubr.msk.bf16.vlgmr.msra.gmra.mrb[0].mxu1 %vm357_vm0, %v1064_v9 }
  0x1b   : > { %1008 = vmatprep.mubr.msk.bf16.mxu0 %vm357_vm0, %v1065_v10  ;;  %1024 = vmatprep.mubr.msk.bf16.mxu1 %vm357_vm0, %v1066_v11 }
  0x22   : > { %1009 = vmatmul.mubr.msk.bf16.gmra.mrb[4].mxu0 %vm357_vm0, %v1067_v12  ;;  %1025 = vmatmul.mubr.msk.bf16.gmra.mrb[4].mxu1 %vm357_vm0, %v1068_v13 }
  0x23   : > { %1012 = vmatprep.mubr.msk.bf16.mxu0 %vm357_vm0, %v1069_v14  ;;  %1028 = vmatprep.mubr.msk.bf16.mxu1 %vm357_vm0, %v1070_v15 }
  0x2a   : > { %1013 = vmatmul.mubr.msk.bf16.gmra.mrb[8].mxu0 %vm357_vm0, %v1071_v16  ;;  %1029 = vmatmul.mubr.msk.bf16.gmra.mrb[8].mxu1 %vm357_vm0, %v1072_v17 }
  0x2b   : > { %1016 = vmatprep.mubr.msk.bf16.mxu0 %vm357_vm0, %v1073_v18  ;;  %1032 = vmatprep.mubr.msk.bf16.mxu1 %vm357_vm0, %v1074_v19 }
  0x32   : > { %1017 = vmatmul.mubr.msk.bf16.gmra.mrb[12].mxu0 %vm357_vm0, %v1075_v20  ;;  %1033 = vmatmul.mubr.msk.bf16.gmra.mrb[12].mxu1 %vm357_vm0, %v1076_v21 }
  0xed   : > { %v1006_v23 = vpop.f32.mrb[0].mxu0  ;;  %v1022_v24 = vpop.f32.mrb[0].mxu1 }
  0xee   : > { %v453_v25 = vadd.f32 %v1006_v23, %v1178_v22  ;;  %v517_v26 = vadd.f32 %v1022_v24, %v1178_v22  ;;  %v444_v27 = vpop.f32.mrb[1].mxu0  ;;  %v508_v28 = vpop.f32.mrb[1].mxu1 }
  0xef   : > { %v445_v30 = vadd.f32 %v1178_v22, %v444_v27  ;;  %v509_v31 = vadd.f32 %v1178_v22, %v508_v28  ;;  %v1007_v32 = vpop.f32.mrb[2].mxu0  ;;  %v1023_v33 = vpop.f32.mrb[2].mxu1 }
  0xf0   : > { %v573_v34 = vmax.f32 %v453_v25, 0.0  ;;  %v589_v35 = vmax.f32 %v517_v26, 0.0  ;;  %v456_v36 = vadd.f32 %v1007_v32, %v1178_v22  ;;  %v520_v37 = vadd.f32 %v1023_v33, %v1178_v22  ;;  %v447_v38 = vpop.f32.mrb[3].mxu0  ;;  %v511_v39 = vpop.f32.mrb[3].mxu1 }
  0xf1   : > { %v571_v40 = vmax.f32 %v445_v30, 0.0  ;;  %v587_v41 = vmax.f32 %v509_v31, 0.0  ;;  %v448_v42 = vadd.f32 %v1178_v22, %v447_v38  ;;  %v512_v43 = vadd.f32 %v1178_v22, %v511_v39 }
  0xf2   : > { %v612_v44 = vadd.f32 %v1185_v29, %v573_v34  ;;  %v628_v45 = vadd.f32 %v1185_v29, %v589_v35  ;;  %v574_v46 = vmax.f32 %v456_v36, 0.0  ;;  %v590_v47 = vmax.f32 %v520_v37, 0.0 }
  0xf3   : > { %v610_v48 = vadd.f32 %v1185_v29, %v571_v40  ;;  %v626_v49 = vadd.f32 %v1185_v29, %v587_v41  ;;  %v572_v50 = vmax.f32 %v448_v42, 0.0  ;;  %v588_v51 = vmax.f32 %v512_v43, 0.0 }
  0xf4   : > { %v943_v52 = vpack.c.bf16 %v612_v44, %v612_v44  ;;  %v959_v53 = vpack.c.bf16 %v628_v45, %v628_v45  ;;  %v613_v54 = vadd.f32 %v1185_v29, %v574_v46  ;;  %v629_v55 = vadd.f32 %v1185_v29, %v590_v47 }
  0xf5   : > { %v941_v56 = vpack.c.bf16 %v610_v48, %v610_v48  ;;  %v957_v57 = vpack.c.bf16 %v626_v49, %v626_v49  ;;  %v611_v58 = vadd.f32 %v1185_v29, %v572_v50  ;;  %v627_v59 = vadd.f32 %v1185_v29, %v588_v51  ;;  %v1010_v60 = vpop.f32.mrb[4].mxu0  ;;  %v1026_v61 = vpop.f32.mrb[4].mxu1 }
  0xf6   : > { %773 = vst.msk [vmem:[%s1200_s12 + $0x8] sm:$0xf] %vm770_vm2, %v943_v52  ;;  %789 = vst.msk [vmem:[%s1200_s12 + $0x48] sm:$0xf] %vm770_vm2, %v959_v53  ;;  %v944_v62 = vpack.c.bf16 %v613_v54, %v613_v54  ;;  %v960_v63 = vpack.c.bf16 %v629_v55, %v629_v55  ;;  %v469_v0 = vadd.f32 %v1010_v60, %v1178_v22  ;;  %v460_v2 = vpop.f32.mrb[5].mxu0  ;;  %v524_v3 = vpop.f32.mrb[5].mxu1 }
  0xf7   : > { %v533_v1 = vadd.f32 %v1026_v61, %v1178_v22  ;;  %771 = vst.msk [vmem:[%s1200_s12] sm:$0xf] %vm770_vm2, %v941_v56  ;;  %787 = vst.msk [vmem:[%s1200_s12 + $0x40] sm:$0xf] %vm770_vm2, %v957_v57  ;;  %v942_v4 = vpack.c.bf16 %v611_v58, %v611_v58  ;;  %v958_v5 = vpack.c.bf16 %v627_v59, %v627_v59  ;;  %v1011_v8 = vpop.f32.mrb[6].mxu0  ;;  %v1027_v9 = vpop.f32.mrb[6].mxu1 }
  0xf8   : > { %v461_v6 = vadd.f32 %v1178_v22, %v460_v2  ;;  %v525_v7 = vadd.f32 %v1178_v22, %v524_v3  ;;  %774 = vst.msk [vmem:[%s1200_s12 + $0xc] sm:$0xf] %vm770_vm2, %v944_v62  ;;  %790 = vst.msk [vmem:[%s1200_s12 + $0x4c] sm:$0xf] %vm770_vm2, %v960_v63  ;;  %v577_v10 = vmax.f32 %v469_v0, 0.0  ;;  %v472_v12 = vadd.f32 %v1011_v8, %v1178_v22  ;;  %v463_v14 = vpop.f32.mrb[7].mxu0 }
  0xf9   : > { %v593_v11 = vmax.f32 %v533_v1, 0.0  ;;  %v536_v13 = vadd.f32 %v1027_v9, %v1178_v22  ;;  %v527_v15 = vpop.f32.mrb[7].mxu1  ;;  %772 = vst.msk [vmem:[%s1200_s12 + $0x4] sm:$0xf] %vm770_vm2, %v942_v4  ;;  %788 = vst.msk [vmem:[%s1200_s12 + $0x44] sm:$0xf] %vm770_vm2, %v958_v5  ;;  %v464_v18 = vadd.f32 %v1178_v22, %v463_v14 }
  0xfa   : > { %v575_v16 = vmax.f32 %v461_v6, 0.0  ;;  %v591_v17 = vmax.f32 %v525_v7, 0.0  ;;  %v528_v19 = vadd.f32 %v1178_v22, %v527_v15  ;;  %v616_v20 = vadd.f32 %v1185_v29, %v577_v10 }
  0xfb   : > { %v632_v21 = vadd.f32 %v1185_v29, %v593_v11  ;;  %v578_v23 = vmax.f32 %v472_v12, 0.0  ;;  %v594_v24 = vmax.f32 %v536_v13, 0.0  ;;  %v576_v27 = vmax.f32 %v464_v18, 0.0 }
  0xfc   : > { %v614_v25 = vadd.f32 %v1185_v29, %v575_v16  ;;  %v630_v26 = vadd.f32 %v1185_v29, %v591_v17  ;;  %v592_v28 = vmax.f32 %v528_v19, 0.0  ;;  %v947_v30 = vpack.c.bf16 %v616_v20, %v616_v20 }
  0xfd   : > { %v963_v31 = vpack.c.bf16 %v632_v21, %v632_v21  ;;  %v617_v32 = vadd.f32 %v1185_v29, %v578_v23  ;;  %v633_v33 = vadd.f32 %v1185_v29, %v594_v24  ;;  %v615_v36 = vadd.f32 %v1185_v29, %v576_v27  ;;  %v1014_v38 = vpop.f32.mrb[8].mxu0  ;;  %v1030_v39 = vpop.f32.mrb[8].mxu1 }
  0xfe   : > { %v945_v34 = vpack.c.bf16 %v614_v25, %v614_v25  ;;  %v961_v35 = vpack.c.bf16 %v630_v26, %v630_v26  ;;  %v631_v37 = vadd.f32 %v1185_v29, %v592_v28  ;;  %777 = vst.msk [vmem:[%s1200_s12 + $0x18] sm:$0xf] %vm770_vm2, %v947_v30  ;;  %v485_v42 = vadd.f32 %v1014_v38, %v1178_v22  ;;  %v476_v44 = vpop.f32.mrb[9].mxu0  ;;  %v540_v45 = vpop.f32.mrb[9].mxu1 }
  0xff   : > { %793 = vst.msk [vmem:[%s1200_s12 + $0x58] sm:$0xf] %vm770_vm2, %v963_v31  ;;  %v948_v40 = vpack.c.bf16 %v617_v32, %v617_v32  ;;  %v964_v41 = vpack.c.bf16 %v633_v33, %v633_v33  ;;  %v549_v43 = vadd.f32 %v1030_v39, %v1178_v22  ;;  %v946_v46 = vpack.c.bf16 %v615_v36, %v615_v36  ;;  %v1015_v50 = vpop.f32.mrb[10].mxu0  ;;  %v1031_v51 = vpop.f32.mrb[10].mxu1 }
 0x100   : > { %775 = vst.msk [vmem:[%s1200_s12 + $0x10] sm:$0xf] %vm770_vm2, %v945_v34  ;;  %791 = vst.msk [vmem:[%s1200_s12 + $0x50] sm:$0xf] %vm770_vm2, %v961_v35  ;;  %v962_v47 = vpack.c.bf16 %v631_v37, %v631_v37  ;;  %v477_v48 = vadd.f32 %v1178_v22, %v476_v44  ;;  %v541_v49 = vadd.f32 %v1178_v22, %v540_v45  ;;  %v581_v52 = vmax.f32 %v485_v42, 0.0  ;;  %v479_v56 = vpop.f32.mrb[11].mxu0 }
 0x101   : > { %778 = vst.msk [vmem:[%s1200_s12 + $0x1c] sm:$0xf] %vm770_vm2, %v948_v40  ;;  %794 = vst.msk [vmem:[%s1200_s12 + $0x5c] sm:$0xf] %vm770_vm2, %v964_v41  ;;  %v597_v53 = vmax.f32 %v549_v43, 0.0  ;;  %v488_v54 = vadd.f32 %v1015_v50, %v1178_v22  ;;  %v552_v55 = vadd.f32 %v1031_v51, %v1178_v22  ;;  %v543_v57 = vpop.f32.mrb[11].mxu1  ;;  %v480_v60 = vadd.f32 %v1178_v22, %v479_v56 }
 0x102   : > { %776 = vst.msk [vmem:[%s1200_s12 + $0x14] sm:$0xf] %vm770_vm2, %v946_v46  ;;  %792 = vst.msk [vmem:[%s1200_s12 + $0x54] sm:$0xf] %vm770_vm2, %v962_v47  ;;  %v579_v58 = vmax.f32 %v477_v48, 0.0  ;;  %v595_v59 = vmax.f32 %v541_v49, 0.0  ;;  %v544_v61 = vadd.f32 %v1178_v22, %v543_v57  ;;  %v620_v62 = vadd.f32 %v1185_v29, %v581_v52 }
 0x103   : > { %v636_v63 = vadd.f32 %v1185_v29, %v597_v53  ;;  %v582_v0 = vmax.f32 %v488_v54, 0.0  ;;  %v598_v1 = vmax.f32 %v552_v55, 0.0  ;;  %v580_v4 = vmax.f32 %v480_v60, 0.0 }
 0x104   : > { %v618_v2 = vadd.f32 %v1185_v29, %v579_v58  ;;  %v634_v3 = vadd.f32 %v1185_v29, %v595_v59  ;;  %v596_v5 = vmax.f32 %v544_v61, 0.0  ;;  %v951_v6 = vpack.c.bf16 %v620_v62, %v620_v62 }
 0x105   : > { %v967_v7 = vpack.c.bf16 %v636_v63, %v636_v63  ;;  %v621_v8 = vadd.f32 %v1185_v29, %v582_v0  ;;  %v637_v9 = vadd.f32 %v1185_v29, %v598_v1  ;;  %v619_v12 = vadd.f32 %v1185_v29, %v580_v4  ;;  %v1018_v14 = vpop.f32.mrb[12].mxu0  ;;  %v1034_v15 = vpop.f32.mrb[12].mxu1 }
 0x106   : > { %v949_v10 = vpack.c.bf16 %v618_v2, %v618_v2  ;;  %v965_v11 = vpack.c.bf16 %v634_v3, %v634_v3  ;;  %v635_v13 = vadd.f32 %v1185_v29, %v596_v5  ;;  %781 = vst.msk [vmem:[%s1200_s12 + $0x28] sm:$0xf] %vm770_vm2, %v951_v6  ;;  %v501_v18 = vadd.f32 %v1018_v14, %v1178_v22  ;;  %v492_v20 = vpop.f32.mrb[13].mxu0  ;;  %v556_v21 = vpop.f32.mrb[13].mxu1 }
 0x107   : > { %797 = vst.msk [vmem:[%s1200_s12 + $0x68] sm:$0xf] %vm770_vm2, %v967_v7  ;;  %v952_v16 = vpack.c.bf16 %v621_v8, %v621_v8  ;;  %v968_v17 = vpack.c.bf16 %v637_v9, %v637_v9  ;;  %v565_v19 = vadd.f32 %v1034_v15, %v1178_v22  ;;  %v950_v23 = vpack.c.bf16 %v619_v12, %v619_v12  ;;  %v1019_v27 = vpop.f32.mrb[14].mxu0  ;;  %v1035_v28 = vpop.f32.mrb[14].mxu1 }
 0x108   : > { %779 = vst.msk [vmem:[%s1200_s12 + $0x20] sm:$0xf] %vm770_vm2, %v949_v10  ;;  %795 = vst.msk [vmem:[%s1200_s12 + $0x60] sm:$0xf] %vm770_vm2, %v965_v11  ;;  %v966_v24 = vpack.c.bf16 %v635_v13, %v635_v13  ;;  %v493_v25 = vadd.f32 %v1178_v22, %v492_v20  ;;  %v557_v26 = vadd.f32 %v1178_v22, %v556_v21  ;;  %v585_v30 = vmax.f32 %v501_v18, 0.0  ;;  %v495_v34 = vpop.f32.mrb[15].mxu0 }
 0x109   : > { %782 = vst.msk [vmem:[%s1200_s12 + $0x2c] sm:$0xf] %vm770_vm2, %v952_v16  ;;  %798 = vst.msk [vmem:[%s1200_s12 + $0x6c] sm:$0xf] %vm770_vm2, %v968_v17  ;;  %v601_v31 = vmax.f32 %v565_v19, 0.0  ;;  %v504_v32 = vadd.f32 %v1019_v27, %v1178_v22  ;;  %v568_v33 = vadd.f32 %v1035_v28, %v1178_v22  ;;  %v559_v35 = vpop.f32.mrb[15].mxu1  ;;  %v496_v38 = vadd.f32 %v1178_v22, %v495_v34 }
 0x10a   : > { %780 = vst.msk [vmem:[%s1200_s12 + $0x24] sm:$0xf] %vm770_vm2, %v950_v23  ;;  %796 = vst.msk [vmem:[%s1200_s12 + $0x64] sm:$0xf] %vm770_vm2, %v966_v24  ;;  %v583_v36 = vmax.f32 %v493_v25, 0.0  ;;  %v599_v37 = vmax.f32 %v557_v26, 0.0  ;;  %v560_v39 = vadd.f32 %v1178_v22, %v559_v35  ;;  %v624_v40 = vadd.f32 %v1185_v29, %v585_v30 }
 0x10b   : > { %v640_v41 = vadd.f32 %v1185_v29, %v601_v31  ;;  %v586_v42 = vmax.f32 %v504_v32, 0.0  ;;  %v602_v43 = vmax.f32 %v568_v33, 0.0  ;;  %v584_v46 = vmax.f32 %v496_v38, 0.0 }
 0x10c   : > { %v622_v44 = vadd.f32 %v1185_v29, %v583_v36  ;;  %v638_v45 = vadd.f32 %v1185_v29, %v599_v37  ;;  %v600_v47 = vmax.f32 %v560_v39, 0.0  ;;  %v955_v48 = vpack.c.bf16 %v624_v40, %v624_v40 }
 0x10d   : > { %v971_v49 = vpack.c.bf16 %v640_v41, %v640_v41  ;;  %v625_v22 = vadd.f32 %v1185_v29, %v586_v42  ;;  %v641_v50 = vadd.f32 %v1185_v29, %v602_v43  ;;  %v623_v53 = vadd.f32 %v1185_v29, %v584_v46 }
 0x10e   : > { %v953_v51 = vpack.c.bf16 %v622_v44, %v622_v44  ;;  %v969_v52 = vpack.c.bf16 %v638_v45, %v638_v45  ;;  %v639_v54 = vadd.f32 %v1185_v29, %v600_v47  ;;  %785 = vst.msk [vmem:[%s1200_s12 + $0x38] sm:$0xf] %vm770_vm2, %v955_v48 }
 0x10f   : > { %801 = vst.msk [vmem:[%s1200_s12 + $0x78] sm:$0xf] %vm770_vm2, %v971_v49  ;;  %v956_v55 = vpack.c.bf16 %v625_v22, %v625_v22  ;;  %v972_v56 = vpack.c.bf16 %v641_v50, %v641_v50  ;;  %v954_v57 = vpack.c.bf16 %v623_v53, %v623_v53 }
 0x110   : > { %783 = vst.msk [vmem:[%s1200_s12 + $0x30] sm:$0xf] %vm770_vm2, %v953_v51  ;;  %799 = vst.msk [vmem:[%s1200_s12 + $0x70] sm:$0xf] %vm770_vm2, %v969_v52  ;;  %v970_v58 = vpack.c.bf16 %v639_v54, %v639_v54 }
 0x111   : > { %786 = vst.msk [vmem:[%s1200_s12 + $0x3c] sm:$0xf] %vm770_vm2, %v956_v55  ;;  %802 = vst.msk [vmem:[%s1200_s12 + $0x7c] sm:$0xf] %vm770_vm2, %v972_v56 }
 0x112   : > { %784 = vst.msk [vmem:[%s1200_s12 + $0x34] sm:$0xf] %vm770_vm2, %v954_v57  ;;  %800 = vst.msk [vmem:[%s1200_s12 + $0x74] sm:$0xf] %vm770_vm2, %v970_v58 }
 0x113 PF: > { %s14_s15 = sadd.s32 1, %s1083_s15  }
 0x114   : > { %p11_p4 = scmp.ge.s32.totalorder %s14_s15, 9  }
 0x116   :  { %13 = sbr.rel (!%p11_p4) target bundleno = 1 (0x1), region = 66 }

// kernel: cnn_forward.9
= control target key start
LH: loop header
LB: loop body
LE: loop exit
PB: predicated region body
PF: predicated region fallthrough
CT: control target
= control target key end

     0   :  { %s1512_s15 = smov 0   ;;  %s1774_s0 = inlined_call_operand.vmem [shape: bf16[352,400], index: 0, kind: input, shape index: {}]   ;;  %s1775_s1 = inlined_call_operand.vmem [shape: bf16[400,32], index: 1, kind: input, shape index: {}]   ;;  %s1776_s2 = inlined_call_operand.vmem [shape: f32[1,32], index: 2, kind: input, shape index: {}]   ;;  %s1777_s3 = inlined_call_operand.vmem [shape: f32[1,32], index: 3, kind: input, shape index: {}]   ;;  %s1778_s4 = inlined_call_operand.vmem [shape: bf16[352,32], index: 4, kind: output, shape index: {}]  }
   0x1 LB: > { %s1159_s16 = sadd.s32 4294967295, %s1484_s15   ;;  %p1163_p0 = scmp.ge.s32.totalorder %s1484_s15, 1  ;;  %s1484_s15 = sphi %s1512_s15, %s14_s15  }
   0x2   : > { %p164_p1 = scmp.lt.s32.totalorder %s1484_s15, 3 }
   0x4   : > { %p165_p2 = pnand %p1163_p0, %p164_p1 }
   0x5   : > { %v1387_v0 = vld [vmem:[%s1775_s1 + $0x40] sm:$0xff] (!%p165_p2)   ;;  %v1486_v1 = vmov (!%p165_p2), 0   ;;  %v1390_v4 = vld [vmem:[%s1775_s1 + $0x48] sm:$0xff] (!%p165_p2)   ;;  %v1393_v7 = vld [vmem:[%s1775_s1 + $0x50] sm:$0xff] (!%p165_p2)   ;;  %s191_s7 = smul.u32 (!%p165_p2), 22, %s1159_s16  ;;  %vm665_vm0 = vcmask (!%p165_p2), 130048  }
   0x6   : > { %168 = sbr.rel (%p165_p2) target bundleno = 347 (0x15b), region = 36  ;;  %820 = vmatprep.subr.bf16.mxu1 (!%p165_p2), %v1486_v1  ;;  %v1388_v2 = vld [vmem:[%s1775_s1 + $0x80] sm:$0xff] (!%p165_p2)   ;;  %1296 = vmatprep.subr.bf16.mxu0 (!%p165_p2), %v1387_v0  ;;  %v1391_v5 = vld [vmem:[%s1775_s1 + $0x88] sm:$0xff] (!%p165_p2)   ;;  %v1394_v8 = vld [vmem:[%s1775_s1 + $0x90] sm:$0xff] (!%p165_p2)   ;;  %vm1080_vm1 = vcmask (!%p165_p2), 257024  }
   0x7   : > { %v1389_v3 = vld [vmem:[%s1775_s1] sm:$0xff] (!%p165_p2)   ;;  %821 = vmatpush1.bf16.msra.mxu1 (!%p165_p2), %v1388_v2  ;;  %v1392_v6 = vld [vmem:[%s1775_s1 + $0x8] sm:$0xff] (!%p165_p2)   ;;  %v1395_v9 = vld [vmem:[%s1775_s1 + $0x10] sm:$0xff] (!%p165_p2)   ;;  %p192_p3 = scmp.lt.s32.totalorder (!%p165_p2), %s191_s7, 43 }
   0x8   : > { %1297 = vmatpush3.bf16.msra.mxu0 (!%p165_p2), %v1389_v3  ;;  %822 = vmatprep.subr.bf16.mxu1 (!%p165_p2), %v1486_v1  ;;  %v1396_v10 = vld [vmem:[%s1775_s1 + $0x58] sm:$0xff] (!%p165_p2)   ;;  %v1399_v13 = vld [vmem:[%s1775_s1 + $0x60] sm:$0xff] (!%p165_p2)   ;;  %v1402_v16 = vld [vmem:[%s1775_s1 + $0x68] sm:$0xff] (!%p165_p2)  }
   0x9   : > { %1298 = vmatprep.subr.bf16.mxu0 (!%p165_p2), %v1390_v4  ;;  %v1397_v11 = vld [vmem:[%s1775_s1 + $0x98] sm:$0xff] (!%p165_p2)   ;;  %v1400_v14 = vld [vmem:[%s1775_s1 + $0xa0] sm:$0xff] (!%p165_p2)   ;;  %v1403_v17 = vld [vmem:[%s1775_s1 + $0xa8] sm:$0xff] (!%p165_p2)  }
   0xa   : > { %v1398_v12 = vld [vmem:[%s1775_s1 + $0x18] sm:$0xff] (!%p165_p2)   ;;  %v1401_v15 = vld [vmem:[%s1775_s1 + $0x20] sm:$0xff] (!%p165_p2)   ;;  %v1404_v18 = vld [vmem:[%s1775_s1 + $0x28] sm:$0xff] (!%p165_p2)  }
   0xb   : > { %823 = vmatpush1.bf16.msra.mxu1 (!%p165_p2), %v1391_v5  ;;  %v1405_v19 = vld [vmem:[%s1775_s1 + $0x70] sm:$0xff] (!%p165_p2)   ;;  %v1408_v22 = vld [vmem:[%s1775_s1 + $0x78] sm:$0xff] (!%p165_p2)   ;;  %v1414_v28 = vld [vmem:[%s1775_s1 + $0xc0] sm:$0xff] (!%p165_p2)  }
   0xc   : > { %1299 = vmatpush3.bf16.msra.mxu0 (!%p165_p2), %v1392_v6  ;;  %824 = vmatprep.subr.bf16.mxu1 (!%p165_p2), %v1486_v1  ;;  %v1406_v20 = vld [vmem:[%s1775_s1 + $0xb0] sm:$0xff] (!%p165_p2)   ;;  %v1409_v24 = vld [vmem:[%s1775_s1 + $0xb8] sm:$0xff] (!%p165_p2)  }
   0xd   : > { %1300 = vmatprep.subr.bf16.mxu0 %v1393_v7  ;;  %s1780_s7 = smov (!%p192_p3, %s191_s7), 43  ;;  %v1407_v21 = vld [vmem:[%s1775_s1 + $0x30] sm:$0xff]   ;;  %v1410_v26 = vld [vmem:[%s1775_s1 + $0x38] sm:$0xff]  }
   0xe   : > { %s1273_s27 = sshll.u32 %s1780_s7, 4 }
   0xf   : > { %825 = vmatpush1.bf16.msra.mxu1 %v1394_v8  ;;  %s1592_s11 = scalar_lea.vmem %s1774_s0, %s1273_s27  ;;  %v1670_v8 = vld [vmem:[%s1776_s2] ss:$0 sm:$0xff]  ;;  %s1166_s27 = sshll.u32 %s1780_s7, 2 }
  0x10   : > { %1301 = vmatpush3.bf16.msra.mxu0 %v1395_v9  ;;  %826 = vmatprep.subr.bf16.mxu1 %v1486_v1  ;;  %v1413_v23 = vld [vmem:[%s1592_s11 + $0x4] ss:$16 sps:$4 sm:$0xff]   ;;  %v1417_v25 = vld [vmem:[%s1592_s11 + $0xc] ss:$16 sps:$4 sm:$0xff]   ;;  %v1411_v27 = vld [vmem:[%s1592_s11] ss:$16 sps:$4 sm:$0xff]   ;;  %s1684_s30 = scalar_lea.vmem %s1778_s4, %s1166_s27 }
  0x11   : > { %1302 = vmatprep.subr.bf16.mxu0 %v1396_v10  ;;  %731 = vmatprep.mubr.bf16.mxu0 %v1413_v23  ;;  %v1418_v29 = vld [vmem:[%s1592_s11 + $0x24] ss:$16 sps:$4 sm:$0xff]   ;;  %v1415_v30 = vld [vmem:[%s1592_s11 + $0x8] ss:$16 sps:$4 sm:$0xff]   ;;  %v1421_v31 = vld [vmem:[%s1592_s11 + $0x2c] ss:$16 sps:$4 sm:$0xff]  }
  0x12   : > { %1237 = vmatprep.mubr.msk.bf16.mxu1 %vm665_vm0, %v1417_v25  ;;  %v1420_v32 = vld [vmem:[%s1592_s11 + $0x20] ss:$16 sps:$4 sm:$0xff]   ;;  %v1424_v33 = vld [vmem:[%s1592_s11 + $0x44] ss:$16 sps:$4 sm:$0xff]   ;;  %v1423_v34 = vld [vmem:[%s1592_s11 + $0x28] ss:$16 sps:$4 sm:$0xff]  }
  0x13   : > { %827 = vmatpush1.bf16.msra.mxu1 %v1397_v11  ;;  %v1427_v35 = vld [vmem:[%s1592_s11 + $0x4c] ss:$16 sps:$4 sm:$0xff]   ;;  %v1426_v36 = vld [vmem:[%s1592_s11 + $0x40] ss:$16 sps:$4 sm:$0xff]   ;;  %v1430_v37 = vld [vmem:[%s1592_s11 + $0x64] ss:$16 sps:$4 sm:$0xff]  }
  0x14   : > { %1303 = vmatpush3.bf16.msra.mxu0 %v1398_v12  ;;  %828 = vmatprep.subr.bf16.mxu1 %v1486_v1  ;;  %v1429_v38 = vld [vmem:[%s1592_s11 + $0x48] ss:$16 sps:$4 sm:$0xff]   ;;  %v1433_v39 = vld [vmem:[%s1592_s11 + $0x6c] ss:$16 sps:$4 sm:$0xff]   ;;  %v1432_v40 = vld [vmem:[%s1592_s11 + $0x60] ss:$16 sps:$4 sm:$0xff]  }
  0x15   : > { %1304 = vmatprep.subr.bf16.mxu0 %v1399_v13  ;;  %v1436_v41 = vld [vmem:[%s1592_s11 + $0x84] ss:$16 sps:$4 sm:$0xff]   ;;  %v1435_v42 = vld [vmem:[%s1592_s11 + $0x68] ss:$16 sps:$4 sm:$0xff]   ;;  %v1439_v43 = vld [vmem:[%s1592_s11 + $0x8c] ss:$16 sps:$4 sm:$0xff]  }
  0x16   : > { %v1438_v44 = vld [vmem:[%s1592_s11 + $0x80] ss:$16 sps:$4 sm:$0xff]   ;;  %v1442_v45 = vld [vmem:[%s1592_s11 + $0xa4] ss:$16 sps:$4 sm:$0xff]   ;;  %v1441_v46 = vld [vmem:[%s1592_s11 + $0x88] ss:$16 sps:$4 sm:$0xff]  }
  0x17   : > { %829 = vmatpush1.bf16.msra.mxu1 %v1400_v14  ;;  %v1445_v47 = vld [vmem:[%s1592_s11 + $0xac] ss:$16 sps:$4 sm:$0xff]   ;;  %v1444_v48 = vld [vmem:[%s1592_s11 + $0xa0] ss:$16 sps:$4 sm:$0xff]   ;;  %v1448_v49 = vld [vmem:[%s1592_s11 + $0xc4] ss:$16 sps:$4 sm:$0xff]  }
  0x18   : > { %1305 = vmatpush3.bf16.msra.mxu0 %v1401_v15  ;;  %830 = vmatprep.subr.bf16.mxu1 %v1486_v1  ;;  %v1447_v50 = vld [vmem:[%s1592_s11 + $0xa8] ss:$16 sps:$4 sm:$0xff]   ;;  %v1451_v51 = vld [vmem:[%s1592_s11 + $0xcc] ss:$16 sps:$4 sm:$0xff]   ;;  %v1450_v52 = vld [vmem:[%s1592_s11 + $0xc0] ss:$16 sps:$4 sm:$0xff]  }
  0x19   : > { %1306 = vmatprep.subr.bf16.mxu0 %v1402_v16  ;;  %v1454_v53 = vld [vmem:[%s1592_s11 + $0xe4] ss:$16 sps:$4 sm:$0xff]   ;;  %v1453_v54 = vld [vmem:[%s1592_s11 + $0xc8] ss:$16 sps:$4 sm:$0xff]   ;;  %v1457_v55 = vld [vmem:[%s1592_s11 + $0xec] ss:$16 sps:$4 sm:$0xff]  }
  0x1a   : > { %v1456_v56 = vld [vmem:[%s1592_s11 + $0xe0] ss:$16 sps:$4 sm:$0xff]   ;;  %v1460_v57 = vld [vmem:[%s1592_s11 + $0x104] ss:$16 sps:$4 sm:$0xff]   ;;  %v1459_v58 = vld [vmem:[%s1592_s11 + $0xe8] ss:$16 sps:$4 sm:$0xff]  }
  0x1b   : > { %831 = vmatpush1.bf16.msra.mxu1 %v1403_v17  ;;  %v1463_v59 = vld [vmem:[%s1592_s11 + $0x10c] ss:$16 sps:$4 sm:$0xff]   ;;  %v1462_v60 = vld [vmem:[%s1592_s11 + $0x100] ss:$16 sps:$4 sm:$0xff]   ;;  %v1466_v61 = vld [vmem:[%s1592_s11 + $0x124] ss:$16 sps:$4 sm:$0xff]  }
  0x1c   : > { %1307 = vmatpush3.bf16.msra.mxu0 %v1404_v18  ;;  %832 = vmatprep.subr.bf16.mxu1 %v1486_v1  ;;  %v1465_v62 = vld [vmem:[%s1592_s11 + $0x108] ss:$16 sps:$4 sm:$0xff]   ;;  %v1469_v63 = vld [vmem:[%s1592_s11 + $0x12c] ss:$16 sps:$4 sm:$0xff]   ;;  %v1468_v0 = vld [vmem:[%s1592_s11 + $0x120] ss:$16 sps:$4 sm:$0xff]  }
  0x1d   : > { %1308 = vmatprep.subr.bf16.mxu0 %v1405_v19  ;;  %v1471_v2 = vld [vmem:[%s1592_s11 + $0x128] ss:$16 sps:$4 sm:$0xff]   ;;  %v1475_v3 = vld [vmem:[%s1592_s11 + $0x14c] ss:$16 sps:$4 sm:$0xff]   ;;  %v1474_v4 = vld [vmem:[%s1592_s11 + $0x140] ss:$16 sps:$4 sm:$0xff]  }
  0x1e   : > { %v1477_v5 = vld [vmem:[%s1592_s11 + $0x148] ss:$16 sps:$4 sm:$0xff]  }
  0x1f   : > { %833 = vmatpush1.bf16.msra.mxu1 %v1406_v20  ;;  %v1677_v20 = vld [vmem:[%s1777_s3] ss:$0 sm:$0xff] }
  0x20   : > { %1309 = vmatpush3.bf16.msra.mxu0 %v1407_v21  ;;  %834 = vmatprep.subr.bf16.mxu1 %v1486_v1 }
  0x21   : > { %1310 = vmatprep.subr.bf16.mxu0 %v1408_v22 }
  0x23   : > { %835 = vmatpush1.bf16.msra.mxu1 %v1409_v24 }
  0x24   : > { %1311 = vmatpush3.bf16.msra.mxu0 %v1410_v26  ;;  %836 = vmatprep.subr.bf16.mxu1 %v1486_v1  ;;  %v1472_v1 = vld [vmem:[%s1592_s11 + $0x144] ss:$16 sps:$4 sm:$0xff]  }
  0x27   : > { %732 = vmatmul.mubr.bf16.vlgmr.msra.gmra.mrb[0].mxu0 %v1411_v27  ;;  %837 = vmatpush1.bf16.msra.mxu1 %v1414_v28 }
  0x28   : > { %739 = vmatprep.mubr.bf16.mxu0 %v1418_v29 }
  0x2a   : > { %853 = vmatmul.mubr.bf16.vlgmr.msra.gmra.mrb[0].mxu1 %v1415_v30 }
  0x2b   : > { %1238 = vmatprep.mubr.msk.bf16.mxu1 %vm665_vm0, %v1421_v31 }
  0x2f   : > { %740 = vmatmul.mubr.bf16.gmra.mrb[4].mxu0 %v1420_v32 }
  0x30   : > { %747 = vmatprep.mubr.bf16.mxu0 %v1424_v33 }
  0x32   : > { %861 = vmatmul.mubr.bf16.gmra.mrb[4].mxu1 %v1423_v34 }
  0x33   : > { %1239 = vmatprep.mubr.msk.bf16.mxu1 %vm665_vm0, %v1427_v35 }
  0x37   : > { %748 = vmatmul.mubr.bf16.gmra.mrb[8].mxu0 %v1426_v36 }
  0x38   : > { %755 = vmatprep.mubr.bf16.mxu0 %v1430_v37 }
  0x3a   : > { %869 = vmatmul.mubr.bf16.gmra.mrb[8].mxu1 %v1429_v38 }
  0x3b   : > { %1240 = vmatprep.mubr.msk.bf16.mxu1 %vm665_vm0, %v1433_v39 }
  0x3f   : > { %756 = vmatmul.mubr.bf16.gmra.mrb[12].mxu0 %v1432_v40 }
  0x40   : > { %763 = vmatprep.mubr.bf16.mxu0 %v1436_v41 }
  0x42   : > { %877 = vmatmul.mubr.bf16.gmra.mrb[12].mxu1 %v1435_v42 }
  0x43   : > { %1241 = vmatprep.mubr.msk.bf16.mxu1 %vm665_vm0, %v1439_v43 }
  0x47   : > { %764 = vmatmul.mubr.bf16.gmra.mrb[16].mxu0 %v1438_v44 }
  0x48   : > { %771 = vmatprep.mubr.bf16.mxu0 %v1442_v45 }
  0x4a   : > { %885 = vmatmul.mubr.bf16.gmra.mrb[16].mxu1 %v1441_v46 }
  0x4b   : > { %1242 = vmatprep.mubr.msk.bf16.mxu1 %vm665_vm0, %v1445_v47 }
  0x4f   : > { %772 = vmatmul.mubr.bf16.gmra.mrb[20].mxu0 %v1444_v48 }
  0x50   : > { %779 = vmatprep.mubr.bf16.mxu0 %v1448_v49 }
  0x52   : > { %893 = vmatmul.mubr.bf16.gmra.mrb[20].mxu1 %v1447_v50 }
  0x53   : > { %1243 = vmatprep.mubr.msk.bf16.mxu1 %vm665_vm0, %v1451_v51 }
  0x57   : > { %780 = vmatmul.mubr.bf16.gmra.mrb[24].mxu0 %v1450_v52 }
  0x58   : > { %787 = vmatprep.mubr.bf16.mxu0 %v1454_v53 }
  0x5a   : > { %901 = vmatmul.mubr.bf16.gmra.mrb[24].mxu1 %v1453_v54 }
  0x5b   : > { %1244 = vmatprep.mubr.msk.bf16.mxu1 %vm665_vm0, %v1457_v55 }
  0x5f   : > { %788 = vmatmul.mubr.bf16.gmra.mrb[28].mxu0 %v1456_v56 }
  0x60   : > { %795 = vmatprep.mubr.bf16.mxu0 %v1460_v57 }
  0x62   : > { %909 = vmatmul.mubr.bf16.gmra.mrb[28].mxu1 %v1459_v58 }
  0x63   : > { %1245 = vmatprep.mubr.msk.bf16.mxu1 %vm665_vm0, %v1463_v59 }
  0x67   : > { %796 = vmatmul.mubr.bf16.gmra.mrb[32].mxu0 %v1462_v60 }
  0x68   : > { %803 = vmatprep.mubr.bf16.mxu0 %v1466_v61 }
  0x6a   : > { %917 = vmatmul.mubr.bf16.gmra.mrb[32].mxu1 %v1465_v62 }
  0x6b   : > { %1246 = vmatprep.mubr.msk.bf16.mxu1 %vm665_vm0, %v1469_v63 }
  0x6f   : > { %804 = vmatmul.mubr.bf16.gmra.mrb[36].mxu0 %v1468_v0 }
  0x70   : > { %811 = vmatprep.mubr.bf16.mxu0 %v1472_v1 }
  0x72   : > { %925 = vmatmul.mubr.bf16.gmra.mrb[36].mxu1 %v1471_v2 }
  0x73   : > { %1247 = vmatprep.mubr.msk.bf16.mxu1 %vm665_vm0, %v1475_v3 }
  0x77   : > { %812 = vmatmul.mubr.bf16.gmra.mrb[40].mxu0 %v1474_v4 }
  0x7a   : > { %933 = vmatmul.mubr.bf16.gmra.mrb[40].mxu1 %v1477_v5 }
  0xfa   : > { %v1312_v6 = vpop.f32.mrb[0].mxu0 }
  0xfb   : > { %v1313_v7 = vpop.f32.mrb[1].mxu0 }
  0xfc   : > { %v1314_v9 = vadd.f32 %v1313_v7, %v1312_v6  ;;  %v1315_v10 = vpop.f32.mrb[2].mxu0 }
  0xfd   : > { %v1316_v11 = vpop.f32.mrb[3].mxu0  ;;  %v854_v12 = vpop.f32.mrb[0].mxu1 }
  0xfe   : > { %v1317_v13 = vadd.f32 %v1316_v11, %v1315_v10  ;;  %v734_v14 = vadd.f32 %v1314_v9, %v1670_v8  ;;  %v856_v15 = vpop.f32.mrb[1].mxu1 }
  0xff   : > { %v857_v16 = vpop.f32.mrb[2].mxu1 }
 0x100   : > { %v855_v17 = vadd.f32 %v854_v12, %v734_v14  ;;  %v737_v18 = vadd.f32 %v1317_v13, %v1670_v8  ;;  %v859_v19 = vpop.f32.mrb[3].mxu1 }
 0x102   : > { %v941_v21 = vmax.f32 %v855_v17, 0.0  ;;  %v858_v22 = vadd.f32 %v857_v16, %v737_v18  ;;  %v1318_v23 = vpop.f32.mrb[4].mxu0 }
 0x103   : > { %v1319_v24 = vpop.f32.mrb[5].mxu0 }
 0x104   : > { %v970_v25 = vadd.f32 %v1677_v20, %v941_v21  ;;  %v942_v26 = vmax.f32 %v858_v22, 0.0  ;;  %v1320_v27 = vadd.f32 %v1319_v24, %v1318_v23  ;;  %v1321_v28 = vpop.f32.mrb[6].mxu0 }
 0x105   : > { %v1322_v29 = vpop.f32.mrb[7].mxu0  ;;  %v862_v30 = vpop.f32.mrb[4].mxu1 }
 0x106   : > { %v1274_v31 = vpack.c.bf16 %v970_v25, %v970_v25  ;;  %v971_v32 = vadd.f32 %v1677_v20, %v942_v26  ;;  %v1323_v33 = vadd.f32 %v1322_v29, %v1321_v28  ;;  %v742_v34 = vadd.f32 %v1320_v27, %v1670_v8  ;;  %v864_v35 = vpop.f32.mrb[5].mxu1 }
 0x107   : > { %v865_v36 = vpop.f32.mrb[6].mxu1 }
 0x108   : > { %1081 = vst.msk [vmem:[%s1684_s30] sm:$0xf] %vm1080_vm1, %v1274_v31  ;;  %v1275_v37 = vpack.c.bf16 %v971_v32, %v971_v32  ;;  %v863_v38 = vadd.f32 %v862_v30, %v742_v34  ;;  %v745_v39 = vadd.f32 %v1323_v33, %v1670_v8  ;;  %v867_v40 = vpop.f32.mrb[7].mxu1 }
 0x10a   : > { %1082 = vst.msk [vmem:[%s1684_s30 + $0x4] sm:$0xf] %vm1080_vm1, %v1275_v37  ;;  %v943_v41 = vmax.f32 %v863_v38, 0.0  ;;  %v866_v42 = vadd.f32 %v865_v36, %v745_v39  ;;  %v1324_v43 = vpop.f32.mrb[8].mxu0 }
 0x10b   : > { %v1325_v44 = vpop.f32.mrb[9].mxu0 }
 0x10c   : > { %v972_v45 = vadd.f32 %v1677_v20, %v943_v41  ;;  %v944_v46 = vmax.f32 %v866_v42, 0.0  ;;  %v1326_v47 = vadd.f32 %v1325_v44, %v1324_v43  ;;  %v1327_v48 = vpop.f32.mrb[10].mxu0 }
 0x10d   : > { %v1328_v49 = vpop.f32.mrb[11].mxu0  ;;  %v870_v50 = vpop.f32.mrb[8].mxu1 }
 0x10e   : > { %v1276_v51 = vpack.c.bf16 %v972_v45, %v972_v45  ;;  %v973_v52 = vadd.f32 %v1677_v20, %v944_v46  ;;  %v1329_v53 = vadd.f32 %v1328_v49, %v1327_v48  ;;  %v750_v54 = vadd.f32 %v1326_v47, %v1670_v8  ;;  %v872_v55 = vpop.f32.mrb[9].mxu1 }
 0x10f   : > { %v873_v56 = vpop.f32.mrb[10].mxu1 }
 0x110   : > { %1083 = vst.msk [vmem:[%s1684_s30 + $0x8] sm:$0xf] %vm1080_vm1, %v1276_v51  ;;  %v1277_v57 = vpack.c.bf16 %v973_v52, %v973_v52  ;;  %v871_v58 = vadd.f32 %v870_v50, %v750_v54  ;;  %v753_v59 = vadd.f32 %v1329_v53, %v1670_v8  ;;  %v875_v60 = vpop.f32.mrb[11].mxu1 }
 0x112   : > { %1084 = vst.msk [vmem:[%s1684_s30 + $0xc] sm:$0xf] %vm1080_vm1, %v1277_v57  ;;  %v945_v61 = vmax.f32 %v871_v58, 0.0  ;;  %v874_v62 = vadd.f32 %v873_v56, %v753_v59  ;;  %v1330_v63 = vpop.f32.mrb[12].mxu0 }
 0x113   : > { %v1331_v0 = vpop.f32.mrb[13].mxu0 }
 0x114   : > { %v974_v1 = vadd.f32 %v1677_v20, %v945_v61  ;;  %v946_v2 = vmax.f32 %v874_v62, 0.0  ;;  %v1332_v3 = vadd.f32 %v1331_v0, %v1330_v63  ;;  %v1333_v4 = vpop.f32.mrb[14].mxu0 }
 0x115   : > { %v1334_v5 = vpop.f32.mrb[15].mxu0  ;;  %v878_v6 = vpop.f32.mrb[12].mxu1 }
 0x116   : > { %v1278_v7 = vpack.c.bf16 %v974_v1, %v974_v1  ;;  %v975_v9 = vadd.f32 %v1677_v20, %v946_v2  ;;  %v1335_v10 = vadd.f32 %v1334_v5, %v1333_v4  ;;  %v758_v11 = vadd.f32 %v1332_v3, %v1670_v8  ;;  %v880_v12 = vpop.f32.mrb[13].mxu1 }
 0x117   : > { %v881_v13 = vpop.f32.mrb[14].mxu1 }
 0x118   : > { %1085 = vst.msk [vmem:[%s1684_s30 + $0x10] sm:$0xf] %vm1080_vm1, %v1278_v7  ;;  %v1279_v14 = vpack.c.bf16 %v975_v9, %v975_v9  ;;  %v879_v15 = vadd.f32 %v878_v6, %v758_v11  ;;  %v761_v16 = vadd.f32 %v1335_v10, %v1670_v8  ;;  %v883_v17 = vpop.f32.mrb[15].mxu1 }
 0x11a   : > { %1086 = vst.msk [vmem:[%s1684_s30 + $0x14] sm:$0xf] %vm1080_vm1, %v1279_v14  ;;  %v947_v18 = vmax.f32 %v879_v15, 0.0  ;;  %v882_v19 = vadd.f32 %v881_v13, %v761_v16  ;;  %v1336_v21 = vpop.f32.mrb[16].mxu0 }
 0x11b   : > { %v1337_v22 = vpop.f32.mrb[17].mxu0 }
 0x11c   : > { %v976_v23 = vadd.f32 %v1677_v20, %v947_v18  ;;  %v948_v24 = vmax.f32 %v882_v19, 0.0  ;;  %v1338_v25 = vadd.f32 %v1337_v22, %v1336_v21  ;;  %v1339_v26 = vpop.f32.mrb[18].mxu0 }
 0x11d   : > { %v1340_v27 = vpop.f32.mrb[19].mxu0  ;;  %v886_v28 = vpop.f32.mrb[16].mxu1 }
 0x11e   : > { %v1280_v29 = vpack.c.bf16 %v976_v23, %v976_v23  ;;  %v977_v30 = vadd.f32 %v1677_v20, %v948_v24  ;;  %v1341_v31 = vadd.f32 %v1340_v27, %v1339_v26  ;;  %v766_v32 = vadd.f32 %v1338_v25, %v1670_v8  ;;  %v888_v33 = vpop.f32.mrb[17].mxu1 }
 0x11f   : > { %v889_v34 = vpop.f32.mrb[18].mxu1 }
 0x120   : > { %1087 = vst.msk [vmem:[%s1684_s30 + $0x18] sm:$0xf] %vm1080_vm1, %v1280_v29  ;;  %v1281_v35 = vpack.c.bf16 %v977_v30, %v977_v30  ;;  %v887_v36 = vadd.f32 %v886_v28, %v766_v32  ;;  %v769_v37 = vadd.f32 %v1341_v31, %v1670_v8  ;;  %v891_v38 = vpop.f32.mrb[19].mxu1 }
 0x122   : > { %1088 = vst.msk [vmem:[%s1684_s30 + $0x1c] sm:$0xf] %vm1080_vm1, %v1281_v35  ;;  %v949_v39 = vmax.f32 %v887_v36, 0.0  ;;  %v890_v40 = vadd.f32 %v889_v34, %v769_v37  ;;  %v1342_v41 = vpop.f32.mrb[20].mxu0 }
 0x123   : > { %v1343_v42 = vpop.f32.mrb[21].mxu0 }
 0x124   : > { %v978_v43 = vadd.f32 %v1677_v20, %v949_v39  ;;  %v950_v44 = vmax.f32 %v890_v40, 0.0  ;;  %v1344_v45 = vadd.f32 %v1343_v42, %v1342_v41  ;;  %v1345_v46 = vpop.f32.mrb[22].mxu0 }
 0x125   : > { %v1346_v47 = vpop.f32.mrb[23].mxu0  ;;  %v894_v48 = vpop.f32.mrb[20].mxu1 }
 0x126   : > { %v1282_v49 = vpack.c.bf16 %v978_v43, %v978_v43  ;;  %v979_v50 = vadd.f32 %v1677_v20, %v950_v44  ;;  %v1347_v51 = vadd.f32 %v1346_v47, %v1345_v46  ;;  %v774_v52 = vadd.f32 %v1344_v45, %v1670_v8  ;;  %v896_v53 = vpop.f32.mrb[21].mxu1 }
 0x127   : > { %v897_v54 = vpop.f32.mrb[22].mxu1 }
 0x128   : > { %1089 = vst.msk [vmem:[%s1684_s30 + $0x20] sm:$0xf] %vm1080_vm1, %v1282_v49  ;;  %v1283_v55 = vpack.c.bf16 %v979_v50, %v979_v50  ;;  %v895_v56 = vadd.f32 %v894_v48, %v774_v52  ;;  %v777_v57 = vadd.f32 %v1347_v51, %v1670_v8  ;;  %v899_v58 = vpop.f32.mrb[23].mxu1 }
 0x12a   : > { %1090 = vst.msk [vmem:[%s1684_s30 + $0x24] sm:$0xf] %vm1080_vm1, %v1283_v55  ;;  %v951_v59 = vmax.f32 %v895_v56, 0.0  ;;  %v898_v60 = vadd.f32 %v897_v54, %v777_v57  ;;  %v1348_v61 = vpop.f32.mrb[24].mxu0 }
 0x12b   : > { %v1349_v62 = vpop.f32.mrb[25].mxu0 }
 0x12c   : > { %v980_v63 = vadd.f32 %v1677_v20, %v951_v59  ;;  %v952_v0 = vmax.f32 %v898_v60, 0.0  ;;  %v1350_v1 = vadd.f32 %v1349_v62, %v1348_v61  ;;  %v1351_v2 = vpop.f32.mrb[26].mxu0 }
 0x12d   : > { %v1352_v3 = vpop.f32.mrb[27].mxu0  ;;  %v902_v4 = vpop.f32.mrb[24].mxu1 }
 0x12e   : > { %v1284_v5 = vpack.c.bf16 %v980_v63, %v980_v63  ;;  %v981_v6 = vadd.f32 %v1677_v20, %v952_v0  ;;  %v1353_v7 = vadd.f32 %v1352_v3, %v1351_v2  ;;  %v782_v9 = vadd.f32 %v1350_v1, %v1670_v8  ;;  %v904_v10 = vpop.f32.mrb[25].mxu1 }
 0x12f   : > { %v905_v11 = vpop.f32.mrb[26].mxu1 }
 0x130   : > { %1091 = vst.msk [vmem:[%s1684_s30 + $0x28] sm:$0xf] %vm1080_vm1, %v1284_v5  ;;  %v1285_v12 = vpack.c.bf16 %v981_v6, %v981_v6  ;;  %v903_v13 = vadd.f32 %v902_v4, %v782_v9  ;;  %v785_v14 = vadd.f32 %v1353_v7, %v1670_v8  ;;  %v907_v15 = vpop.f32.mrb[27].mxu1 }
 0x132   : > { %1092 = vst.msk [vmem:[%s1684_s30 + $0x2c] sm:$0xf] %vm1080_vm1, %v1285_v12  ;;  %v953_v16 = vmax.f32 %v903_v13, 0.0  ;;  %v906_v17 = vadd.f32 %v905_v11, %v785_v14  ;;  %v1354_v18 = vpop.f32.mrb[28].mxu0 }
 0x133   : > { %v1355_v19 = vpop.f32.mrb[29].mxu0 }
 0x134   : > { %v982_v21 = vadd.f32 %v1677_v20, %v953_v16  ;;  %v954_v22 = vmax.f32 %v906_v17, 0.0  ;;  %v1356_v23 = vadd.f32 %v1355_v19, %v1354_v18  ;;  %v1357_v24 = vpop.f32.mrb[30].mxu0 }
 0x135   : > { %v1358_v25 = vpop.f32.mrb[31].mxu0  ;;  %v910_v26 = vpop.f32.mrb[28].mxu1 }
 0x136   : > { %v1286_v27 = vpack.c.bf16 %v982_v21, %v982_v21  ;;  %v983_v28 = vadd.f32 %v1677_v20, %v954_v22  ;;  %v1359_v29 = vadd.f32 %v1358_v25, %v1357_v24  ;;  %v790_v30 = vadd.f32 %v1356_v23, %v1670_v8  ;;  %v912_v31 = vpop.f32.mrb[29].mxu1 }
 0x137   : > { %v913_v32 = vpop.f32.mrb[30].mxu1 }
 0x138   : > { %1093 = vst.msk [vmem:[%s1684_s30 + $0x30] sm:$0xf] %vm1080_vm1, %v1286_v27  ;;  %v1287_v33 = vpack.c.bf16 %v983_v28, %v983_v28  ;;  %v911_v34 = vadd.f32 %v910_v26, %v790_v30  ;;  %v793_v35 = vadd.f32 %v1359_v29, %v1670_v8  ;;  %v915_v36 = vpop.f32.mrb[31].mxu1 }
 0x13a   : > { %1094 = vst.msk [vmem:[%s1684_s30 + $0x34] sm:$0xf] %vm1080_vm1, %v1287_v33  ;;  %v955_v37 = vmax.f32 %v911_v34, 0.0  ;;  %v914_v38 = vadd.f32 %v913_v32, %v793_v35  ;;  %v1360_v39 = vpop.f32.mrb[32].mxu0 }
 0x13b   : > { %v1361_v40 = vpop.f32.mrb[33].mxu0 }
 0x13c   : > { %v984_v41 = vadd.f32 %v1677_v20, %v955_v37  ;;  %v956_v42 = vmax.f32 %v914_v38, 0.0  ;;  %v1362_v43 = vadd.f32 %v1361_v40, %v1360_v39  ;;  %v1363_v44 = vpop.f32.mrb[34].mxu0 }
 0x13d   : > { %v1364_v45 = vpop.f32.mrb[35].mxu0  ;;  %v918_v46 = vpop.f32.mrb[32].mxu1 }
 0x13e   : > { %v1288_v47 = vpack.c.bf16 %v984_v41, %v984_v41  ;;  %v985_v48 = vadd.f32 %v1677_v20, %v956_v42  ;;  %v1365_v49 = vadd.f32 %v1364_v45, %v1363_v44  ;;  %v798_v50 = vadd.f32 %v1362_v43, %v1670_v8  ;;  %v920_v51 = vpop.f32.mrb[33].mxu1 }
 0x13f   : > { %v921_v52 = vpop.f32.mrb[34].mxu1 }
 0x140   : > { %1095 = vst.msk [vmem:[%s1684_s30 + $0x38] sm:$0xf] %vm1080_vm1, %v1288_v47  ;;  %v1289_v53 = vpack.c.bf16 %v985_v48, %v985_v48  ;;  %v919_v54 = vadd.f32 %v918_v46, %v798_v50  ;;  %v801_v55 = vadd.f32 %v1365_v49, %v1670_v8  ;;  %v923_v56 = vpop.f32.mrb[35].mxu1 }
 0x142   : > { %1096 = vst.msk [vmem:[%s1684_s30 + $0x3c] sm:$0xf] %vm1080_vm1, %v1289_v53  ;;  %v957_v57 = vmax.f32 %v919_v54, 0.0  ;;  %v922_v58 = vadd.f32 %v921_v52, %v801_v55  ;;  %v1366_v59 = vpop.f32.mrb[36].mxu0 }
 0x143   : > { %v1367_v60 = vpop.f32.mrb[37].mxu0 }
 0x144   : > { %v986_v61 = vadd.f32 %v1677_v20, %v957_v57  ;;  %v958_v62 = vmax.f32 %v922_v58, 0.0  ;;  %v1368_v63 = vadd.f32 %v1367_v60, %v1366_v59  ;;  %v1369_v0 = vpop.f32.mrb[38].mxu0 }
 0x145   : > { %v1370_v1 = vpop.f32.mrb[39].mxu0  ;;  %v926_v2 = vpop.f32.mrb[36].mxu1 }
 0x146   : > { %v1290_v3 = vpack.c.bf16 %v986_v61, %v986_v61  ;;  %v987_v4 = vadd.f32 %v1677_v20, %v958_v62  ;;  %v1371_v5 = vadd.f32 %v1370_v1, %v1369_v0  ;;  %v806_v6 = vadd.f32 %v1368_v63, %v1670_v8  ;;  %v928_v7 = vpop.f32.mrb[37].mxu1 }
 0x147   : > { %v929_v9 = vpop.f32.mrb[38].mxu1 }
 0x148   : > { %1097 = vst.msk [vmem:[%s1684_s30 + $0x40] sm:$0xf] %vm1080_vm1, %v1290_v3  ;;  %v1291_v10 = vpack.c.bf16 %v987_v4, %v987_v4  ;;  %v927_v11 = vadd.f32 %v926_v2, %v806_v6  ;;  %v809_v12 = vadd.f32 %v1371_v5, %v1670_v8  ;;  %v931_v13 = vpop.f32.mrb[39].mxu1 }
 0x14a   : > { %1098 = vst.msk [vmem:[%s1684_s30 + $0x44] sm:$0xf] %vm1080_vm1, %v1291_v10  ;;  %v959_v14 = vmax.f32 %v927_v11, 0.0  ;;  %v930_v15 = vadd.f32 %v929_v9, %v809_v12  ;;  %v1372_v16 = vpop.f32.mrb[40].mxu0 }
 0x14b   : > { %v1373_v17 = vpop.f32.mrb[41].mxu0 }
 0x14c   : > { %v988_v18 = vadd.f32 %v1677_v20, %v959_v14  ;;  %v960_v19 = vmax.f32 %v930_v15, 0.0  ;;  %v1374_v21 = vadd.f32 %v1373_v17, %v1372_v16  ;;  %v1375_v22 = vpop.f32.mrb[42].mxu0 }
 0x14d   : > { %v1376_v23 = vpop.f32.mrb[43].mxu0  ;;  %v934_v24 = vpop.f32.mrb[40].mxu1 }
 0x14e   : > { %v1292_v25 = vpack.c.bf16 %v988_v18, %v988_v18  ;;  %v989_v26 = vadd.f32 %v1677_v20, %v960_v19  ;;  %v1377_v27 = vadd.f32 %v1376_v23, %v1375_v22  ;;  %v814_v28 = vadd.f32 %v1374_v21, %v1670_v8  ;;  %v936_v29 = vpop.f32.mrb[41].mxu1 }
 0x14f   : > { %v937_v30 = vpop.f32.mrb[42].mxu1 }
 0x150   : > { %1099 = vst.msk [vmem:[%s1684_s30 + $0x48] sm:$0xf] %vm1080_vm1, %v1292_v25  ;;  %v1293_v31 = vpack.c.bf16 %v989_v26, %v989_v26  ;;  %v935_v32 = vadd.f32 %v934_v24, %v814_v28  ;;  %v817_v33 = vadd.f32 %v1377_v27, %v1670_v8  ;;  %v939_v34 = vpop.f32.mrb[43].mxu1 }
 0x152   : > { %1100 = vst.msk [vmem:[%s1684_s30 + $0x4c] sm:$0xf] %vm1080_vm1, %v1293_v31  ;;  %v961_v35 = vmax.f32 %v935_v32, 0.0  ;;  %v938_v36 = vadd.f32 %v937_v30, %v817_v33 }
 0x154   : > { %v990_v37 = vadd.f32 %v1677_v20, %v961_v35  ;;  %v962_v38 = vmax.f32 %v938_v36, 0.0 }
 0x156   : > { %v1294_v39 = vpack.c.bf16 %v990_v37, %v990_v37  ;;  %v991_v40 = vadd.f32 %v1677_v20, %v962_v38 }
 0x158   : > { %1101 = vst.msk [vmem:[%s1684_s30 + $0x50] sm:$0xf] %vm1080_vm1, %v1294_v39  ;;  %v1295_v41 = vpack.c.bf16 %v991_v40, %v991_v40 }
 0x15a   : > { %1102 = vst.msk [vmem:[%s1684_s30 + $0x54] sm:$0xf] %vm1080_vm1, %v1295_v41 }
 0x15b PF: > { %s14_s15 = sadd.s32 1, %s1484_s15  }
 0x15c   : > { %p11_p4 = scmp.ge.s32.totalorder %s14_s15, 4  }
 0x15e   :  { %13 = sbr.rel (!%p11_p4) target bundleno = 1 (0x1), region = 66 }

// kernel: cnn_forward.10
= control target key start
LH: loop header
LB: loop body
LE: loop exit
PB: predicated region body
PF: predicated region fallthrough
CT: control target
= control target key end

     0   :  { %s1427_s15 = smov 0   ;;  %s1672_s0 = inlined_call_operand.vmem [shape: bf16[352,288], index: 0, kind: input, shape index: {}]   ;;  %s1673_s1 = inlined_call_operand.vmem [shape: bf16[288,64], index: 1, kind: input, shape index: {}]   ;;  %s1674_s2 = inlined_call_operand.vmem [shape: f32[1,64], index: 2, kind: input, shape index: {}]   ;;  %s1675_s3 = inlined_call_operand.vmem [shape: f32[1,64], index: 3, kind: input, shape index: {}]   ;;  %s1676_s4 = inlined_call_operand.vmem [shape: bf16[352,64], index: 4, kind: output, shape index: {}]  }
   0x1 LB: > { %s1059_s16 = sadd.s32 4294967295, %s1398_s15   ;;  %p1063_p0 = scmp.ge.s32.totalorder %s1398_s15, 1  ;;  %s1398_s15 = sphi %s1427_s15, %s14_s15  }
   0x2   : > { %p164_p1 = scmp.lt.s32.totalorder %s1398_s15, 3 }
   0x4   : > { %p165_p2 = pnand %p1063_p0, %p164_p1 }
   0x5   : > { %v1330_v0 = vld [vmem:[%s1673_s1 + $0x40] sm:$0xff] (!%p165_p2)   ;;  %v1400_v2 = vmov (!%p165_p2), 0.0   ;;  %s191_s21 = smul.u32 (!%p165_p2), 22, %s1059_s16  ;;  %v1332_v3 = vld [vmem:[%s1673_s1 + $0x48] sm:$0xff] (!%p165_p2)   ;;  %vm1401_vm0 = vmmov (!%p165_p2), 0   ;;  %v1334_v5 = vld [vmem:[%s1673_s1 + $0x50] sm:$0xff] (!%p165_p2)  }
   0x6   : > { %168 = sbr.rel (%p165_p2) target bundleno = 346 (0x15a), region = 36  ;;  %v1331_v1 = vld [vmem:[%s1673_s1] sm:$0xff] (!%p165_p2)   ;;  %1271 = vmatprep.subr.bf16.mxu1 (!%p165_p2), %v1400_v2  ;;  %1176 = vmatprep.subr.bf16.mxu0 (!%p165_p2), %v1330_v0  ;;  %v1333_v4 = vld [vmem:[%s1673_s1 + $0x8] sm:$0xff] (!%p165_p2)   ;;  %v1335_v6 = vld [vmem:[%s1673_s1 + $0x10] sm:$0xff] (!%p165_p2)   ;;  %vm565_vm1 = vcmask (!%p165_p2), 261120   ;;  %vm980_vm2 = vcmask (!%p165_p2), 519168  }
   0x7   : > { %1177 = vmatpush3.bf16.msra.mxu0 (!%p165_p2), %v1331_v1  ;;  %p192_p3 = scmp.lt.s32.totalorder (!%p165_p2), %s191_s21, 43  ;;  %1275 = vmatprep.mubr.msk.bf16.mxu1 (!%p165_p2), %vm1401_vm0, %v1400_v2  ;;  %v1336_v7 = vld [vmem:[%s1673_s1 + $0x58] sm:$0xff] (!%p165_p2)   ;;  %v1338_v9 = vld [vmem:[%s1673_s1 + $0x60] sm:$0xff] (!%p165_p2)   ;;  %v1340_v12 = vld [vmem:[%s1673_s1 + $0x68] sm:$0xff] (!%p165_p2)  }
   0x8   : > { %1178 = vmatprep.subr.bf16.mxu0 (!%p165_p2), %v1332_v3  ;;  %v1337_v8 = vld [vmem:[%s1673_s1 + $0x18] sm:$0xff] (!%p165_p2)   ;;  %v1344_v10 = vld [vmem:[%s1673_s1 + $0x80] sm:$0xff] (!%p165_p2)   ;;  %v1341_v13 = vld [vmem:[%s1673_s1 + $0x28] sm:$0xff] (!%p165_p2)  }
   0x9   : > { %v1339_v11 = vld [vmem:[%s1673_s1 + $0x20] sm:$0xff] (!%p165_p2)   ;;  %1272 = vmatpush3.bf16.msra.mxu1 (!%p165_p2), %v1344_v10  ;;  %v1342_v14 = vld [vmem:[%s1673_s1 + $0x70] sm:$0xff] (!%p165_p2)   ;;  %v1350_v16 = vld [vmem:[%s1673_s1 + $0x88] sm:$0xff] (!%p165_p2)  }
   0xa   : > { %1273 = vmatprep.subr.bf16.mxu1 (!%p165_p2), %v1400_v2  ;;  %v1343_v18 = vld [vmem:[%s1673_s1 + $0x30] sm:$0xff] (!%p165_p2)   ;;  %v1345_v19 = vld [vmem:[%s1673_s1 + $0x78] sm:$0xff] (!%p165_p2)   ;;  %v1568_v61 = vld [vmem:[%s1674_s2] ss:$0 sm:$0xff] (!%p165_p2) }
   0xb   : > { %1179 = vmatpush3.bf16.msra.mxu0 (!%p165_p2), %v1333_v4  ;;  %v1346_v20 = vld [vmem:[%s1673_s1 + $0x38] sm:$0xff] (!%p165_p2)  }
   0xc   : > { %1180 = vmatprep.subr.bf16.mxu0 (!%p165_p2), %v1334_v5 }
   0xd   : > { %s1678_s21 = smov (!%p192_p3, %s191_s21), 43  ;;  %1274 = vmatpush3.bf16.msra.mxu1 %v1350_v16 }
   0xe   : > { %s1319_s8 = smul.u32 12, %s1678_s21  ;;  %s1065_s12 = sshll.u32 %s1678_s21, 2 }
   0xf   : > { %1181 = vmatpush3.bf16.msra.mxu0 %v1335_v6  ;;  %s1582_s16 = scalar_lea.vmem %s1676_s4, %s1065_s12 }
  0x10   : > { %1182 = vmatprep.subr.bf16.mxu0 %v1336_v7  ;;  %s1477_s18 = scalar_lea.vmem %s1672_s0, %s1319_s8  ;;  %v1575_v7 = vld [vmem:[%s1675_s3] ss:$0 sm:$0xff] }
  0x11   : > { %v1349_v15 = vld [vmem:[%s1477_s18 + $0x4] ss:$12 sps:$4 sm:$0xff]   ;;  %v1351_v17 = vld [vmem:[%s1477_s18 + $0x8] ss:$12 sps:$4 sm:$0xff]   ;;  %v1355_v21 = vld [vmem:[%s1477_s18 + $0x20] ss:$12 sps:$4 sm:$0xff]  }
  0x12   : > { %631 = vmatprep.mubr.bf16.mxu0 %v1349_v15  ;;  %1276 = vmatmul.mubr.msk.bf16.vlgmr.msra.gmra.mrb[0].mxu1 %vm565_vm1, %v1351_v17  ;;  %v1347_v22 = vld [vmem:[%s1477_s18] ss:$12 sps:$4 sm:$0xff]   ;;  %v1352_v23 = vld [vmem:[%s1477_s18 + $0x1c] ss:$12 sps:$4 sm:$0xff]   ;;  %v1359_v24 = vld [vmem:[%s1477_s18 + $0x38] ss:$12 sps:$4 sm:$0xff]  }
  0x13   : > { %1183 = vmatpush3.bf16.msra.mxu0 %v1337_v8  ;;  %1279 = vmatprep.mubr.msk.bf16.mxu1 %vm1401_vm0, %v1400_v2  ;;  %v1354_v25 = vld [vmem:[%s1477_s18 + $0x18] ss:$12 sps:$4 sm:$0xff]   ;;  %v1356_v26 = vld [vmem:[%s1477_s18 + $0x34] ss:$12 sps:$4 sm:$0xff]   ;;  %v1363_v27 = vld [vmem:[%s1477_s18 + $0x50] ss:$12 sps:$4 sm:$0xff]  }
  0x14   : > { %1184 = vmatprep.subr.bf16.mxu0 %v1338_v9  ;;  %v1358_v28 = vld [vmem:[%s1477_s18 + $0x30] ss:$12 sps:$4 sm:$0xff]   ;;  %v1360_v29 = vld [vmem:[%s1477_s18 + $0x4c] ss:$12 sps:$4 sm:$0xff]   ;;  %v1367_v30 = vld [vmem:[%s1477_s18 + $0x68] ss:$12 sps:$4 sm:$0xff]  }
  0x15   : > { %v1362_v31 = vld [vmem:[%s1477_s18 + $0x48] ss:$12 sps:$4 sm:$0xff]   ;;  %v1364_v32 = vld [vmem:[%s1477_s18 + $0x64] ss:$12 sps:$4 sm:$0xff]   ;;  %v1371_v33 = vld [vmem:[%s1477_s18 + $0x80] ss:$12 sps:$4 sm:$0xff]  }
  0x16   : > { %v1366_v34 = vld [vmem:[%s1477_s18 + $0x60] ss:$12 sps:$4 sm:$0xff]   ;;  %v1368_v35 = vld [vmem:[%s1477_s18 + $0x7c] ss:$12 sps:$4 sm:$0xff]   ;;  %v1375_v36 = vld [vmem:[%s1477_s18 + $0x98] ss:$12 sps:$4 sm:$0xff]  }
  0x17   : > { %1185 = vmatpush3.bf16.msra.mxu0 %v1339_v11  ;;  %v1370_v37 = vld [vmem:[%s1477_s18 + $0x78] ss:$12 sps:$4 sm:$0xff]   ;;  %v1372_v38 = vld [vmem:[%s1477_s18 + $0x94] ss:$12 sps:$4 sm:$0xff]   ;;  %v1379_v39 = vld [vmem:[%s1477_s18 + $0xb0] ss:$12 sps:$4 sm:$0xff]  }
  0x18   : > { %1186 = vmatprep.subr.bf16.mxu0 %v1340_v12  ;;  %v1374_v40 = vld [vmem:[%s1477_s18 + $0x90] ss:$12 sps:$4 sm:$0xff]   ;;  %v1376_v41 = vld [vmem:[%s1477_s18 + $0xac] ss:$12 sps:$4 sm:$0xff]   ;;  %v1383_v42 = vld [vmem:[%s1477_s18 + $0xc8] ss:$12 sps:$4 sm:$0xff]  }
  0x19   : > { %v1378_v43 = vld [vmem:[%s1477_s18 + $0xa8] ss:$12 sps:$4 sm:$0xff]   ;;  %v1380_v44 = vld [vmem:[%s1477_s18 + $0xc4] ss:$12 sps:$4 sm:$0xff]   ;;  %v1387_v45 = vld [vmem:[%s1477_s18 + $0xe0] ss:$12 sps:$4 sm:$0xff]  }
  0x1a   : > { %1280 = vmatmul.mubr.msk.bf16.gmra.mrb[4].mxu1 %vm565_vm1, %v1355_v21  ;;  %v1382_v46 = vld [vmem:[%s1477_s18 + $0xc0] ss:$12 sps:$4 sm:$0xff]   ;;  %v1384_v47 = vld [vmem:[%s1477_s18 + $0xdc] ss:$12 sps:$4 sm:$0xff]   ;;  %v1391_v48 = vld [vmem:[%s1477_s18 + $0xf8] ss:$12 sps:$4 sm:$0xff]  }
  0x1b   : > { %1187 = vmatpush3.bf16.msra.mxu0 %v1341_v13  ;;  %1283 = vmatprep.mubr.msk.bf16.mxu1 %vm1401_vm0, %v1400_v2  ;;  %v1386_v49 = vld [vmem:[%s1477_s18 + $0xd8] ss:$12 sps:$4 sm:$0xff]   ;;  %v1388_v50 = vld [vmem:[%s1477_s18 + $0xf4] ss:$12 sps:$4 sm:$0xff]   ;;  %v1390_v51 = vld [vmem:[%s1477_s18 + $0xf0] ss:$12 sps:$4 sm:$0xff]  }
  0x1c   : > { %1188 = vmatprep.subr.bf16.mxu0 %v1342_v14 }
  0x1f   : > { %1189 = vmatpush3.bf16.msra.mxu0 %v1343_v18 }
  0x20   : > { %1190 = vmatprep.subr.bf16.mxu0 %v1345_v19 }
  0x22   : > { %1284 = vmatmul.mubr.msk.bf16.gmra.mrb[8].mxu1 %vm565_vm1, %v1359_v24 }
  0x23   : > { %1191 = vmatpush3.bf16.msra.mxu0 %v1346_v20  ;;  %1287 = vmatprep.mubr.msk.bf16.mxu1 %vm1401_vm0, %v1400_v2 }
  0x26   : > { %632 = vmatmul.mubr.bf16.vlgmr.msra.gmra.mrb[0].mxu0 %v1347_v22 }
  0x27   : > { %639 = vmatprep.mubr.bf16.mxu0 %v1352_v23 }
  0x2a   : > { %1288 = vmatmul.mubr.msk.bf16.gmra.mrb[12].mxu1 %vm565_vm1, %v1363_v27 }
  0x2b   : > { %1291 = vmatprep.mubr.msk.bf16.mxu1 %vm1401_vm0, %v1400_v2 }
  0x2e   : > { %640 = vmatmul.mubr.bf16.gmra.mrb[4].mxu0 %v1354_v25 }
  0x2f   : > { %647 = vmatprep.mubr.bf16.mxu0 %v1356_v26 }
  0x32   : > { %1292 = vmatmul.mubr.msk.bf16.gmra.mrb[16].mxu1 %vm565_vm1, %v1367_v30 }
  0x33   : > { %1295 = vmatprep.mubr.msk.bf16.mxu1 %vm1401_vm0, %v1400_v2 }
  0x36   : > { %648 = vmatmul.mubr.bf16.gmra.mrb[8].mxu0 %v1358_v28 }
  0x37   : > { %655 = vmatprep.mubr.bf16.mxu0 %v1360_v29 }
  0x3a   : > { %1296 = vmatmul.mubr.msk.bf16.gmra.mrb[20].mxu1 %vm565_vm1, %v1371_v33 }
  0x3b   : > { %1299 = vmatprep.mubr.msk.bf16.mxu1 %vm1401_vm0, %v1400_v2 }
  0x3e   : > { %656 = vmatmul.mubr.bf16.gmra.mrb[12].mxu0 %v1362_v31 }
  0x3f   : > { %663 = vmatprep.mubr.bf16.mxu0 %v1364_v32 }
  0x42   : > { %1300 = vmatmul.mubr.msk.bf16.gmra.mrb[24].mxu1 %vm565_vm1, %v1375_v36 }
  0x43   : > { %1303 = vmatprep.mubr.msk.bf16.mxu1 %vm1401_vm0, %v1400_v2 }
  0x46   : > { %664 = vmatmul.mubr.bf16.gmra.mrb[16].mxu0 %v1366_v34 }
  0x47   : > { %671 = vmatprep.mubr.bf16.mxu0 %v1368_v35 }
  0x4a   : > { %1304 = vmatmul.mubr.msk.bf16.gmra.mrb[28].mxu1 %vm565_vm1, %v1379_v39 }
  0x4b   : > { %1307 = vmatprep.mubr.msk.bf16.mxu1 %vm1401_vm0, %v1400_v2 }
  0x4e   : > { %672 = vmatmul.mubr.bf16.gmra.mrb[20].mxu0 %v1370_v37 }
  0x4f   : > { %679 = vmatprep.mubr.bf16.mxu0 %v1372_v38 }
  0x52   : > { %1308 = vmatmul.mubr.msk.bf16.gmra.mrb[32].mxu1 %vm565_vm1, %v1383_v42 }
  0x53   : > { %1311 = vmatprep.mubr.msk.bf16.mxu1 %vm1401_vm0, %v1400_v2 }
  0x56   : > { %680 = vmatmul.mubr.bf16.gmra.mrb[24].mxu0 %v1374_v40 }
  0x57   : > { %687 = vmatprep.mubr.bf16.mxu0 %v1376_v41 }
  0x5a   : > { %1312 = vmatmul.mubr.msk.bf16.gmra.mrb[36].mxu1 %vm565_vm1, %v1387_v45 }
  0x5b   : > { %1315 = vmatprep.mubr.msk.bf16.mxu1 %vm1401_vm0, %v1400_v2 }
  0x5e   : > { %688 = vmatmul.mubr.bf16.gmra.mrb[28].mxu0 %v1378_v43 }
  0x5f   : > { %695 = vmatprep.mubr.bf16.mxu0 %v1380_v44 }
  0x62   : > { %1316 = vmatmul.mubr.msk.bf16.gmra.mrb[40].mxu1 %vm565_vm1, %v1391_v48 }
  0x66   : > { %696 = vmatmul.mubr.bf16.gmra.mrb[32].mxu0 %v1382_v46 }
  0x67   : > { %703 = vmatprep.mubr.bf16.mxu0 %v1384_v47 }
  0x6e   : > { %704 = vmatmul.mubr.bf16.gmra.mrb[36].mxu0 %v1386_v49 }
  0x6f   : > { %711 = vmatprep.mubr.bf16.mxu0 %v1388_v50 }
  0x76   : > { %712 = vmatmul.mubr.bf16.gmra.mrb[40].mxu0 %v1390_v51 }
  0xe5   : > { %v754_v52 = vpop.f32.mrb[0].mxu1 }
  0xe6   : > { %v1277_v53 = vpop.f32.mrb[1].mxu1 }
  0xe7   : > { %v757_v54 = vpop.f32.mrb[2].mxu1 }
  0xe8   : > { %v1278_v55 = vpop.f32.mrb[3].mxu1 }
  0xed   : > { %v762_v56 = vpop.f32.mrb[4].mxu1 }
  0xee   : > { %v1281_v57 = vpop.f32.mrb[5].mxu1 }
  0xef   : > { %v765_v59 = vpop.f32.mrb[6].mxu1 }
  0xf0   : > { %v1282_v62 = vpop.f32.mrb[7].mxu1 }
  0xf5   : > { %v770_v6 = vpop.f32.mrb[8].mxu1 }
  0xf6   : > { %v1285_v8 = vpop.f32.mrb[9].mxu1 }
  0xf7   : > { %v773_v12 = vpop.f32.mrb[10].mxu1 }
  0xf8   : > { %v1286_v14 = vpop.f32.mrb[11].mxu1 }
  0xf9   : > { %v1192_v58 = vpop.f32.mrb[0].mxu0 }
  0xfa   : > { %v1193_v60 = vpop.f32.mrb[1].mxu0 }
  0xfb   : > { %v1194_v63 = vadd.f32 %v1193_v60, %v1192_v58  ;;  %v1195_v0 = vpop.f32.mrb[2].mxu0 }
  0xfc   : > { %v1196_v1 = vpop.f32.mrb[3].mxu0 }
  0xfd   : > { %v634_v2 = vadd.f32 %v1194_v63, %v1568_v61  ;;  %v1197_v3 = vadd.f32 %v1196_v1, %v1195_v0  ;;  %v778_v27 = vpop.f32.mrb[12].mxu1 }
  0xfe   : > { %v1289_v28 = vpop.f32.mrb[13].mxu1 }
  0xff   : > { %v755_v4 = vadd.f32 %v754_v52, %v634_v2  ;;  %v637_v5 = vadd.f32 %v1197_v3, %v1568_v61  ;;  %v781_v32 = vpop.f32.mrb[14].mxu1 }
 0x100   : > { %v1290_v34 = vpop.f32.mrb[15].mxu1 }
 0x101   : > { %v841_v9 = vmax.f32 %v755_v4, 0.0  ;;  %v758_v10 = vadd.f32 %v757_v54, %v637_v5  ;;  %v1198_v11 = vpop.f32.mrb[4].mxu0 }
 0x102   : > { %v1199_v13 = vpop.f32.mrb[5].mxu0 }
 0x103   : > { %v870_v15 = vadd.f32 %v1575_v7, %v841_v9  ;;  %v842_v16 = vmax.f32 %v758_v10, 0.0  ;;  %v1200_v17 = vadd.f32 %v1199_v13, %v1198_v11  ;;  %v1201_v18 = vpop.f32.mrb[6].mxu0 }
 0x104   : > { %v1202_v19 = vpop.f32.mrb[7].mxu0 }
 0x105   : > { %v1154_v20 = vpack.c.bf16 %v870_v15, %v870_v15  ;;  %v871_v21 = vadd.f32 %v1575_v7, %v842_v16  ;;  %v642_v22 = vadd.f32 %v1200_v17, %v1568_v61  ;;  %v1203_v23 = vadd.f32 %v1202_v19, %v1201_v18  ;;  %v786_v47 = vpop.f32.mrb[16].mxu1 }
 0x106   : > { %v1293_v48 = vpop.f32.mrb[17].mxu1 }
 0x107   : > { %981 = vst.msk [vmem:[%s1582_s16] sm:$0xf] %vm980_vm2, %v1154_v20  ;;  %v1155_v24 = vpack.c.bf16 %v871_v21, %v871_v21  ;;  %v763_v25 = vadd.f32 %v762_v56, %v642_v22  ;;  %v645_v26 = vadd.f32 %v1203_v23, %v1568_v61  ;;  %v789_v52 = vpop.f32.mrb[18].mxu1 }
 0x108   : > { %v1294_v54 = vpop.f32.mrb[19].mxu1 }
 0x109   : > { %982 = vst.msk [vmem:[%s1582_s16 + $0x4] sm:$0xf] %vm980_vm2, %v1155_v24  ;;  %v843_v29 = vmax.f32 %v763_v25, 0.0  ;;  %v766_v30 = vadd.f32 %v765_v59, %v645_v26  ;;  %v1204_v31 = vpop.f32.mrb[8].mxu0 }
 0x10a   : > { %v1205_v33 = vpop.f32.mrb[9].mxu0 }
 0x10b   : > { %v872_v35 = vadd.f32 %v1575_v7, %v843_v29  ;;  %v844_v36 = vmax.f32 %v766_v30, 0.0  ;;  %v1206_v37 = vadd.f32 %v1205_v33, %v1204_v31  ;;  %v1207_v38 = vpop.f32.mrb[10].mxu0 }
 0x10c   : > { %v1208_v39 = vpop.f32.mrb[11].mxu0 }
 0x10d   : > { %v1156_v40 = vpack.c.bf16 %v872_v35, %v872_v35  ;;  %v873_v41 = vadd.f32 %v1575_v7, %v844_v36  ;;  %v650_v42 = vadd.f32 %v1206_v37, %v1568_v61  ;;  %v1209_v43 = vadd.f32 %v1208_v39, %v1207_v38  ;;  %v794_v4 = vpop.f32.mrb[20].mxu1 }
 0x10e   : > { %v1297_v5 = vpop.f32.mrb[21].mxu1 }
 0x10f   : > { %983 = vst.msk [vmem:[%s1582_s16 + $0x8] sm:$0xf] %vm980_vm2, %v1156_v40  ;;  %v1157_v44 = vpack.c.bf16 %v873_v41, %v873_v41  ;;  %v771_v45 = vadd.f32 %v770_v6, %v650_v42  ;;  %v653_v46 = vadd.f32 %v1209_v43, %v1568_v61  ;;  %v797_v10 = vpop.f32.mrb[22].mxu1 }
 0x111   : > { %984 = vst.msk [vmem:[%s1582_s16 + $0xc] sm:$0xf] %vm980_vm2, %v1157_v44  ;;  %v845_v49 = vmax.f32 %v771_v45, 0.0  ;;  %v774_v50 = vadd.f32 %v773_v12, %v653_v46  ;;  %v1210_v51 = vpop.f32.mrb[12].mxu0  ;;  %v1298_v12 = vpop.f32.mrb[23].mxu1 }
 0x112   : > { %v1211_v53 = vpop.f32.mrb[13].mxu0 }
 0x113   : > { %v874_v55 = vadd.f32 %v1575_v7, %v845_v49  ;;  %v846_v56 = vmax.f32 %v774_v50, 0.0  ;;  %v1212_v57 = vadd.f32 %v1211_v53, %v1210_v51  ;;  %v1213_v58 = vpop.f32.mrb[14].mxu0 }
 0x114   : > { %v1214_v59 = vpop.f32.mrb[15].mxu0 }
 0x115   : > { %v1158_v60 = vpack.c.bf16 %v874_v55, %v874_v55  ;;  %v875_v62 = vadd.f32 %v1575_v7, %v846_v56  ;;  %v658_v63 = vadd.f32 %v1212_v57, %v1568_v61  ;;  %v1215_v0 = vadd.f32 %v1214_v59, %v1213_v58  ;;  %v802_v25 = vpop.f32.mrb[24].mxu1 }
 0x116   : > { %v1301_v26 = vpop.f32.mrb[25].mxu1 }
 0x117   : > { %985 = vst.msk [vmem:[%s1582_s16 + $0x10] sm:$0xf] %vm980_vm2, %v1158_v60  ;;  %v1159_v1 = vpack.c.bf16 %v875_v62, %v875_v62  ;;  %v779_v2 = vadd.f32 %v778_v27, %v658_v63  ;;  %v661_v3 = vadd.f32 %v1215_v0, %v1568_v61  ;;  %v805_v30 = vpop.f32.mrb[26].mxu1 }
 0x119   : > { %986 = vst.msk [vmem:[%s1582_s16 + $0x14] sm:$0xf] %vm980_vm2, %v1159_v1  ;;  %v847_v6 = vmax.f32 %v779_v2, 0.0  ;;  %v782_v8 = vadd.f32 %v781_v32, %v661_v3  ;;  %v1216_v9 = vpop.f32.mrb[16].mxu0  ;;  %v1302_v32 = vpop.f32.mrb[27].mxu1 }
 0x11a   : > { %v1217_v11 = vpop.f32.mrb[17].mxu0 }
 0x11b   : > { %v876_v13 = vadd.f32 %v1575_v7, %v847_v6  ;;  %v848_v14 = vmax.f32 %v782_v8, 0.0  ;;  %v1218_v15 = vadd.f32 %v1217_v11, %v1216_v9  ;;  %v1219_v16 = vpop.f32.mrb[18].mxu0 }
 0x11c   : > { %v1220_v17 = vpop.f32.mrb[19].mxu0 }
 0x11d   : > { %v1160_v18 = vpack.c.bf16 %v876_v13, %v876_v13  ;;  %v877_v19 = vadd.f32 %v1575_v7, %v848_v14  ;;  %v666_v20 = vadd.f32 %v1218_v15, %v1568_v61  ;;  %v1221_v21 = vadd.f32 %v1220_v17, %v1219_v16  ;;  %v810_v45 = vpop.f32.mrb[28].mxu1 }
 0x11e   : > { %v1305_v46 = vpop.f32.mrb[29].mxu1 }
 0x11f   : > { %987 = vst.msk [vmem:[%s1582_s16 + $0x18] sm:$0xf] %vm980_vm2, %v1160_v18  ;;  %v1161_v22 = vpack.c.bf16 %v877_v19, %v877_v19  ;;  %v787_v23 = vadd.f32 %v786_v47, %v666_v20  ;;  %v669_v24 = vadd.f32 %v1221_v21, %v1568_v61  ;;  %v813_v50 = vpop.f32.mrb[30].mxu1 }
 0x121   : > { %988 = vst.msk [vmem:[%s1582_s16 + $0x1c] sm:$0xf] %vm980_vm2, %v1161_v22  ;;  %v849_v27 = vmax.f32 %v787_v23, 0.0  ;;  %v790_v28 = vadd.f32 %v789_v52, %v669_v24  ;;  %v1222_v29 = vpop.f32.mrb[20].mxu0  ;;  %v1306_v52 = vpop.f32.mrb[31].mxu1 }
 0x122   : > { %v1223_v31 = vpop.f32.mrb[21].mxu0 }
 0x123   : > { %v878_v33 = vadd.f32 %v1575_v7, %v849_v27  ;;  %v850_v34 = vmax.f32 %v790_v28, 0.0  ;;  %v1224_v35 = vadd.f32 %v1223_v31, %v1222_v29  ;;  %v1225_v36 = vpop.f32.mrb[22].mxu0 }
 0x124   : > { %v1226_v37 = vpop.f32.mrb[23].mxu0 }
 0x125   : > { %v1162_v38 = vpack.c.bf16 %v878_v33, %v878_v33  ;;  %v879_v39 = vadd.f32 %v1575_v7, %v850_v34  ;;  %v674_v40 = vadd.f32 %v1224_v35, %v1568_v61  ;;  %v1227_v41 = vadd.f32 %v1226_v37, %v1225_v36  ;;  %v818_v2 = vpop.f32.mrb[32].mxu1 }
 0x126   : > { %v1309_v3 = vpop.f32.mrb[33].mxu1 }
 0x127   : > { %989 = vst.msk [vmem:[%s1582_s16 + $0x20] sm:$0xf] %vm980_vm2, %v1162_v38  ;;  %v1163_v42 = vpack.c.bf16 %v879_v39, %v879_v39  ;;  %v795_v43 = vadd.f32 %v794_v4, %v674_v40  ;;  %v677_v44 = vadd.f32 %v1227_v41, %v1568_v61  ;;  %v821_v8 = vpop.f32.mrb[34].mxu1 }
 0x129   : > { %990 = vst.msk [vmem:[%s1582_s16 + $0x24] sm:$0xf] %vm980_vm2, %v1163_v42  ;;  %v851_v47 = vmax.f32 %v795_v43, 0.0  ;;  %v798_v48 = vadd.f32 %v797_v10, %v677_v44  ;;  %v1228_v49 = vpop.f32.mrb[24].mxu0  ;;  %v1310_v10 = vpop.f32.mrb[35].mxu1 }
 0x12a   : > { %v1229_v51 = vpop.f32.mrb[25].mxu0 }
 0x12b   : > { %v880_v53 = vadd.f32 %v1575_v7, %v851_v47  ;;  %v852_v54 = vmax.f32 %v798_v48, 0.0  ;;  %v1230_v55 = vadd.f32 %v1229_v51, %v1228_v49  ;;  %v1231_v56 = vpop.f32.mrb[26].mxu0 }
 0x12c   : > { %v1232_v57 = vpop.f32.mrb[27].mxu0 }
 0x12d   : > { %v1164_v58 = vpack.c.bf16 %v880_v53, %v880_v53  ;;  %v881_v59 = vadd.f32 %v1575_v7, %v852_v54  ;;  %v682_v60 = vadd.f32 %v1230_v55, %v1568_v61  ;;  %v1233_v62 = vadd.f32 %v1232_v57, %v1231_v56  ;;  %v826_v23 = vpop.f32.mrb[36].mxu1 }
 0x12e   : > { %v1313_v24 = vpop.f32.mrb[37].mxu1 }
 0x12f   : > { %991 = vst.msk [vmem:[%s1582_s16 + $0x28] sm:$0xf] %vm980_vm2, %v1164_v58  ;;  %v1165_v63 = vpack.c.bf16 %v881_v59, %v881_v59  ;;  %v803_v0 = vadd.f32 %v802_v25, %v682_v60  ;;  %v685_v1 = vadd.f32 %v1233_v62, %v1568_v61  ;;  %v829_v28 = vpop.f32.mrb[38].mxu1 }
 0x131   : > { %992 = vst.msk [vmem:[%s1582_s16 + $0x2c] sm:$0xf] %vm980_vm2, %v1165_v63  ;;  %v853_v4 = vmax.f32 %v803_v0, 0.0  ;;  %v806_v5 = vadd.f32 %v805_v30, %v685_v1  ;;  %v1234_v6 = vpop.f32.mrb[28].mxu0  ;;  %v1314_v30 = vpop.f32.mrb[39].mxu1 }
 0x132   : > { %v1235_v9 = vpop.f32.mrb[29].mxu0 }
 0x133   : > { %v882_v11 = vadd.f32 %v1575_v7, %v853_v4  ;;  %v854_v12 = vmax.f32 %v806_v5, 0.0  ;;  %v1236_v13 = vadd.f32 %v1235_v9, %v1234_v6  ;;  %v1237_v14 = vpop.f32.mrb[30].mxu0 }
 0x134   : > { %v1238_v15 = vpop.f32.mrb[31].mxu0 }
 0x135   : > { %v1166_v16 = vpack.c.bf16 %v882_v11, %v882_v11  ;;  %v883_v17 = vadd.f32 %v1575_v7, %v854_v12  ;;  %v690_v18 = vadd.f32 %v1236_v13, %v1568_v61  ;;  %v1239_v19 = vadd.f32 %v1238_v15, %v1237_v14  ;;  %v834_v43 = vpop.f32.mrb[40].mxu1 }
 0x136   : > { %v1317_v44 = vpop.f32.mrb[41].mxu1 }
 0x137   : > { %993 = vst.msk [vmem:[%s1582_s16 + $0x30] sm:$0xf] %vm980_vm2, %v1166_v16  ;;  %v1167_v20 = vpack.c.bf16 %v883_v17, %v883_v17  ;;  %v811_v21 = vadd.f32 %v810_v45, %v690_v18  ;;  %v693_v22 = vadd.f32 %v1239_v19, %v1568_v61  ;;  %v837_v48 = vpop.f32.mrb[42].mxu1 }
 0x139   : > { %994 = vst.msk [vmem:[%s1582_s16 + $0x34] sm:$0xf] %vm980_vm2, %v1167_v20  ;;  %v855_v25 = vmax.f32 %v811_v21, 0.0  ;;  %v814_v26 = vadd.f32 %v813_v50, %v693_v22  ;;  %v1240_v27 = vpop.f32.mrb[32].mxu0  ;;  %v1318_v50 = vpop.f32.mrb[43].mxu1 }
 0x13a   : > { %v1241_v29 = vpop.f32.mrb[33].mxu0 }
 0x13b   : > { %v884_v31 = vadd.f32 %v1575_v7, %v855_v25  ;;  %v856_v32 = vmax.f32 %v814_v26, 0.0  ;;  %v1242_v33 = vadd.f32 %v1241_v29, %v1240_v27  ;;  %v1243_v34 = vpop.f32.mrb[34].mxu0 }
 0x13c   : > { %v1244_v35 = vpop.f32.mrb[35].mxu0 }
 0x13d   : > { %v1168_v36 = vpack.c.bf16 %v884_v31, %v884_v31  ;;  %v885_v37 = vadd.f32 %v1575_v7, %v856_v32  ;;  %v698_v38 = vadd.f32 %v1242_v33, %v1568_v61  ;;  %v1245_v39 = vadd.f32 %v1244_v35, %v1243_v34 }
 0x13f   : > { %995 = vst.msk [vmem:[%s1582_s16 + $0x38] sm:$0xf] %vm980_vm2, %v1168_v36  ;;  %v1169_v40 = vpack.c.bf16 %v885_v37, %v885_v37  ;;  %v819_v41 = vadd.f32 %v818_v2, %v698_v38  ;;  %v701_v42 = vadd.f32 %v1245_v39, %v1568_v61 }
 0x141   : > { %996 = vst.msk [vmem:[%s1582_s16 + $0x3c] sm:$0xf] %vm980_vm2, %v1169_v40  ;;  %v857_v45 = vmax.f32 %v819_v41, 0.0  ;;  %v822_v46 = vadd.f32 %v821_v8, %v701_v42  ;;  %v1246_v47 = vpop.f32.mrb[36].mxu0 }
 0x142   : > { %v1247_v49 = vpop.f32.mrb[37].mxu0 }
 0x143   : > { %v886_v51 = vadd.f32 %v1575_v7, %v857_v45  ;;  %v858_v52 = vmax.f32 %v822_v46, 0.0  ;;  %v1248_v53 = vadd.f32 %v1247_v49, %v1246_v47  ;;  %v1249_v54 = vpop.f32.mrb[38].mxu0 }
 0x144   : > { %v1250_v55 = vpop.f32.mrb[39].mxu0 }
 0x145   : > { %v1170_v56 = vpack.c.bf16 %v886_v51, %v886_v51  ;;  %v887_v57 = vadd.f32 %v1575_v7, %v858_v52  ;;  %v706_v58 = vadd.f32 %v1248_v53, %v1568_v61  ;;  %v1251_v59 = vadd.f32 %v1250_v55, %v1249_v54 }
 0x147   : > { %997 = vst.msk [vmem:[%s1582_s16 + $0x40] sm:$0xf] %vm980_vm2, %v1170_v56  ;;  %v1171_v60 = vpack.c.bf16 %v887_v57, %v887_v57  ;;  %v827_v62 = vadd.f32 %v826_v23, %v706_v58  ;;  %v709_v63 = vadd.f32 %v1251_v59, %v1568_v61 }
 0x149   : > { %998 = vst.msk [vmem:[%s1582_s16 + $0x44] sm:$0xf] %vm980_vm2, %v1171_v60  ;;  %v859_v0 = vmax.f32 %v827_v62, 0.0  ;;  %v830_v1 = vadd.f32 %v829_v28, %v709_v63  ;;  %v1252_v2 = vpop.f32.mrb[40].mxu0 }
 0x14a   : > { %v1253_v3 = vpop.f32.mrb[41].mxu0 }
 0x14b   : > { %v888_v4 = vadd.f32 %v1575_v7, %v859_v0  ;;  %v860_v5 = vmax.f32 %v830_v1, 0.0  ;;  %v1254_v6 = vadd.f32 %v1253_v3, %v1252_v2  ;;  %v1255_v8 = vpop.f32.mrb[42].mxu0 }
 0x14c   : > { %v1256_v9 = vpop.f32.mrb[43].mxu0 }
 0x14d   : > { %v1172_v10 = vpack.c.bf16 %v888_v4, %v888_v4  ;;  %v889_v11 = vadd.f32 %v1575_v7, %v860_v5  ;;  %v714_v12 = vadd.f32 %v1254_v6, %v1568_v61  ;;  %v1257_v13 = vadd.f32 %v1256_v9, %v1255_v8 }
 0x14f   : > { %999 = vst.msk [vmem:[%s1582_s16 + $0x48] sm:$0xf] %vm980_vm2, %v1172_v10  ;;  %v1173_v14 = vpack.c.bf16 %v889_v11, %v889_v11  ;;  %v835_v15 = vadd.f32 %v834_v43, %v714_v12  ;;  %v717_v16 = vadd.f32 %v1257_v13, %v1568_v61 }
 0x151   : > { %1000 = vst.msk [vmem:[%s1582_s16 + $0x4c] sm:$0xf] %vm980_vm2, %v1173_v14  ;;  %v861_v17 = vmax.f32 %v835_v15, 0.0  ;;  %v838_v18 = vadd.f32 %v837_v48, %v717_v16 }
 0x153   : > { %v890_v19 = vadd.f32 %v1575_v7, %v861_v17  ;;  %v862_v20 = vmax.f32 %v838_v18, 0.0 }
 0x155   : > { %v1174_v21 = vpack.c.bf16 %v890_v19, %v890_v19  ;;  %v891_v22 = vadd.f32 %v1575_v7, %v862_v20 }
 0x157   : > { %1001 = vst.msk [vmem:[%s1582_s16 + $0x50] sm:$0xf] %vm980_vm2, %v1174_v21  ;;  %v1175_v23 = vpack.c.bf16 %v891_v22, %v891_v22 }
 0x159   : > { %1002 = vst.msk [vmem:[%s1582_s16 + $0x54] sm:$0xf] %vm980_vm2, %v1175_v23 }
 0x15a PF: > { %s14_s15 = sadd.s32 1, %s1398_s15  }
 0x15b   : > { %p11_p4 = scmp.ge.s32.totalorder %s14_s15, 4  }
 0x15d   :  { %13 = sbr.rel (!%p11_p4) target bundleno = 1 (0x1), region = 66 }

// kernel: cnn_forward.11
= control target key start
LH: loop header
LB: loop body
LE: loop exit
PB: predicated region body
PF: predicated region fallthrough
CT: control target
= control target key end

     0   :  { %s2083_s15 = smov 0   ;;  %s2439_s0 = inlined_call_operand.vmem [shape: bf16[352,576], index: 0, kind: input, shape index: {}]   ;;  %s2440_s1 = inlined_call_operand.vmem [shape: bf16[576,128], index: 1, kind: input, shape index: {}]   ;;  %s2441_s2 = inlined_call_operand.vmem [shape: f32[1,128], index: 2, kind: input, shape index: {}]   ;;  %s2442_s3 = inlined_call_operand.vmem [shape: f32[1,128], index: 3, kind: input, shape index: {}]   ;;  %s2443_s4 = inlined_call_operand.vmem [shape: bf16[352,128], index: 4, kind: output, shape index: {}]  }
   0x1 LB: > { %s1455_s16 = sadd.s32 4294967295, %s2054_s15   ;;  %p1459_p0 = scmp.ge.s32.totalorder %s2054_s15, 1  ;;  %s2054_s15 = sphi %s2083_s15, %s14_s15  }
   0x2   : > { %p164_p1 = scmp.lt.s32.totalorder %s2054_s15, 3 }
   0x4   : > { %p165_p2 = pnand %p1459_p0, %p164_p1 }
   0x5   : > { %v1935_v0 = vld [vmem:[%s2440_s1 + $0x40] sm:$0xff] (!%p165_p2)   ;;  %s191_s19 = smul.u32 (!%p165_p2), 22, %s1455_s16  ;;  %v1937_v2 = vld [vmem:[%s2440_s1 + $0x48] sm:$0xff] (!%p165_p2)   ;;  %v1939_v4 = vld [vmem:[%s2440_s1 + $0x50] sm:$0xff] (!%p165_p2)   ;;  %v2056_v24 = vmov (!%p165_p2), 0.0   ;;  %vm2057_vm0 = vmmov (!%p165_p2), 0  }
   0x6   : > { %168 = sbr.rel (%p165_p2) target bundleno = 389 (0x185), region = 36  ;;  %v1936_v1 = vld [vmem:[%s2440_s1] sm:$0xff] (!%p165_p2)   ;;  %1677 = vmatprep.subr.bf16.mxu0 (!%p165_p2), %v1935_v0  ;;  %1908 = vmatprep.subr.bf16.mxu1 (!%p165_p2), %v1935_v0  ;;  %v1938_v3 = vld [vmem:[%s2440_s1 + $0x8] sm:$0xff] (!%p165_p2)   ;;  %v1940_v5 = vld [vmem:[%s2440_s1 + $0x10] sm:$0xff] (!%p165_p2)   ;;  %vm841_vm1 = vcmask (!%p165_p2), 523264  }
   0x7   : > { %p192_p3 = scmp.lt.s32.totalorder (!%p165_p2), %s191_s19, 43  ;;  %1678 = vmatpush3.bf16.msra.mxu0 (!%p165_p2), %v1936_v1  ;;  %1916 = vmatpush3.bf16.msra.mxu1 (!%p165_p2), %v1936_v1  ;;  %v1941_v6 = vld [vmem:[%s2440_s1 + $0x58] sm:$0xff] (!%p165_p2)   ;;  %v1943_v8 = vld [vmem:[%s2440_s1 + $0x60] sm:$0xff] (!%p165_p2)   ;;  %v1945_v10 = vld [vmem:[%s2440_s1 + $0x68] sm:$0xff] (!%p165_p2)  }
   0x8   : > { %1679 = vmatprep.subr.bf16.mxu0 (!%p165_p2), %v1937_v2  ;;  %1909 = vmatprep.subr.bf16.mxu1 (!%p165_p2), %v1937_v2  ;;  %v1942_v7 = vld [vmem:[%s2440_s1 + $0x18] sm:$0xff] (!%p165_p2)   ;;  %v1944_v9 = vld [vmem:[%s2440_s1 + $0x20] sm:$0xff] (!%p165_p2)   ;;  %v1946_v13 = vld [vmem:[%s2440_s1 + $0x28] sm:$0xff] (!%p165_p2)  }
   0x9   : > { %v1947_v14 = vld [vmem:[%s2440_s1 + $0x70] sm:$0xff] (!%p165_p2)   ;;  %v1949_v16 = vld [vmem:[%s2440_s1 + $0x78] sm:$0xff] (!%p165_p2)   ;;  %v1958_v18 = vld [vmem:[%s2440_s1 + $0xc0] sm:$0xff] (!%p165_p2)  }
   0xa   : > { %v1948_v15 = vld [vmem:[%s2440_s1 + $0x30] sm:$0xff] (!%p165_p2)   ;;  %v1950_v17 = vld [vmem:[%s2440_s1 + $0x38] sm:$0xff] (!%p165_p2)   ;;  %v1957_v21 = vld [vmem:[%s2440_s1 + $0x100] sm:$0xff] (!%p165_p2)  }
   0xb   : > { %1680 = vmatpush3.bf16.msra.mxu0 (!%p165_p2), %v1938_v3  ;;  %1917 = vmatpush3.bf16.msra.mxu1 (!%p165_p2), %v1938_v3  ;;  %v1959_v22 = vld [vmem:[%s2440_s1 + $0x80] sm:$0xff] (!%p165_p2)   ;;  %v1966_v26 = vld [vmem:[%s2440_s1 + $0xc8] sm:$0xff] (!%p165_p2)   ;;  %v1968_v30 = vld [vmem:[%s2440_s1 + $0xd0] sm:$0xff] (!%p165_p2)  }
   0xc   : > { %1681 = vmatprep.subr.bf16.mxu0 (!%p165_p2), %v1939_v4  ;;  %1910 = vmatprep.subr.bf16.mxu1 (!%p165_p2), %v1939_v4  ;;  %v1967_v27 = vld [vmem:[%s2440_s1 + $0x88] sm:$0xff] (!%p165_p2)   ;;  %v1970_v32 = vld [vmem:[%s2440_s1 + $0x90] sm:$0xff] (!%p165_p2)   ;;  %v1977_v35 = vld [vmem:[%s2440_s1 + $0xd8] sm:$0xff] (!%p165_p2)  }
   0xd   : > { %s2445_s19 = smov (!%p192_p3, %s191_s19), 43  ;;  %v1969_v28 = vld [vmem:[%s2440_s1 + $0x108] sm:$0xff]   ;;  %v1987_v36 = vld [vmem:[%s2440_s1 + $0x110] sm:$0xff]   ;;  %v1978_v37 = vld [vmem:[%s2440_s1 + $0x98] sm:$0xff]  }
   0xe   : > { %s1924_s6 = smul.u32 20, %s2445_s19  ;;  %v1983_v40 = vld [vmem:[%s2440_s1 + $0xe0] sm:$0xff]   ;;  %v1988_v44 = vld [vmem:[%s2440_s1 + $0xe8] sm:$0xff]   ;;  %v2000_v45 = vld [vmem:[%s2440_s1 + $0x118] sm:$0xff]   ;;  %s1461_s27 = sshll.u32 %s2445_s19, 2 }
   0xf   : > { %1682 = vmatpush3.bf16.msra.mxu0 %v1940_v5  ;;  %1918 = vmatpush3.bf16.msra.mxu1 %v1940_v5  ;;  %v1986_v43 = vld [vmem:[%s2440_s1 + $0xa0] sm:$0xff]   ;;  %v1989_v47 = vld [vmem:[%s2440_s1 + $0xa8] sm:$0xff]   ;;  %v1996_v48 = vld [vmem:[%s2440_s1 + $0xf0] sm:$0xff]   ;;  %s2373_s30 = scalar_lea.vmem %s2443_s4, %s1461_s27 }
  0x10   : > { %1683 = vmatprep.subr.bf16.mxu0 %v1941_v6  ;;  %1911 = vmatprep.subr.bf16.mxu1 %v1941_v6  ;;  %s2124_s13 = scalar_lea.vmem %s2439_s0, %s1924_s6  ;;  %v1997_v52 = vld [vmem:[%s2440_s1 + $0xb0] sm:$0xff]   ;;  %v1998_v53 = vld [vmem:[%s2440_s1 + $0xf8] sm:$0xff]  }
  0x11   : > { %v1953_v11 = vld [vmem:[%s2124_s13 + $0x4] ss:$20 sps:$4 sm:$0xff]   ;;  %v1956_v12 = vld [vmem:[%s2124_s13 + $0xf4] ss:$20 sps:$4 sm:$0xff]   ;;  %v1960_v23 = vld [vmem:[%s2124_s13 + $0x2c] ss:$20 sps:$4 sm:$0xff]  }
  0x12   : > { %907 = vmatprep.mubr.bf16.mxu0 %v1953_v11  ;;  %955 = vmatprep.mubr.bf16.mxu1 %v1956_v12  ;;  %v1951_v19 = vld [vmem:[%s2124_s13] ss:$20 sps:$4 sm:$0xff]   ;;  %v1954_v20 = vld [vmem:[%s2124_s13 + $0xf0] ss:$20 sps:$4 sm:$0xff]   ;;  %v1964_v29 = vld [vmem:[%s2124_s13 + $0x28] ss:$20 sps:$4 sm:$0xff]  }
  0x13   : > { %1684 = vmatpush3.bf16.msra.mxu0 %v1942_v7  ;;  %1919 = vmatpush3.bf16.msra.mxu1 %v1942_v7  ;;  %v1962_v25 = vld [vmem:[%s2124_s13 + $0x11c] ss:$20 sps:$4 sm:$0xff]   ;;  %v1965_v31 = vld [vmem:[%s2124_s13 + $0x118] ss:$20 sps:$4 sm:$0xff]   ;;  %v1971_v33 = vld [vmem:[%s2124_s13 + $0x54] ss:$20 sps:$4 sm:$0xff]  }
  0x14   : > { %1685 = vmatprep.subr.bf16.mxu0 %v1943_v8  ;;  %1912 = vmatprep.subr.bf16.mxu1 %v1943_v8  ;;  %v1973_v34 = vld [vmem:[%s2124_s13 + $0x144] ss:$20 sps:$4 sm:$0xff]   ;;  %v1976_v39 = vld [vmem:[%s2124_s13 + $0x140] ss:$20 sps:$4 sm:$0xff]   ;;  %v1979_v41 = vld [vmem:[%s2124_s13 + $0x7c] ss:$20 sps:$4 sm:$0xff]  }
  0x15   : > { %v1975_v38 = vld [vmem:[%s2124_s13 + $0x50] ss:$20 sps:$4 sm:$0xff]   ;;  %v1981_v42 = vld [vmem:[%s2124_s13 + $0x16c] ss:$20 sps:$4 sm:$0xff]   ;;  %v1985_v49 = vld [vmem:[%s2124_s13 + $0x168] ss:$20 sps:$4 sm:$0xff]  }
  0x16   : > { %v1984_v46 = vld [vmem:[%s2124_s13 + $0x78] ss:$20 sps:$4 sm:$0xff]   ;;  %v1992_v51 = vld [vmem:[%s2124_s13 + $0x194] ss:$20 sps:$4 sm:$0xff]   ;;  %v1995_v56 = vld [vmem:[%s2124_s13 + $0x190] ss:$20 sps:$4 sm:$0xff]  }
  0x17   : > { %1686 = vmatpush3.bf16.msra.mxu0 %v1944_v9  ;;  %1920 = vmatpush3.bf16.msra.mxu1 %v1944_v9  ;;  %v1990_v50 = vld [vmem:[%s2124_s13 + $0xa4] ss:$20 sps:$4 sm:$0xff]   ;;  %v1994_v55 = vld [vmem:[%s2124_s13 + $0xa0] ss:$20 sps:$4 sm:$0xff]   ;;  %v2003_v59 = vld [vmem:[%s2124_s13 + $0x8] ss:$20 sps:$4 sm:$0xff]  }
  0x18   : > { %1687 = vmatprep.subr.bf16.mxu0 %v1945_v10  ;;  %1913 = vmatprep.subr.bf16.mxu1 %v1945_v10  ;;  %v1999_v54 = vld [vmem:[%s2440_s1 + $0xb8] sm:$0xff]   ;;  %v2001_v57 = vld [vmem:[%s2124_s13 + $0xcc] ss:$20 sps:$4 sm:$0xff]   ;;  %v2007_v61 = vld [vmem:[%s2124_s13 + $0x34] ss:$20 sps:$4 sm:$0xff]  }
  0x19   : > { %v2005_v58 = vld [vmem:[%s2124_s13 + $0xc] ss:$20 sps:$4 sm:$0xff]   ;;  %v2006_v60 = vld [vmem:[%s2124_s13 + $0xc8] ss:$20 sps:$4 sm:$0xff]   ;;  %v2009_v62 = vld [vmem:[%s2124_s13 + $0x30] ss:$20 sps:$4 sm:$0xff]  }
  0x1a   : > { %v2010_v63 = vld [vmem:[%s2124_s13 + $0x10] ss:$20 sps:$4 sm:$0xff]   ;;  %v2013_v1 = vld [vmem:[%s2124_s13 + $0x58] ss:$20 sps:$4 sm:$0xff]   ;;  %v2017_v4 = vld [vmem:[%s2124_s13 + $0x80] ss:$20 sps:$4 sm:$0xff]  }
  0x1b   : > { %1688 = vmatpush3.bf16.msra.mxu0 %v1946_v13  ;;  %1921 = vmatpush3.bf16.msra.mxu1 %v1946_v13  ;;  %v2011_v0 = vld [vmem:[%s2124_s13 + $0x5c] ss:$20 sps:$4 sm:$0xff]   ;;  %v2014_v2 = vld [vmem:[%s2124_s13 + $0x38] ss:$20 sps:$4 sm:$0xff]   ;;  %v2018_v5 = vld [vmem:[%s2124_s13 + $0x60] ss:$20 sps:$4 sm:$0xff]  }
  0x1c   : > { %1689 = vmatprep.subr.bf16.mxu0 %v1947_v14  ;;  %1914 = vmatprep.subr.bf16.mxu1 %v1947_v14  ;;  %v2015_v3 = vld [vmem:[%s2124_s13 + $0x84] ss:$20 sps:$4 sm:$0xff]   ;;  %v2019_v6 = vld [vmem:[%s2124_s13 + $0xac] ss:$20 sps:$4 sm:$0xff]   ;;  %v2021_v7 = vld [vmem:[%s2124_s13 + $0xa8] ss:$20 sps:$4 sm:$0xff]  }
  0x1d   : > { %v2022_v8 = vld [vmem:[%s2124_s13 + $0x88] ss:$20 sps:$4 sm:$0xff]   ;;  %v2025_v10 = vld [vmem:[%s2124_s13 + $0xd0] ss:$20 sps:$4 sm:$0xff]   ;;  %v2029_v13 = vld [vmem:[%s2124_s13 + $0xf8] ss:$20 sps:$4 sm:$0xff]  }
  0x1e   : > { %v2023_v9 = vld [vmem:[%s2124_s13 + $0xd4] ss:$20 sps:$4 sm:$0xff]   ;;  %v2026_v11 = vld [vmem:[%s2124_s13 + $0xb0] ss:$20 sps:$4 sm:$0xff]   ;;  %v2030_v14 = vld [vmem:[%s2124_s13 + $0xd8] ss:$20 sps:$4 sm:$0xff]  }
  0x1f   : > { %1690 = vmatpush3.bf16.msra.mxu0 %v1948_v15  ;;  %1922 = vmatpush3.bf16.msra.mxu1 %v1948_v15  ;;  %v2027_v12 = vld [vmem:[%s2124_s13 + $0xfc] ss:$20 sps:$4 sm:$0xff]   ;;  %v2031_v15 = vld [vmem:[%s2124_s13 + $0x124] ss:$20 sps:$4 sm:$0xff]  }
  0x20   : > { %1691 = vmatprep.subr.bf16.mxu0 %v1949_v16  ;;  %1915 = vmatprep.subr.bf16.mxu1 %v1949_v16  ;;  %v2033_v16 = vld [vmem:[%s2124_s13 + $0x120] ss:$20 sps:$4 sm:$0xff]  }
  0x23   : > { %1692 = vmatpush3.bf16.msra.mxu0 %v1950_v17  ;;  %1923 = vmatpush3.bf16.msra.mxu1 %v1950_v17  ;;  %v2034_v17 = vld [vmem:[%s2124_s13 + $0x100] ss:$20 sps:$4 sm:$0xff]  }
  0x24   : > { %1856 = vmatprep.subr.bf16.mxu0 %v2056_v24  ;;  %1759 = vmatprep.subr.bf16.mxu1 %v1958_v18  ;;  %v2035_v18 = vld [vmem:[%s2124_s13 + $0x14c] ss:$20 sps:$4 sm:$0xff]  }
  0x26   : > { %908 = vmatmul.mubr.bf16.vlgmr.msra.gmra.mrb[0].mxu0 %v1951_v19  ;;  %956 = vmatmul.mubr.bf16.vlgmr.msra.gmra.mrb[0].mxu1 %v1954_v20  ;;  %v2037_v19 = vld [vmem:[%s2124_s13 + $0x148] ss:$20 sps:$4 sm:$0xff]  }
  0x27   : > { %1857 = vmatpush3.bf16.msra.mxu0 %v1957_v21  ;;  %1760 = vmatpush3.bf16.msra.mxu1 %v1959_v22  ;;  %v2038_v20 = vld [vmem:[%s2124_s13 + $0x128] ss:$20 sps:$4 sm:$0xff]   ;;  %v2041_v22 = vld [vmem:[%s2124_s13 + $0x170] ss:$20 sps:$4 sm:$0xff]  }
  0x28   : > { %915 = vmatprep.mubr.bf16.mxu0 %v1960_v23  ;;  %963 = vmatprep.mubr.bf16.mxu1 %v1962_v25  ;;  %v2039_v21 = vld [vmem:[%s2124_s13 + $0x174] ss:$20 sps:$4 sm:$0xff]   ;;  %v2042_v23 = vld [vmem:[%s2124_s13 + $0x150] ss:$20 sps:$4 sm:$0xff]  }
  0x29   : > { %1761 = vmatprep.subr.bf16.mxu1 %v1966_v26  ;;  %1858 = vmatprep.subr.bf16.mxu0 %v2056_v24  ;;  %v2043_v25 = vld [vmem:[%s2124_s13 + $0x19c] ss:$20 sps:$4 sm:$0xff]   ;;  %v2045_v26 = vld [vmem:[%s2124_s13 + $0x198] ss:$20 sps:$4 sm:$0xff]  }
  0x2b   : > { %1762 = vmatpush3.bf16.msra.mxu1 %v1967_v27  ;;  %1859 = vmatpush3.bf16.msra.mxu0 %v1969_v28  ;;  %v2046_v27 = vld [vmem:[%s2124_s13 + $0x178] ss:$20 sps:$4 sm:$0xff]   ;;  %v2047_v28 = vld [vmem:[%s2124_s13 + $0x1a0] ss:$20 sps:$4 sm:$0xff]  }
  0x2c   : > { %1763 = vmatprep.subr.bf16.mxu1 %v1968_v30  ;;  %1860 = vmatprep.subr.bf16.mxu0 %v2056_v24 }
  0x2e   : > { %916 = vmatmul.mubr.bf16.gmra.mrb[4].mxu0 %v1964_v29  ;;  %964 = vmatmul.mubr.bf16.gmra.mrb[4].mxu1 %v1965_v31 }
  0x2f   : > { %1764 = vmatpush3.bf16.msra.mxu1 %v1970_v32  ;;  %923 = vmatprep.mubr.bf16.mxu0 %v1971_v33 }
  0x30   : > { %971 = vmatprep.mubr.bf16.mxu1 %v1973_v34  ;;  %1765 = vmatprep.subr.bf16.mxu1 %v1977_v35 }
  0x31   : > { %1861 = vmatpush3.bf16.msra.mxu0 %v1987_v36 }
  0x32   : > { %1862 = vmatprep.subr.bf16.mxu0 %v2056_v24 }
  0x33   : > { %1766 = vmatpush3.bf16.msra.mxu1 %v1978_v37 }
  0x34   : > { %1767 = vmatprep.subr.bf16.mxu1 %v1983_v40 }
  0x35   : > { %1863 = vmatpush3.bf16.msra.mxu0 %v2000_v45 }
  0x36   : > { %924 = vmatmul.mubr.bf16.gmra.mrb[8].mxu0 %v1975_v38  ;;  %972 = vmatmul.mubr.bf16.gmra.mrb[8].mxu1 %v1976_v39 }
  0x37   : > { %931 = vmatprep.mubr.bf16.mxu0 %v1979_v41  ;;  %979 = vmatprep.mubr.bf16.mxu1 %v1981_v42 }
  0x38   : > { %1768 = vmatpush3.bf16.msra.mxu1 %v1986_v43 }
  0x39   : > { %1769 = vmatprep.subr.bf16.mxu1 %v1988_v44 }
  0x3c   : > { %1770 = vmatpush3.bf16.msra.mxu1 %v1989_v47 }
  0x3d   : > { %1771 = vmatprep.subr.bf16.mxu1 %v1996_v48 }
  0x3e   : > { %932 = vmatmul.mubr.bf16.gmra.mrb[12].mxu0 %v1984_v46  ;;  %980 = vmatmul.mubr.bf16.gmra.mrb[12].mxu1 %v1985_v49 }
  0x3f   : > { %939 = vmatprep.mubr.bf16.mxu0 %v1990_v50  ;;  %987 = vmatprep.mubr.bf16.mxu1 %v1992_v51 }
  0x40   : > { %1772 = vmatpush3.bf16.msra.mxu1 %v1997_v52 }
  0x41   : > { %1773 = vmatprep.subr.bf16.mxu1 %v1998_v53 }
  0x44   : > { %1774 = vmatpush3.bf16.msra.mxu1 %v1999_v54 }
  0x46   : > { %940 = vmatmul.mubr.bf16.gmra.mrb[16].mxu0 %v1994_v55  ;;  %988 = vmatmul.mubr.bf16.gmra.mrb[16].mxu1 %v1995_v56 }
  0x47   : > { %947 = vmatprep.mubr.bf16.mxu0 %v2001_v57  ;;  %1028 = vmatprep.mubr.bf16.mxu1 %v2005_v58 }
  0x4e   : > { %948 = vmatmul.mubr.bf16.gmra.mrb[20].mxu0 %v2006_v60  ;;  %1029 = vmatmul.mubr.bf16.vlgmr.msra.gmra.mrb[20].mxu1 %v2003_v59  ;;  %v2320_v60 = vld [vmem:[%s2441_s2] ss:$0 sm:$0xff] }
  0x4f   : > { %1036 = vmatprep.mubr.bf16.mxu1 %v2007_v61  ;;  %1864 = vmatprep.mubr.msk.bf16.mxu0 %vm2057_vm0, %v2056_v24 }
  0x56   : > { %1037 = vmatmul.mubr.bf16.gmra.mrb[24].mxu1 %v2009_v62  ;;  %1865 = vmatmul.mubr.msk.bf16.vlgmr.msra.gmra.mrb[24].mxu0 %vm841_vm1, %v2010_v63 }
  0x57   : > { %1044 = vmatprep.mubr.bf16.mxu1 %v2011_v0  ;;  %1868 = vmatprep.mubr.msk.bf16.mxu0 %vm2057_vm0, %v2056_v24 }
  0x5e   : > { %1045 = vmatmul.mubr.bf16.gmra.mrb[28].mxu1 %v2013_v1  ;;  %1869 = vmatmul.mubr.msk.bf16.gmra.mrb[28].mxu0 %vm841_vm1, %v2014_v2 }
  0x5f   : > { %1052 = vmatprep.mubr.bf16.mxu1 %v2015_v3  ;;  %1872 = vmatprep.mubr.msk.bf16.mxu0 %vm2057_vm0, %v2056_v24 }
  0x66   : > { %1053 = vmatmul.mubr.bf16.gmra.mrb[32].mxu1 %v2017_v4  ;;  %1873 = vmatmul.mubr.msk.bf16.gmra.mrb[32].mxu0 %vm841_vm1, %v2018_v5 }
  0x67   : > { %1060 = vmatprep.mubr.bf16.mxu1 %v2019_v6  ;;  %1876 = vmatprep.mubr.msk.bf16.mxu0 %vm2057_vm0, %v2056_v24 }
  0x6e   : > { %1061 = vmatmul.mubr.bf16.gmra.mrb[36].mxu1 %v2021_v7  ;;  %1877 = vmatmul.mubr.msk.bf16.gmra.mrb[36].mxu0 %vm841_vm1, %v2022_v8 }
  0x6f   : > { %1068 = vmatprep.mubr.bf16.mxu1 %v2023_v9  ;;  %1880 = vmatprep.mubr.msk.bf16.mxu0 %vm2057_vm0, %v2056_v24 }
  0x76   : > { %1069 = vmatmul.mubr.bf16.gmra.mrb[40].mxu1 %v2025_v10  ;;  %1881 = vmatmul.mubr.msk.bf16.gmra.mrb[40].mxu0 %vm841_vm1, %v2026_v11 }
  0x77   : > { %1076 = vmatprep.mubr.bf16.mxu1 %v2027_v12  ;;  %1884 = vmatprep.mubr.msk.bf16.mxu0 %vm2057_vm0, %v2056_v24 }
  0x7e   : > { %1077 = vmatmul.mubr.bf16.gmra.mrb[44].mxu1 %v2029_v13  ;;  %1885 = vmatmul.mubr.msk.bf16.gmra.mrb[44].mxu0 %vm841_vm1, %v2030_v14 }
  0x7f   : > { %1084 = vmatprep.mubr.bf16.mxu1 %v2031_v15  ;;  %1888 = vmatprep.mubr.msk.bf16.mxu0 %vm2057_vm0, %v2056_v24 }
  0x86   : > { %1085 = vmatmul.mubr.bf16.gmra.mrb[48].mxu1 %v2033_v16  ;;  %1889 = vmatmul.mubr.msk.bf16.gmra.mrb[48].mxu0 %vm841_vm1, %v2034_v17 }
  0x87   : > { %1092 = vmatprep.mubr.bf16.mxu1 %v2035_v18  ;;  %1892 = vmatprep.mubr.msk.bf16.mxu0 %vm2057_vm0, %v2056_v24 }
  0x8e   : > { %1093 = vmatmul.mubr.bf16.gmra.mrb[52].mxu1 %v2037_v19  ;;  %1893 = vmatmul.mubr.msk.bf16.gmra.mrb[52].mxu0 %vm841_vm1, %v2038_v20 }
  0x8f   : > { %1100 = vmatprep.mubr.bf16.mxu1 %v2039_v21  ;;  %1896 = vmatprep.mubr.msk.bf16.mxu0 %vm2057_vm0, %v2056_v24 }
  0x96   : > { %1101 = vmatmul.mubr.bf16.gmra.mrb[56].mxu1 %v2041_v22  ;;  %1897 = vmatmul.mubr.msk.bf16.gmra.mrb[56].mxu0 %vm841_vm1, %v2042_v23 }
  0x97   : > { %1108 = vmatprep.mubr.bf16.mxu1 %v2043_v25  ;;  %1900 = vmatprep.mubr.msk.bf16.mxu0 %vm2057_vm0, %v2056_v24 }
  0x9e   : > { %1109 = vmatmul.mubr.bf16.gmra.mrb[60].mxu1 %v2045_v26  ;;  %1901 = vmatmul.mubr.msk.bf16.gmra.mrb[60].mxu0 %vm841_vm1, %v2046_v27 }
  0x9f   : > { %1904 = vmatprep.mubr.msk.bf16.mxu0 %vm2057_vm0, %v2056_v24 }
  0xa6   : > { %1905 = vmatmul.mubr.msk.bf16.gmra.mrb[64].mxu0 %vm841_vm1, %v2047_v28 }
  0xf9   : > { %v1693_v29 = vpop.f32.mrb[0].mxu0  ;;  %v1729_v30 = vpop.f32.mrb[0].mxu1 }
  0xfa   : > { %v1694_v31 = vpop.f32.mrb[1].mxu0  ;;  %v1730_v32 = vpop.f32.mrb[1].mxu1 }
  0xfb   : > { %v2299_v33 = vadd.f32 %v1694_v31, %v1693_v29  ;;  %v1696_v34 = vpop.f32.mrb[2].mxu0  ;;  %v2301_v35 = vadd.f32 %v1730_v32, %v1729_v30  ;;  %v1732_v36 = vpop.f32.mrb[2].mxu1 }
  0xfc   : > { %v1697_v37 = vpop.f32.mrb[3].mxu0  ;;  %v1733_v38 = vpop.f32.mrb[3].mxu1 }
  0xfd   : > { %v2303_v39 = vadd.f32 %v1697_v37, %v1696_v34  ;;  %v2305_v40 = vadd.f32 %v1733_v38, %v1732_v36  ;;  %v910_v38 = vadd.f32 %v2299_v33, %v2320_v60 }
 0x101   : > { %v1699_v24 = vpop.f32.mrb[4].mxu0  ;;  %v1735_v41 = vpop.f32.mrb[4].mxu1 }
 0x102   : > { %v1700_v42 = vpop.f32.mrb[5].mxu0  ;;  %v1736_v43 = vpop.f32.mrb[5].mxu1 }
 0x103   : > { %v2307_v44 = vadd.f32 %v1700_v42, %v1699_v24  ;;  %v1702_v45 = vpop.f32.mrb[6].mxu0  ;;  %v2309_v46 = vadd.f32 %v1736_v43, %v1735_v41  ;;  %v1738_v47 = vpop.f32.mrb[6].mxu1 }
 0x104   : > { %v1703_v48 = vpop.f32.mrb[7].mxu0  ;;  %v1739_v49 = vpop.f32.mrb[7].mxu1 }
 0x105   : > { %v2311_v50 = vadd.f32 %v1703_v48, %v1702_v45  ;;  %v2313_v51 = vadd.f32 %v1739_v49, %v1738_v47  ;;  %v913_v48 = vadd.f32 %v2303_v39, %v2320_v60 }
 0x109   : > { %v1705_v52 = vpop.f32.mrb[8].mxu0  ;;  %v1741_v53 = vpop.f32.mrb[8].mxu1 }
 0x10a   : > { %v1706_v54 = vpop.f32.mrb[9].mxu0  ;;  %v1742_v55 = vpop.f32.mrb[9].mxu1 }
 0x10b   : > { %v2315_v56 = vadd.f32 %v1706_v54, %v1705_v52  ;;  %v1708_v57 = vpop.f32.mrb[10].mxu0  ;;  %v1743_v58 = vadd.f32 %v1742_v55, %v1741_v53  ;;  %v1744_v59 = vpop.f32.mrb[10].mxu1 }
 0x10c   : > { %v1709_v61 = vpop.f32.mrb[11].mxu0  ;;  %v1745_v62 = vpop.f32.mrb[11].mxu1 }
 0x10d   : > { %v2323_v63 = vadd.f32 %v1743_v58, %v2320_v60  ;;  %v2325_v0 = vadd.f32 %v1709_v61, %v1708_v57  ;;  %v1746_v1 = vadd.f32 %v1745_v62, %v1744_v59  ;;  %v918_v61 = vadd.f32 %v2307_v44, %v2320_v60 }
 0x10f   : > { %v2328_v2 = vadd.f32 %v1746_v1, %v2320_v60 }
 0x111   : > { %v1711_v3 = vpop.f32.mrb[12].mxu0  ;;  %v1747_v4 = vpop.f32.mrb[12].mxu1 }
 0x112   : > { %v1712_v5 = vpop.f32.mrb[13].mxu0  ;;  %v1748_v6 = vpop.f32.mrb[13].mxu1 }
 0x113   : > { %v2330_v7 = vadd.f32 %v1712_v5, %v1711_v3  ;;  %v1714_v8 = vpop.f32.mrb[14].mxu0  ;;  %v1749_v9 = vadd.f32 %v1748_v6, %v1747_v4  ;;  %v1750_v10 = vpop.f32.mrb[14].mxu1 }
 0x114   : > { %v1715_v11 = vpop.f32.mrb[15].mxu0  ;;  %v1751_v12 = vpop.f32.mrb[15].mxu1 }
 0x115   : > { %v2333_v13 = vadd.f32 %v1749_v9, %v2320_v60  ;;  %v2335_v14 = vadd.f32 %v1715_v11, %v1714_v8  ;;  %v1752_v15 = vadd.f32 %v1751_v12, %v1750_v10  ;;  %v921_v8 = vadd.f32 %v2311_v50, %v2320_v60  ;;  %v2365_v9 = vld [vmem:[%s2442_s3] ss:$0 sm:$0xff] }
 0x117   : > { %v2338_v16 = vadd.f32 %v1752_v15, %v2320_v60 }
 0x119   : > { %v1717_v17 = vpop.f32.mrb[16].mxu0  ;;  %v1753_v18 = vpop.f32.mrb[16].mxu1 }
 0x11a   : > { %v1718_v19 = vpop.f32.mrb[17].mxu0  ;;  %v1754_v20 = vpop.f32.mrb[17].mxu1 }
 0x11b   : > { %v2340_v21 = vadd.f32 %v1718_v19, %v1717_v17  ;;  %v1720_v22 = vpop.f32.mrb[18].mxu0  ;;  %v1755_v23 = vadd.f32 %v1754_v20, %v1753_v18  ;;  %v1756_v25 = vpop.f32.mrb[18].mxu1 }
 0x11c   : > { %v1721_v26 = vpop.f32.mrb[19].mxu0  ;;  %v1757_v27 = vpop.f32.mrb[19].mxu1 }
 0x11d   : > { %v2343_v28 = vadd.f32 %v1755_v23, %v2320_v60  ;;  %v2345_v29 = vadd.f32 %v1721_v26, %v1720_v22  ;;  %v1758_v30 = vadd.f32 %v1757_v27, %v1756_v25  ;;  %v926_v25 = vadd.f32 %v2315_v56, %v2320_v60 }
 0x11f   : > { %v2348_v31 = vadd.f32 %v1758_v30, %v2320_v60 }
 0x121   : > { %v1723_v32 = vpop.f32.mrb[20].mxu0  ;;  %v1775_v34 = vpop.f32.mrb[20].mxu1 }
 0x122   : > { %v1724_v36 = vpop.f32.mrb[21].mxu0  ;;  %v1776_v37 = vpop.f32.mrb[21].mxu1 }
 0x123   : > { %v2352_v24 = vadd.f32 %v1724_v36, %v1723_v32  ;;  %v1777_v41 = vadd.f32 %v1776_v37, %v1775_v34  ;;  %v1726_v42 = vpop.f32.mrb[22].mxu0  ;;  %v1778_v43 = vpop.f32.mrb[22].mxu1 }
 0x124   : > { %v1727_v45 = vpop.f32.mrb[23].mxu0  ;;  %v1779_v47 = vpop.f32.mrb[23].mxu1 }
 0x125   : > { %v2356_v49 = vadd.f32 %v1727_v45, %v1726_v42  ;;  %v1780_v52 = vadd.f32 %v1779_v47, %v1778_v43  ;;  %v1031_v53 = vadd.f32 %v1777_v41, %v910_v38  ;;  %v929_v38 = vadd.f32 %v2325_v0, %v2320_v60 }
 0x127   : > { %v1034_v54 = vadd.f32 %v1780_v52, %v913_v48 }
 0x129   : > { %v1781_v55 = vpop.f32.mrb[24].mxu1  ;;  %v1151_v57 = vpop.f32.mrb[24].mxu0 }
 0x12a   : > { %v1152_v58 = vadd.f32 %v1151_v57, %v1031_v53  ;;  %v1782_v33 = vpop.f32.mrb[25].mxu1  ;;  %v1866_v59 = vpop.f32.mrb[25].mxu0 }
 0x12b   : > { %v1783_v62 = vadd.f32 %v1782_v33, %v1781_v55  ;;  %v1784_v1 = vpop.f32.mrb[26].mxu1  ;;  %v1154_v3 = vpop.f32.mrb[26].mxu0 }
 0x12c   : > { %v1238_v4 = vmax.f32 %v1152_v58, 0.0  ;;  %v1155_v5 = vadd.f32 %v1154_v3, %v1034_v54  ;;  %v1785_v39 = vpop.f32.mrb[27].mxu1  ;;  %v1867_v6 = vpop.f32.mrb[27].mxu0  ;;  %v934_v58 = vadd.f32 %v2330_v7, %v2320_v60 }
 0x12d   : > { %v1786_v10 = vadd.f32 %v1785_v39, %v1784_v1  ;;  %v1039_v11 = vadd.f32 %v1783_v62, %v918_v61 }
 0x12e   : > { %v1239_v12 = vmax.f32 %v1155_v5, 0.0  ;;  %v1267_v15 = vadd.f32 %v2365_v9, %v1238_v4  ;;  %v937_v4 = vadd.f32 %v2335_v14, %v2320_v60 }
 0x12f   : > { %v1042_v44 = vadd.f32 %v1786_v10, %v921_v8 }
 0x130   : > { %v1268_v17 = vadd.f32 %v2365_v9, %v1239_v12 }
 0x131   : > { %v1787_v50 = vpop.f32.mrb[28].mxu1  ;;  %v1159_v18 = vpop.f32.mrb[28].mxu0 }
 0x132   : > { %v1615_v19 = vpack.c.bf16 %v1268_v17, %v1267_v15  ;;  %v1160_v20 = vadd.f32 %v1159_v18, %v1039_v11  ;;  %v1788_v22 = vpop.f32.mrb[29].mxu1  ;;  %v1870_v23 = vpop.f32.mrb[29].mxu0  ;;  %v942_v18 = vadd.f32 %v2340_v21, %v2320_v60 }
 0x133   : > { %v1789_v26 = vadd.f32 %v1788_v22, %v1787_v50  ;;  %v1790_v27 = vpop.f32.mrb[30].mxu1  ;;  %v1162_v30 = vpop.f32.mrb[30].mxu0 }
 0x134   : > { %1616 = vst [vmem:[%s2373_s30] sm:$0xff] %v1615_v19   ;;  %v1240_v32 = vmax.f32 %v1160_v20, 0.0  ;;  %v1163_v34 = vadd.f32 %v1162_v30, %v1042_v44  ;;  %v1791_v36 = vpop.f32.mrb[31].mxu1  ;;  %v1871_v37 = vpop.f32.mrb[31].mxu0 }
 0x135   : > { %v1792_v41 = vadd.f32 %v1791_v36, %v1790_v27  ;;  %v1047_v42 = vadd.f32 %v1789_v26, %v926_v25  ;;  %v945_v27 = vadd.f32 %v2345_v29, %v2320_v60 }
 0x136   : > { %v1241_v43 = vmax.f32 %v1163_v34, 0.0  ;;  %v1269_v47 = vadd.f32 %v2365_v9, %v1240_v32 }
 0x137   : > { %v1050_v45 = vadd.f32 %v1792_v41, %v929_v38 }
 0x138   : > { %v1270_v56 = vadd.f32 %v2365_v9, %v1241_v43 }
 0x139   : > { %v1793_v48 = vpop.f32.mrb[32].mxu1  ;;  %v1167_v52 = vpop.f32.mrb[32].mxu0 }
 0x13a   : > { %v1620_v53 = vpack.c.bf16 %v1270_v56, %v1269_v47  ;;  %v1168_v54 = vadd.f32 %v1167_v52, %v1047_v42  ;;  %v1794_v55 = vpop.f32.mrb[33].mxu1  ;;  %v1874_v57 = vpop.f32.mrb[33].mxu0  ;;  %v950_v56 = vadd.f32 %v2352_v24, %v2320_v60 }
 0x13b   : > { %v1795_v33 = vadd.f32 %v1794_v55, %v1793_v48  ;;  %v1796_v0 = vpop.f32.mrb[34].mxu1  ;;  %v1170_v59 = vpop.f32.mrb[34].mxu0 }
 0x13c   : > { %1667 = vst [vmem:[%s2373_s30 + $0x8] sm:$0xff] %v1620_v53   ;;  %v1242_v61 = vmax.f32 %v1168_v54, 0.0  ;;  %v1171_v62 = vadd.f32 %v1170_v59, %v1050_v45  ;;  %v1797_v1 = vpop.f32.mrb[35].mxu1  ;;  %v1875_v3 = vpop.f32.mrb[35].mxu0 }
 0x13d   : > { %v1798_v5 = vadd.f32 %v1797_v1, %v1796_v0  ;;  %v1055_v39 = vadd.f32 %v1795_v33, %v934_v58  ;;  %v953_v58 = vadd.f32 %v2356_v49, %v2320_v60 }
 0x13e   : > { %v1243_v6 = vmax.f32 %v1171_v62, 0.0  ;;  %v1271_v10 = vadd.f32 %v2365_v9, %v1242_v61 }
 0x13f   : > { %v1058_v8 = vadd.f32 %v1798_v5, %v937_v4 }
 0x140   : > { %v1272_v7 = vadd.f32 %v2365_v9, %v1243_v6 }
 0x141   : > { %v1799_v11 = vpop.f32.mrb[36].mxu1  ;;  %v1175_v12 = vpop.f32.mrb[36].mxu0 }
 0x142   : > { %v1625_v44 = vpack.c.bf16 %v1272_v7, %v1271_v10  ;;  %v1176_v15 = vadd.f32 %v1175_v12, %v1055_v39  ;;  %v1800_v17 = vpop.f32.mrb[37].mxu1  ;;  %v1878_v50 = vpop.f32.mrb[37].mxu0 }
 0x143   : > { %v1801_v19 = vadd.f32 %v1800_v17, %v1799_v11  ;;  %v1802_v14 = vpop.f32.mrb[38].mxu1  ;;  %v1178_v20 = vpop.f32.mrb[38].mxu0  ;;  %v961_v17 = vadd.f32 %v2305_v40, %v2320_v60 }
 0x144   : > { %1668 = vst [vmem:[%s2373_s30 + $0x10] sm:$0xff] %v1625_v44   ;;  %v1244_v22 = vmax.f32 %v1176_v15, 0.0  ;;  %v1179_v23 = vadd.f32 %v1178_v20, %v1058_v8  ;;  %v1803_v25 = vpop.f32.mrb[39].mxu1  ;;  %v1879_v26 = vpop.f32.mrb[39].mxu0  ;;  %v958_v8 = vadd.f32 %v2301_v35, %v2320_v60 }
 0x145   : > { %v1804_v30 = vadd.f32 %v1803_v25, %v1802_v14  ;;  %v1063_v32 = vadd.f32 %v1801_v19, %v942_v18 }
 0x146   : > { %v1245_v34 = vmax.f32 %v1179_v23, 0.0  ;;  %v1273_v37 = vadd.f32 %v2365_v9, %v1244_v22 }
 0x147   : > { %v1066_v36 = vadd.f32 %v1804_v30, %v945_v27 }
 0x148   : > { %v1274_v21 = vadd.f32 %v2365_v9, %v1245_v34 }
 0x149   : > { %v1805_v38 = vpop.f32.mrb[40].mxu1  ;;  %v1183_v41 = vpop.f32.mrb[40].mxu0 }
 0x14a   : > { %v1630_v42 = vpack.c.bf16 %v1274_v21, %v1273_v37  ;;  %v1184_v43 = vadd.f32 %v1183_v41, %v1063_v32  ;;  %v1806_v45 = vpop.f32.mrb[41].mxu1  ;;  %v1882_v47 = vpop.f32.mrb[41].mxu0  ;;  %v966_v32 = vadd.f32 %v2309_v46, %v2320_v60 }
 0x14b   : > { %v1807_v48 = vadd.f32 %v1806_v45, %v1805_v38  ;;  %v1808_v29 = vpop.f32.mrb[42].mxu1  ;;  %v1186_v52 = vpop.f32.mrb[42].mxu0 }
 0x14c   : > { %1669 = vst [vmem:[%s2373_s30 + $0x18] sm:$0xff] %v1630_v42   ;;  %v1246_v53 = vmax.f32 %v1184_v43, 0.0  ;;  %v1187_v54 = vadd.f32 %v1186_v52, %v1066_v36  ;;  %v1809_v55 = vpop.f32.mrb[43].mxu1  ;;  %v1883_v57 = vpop.f32.mrb[43].mxu0  ;;  %v969_v42 = vadd.f32 %v2313_v51, %v2320_v60 }
 0x14d   : > { %v1810_v33 = vadd.f32 %v1809_v55, %v1808_v29  ;;  %v1071_v0 = vadd.f32 %v1807_v48, %v950_v56 }
 0x14e   : > { %v1247_v59 = vmax.f32 %v1187_v54, 0.0  ;;  %v1275_v62 = vadd.f32 %v2365_v9, %v1246_v53 }
 0x14f   : > { %v1074_v61 = vadd.f32 %v1810_v33, %v953_v58 }
 0x150   : > { %v1276_v24 = vadd.f32 %v2365_v9, %v1247_v59 }
 0x151   : > { %v1811_v1 = vpop.f32.mrb[44].mxu1  ;;  %v1191_v3 = vpop.f32.mrb[44].mxu0 }
 0x152   : > { %v1635_v4 = vpack.c.bf16 %v1276_v24, %v1275_v62  ;;  %v1192_v5 = vadd.f32 %v1191_v3, %v1071_v0  ;;  %v1812_v39 = vpop.f32.mrb[45].mxu1  ;;  %v1886_v6 = vpop.f32.mrb[45].mxu0 }
 0x153   : > { %v1813_v10 = vadd.f32 %v1812_v39, %v1811_v1  ;;  %v1814_v49 = vpop.f32.mrb[46].mxu1  ;;  %v1194_v7 = vpop.f32.mrb[46].mxu0 }
 0x154   : > { %1670 = vst [vmem:[%s2373_s30 + $0x20] sm:$0xff] %v1635_v4   ;;  %v1248_v11 = vmax.f32 %v1192_v5, 0.0  ;;  %v1195_v12 = vadd.f32 %v1194_v7, %v1074_v61  ;;  %v1815_v44 = vpop.f32.mrb[47].mxu1  ;;  %v1887_v15 = vpop.f32.mrb[47].mxu0 }
 0x155   : > { %v1816_v50 = vadd.f32 %v1815_v44, %v1814_v49  ;;  %v1079_v18 = vadd.f32 %v1813_v10, %v958_v8 }
 0x156   : > { %v1249_v19 = vmax.f32 %v1195_v12, 0.0  ;;  %v1277_v20 = vadd.f32 %v2365_v9, %v1248_v11 }
 0x157   : > { %v1082_v14 = vadd.f32 %v1816_v50, %v961_v17 }
 0x158   : > { %v1278_v35 = vadd.f32 %v2365_v9, %v1249_v19 }
 0x159   : > { %v1817_v22 = vpop.f32.mrb[48].mxu1  ;;  %v1199_v23 = vpop.f32.mrb[48].mxu0 }
 0x15a   : > { %v1640_v25 = vpack.c.bf16 %v1278_v35, %v1277_v20  ;;  %v1200_v26 = vadd.f32 %v1199_v23, %v1079_v18  ;;  %v1818_v27 = vpop.f32.mrb[49].mxu1  ;;  %v1890_v30 = vpop.f32.mrb[49].mxu0 }
 0x15b   : > { %v1819_v34 = vadd.f32 %v1818_v27, %v1817_v22  ;;  %v1820_v40 = vpop.f32.mrb[50].mxu1  ;;  %v1202_v36 = vpop.f32.mrb[50].mxu0 }
 0x15c   : > { %1671 = vst [vmem:[%s2373_s30 + $0x28] sm:$0xff] %v1640_v25   ;;  %v1250_v37 = vmax.f32 %v1200_v26, 0.0  ;;  %v1203_v21 = vadd.f32 %v1202_v36, %v1082_v14  ;;  %v1821_v38 = vpop.f32.mrb[51].mxu1  ;;  %v1891_v41 = vpop.f32.mrb[51].mxu0 }
 0x15d   : > { %v1822_v43 = vadd.f32 %v1821_v38, %v1820_v40  ;;  %v1087_v45 = vadd.f32 %v1819_v34, %v966_v32 }
 0x15e   : > { %v1251_v47 = vmax.f32 %v1203_v21, 0.0  ;;  %v1279_v48 = vadd.f32 %v2365_v9, %v1250_v37 }
 0x15f   : > { %v1090_v56 = vadd.f32 %v1822_v43, %v969_v42 }
 0x160   : > { %v1280_v46 = vadd.f32 %v2365_v9, %v1251_v47 }
 0x161   : > { %v1823_v29 = vpop.f32.mrb[52].mxu1  ;;  %v1207_v52 = vpop.f32.mrb[52].mxu0 }
 0x162   : > { %v1645_v53 = vpack.c.bf16 %v1280_v46, %v1279_v48  ;;  %v1208_v54 = vadd.f32 %v1207_v52, %v1087_v45  ;;  %v1824_v55 = vpop.f32.mrb[53].mxu1  ;;  %v1894_v57 = vpop.f32.mrb[53].mxu0 }
 0x163   : > { %v1825_v58 = vadd.f32 %v1824_v55, %v1823_v29  ;;  %v1826_v33 = vpop.f32.mrb[54].mxu1  ;;  %v1210_v0 = vpop.f32.mrb[54].mxu0 }
 0x164   : > { %1672 = vst [vmem:[%s2373_s30 + $0x30] sm:$0xff] %v1645_v53   ;;  %v1252_v51 = vmax.f32 %v1208_v54, 0.0  ;;  %v1211_v60 = vadd.f32 %v1210_v0, %v1090_v56  ;;  %v1827_v59 = vpop.f32.mrb[55].mxu1  ;;  %v1895_v61 = vpop.f32.mrb[55].mxu0 }
 0x165   : > { %v1828_v62 = vadd.f32 %v1827_v59, %v1826_v33  ;;  %v1095_v24 = vadd.f32 %v1825_v58, %v2323_v63 }
 0x166   : > { %v1253_v1 = vmax.f32 %v1211_v60, 0.0  ;;  %v1281_v4 = vadd.f32 %v2365_v9, %v1252_v51 }
 0x167   : > { %v1098_v3 = vadd.f32 %v1828_v62, %v2328_v2 }
 0x168   : > { %v1282_v5 = vadd.f32 %v2365_v9, %v1253_v1 }
 0x169   : > { %v1829_v39 = vpop.f32.mrb[56].mxu1  ;;  %v1215_v6 = vpop.f32.mrb[56].mxu0 }
 0x16a   : > { %v1650_v8 = vpack.c.bf16 %v1282_v5, %v1281_v4  ;;  %v1216_v10 = vadd.f32 %v1215_v6, %v1095_v24  ;;  %v1830_v49 = vpop.f32.mrb[57].mxu1  ;;  %v1898_v7 = vpop.f32.mrb[57].mxu0 }
 0x16b   : > { %v1831_v11 = vadd.f32 %v1830_v49, %v1829_v39  ;;  %v1832_v12 = vpop.f32.mrb[58].mxu1  ;;  %v1218_v44 = vpop.f32.mrb[58].mxu0 }
 0x16c   : > { %1673 = vst [vmem:[%s2373_s30 + $0x38] sm:$0xff] %v1650_v8   ;;  %v1254_v15 = vmax.f32 %v1216_v10, 0.0  ;;  %v1219_v17 = vadd.f32 %v1218_v44, %v1098_v3  ;;  %v1833_v63 = vpop.f32.mrb[59].mxu1  ;;  %v1899_v50 = vpop.f32.mrb[59].mxu0 }
 0x16d   : > { %v1834_v2 = vadd.f32 %v1833_v63, %v1832_v12  ;;  %v1103_v18 = vadd.f32 %v1831_v11, %v2333_v13 }
 0x16e   : > { %v1255_v19 = vmax.f32 %v1219_v17, 0.0  ;;  %v1283_v20 = vadd.f32 %v2365_v9, %v1254_v15 }
 0x16f   : > { %v1106_v14 = vadd.f32 %v1834_v2, %v2338_v16 }
 0x170   : > { %v1284_v35 = vadd.f32 %v2365_v9, %v1255_v19 }
 0x171   : > { %v1835_v22 = vpop.f32.mrb[60].mxu1  ;;  %v1223_v23 = vpop.f32.mrb[60].mxu0 }
 0x172   : > { %v1655_v25 = vpack.c.bf16 %v1284_v35, %v1283_v20  ;;  %v1224_v26 = vadd.f32 %v1223_v23, %v1103_v18  ;;  %v1836_v27 = vpop.f32.mrb[61].mxu1  ;;  %v1902_v30 = vpop.f32.mrb[61].mxu0 }
 0x173   : > { %v1837_v32 = vadd.f32 %v1836_v27, %v1835_v22  ;;  %v1838_v34 = vpop.f32.mrb[62].mxu1  ;;  %v1226_v40 = vpop.f32.mrb[62].mxu0 }
 0x174   : > { %1674 = vst [vmem:[%s2373_s30 + $0x40] sm:$0xff] %v1655_v25   ;;  %v1256_v36 = vmax.f32 %v1224_v26, 0.0  ;;  %v1227_v13 = vadd.f32 %v1226_v40, %v1106_v14  ;;  %v1839_v37 = vpop.f32.mrb[63].mxu1  ;;  %v1903_v21 = vpop.f32.mrb[63].mxu0 }
 0x175   : > { %v1840_v16 = vadd.f32 %v1839_v37, %v1838_v34  ;;  %v1111_v38 = vadd.f32 %v1837_v32, %v2343_v28 }
 0x176   : > { %v1257_v41 = vmax.f32 %v1227_v13, 0.0  ;;  %v1285_v43 = vadd.f32 %v2365_v9, %v1256_v36 }
 0x177   : > { %v1114_v42 = vadd.f32 %v1840_v16, %v2348_v31 }
 0x178   : > { %v1286_v45 = vadd.f32 %v2365_v9, %v1257_v41 }
 0x179   : > { %v1231_v47 = vpop.f32.mrb[64].mxu0 }
 0x17a   : > { %v1660_v56 = vpack.c.bf16 %v1286_v45, %v1285_v43  ;;  %v1232_v48 = vadd.f32 %v1231_v47, %v1111_v38  ;;  %v1906_v46 = vpop.f32.mrb[65].mxu0 }
 0x17b   : > { %v1234_v29 = vpop.f32.mrb[66].mxu0 }
 0x17c   : > { %1675 = vst [vmem:[%s2373_s30 + $0x48] sm:$0xff] %v1660_v56   ;;  %v1258_v52 = vmax.f32 %v1232_v48, 0.0  ;;  %v1235_v53 = vadd.f32 %v1234_v29, %v1114_v42  ;;  %v1907_v54 = vpop.f32.mrb[67].mxu0 }
 0x17e   : > { %v1259_v55 = vmax.f32 %v1235_v53, 0.0  ;;  %v1287_v28 = vadd.f32 %v2365_v9, %v1258_v52 }
 0x180   : > { %v1288_v57 = vadd.f32 %v2365_v9, %v1259_v55 }
 0x182   : > { %v1665_v31 = vpack.c.bf16 %v1288_v57, %v1287_v28 }
 0x184   : > { %1676 = vst [vmem:[%s2373_s30 + $0x50] sm:$0xff] %v1665_v31  }
 0x185 PF: > { %s14_s15 = sadd.s32 1, %s2054_s15  }
 0x186   : > { %p11_p4 = scmp.ge.s32.totalorder %s14_s15, 4  }
 0x188   :  { %13 = sbr.rel (!%p11_p4) target bundleno = 1 (0x1), region = 66 }

// kernel: cnn_forward.12
= control target key start
LH: loop header
LB: loop body
LE: loop exit
PB: predicated region body
PF: predicated region fallthrough
CT: control target
= control target key end

     0   :  { %s5455_s15 = smov 0   ;;  %s6769_s0 = inlined_call_operand.vmem [shape: bf16[96,3200], index: 0, kind: input, shape index: {}]   ;;  %s6770_s1 = inlined_call_operand.vmem [shape: bf16[3200,256], index: 1, kind: input, shape index: {}]   ;;  %s6771_s2 = inlined_call_operand.vmem [shape: f32[1,256], index: 2, kind: input, shape index: {}]   ;;  %s6772_s3 = inlined_call_operand.vmem [shape: f32[1,256], index: 3, kind: input, shape index: {}]   ;;  %s6773_s4 = inlined_call_operand.vmem [shape: bf16[96,256], index: 4, kind: output, shape index: {}]  }
   0x1 LB: > { %s4030_s16 = sadd.s32 4294967295, %s5427_s15   ;;  %p4034_p0 = scmp.ge.s32.totalorder %s5427_s15, 1  ;;  %s5427_s15 = sphi %s5455_s15, %s14_s15  }
   0x2   : > { %p164_p1 = scmp.lt.s32.totalorder %s5427_s15, 3 }
   0x4   : > { %p165_p2 = pnand %p4034_p0, %p164_p1 }
   0x5   : > { %v4710_v0 = vld [vmem:[%s6770_s1 + $0x4] ss:$8 sps:$4 sm:$0xff] (!%p165_p2)   ;;  %v4714_v2 = vld [vmem:[%s6770_s1] ss:$8 sps:$4 sm:$0xff] (!%p165_p2)   ;;  %v4716_v4 = vld [vmem:[%s6770_s1 + $0x14] ss:$8 sps:$4 sm:$0xff] (!%p165_p2)  }
   0x6   : > { %168 = sbr.rel (%p165_p2) target bundleno = 654 (0x28e), region = 36  ;;  %v4712_v1 = vld [vmem:[%s6770_s1 + $0x604] ss:$8 sps:$4 sm:$0xff] (!%p165_p2)   ;;  %3075 = vmatprep.subr.bf16.mxu1 (!%p165_p2), %v4710_v0  ;;  %v4715_v3 = vld [vmem:[%s6770_s1 + $0x600] ss:$8 sps:$4 sm:$0xff] (!%p165_p2)  }
   0x7   : > { %3453 = vmatprep.subr.bf16.mxu0 (!%p165_p2), %v4712_v1  ;;  %3076 = vmatpush1.bf16.msra.mxu1 (!%p165_p2), %v4714_v2  ;;  %v4718_v5 = vld [vmem:[%s6770_s1 + $0x614] ss:$8 sps:$4 sm:$0xff] (!%p165_p2)   ;;  %v4720_v6 = vld [vmem:[%s6770_s1 + $0x10] ss:$8 sps:$4 sm:$0xff] (!%p165_p2)   ;;  %v4722_v8 = vld [vmem:[%s6770_s1 + $0x24] ss:$8 sps:$4 sm:$0xff] (!%p165_p2)  }
   0x8   : > { %3454 = vmatpush1.bf16.msra.mxu0 (!%p165_p2), %v4715_v3  ;;  %3077 = vmatprep.subr.bf16.mxu1 (!%p165_p2), %v4716_v4  ;;  %v4721_v7 = vld [vmem:[%s6770_s1 + $0x610] ss:$8 sps:$4 sm:$0xff] (!%p165_p2)   ;;  %v4724_v9 = vld [vmem:[%s6770_s1 + $0x624] ss:$8 sps:$4 sm:$0xff] (!%p165_p2)   ;;  %v4726_v10 = vld [vmem:[%s6770_s1 + $0x20] ss:$8 sps:$4 sm:$0xff] (!%p165_p2)  }
   0x9   : > { %3455 = vmatprep.subr.bf16.mxu0 (!%p165_p2), %v4718_v5  ;;  %v4727_v11 = vld [vmem:[%s6770_s1 + $0x620] ss:$8 sps:$4 sm:$0xff] (!%p165_p2)   ;;  %v4728_v12 = vld [vmem:[%s6770_s1 + $0x34] ss:$8 sps:$4 sm:$0xff] (!%p165_p2)   ;;  %v4732_v14 = vld [vmem:[%s6770_s1 + $0x30] ss:$8 sps:$4 sm:$0xff] (!%p165_p2)  }
   0xa   : > { %v4730_v13 = vld [vmem:[%s6770_s1 + $0x634] ss:$8 sps:$4 sm:$0xff] (!%p165_p2)   ;;  %v4733_v15 = vld [vmem:[%s6770_s1 + $0x630] ss:$8 sps:$4 sm:$0xff] (!%p165_p2)   ;;  %v4734_v16 = vld [vmem:[%s6770_s1 + $0x44] ss:$8 sps:$4 sm:$0xff] (!%p165_p2)  }
   0xb   : > { %3078 = vmatpush1.bf16.msra.mxu1 (!%p165_p2), %v4720_v6  ;;  %v4736_v17 = vld [vmem:[%s6770_s1 + $0x644] ss:$8 sps:$4 sm:$0xff] (!%p165_p2)   ;;  %v4738_v18 = vld [vmem:[%s6770_s1 + $0x40] ss:$8 sps:$4 sm:$0xff] (!%p165_p2)   ;;  %v4740_v20 = vld [vmem:[%s6770_s1 + $0x54] ss:$8 sps:$4 sm:$0xff] (!%p165_p2)  }
   0xc   : > { %3456 = vmatpush1.bf16.msra.mxu0 (!%p165_p2), %v4721_v7  ;;  %3079 = vmatprep.subr.bf16.mxu1 (!%p165_p2), %v4722_v8  ;;  %v4739_v19 = vld [vmem:[%s6770_s1 + $0x640] ss:$8 sps:$4 sm:$0xff] (!%p165_p2)   ;;  %v4742_v21 = vld [vmem:[%s6770_s1 + $0x654] ss:$8 sps:$4 sm:$0xff] (!%p165_p2)   ;;  %v4744_v22 = vld [vmem:[%s6770_s1 + $0x50] ss:$8 sps:$4 sm:$0xff] (!%p165_p2)  }
   0xd   : > { %3457 = vmatprep.subr.bf16.mxu0 %v4724_v9  ;;  %v4745_v23 = vld [vmem:[%s6770_s1 + $0x650] ss:$8 sps:$4 sm:$0xff]   ;;  %v4746_v24 = vld [vmem:[%s6770_s1 + $0x64] ss:$8 sps:$4 sm:$0xff]   ;;  %v4750_v26 = vld [vmem:[%s6770_s1 + $0x60] ss:$8 sps:$4 sm:$0xff]  }
   0xe   : > { %v4748_v25 = vld [vmem:[%s6770_s1 + $0x664] ss:$8 sps:$4 sm:$0xff]   ;;  %v4751_v27 = vld [vmem:[%s6770_s1 + $0x660] ss:$8 sps:$4 sm:$0xff]   ;;  %v4752_v28 = vld [vmem:[%s6770_s1 + $0x74] ss:$8 sps:$4 sm:$0xff]  }
   0xf   : > { %3080 = vmatpush1.bf16.msra.mxu1 %v4726_v10  ;;  %s192_s27 = smul.u32 6, %s4030_s16  ;;  %v4754_v29 = vld [vmem:[%s6770_s1 + $0x674] ss:$8 sps:$4 sm:$0xff]   ;;  %v4756_v30 = vld [vmem:[%s6770_s1 + $0x70] ss:$8 sps:$4 sm:$0xff]  }
  0x10   : > { %3458 = vmatpush1.bf16.msra.mxu0 %v4727_v11  ;;  %3081 = vmatprep.subr.bf16.mxu1 %v4728_v12  ;;  %v4757_v31 = vld [vmem:[%s6770_s1 + $0x670] ss:$8 sps:$4 sm:$0xff]   ;;  %v4758_v32 = vld [vmem:[%s6770_s1 + $0x84] ss:$8 sps:$4 sm:$0xff]   ;;  %v4762_v34 = vld [vmem:[%s6770_s1 + $0x80] ss:$8 sps:$4 sm:$0xff]  }
  0x11   : > { %3459 = vmatprep.subr.bf16.mxu0 %v4730_v13  ;;  %p193_p3 = scmp.lt.s32.totalorder %s192_s27, 11  ;;  %v4760_v33 = vld [vmem:[%s6770_s1 + $0x684] ss:$8 sps:$4 sm:$0xff]   ;;  %v4763_v35 = vld [vmem:[%s6770_s1 + $0x680] ss:$8 sps:$4 sm:$0xff]  }
  0x12   : > { %v4764_v36 = vld [vmem:[%s6770_s1 + $0x94] ss:$8 sps:$4 sm:$0xff]   ;;  %v4768_v38 = vld [vmem:[%s6770_s1 + $0x90] ss:$8 sps:$4 sm:$0xff]   ;;  %v4770_v40 = vld [vmem:[%s6770_s1 + $0xa4] ss:$8 sps:$4 sm:$0xff]  }
  0x13   : > { %3082 = vmatpush1.bf16.msra.mxu1 %v4732_v14  ;;  %s6775_s27 = smov (!%p193_p3, %s192_s27), 11  ;;  %v4766_v37 = vld [vmem:[%s6770_s1 + $0x694] ss:$8 sps:$4 sm:$0xff]   ;;  %v4769_v39 = vld [vmem:[%s6770_s1 + $0x690] ss:$8 sps:$4 sm:$0xff]  }
  0x14   : > { %3460 = vmatpush1.bf16.msra.mxu0 %v4733_v15  ;;  %3083 = vmatprep.subr.bf16.mxu1 %v4734_v16  ;;  %s4700_s28 = smul.u32 100, %s6775_s27  ;;  %v4772_v41 = vld [vmem:[%s6770_s1 + $0x6a4] ss:$8 sps:$4 sm:$0xff]   ;;  %v4774_v42 = vld [vmem:[%s6770_s1 + $0xa0] ss:$8 sps:$4 sm:$0xff]   ;;  %s4521_s13 = sshll.u32 %s6775_s27, 3 }
  0x15   : > { %3461 = vmatprep.subr.bf16.mxu0 %v4736_v17  ;;  %v4775_v43 = vld [vmem:[%s6770_s1 + $0x6a0] ss:$8 sps:$4 sm:$0xff]   ;;  %v4776_v44 = vld [vmem:[%s6770_s1 + $0xb4] ss:$8 sps:$4 sm:$0xff]   ;;  %v4780_v46 = vld [vmem:[%s6770_s1 + $0xb0] ss:$8 sps:$4 sm:$0xff]   ;;  %s6758_s18 = scalar_lea.vmem %s6773_s4, %s4521_s13 }
  0x16   : > { %s5606_s12 = scalar_lea.vmem %s6769_s0, %s4700_s28  ;;  %v4778_v45 = vld [vmem:[%s6770_s1 + $0x6b4] ss:$8 sps:$4 sm:$0xff]   ;;  %v4781_v47 = vld [vmem:[%s6770_s1 + $0x6b0] ss:$8 sps:$4 sm:$0xff]   ;;  %v4782_v49 = vld [vmem:[%s6770_s1 + $0xc4] ss:$8 sps:$4 sm:$0xff]  }
  0x17   : > { %3084 = vmatpush1.bf16.msra.mxu1 %v4738_v18  ;;  %v4808_v48 = vld [vmem:[%s5606_s12 + $0x4] ss:$100 sps:$4 sm:$0xff]   ;;  %v4814_v51 = vld [vmem:[%s5606_s12 + $0x34] ss:$100 sps:$4 sm:$0xff]  }
  0x18   : > { %3462 = vmatpush1.bf16.msra.mxu0 %v4739_v19  ;;  %3085 = vmatprep.subr.bf16.mxu1 %v4740_v20  ;;  %v4784_v50 = vld [vmem:[%s6770_s1 + $0x6c4] ss:$8 sps:$4 sm:$0xff]   ;;  %v4786_v52 = vld [vmem:[%s6770_s1 + $0xc0] ss:$8 sps:$4 sm:$0xff]   ;;  %v4788_v54 = vld [vmem:[%s6770_s1 + $0xd4] ss:$8 sps:$4 sm:$0xff]  }
  0x19   : > { %3463 = vmatprep.subr.bf16.mxu0 %v4742_v21  ;;  %3107 = vmatprep.mubr.bf16.mxu1 %v4808_v48  ;;  %v4787_v53 = vld [vmem:[%s6770_s1 + $0x6c0] ss:$8 sps:$4 sm:$0xff]   ;;  %v4790_v55 = vld [vmem:[%s6770_s1 + $0x6d4] ss:$8 sps:$4 sm:$0xff]   ;;  %v4792_v56 = vld [vmem:[%s6770_s1 + $0xd0] ss:$8 sps:$4 sm:$0xff]  }
  0x1a   : > { %3485 = vmatprep.mubr.bf16.mxu0 %v4814_v51  ;;  %v4793_v57 = vld [vmem:[%s6770_s1 + $0x6d0] ss:$8 sps:$4 sm:$0xff]   ;;  %v4794_v58 = vld [vmem:[%s6770_s1 + $0xe4] ss:$8 sps:$4 sm:$0xff]   ;;  %v4798_v60 = vld [vmem:[%s6770_s1 + $0xe0] ss:$8 sps:$4 sm:$0xff]  }
  0x1b   : > { %3086 = vmatpush1.bf16.msra.mxu1 %v4744_v22  ;;  %v4796_v59 = vld [vmem:[%s6770_s1 + $0x6e4] ss:$8 sps:$4 sm:$0xff]   ;;  %v4799_v61 = vld [vmem:[%s6770_s1 + $0x6e0] ss:$8 sps:$4 sm:$0xff]   ;;  %v4800_v62 = vld [vmem:[%s6770_s1 + $0xf4] ss:$8 sps:$4 sm:$0xff]  }
  0x1c   : > { %3464 = vmatpush1.bf16.msra.mxu0 %v4745_v23  ;;  %3087 = vmatprep.subr.bf16.mxu1 %v4746_v24  ;;  %v4802_v63 = vld [vmem:[%s6770_s1 + $0x6f4] ss:$8 sps:$4 sm:$0xff]   ;;  %v4804_v0 = vld [vmem:[%s6770_s1 + $0xf0] ss:$8 sps:$4 sm:$0xff]   ;;  %v4811_v2 = vld [vmem:[%s6770_s1 + $0x104] ss:$8 sps:$4 sm:$0xff]  }
  0x1d   : > { %3465 = vmatprep.subr.bf16.mxu0 %v4748_v25  ;;  %v4805_v1 = vld [vmem:[%s6770_s1 + $0x6f0] ss:$8 sps:$4 sm:$0xff]   ;;  %v4817_v3 = vld [vmem:[%s6770_s1 + $0x704] ss:$8 sps:$4 sm:$0xff]   ;;  %v4809_v5 = vld [vmem:[%s6770_s1 + $0x100] ss:$8 sps:$4 sm:$0xff]  }
  0x1e   : > { %v4806_v4 = vld [vmem:[%s5606_s12] ss:$100 sps:$4 sm:$0xff]   ;;  %v4812_v6 = vld [vmem:[%s5606_s12 + $0x30] ss:$100 sps:$4 sm:$0xff]  }
  0x1f   : > { %3088 = vmatpush1.bf16.msra.mxu1 %v4750_v26  ;;  %v4815_v7 = vld [vmem:[%s6770_s1 + $0x700] ss:$8 sps:$4 sm:$0xff]   ;;  %v4820_v8 = vld [vmem:[%s6770_s1 + $0x114] ss:$8 sps:$4 sm:$0xff]   ;;  %v4818_v10 = vld [vmem:[%s6770_s1 + $0x110] ss:$8 sps:$4 sm:$0xff]  }
  0x20   : > { %3466 = vmatpush1.bf16.msra.mxu0 %v4751_v27  ;;  %3089 = vmatprep.subr.bf16.mxu1 %v4752_v28  ;;  %v4823_v9 = vld [vmem:[%s6770_s1 + $0x714] ss:$8 sps:$4 sm:$0xff]   ;;  %v4821_v11 = vld [vmem:[%s6770_s1 + $0x710] ss:$8 sps:$4 sm:$0xff]   ;;  %v4826_v12 = vld [vmem:[%s6770_s1 + $0x124] ss:$8 sps:$4 sm:$0xff]  }
  0x21   : > { %3467 = vmatprep.subr.bf16.mxu0 %v4754_v29  ;;  %v4829_v13 = vld [vmem:[%s6770_s1 + $0x724] ss:$8 sps:$4 sm:$0xff]   ;;  %v4824_v14 = vld [vmem:[%s6770_s1 + $0x120] ss:$8 sps:$4 sm:$0xff]   ;;  %v4832_v16 = vld [vmem:[%s6770_s1 + $0x134] ss:$8 sps:$4 sm:$0xff]  }
  0x22   : > { %v4827_v15 = vld [vmem:[%s6770_s1 + $0x720] ss:$8 sps:$4 sm:$0xff]   ;;  %v4835_v17 = vld [vmem:[%s6770_s1 + $0x734] ss:$8 sps:$4 sm:$0xff]   ;;  %v4830_v18 = vld [vmem:[%s6770_s1 + $0x130] ss:$8 sps:$4 sm:$0xff]  }
  0x23   : > { %3090 = vmatpush1.bf16.msra.mxu1 %v4756_v30  ;;  %v4833_v19 = vld [vmem:[%s6770_s1 + $0x730] ss:$8 sps:$4 sm:$0xff]   ;;  %v4838_v20 = vld [vmem:[%s6770_s1 + $0x144] ss:$8 sps:$4 sm:$0xff]   ;;  %v4836_v23 = vld [vmem:[%s6770_s1 + $0x140] ss:$8 sps:$4 sm:$0xff]  }
  0x24   : > { %3468 = vmatpush1.bf16.msra.mxu0 %v4757_v31  ;;  %3091 = vmatprep.subr.bf16.mxu1 %v4758_v32  ;;  %v4841_v21 = vld [vmem:[%s6770_s1 + $0x744] ss:$8 sps:$4 sm:$0xff]   ;;  %v4839_v24 = vld [vmem:[%s6770_s1 + $0x740] ss:$8 sps:$4 sm:$0xff]   ;;  %v4844_v26 = vld [vmem:[%s6770_s1 + $0x154] ss:$8 sps:$4 sm:$0xff]  }
  0x25   : > { %3469 = vmatprep.subr.bf16.mxu0 %v4760_v33  ;;  %v4884_v22 = vld [vmem:[%s5606_s12 + $0xcc] ss:$100 sps:$4 sm:$0xff]   ;;  %v4889_v25 = vld [vmem:[%s5606_s12 + $0xfc] ss:$100 sps:$4 sm:$0xff]  }
  0x26   : > { %v4847_v27 = vld [vmem:[%s6770_s1 + $0x754] ss:$8 sps:$4 sm:$0xff]   ;;  %v4894_v28 = vld [vmem:[%s5606_s12 + $0xc8] ss:$100 sps:$4 sm:$0xff]   ;;  %v4842_v30 = vld [vmem:[%s6770_s1 + $0x150] ss:$8 sps:$4 sm:$0xff]  }
  0x27   : > { %3092 = vmatpush1.bf16.msra.mxu1 %v4762_v34  ;;  %v4895_v29 = vld [vmem:[%s5606_s12 + $0xf8] ss:$100 sps:$4 sm:$0xff]   ;;  %v4850_v32 = vld [vmem:[%s6770_s1 + $0x164] ss:$8 sps:$4 sm:$0xff]   ;;  %v4863_v48 = vld [vmem:[%s6770_s1 + $0x780] ss:$8 sps:$4 sm:$0xff]  }
  0x28   : > { %3470 = vmatpush1.bf16.msra.mxu0 %v4763_v35  ;;  %3093 = vmatprep.subr.bf16.mxu1 %v4764_v36  ;;  %v4845_v31 = vld [vmem:[%s6770_s1 + $0x750] ss:$8 sps:$4 sm:$0xff]   ;;  %v4853_v33 = vld [vmem:[%s6770_s1 + $0x764] ss:$8 sps:$4 sm:$0xff]   ;;  %v4848_v35 = vld [vmem:[%s6770_s1 + $0x160] ss:$8 sps:$4 sm:$0xff]  }
  0x29   : > { %3471 = vmatprep.subr.bf16.mxu0 %v4766_v37  ;;  %v4902_v34 = vld [vmem:[%s5606_s12 + $0x194] ss:$100 sps:$4 sm:$0xff]   ;;  %v4851_v36 = vld [vmem:[%s6770_s1 + $0x760] ss:$8 sps:$4 sm:$0xff]  }
  0x2a   : > { %v4907_v37 = vld [vmem:[%s5606_s12 + $0x1c4] ss:$100 sps:$4 sm:$0xff]   ;;  %v4928_v51 = vld [vmem:[%s5606_s12 + $0x3c] ss:$100 sps:$4 sm:$0xff]  }
  0x2b   : > { %3094 = vmatpush1.bf16.msra.mxu1 %v4768_v38  ;;  %v4856_v38 = vld [vmem:[%s6770_s1 + $0x174] ss:$8 sps:$4 sm:$0xff]  }
  0x2c   : > { %3472 = vmatpush1.bf16.msra.mxu0 %v4769_v39  ;;  %3095 = vmatprep.subr.bf16.mxu1 %v4770_v40  ;;  %v4859_v39 = vld [vmem:[%s6770_s1 + $0x774] ss:$8 sps:$4 sm:$0xff]  }
  0x2d   : > { %3473 = vmatprep.subr.bf16.mxu0 %v4772_v41  ;;  %v4912_v40 = vld [vmem:[%s5606_s12 + $0x190] ss:$100 sps:$4 sm:$0xff]   ;;  %v4913_v41 = vld [vmem:[%s5606_s12 + $0x1c0] ss:$100 sps:$4 sm:$0xff]  }
  0x2f   : > { %3096 = vmatpush1.bf16.msra.mxu1 %v4774_v42  ;;  %v4854_v42 = vld [vmem:[%s6770_s1 + $0x170] ss:$8 sps:$4 sm:$0xff]  }
  0x30   : > { %3474 = vmatpush1.bf16.msra.mxu0 %v4775_v43  ;;  %3097 = vmatprep.subr.bf16.mxu1 %v4776_v44  ;;  %v4857_v43 = vld [vmem:[%s6770_s1 + $0x770] ss:$8 sps:$4 sm:$0xff]   ;;  %v4862_v44 = vld [vmem:[%s6770_s1 + $0x184] ss:$8 sps:$4 sm:$0xff]  }
  0x31   : > { %3475 = vmatprep.subr.bf16.mxu0 %v4778_v45  ;;  %v4865_v45 = vld [vmem:[%s6770_s1 + $0x784] ss:$8 sps:$4 sm:$0xff]  }
  0x33   : > { %3098 = vmatpush1.bf16.msra.mxu1 %v4780_v46  ;;  %v4860_v46 = vld [vmem:[%s6770_s1 + $0x180] ss:$8 sps:$4 sm:$0xff]  }
  0x34   : > { %3476 = vmatpush1.bf16.msra.mxu0 %v4781_v47  ;;  %3099 = vmatprep.subr.bf16.mxu1 %v4782_v49  ;;  %v4922_v47 = vld [vmem:[%s5606_s12 + $0xc] ss:$100 sps:$4 sm:$0xff]   ;;  %v4868_v49 = vld [vmem:[%s6770_s1 + $0x194] ss:$8 sps:$4 sm:$0xff]  }
  0x35   : > { %3477 = vmatprep.subr.bf16.mxu0 %v4784_v50  ;;  %v4871_v50 = vld [vmem:[%s6770_s1 + $0x794] ss:$8 sps:$4 sm:$0xff]  }
  0x37   : > { %3100 = vmatpush1.bf16.msra.mxu1 %v4786_v52  ;;  %v4866_v52 = vld [vmem:[%s6770_s1 + $0x190] ss:$8 sps:$4 sm:$0xff]  }
  0x38   : > { %3478 = vmatpush1.bf16.msra.mxu0 %v4787_v53  ;;  %3101 = vmatprep.subr.bf16.mxu1 %v4788_v54  ;;  %v4869_v53 = vld [vmem:[%s6770_s1 + $0x790] ss:$8 sps:$4 sm:$0xff]   ;;  %v4874_v54 = vld [vmem:[%s6770_s1 + $0x1a4] ss:$8 sps:$4 sm:$0xff]  }
  0x39   : > { %3479 = vmatprep.subr.bf16.mxu0 %v4790_v55  ;;  %v4877_v55 = vld [vmem:[%s6770_s1 + $0x7a4] ss:$8 sps:$4 sm:$0xff]  }
  0x3b   : > { %3102 = vmatpush1.bf16.msra.mxu1 %v4792_v56  ;;  %v4872_v56 = vld [vmem:[%s6770_s1 + $0x1a0] ss:$8 sps:$4 sm:$0xff]  }
  0x3c   : > { %3480 = vmatpush1.bf16.msra.mxu0 %v4793_v57  ;;  %3103 = vmatprep.subr.bf16.mxu1 %v4794_v58  ;;  %v4875_v57 = vld [vmem:[%s6770_s1 + $0x7a0] ss:$8 sps:$4 sm:$0xff]   ;;  %v4880_v58 = vld [vmem:[%s6770_s1 + $0x1b4] ss:$8 sps:$4 sm:$0xff]  }
  0x3d   : > { %3481 = vmatprep.subr.bf16.mxu0 %v4796_v59  ;;  %v4883_v59 = vld [vmem:[%s6770_s1 + $0x7b4] ss:$8 sps:$4 sm:$0xff]  }
  0x3f   : > { %3104 = vmatpush1.bf16.msra.mxu1 %v4798_v60  ;;  %v4878_v60 = vld [vmem:[%s6770_s1 + $0x1b0] ss:$8 sps:$4 sm:$0xff]  }
  0x40   : > { %3482 = vmatpush1.bf16.msra.mxu0 %v4799_v61  ;;  %3105 = vmatprep.subr.bf16.mxu1 %v4800_v62  ;;  %v4881_v61 = vld [vmem:[%s6770_s1 + $0x7b0] ss:$8 sps:$4 sm:$0xff]   ;;  %v4888_v62 = vld [vmem:[%s6770_s1 + $0x1c4] ss:$8 sps:$4 sm:$0xff]  }
  0x41   : > { %3483 = vmatprep.subr.bf16.mxu0 %v4802_v63  ;;  %v4893_v63 = vld [vmem:[%s6770_s1 + $0x7c4] ss:$8 sps:$4 sm:$0xff]  }
  0x43   : > { %3106 = vmatpush1.bf16.msra.mxu1 %v4804_v0  ;;  %v4886_v0 = vld [vmem:[%s6770_s1 + $0x1c0] ss:$8 sps:$4 sm:$0xff]  }
  0x44   : > { %3484 = vmatpush1.bf16.msra.mxu0 %v4805_v1  ;;  %3138 = vmatprep.subr.bf16.mxu1 %v4811_v2  ;;  %v4891_v1 = vld [vmem:[%s6770_s1 + $0x7c0] ss:$8 sps:$4 sm:$0xff]   ;;  %v4898_v2 = vld [vmem:[%s6770_s1 + $0x1d4] ss:$8 sps:$4 sm:$0xff]  }
  0x45   : > { %3516 = vmatprep.subr.bf16.mxu0 %v4817_v3  ;;  %v4901_v3 = vld [vmem:[%s6770_s1 + $0x7d4] ss:$8 sps:$4 sm:$0xff]  }
  0x46   : > { %3108 = vmatmul.mubr.bf16.vlgmr.msra.gmra.mrb[0].mxu1 %v4806_v4  ;;  %v4896_v4 = vld [vmem:[%s6770_s1 + $0x1d0] ss:$8 sps:$4 sm:$0xff]  }
  0x47   : > { %3486 = vmatmul.mubr.bf16.vlgmr.msra.gmra.mrb[0].mxu0 %v4812_v6  ;;  %3139 = vmatpush1.bf16.msra.mxu1 %v4809_v5  ;;  %v4899_v5 = vld [vmem:[%s6770_s1 + $0x7d0] ss:$8 sps:$4 sm:$0xff]   ;;  %v4906_v6 = vld [vmem:[%s6770_s1 + $0x1e4] ss:$8 sps:$4 sm:$0xff]  }
  0x48   : > { %3517 = vmatpush1.bf16.msra.mxu0 %v4815_v7  ;;  %3140 = vmatprep.subr.bf16.mxu1 %v4820_v8  ;;  %v4911_v7 = vld [vmem:[%s6770_s1 + $0x7e4] ss:$8 sps:$4 sm:$0xff]   ;;  %v4904_v8 = vld [vmem:[%s6770_s1 + $0x1e0] ss:$8 sps:$4 sm:$0xff]  }
  0x49   : > { %3518 = vmatprep.subr.bf16.mxu0 %v4823_v9  ;;  %3117 = vmatprep.mubr.bf16.mxu1 %v4884_v22  ;;  %v4909_v9 = vld [vmem:[%s6770_s1 + $0x7e0] ss:$8 sps:$4 sm:$0xff]   ;;  %v4998_v22 = vld [vmem:[%s5606_s12 + $0xd4] ss:$100 sps:$4 sm:$0xff]  }
  0x4a   : > { %3495 = vmatprep.mubr.bf16.mxu0 %v4889_v25  ;;  %v4935_v25 = vld [vmem:[%s6770_s1 + $0x810] ss:$8 sps:$4 sm:$0xff]  }
  0x4b   : > { %3141 = vmatpush1.bf16.msra.mxu1 %v4818_v10  ;;  %v4916_v10 = vld [vmem:[%s6770_s1 + $0x1f4] ss:$8 sps:$4 sm:$0xff]  }
  0x4c   : > { %3519 = vmatpush1.bf16.msra.mxu0 %v4821_v11  ;;  %3142 = vmatprep.subr.bf16.mxu1 %v4826_v12  ;;  %v4919_v11 = vld [vmem:[%s6770_s1 + $0x7f4] ss:$8 sps:$4 sm:$0xff]   ;;  %v4914_v12 = vld [vmem:[%s6770_s1 + $0x1f0] ss:$8 sps:$4 sm:$0xff]  }
  0x4d   : > { %3520 = vmatprep.subr.bf16.mxu0 %v4829_v13  ;;  %v4917_v13 = vld [vmem:[%s6770_s1 + $0x7f0] ss:$8 sps:$4 sm:$0xff]  }
  0x4e   : > { %3118 = vmatmul.mubr.bf16.gmra.mrb[4].mxu1 %v4894_v28  ;;  %v4938_v28 = vld [vmem:[%s6770_s1 + $0x220] ss:$8 sps:$4 sm:$0xff]  }
  0x4f   : > { %3143 = vmatpush1.bf16.msra.mxu1 %v4824_v14  ;;  %3496 = vmatmul.mubr.bf16.gmra.mrb[4].mxu0 %v4895_v29  ;;  %v4925_v14 = vld [vmem:[%s6770_s1 + $0x204] ss:$8 sps:$4 sm:$0xff]   ;;  %v4941_v29 = vld [vmem:[%s6770_s1 + $0x820] ss:$8 sps:$4 sm:$0xff]  }
  0x50   : > { %3521 = vmatpush1.bf16.msra.mxu0 %v4827_v15  ;;  %3144 = vmatprep.subr.bf16.mxu1 %v4832_v16  ;;  %v4931_v15 = vld [vmem:[%s6770_s1 + $0x804] ss:$8 sps:$4 sm:$0xff]  }
  0x51   : > { %3522 = vmatprep.subr.bf16.mxu0 %v4835_v17  ;;  %3127 = vmatprep.mubr.bf16.mxu1 %v4902_v34  ;;  %v4920_v16 = vld [vmem:[%s5606_s12 + $0x8] ss:$100 sps:$4 sm:$0xff]   ;;  %v5016_v34 = vld [vmem:[%s5606_s12 + $0x19c] ss:$100 sps:$4 sm:$0xff]  }
  0x52   : > { %3505 = vmatprep.mubr.bf16.mxu0 %v4907_v37  ;;  %v4923_v17 = vld [vmem:[%s6770_s1 + $0x200] ss:$8 sps:$4 sm:$0xff]   ;;  %v4947_v37 = vld [vmem:[%s6770_s1 + $0x830] ss:$8 sps:$4 sm:$0xff]  }
  0x53   : > { %3145 = vmatpush1.bf16.msra.mxu1 %v4830_v18  ;;  %v4926_v18 = vld [vmem:[%s5606_s12 + $0x38] ss:$100 sps:$4 sm:$0xff]  }
  0x54   : > { %3523 = vmatpush1.bf16.msra.mxu0 %v4833_v19  ;;  %3146 = vmatprep.subr.bf16.mxu1 %v4838_v20  ;;  %v4929_v19 = vld [vmem:[%s6770_s1 + $0x800] ss:$8 sps:$4 sm:$0xff]   ;;  %v4934_v20 = vld [vmem:[%s6770_s1 + $0x214] ss:$8 sps:$4 sm:$0xff]  }
  0x55   : > { %3524 = vmatprep.subr.bf16.mxu0 %v4841_v21  ;;  %v4937_v21 = vld [vmem:[%s6770_s1 + $0x814] ss:$8 sps:$4 sm:$0xff]  }
  0x56   : > { %3128 = vmatmul.mubr.bf16.gmra.mrb[8].mxu1 %v4912_v40  ;;  %v4950_v40 = vld [vmem:[%s6770_s1 + $0x240] ss:$8 sps:$4 sm:$0xff]  }
  0x57   : > { %3147 = vmatpush1.bf16.msra.mxu1 %v4836_v23  ;;  %3506 = vmatmul.mubr.bf16.gmra.mrb[8].mxu0 %v4913_v41  ;;  %v5003_v23 = vld [vmem:[%s5606_s12 + $0x104] ss:$100 sps:$4 sm:$0xff]  }
  0x58   : > { %3525 = vmatpush1.bf16.msra.mxu0 %v4839_v24  ;;  %3148 = vmatprep.subr.bf16.mxu1 %v4844_v26  ;;  %v4932_v24 = vld [vmem:[%s6770_s1 + $0x210] ss:$8 sps:$4 sm:$0xff]   ;;  %v4940_v26 = vld [vmem:[%s6770_s1 + $0x224] ss:$8 sps:$4 sm:$0xff]   ;;  %v4953_v41 = vld [vmem:[%s6770_s1 + $0x840] ss:$8 sps:$4 sm:$0xff]  }
  0x59   : > { %3526 = vmatprep.subr.bf16.mxu0 %v4847_v27  ;;  %3170 = vmatprep.mubr.bf16.mxu1 %v4922_v47  ;;  %v4943_v27 = vld [vmem:[%s6770_s1 + $0x824] ss:$8 sps:$4 sm:$0xff]   ;;  %v5036_v47 = vld [vmem:[%s5606_s12 + $0x14] ss:$100 sps:$4 sm:$0xff]  }
  0x5a   : > { %3548 = vmatprep.mubr.bf16.mxu0 %v4928_v51  ;;  %v4967_v51 = vld [vmem:[%s6770_s1 + $0x864] ss:$8 sps:$4 sm:$0xff]  }
  0x5b   : > { %3149 = vmatpush1.bf16.msra.mxu1 %v4842_v30  ;;  %v5008_v30 = vld [vmem:[%s5606_s12 + $0xd0] ss:$100 sps:$4 sm:$0xff]  }
  0x5c   : > { %3527 = vmatpush1.bf16.msra.mxu0 %v4845_v31  ;;  %3150 = vmatprep.subr.bf16.mxu1 %v4850_v32  ;;  %v5009_v31 = vld [vmem:[%s5606_s12 + $0x100] ss:$100 sps:$4 sm:$0xff]   ;;  %v4946_v32 = vld [vmem:[%s6770_s1 + $0x234] ss:$8 sps:$4 sm:$0xff]  }
  0x5d   : > { %3528 = vmatprep.subr.bf16.mxu0 %v4853_v33  ;;  %v4949_v33 = vld [vmem:[%s6770_s1 + $0x834] ss:$8 sps:$4 sm:$0xff]  }
  0x5f   : > { %3151 = vmatpush1.bf16.msra.mxu1 %v4848_v35  ;;  %v5021_v35 = vld [vmem:[%s5606_s12 + $0x1cc] ss:$100 sps:$4 sm:$0xff]  }
  0x60   : > { %3529 = vmatpush1.bf16.msra.mxu0 %v4851_v36  ;;  %3152 = vmatprep.subr.bf16.mxu1 %v4856_v38  ;;  %v4944_v36 = vld [vmem:[%s6770_s1 + $0x230] ss:$8 sps:$4 sm:$0xff]   ;;  %v4952_v38 = vld [vmem:[%s6770_s1 + $0x244] ss:$8 sps:$4 sm:$0xff]  }
  0x61   : > { %3530 = vmatprep.subr.bf16.mxu0 %v4859_v39  ;;  %v4955_v39 = vld [vmem:[%s6770_s1 + $0x844] ss:$8 sps:$4 sm:$0xff]  }
  0x63   : > { %3153 = vmatpush1.bf16.msra.mxu1 %v4854_v42  ;;  %v5026_v42 = vld [vmem:[%s5606_s12 + $0x198] ss:$100 sps:$4 sm:$0xff]  }
  0x64   : > { %3531 = vmatpush1.bf16.msra.mxu0 %v4857_v43  ;;  %3154 = vmatprep.subr.bf16.mxu1 %v4862_v44  ;;  %v5027_v43 = vld [vmem:[%s5606_s12 + $0x1c8] ss:$100 sps:$4 sm:$0xff]   ;;  %v4958_v44 = vld [vmem:[%s6770_s1 + $0x254] ss:$8 sps:$4 sm:$0xff]  }
  0x65   : > { %3532 = vmatprep.subr.bf16.mxu0 %v4865_v45  ;;  %v4961_v45 = vld [vmem:[%s6770_s1 + $0x854] ss:$8 sps:$4 sm:$0xff]  }
  0x67   : > { %3155 = vmatpush1.bf16.msra.mxu1 %v4860_v46  ;;  %v4956_v46 = vld [vmem:[%s6770_s1 + $0x250] ss:$8 sps:$4 sm:$0xff]  }
  0x68   : > { %3533 = vmatpush1.bf16.msra.mxu0 %v4863_v48  ;;  %3156 = vmatprep.subr.bf16.mxu1 %v4868_v49  ;;  %v4959_v48 = vld [vmem:[%s6770_s1 + $0x850] ss:$8 sps:$4 sm:$0xff]   ;;  %v5042_v49 = vld [vmem:[%s5606_s12 + $0x44] ss:$100 sps:$4 sm:$0xff]  }
  0x69   : > { %3534 = vmatprep.subr.bf16.mxu0 %v4871_v50  ;;  %v4964_v50 = vld [vmem:[%s6770_s1 + $0x264] ss:$8 sps:$4 sm:$0xff]  }
  0x6b   : > { %3157 = vmatpush1.bf16.msra.mxu1 %v4866_v52  ;;  %v4962_v52 = vld [vmem:[%s6770_s1 + $0x260] ss:$8 sps:$4 sm:$0xff]  }
  0x6c   : > { %3535 = vmatpush1.bf16.msra.mxu0 %v4869_v53  ;;  %3158 = vmatprep.subr.bf16.mxu1 %v4874_v54  ;;  %v4965_v53 = vld [vmem:[%s6770_s1 + $0x860] ss:$8 sps:$4 sm:$0xff]   ;;  %v4970_v54 = vld [vmem:[%s6770_s1 + $0x274] ss:$8 sps:$4 sm:$0xff]  }
  0x6d   : > { %3536 = vmatprep.subr.bf16.mxu0 %v4877_v55  ;;  %v4973_v55 = vld [vmem:[%s6770_s1 + $0x874] ss:$8 sps:$4 sm:$0xff]  }
  0x6f   : > { %3159 = vmatpush1.bf16.msra.mxu1 %v4872_v56  ;;  %v4968_v56 = vld [vmem:[%s6770_s1 + $0x270] ss:$8 sps:$4 sm:$0xff]  }
  0x70   : > { %3537 = vmatpush1.bf16.msra.mxu0 %v4875_v57  ;;  %3160 = vmatprep.subr.bf16.mxu1 %v4880_v58  ;;  %v4971_v57 = vld [vmem:[%s6770_s1 + $0x870] ss:$8 sps:$4 sm:$0xff]   ;;  %v4976_v58 = vld [vmem:[%s6770_s1 + $0x284] ss:$8 sps:$4 sm:$0xff]  }
  0x71   : > { %3538 = vmatprep.subr.bf16.mxu0 %v4883_v59  ;;  %v4979_v59 = vld [vmem:[%s6770_s1 + $0x884] ss:$8 sps:$4 sm:$0xff]  }
  0x73   : > { %3161 = vmatpush1.bf16.msra.mxu1 %v4878_v60  ;;  %v4974_v60 = vld [vmem:[%s6770_s1 + $0x280] ss:$8 sps:$4 sm:$0xff]  }
  0x74   : > { %3539 = vmatpush1.bf16.msra.mxu0 %v4881_v61  ;;  %3162 = vmatprep.subr.bf16.mxu1 %v4888_v62  ;;  %v4977_v61 = vld [vmem:[%s6770_s1 + $0x880] ss:$8 sps:$4 sm:$0xff]   ;;  %v4982_v62 = vld [vmem:[%s6770_s1 + $0x294] ss:$8 sps:$4 sm:$0xff]  }
  0x75   : > { %3540 = vmatprep.subr.bf16.mxu0 %v4893_v63  ;;  %v4985_v63 = vld [vmem:[%s6770_s1 + $0x894] ss:$8 sps:$4 sm:$0xff]  }
  0x77   : > { %3163 = vmatpush1.bf16.msra.mxu1 %v4886_v0  ;;  %v4980_v0 = vld [vmem:[%s6770_s1 + $0x290] ss:$8 sps:$4 sm:$0xff]  }
  0x78   : > { %3541 = vmatpush1.bf16.msra.mxu0 %v4891_v1  ;;  %3164 = vmatprep.subr.bf16.mxu1 %v4898_v2  ;;  %v4983_v1 = vld [vmem:[%s6770_s1 + $0x890] ss:$8 sps:$4 sm:$0xff]   ;;  %v4988_v2 = vld [vmem:[%s6770_s1 + $0x2a4] ss:$8 sps:$4 sm:$0xff]  }
  0x79   : > { %3542 = vmatprep.subr.bf16.mxu0 %v4901_v3  ;;  %v4991_v3 = vld [vmem:[%s6770_s1 + $0x8a4] ss:$8 sps:$4 sm:$0xff]  }
  0x7b   : > { %3165 = vmatpush1.bf16.msra.mxu1 %v4896_v4  ;;  %v4986_v4 = vld [vmem:[%s6770_s1 + $0x2a0] ss:$8 sps:$4 sm:$0xff]  }
  0x7c   : > { %3543 = vmatpush1.bf16.msra.mxu0 %v4899_v5  ;;  %3166 = vmatprep.subr.bf16.mxu1 %v4906_v6  ;;  %v4989_v5 = vld [vmem:[%s6770_s1 + $0x8a0] ss:$8 sps:$4 sm:$0xff]   ;;  %v4994_v6 = vld [vmem:[%s6770_s1 + $0x2b4] ss:$8 sps:$4 sm:$0xff]  }
  0x7d   : > { %3544 = vmatprep.subr.bf16.mxu0 %v4911_v7  ;;  %v4997_v7 = vld [vmem:[%s6770_s1 + $0x8b4] ss:$8 sps:$4 sm:$0xff]  }
  0x7f   : > { %3167 = vmatpush1.bf16.msra.mxu1 %v4904_v8  ;;  %v4992_v8 = vld [vmem:[%s6770_s1 + $0x2b0] ss:$8 sps:$4 sm:$0xff]  }
  0x80   : > { %3545 = vmatpush1.bf16.msra.mxu0 %v4909_v9  ;;  %3168 = vmatprep.subr.bf16.mxu1 %v4916_v10  ;;  %v4995_v9 = vld [vmem:[%s6770_s1 + $0x8b0] ss:$8 sps:$4 sm:$0xff]   ;;  %v5002_v10 = vld [vmem:[%s6770_s1 + $0x2c4] ss:$8 sps:$4 sm:$0xff]  }
  0x81   : > { %3546 = vmatprep.subr.bf16.mxu0 %v4919_v11  ;;  %v5007_v11 = vld [vmem:[%s6770_s1 + $0x8c4] ss:$8 sps:$4 sm:$0xff]  }
  0x83   : > { %3169 = vmatpush1.bf16.msra.mxu1 %v4914_v12  ;;  %v5000_v12 = vld [vmem:[%s6770_s1 + $0x2c0] ss:$8 sps:$4 sm:$0xff]  }
  0x84   : > { %3547 = vmatpush1.bf16.msra.mxu0 %v4917_v13  ;;  %3201 = vmatprep.subr.bf16.mxu1 %v4925_v14  ;;  %v5005_v13 = vld [vmem:[%s6770_s1 + $0x8c0] ss:$8 sps:$4 sm:$0xff]   ;;  %v5012_v14 = vld [vmem:[%s6770_s1 + $0x2d4] ss:$8 sps:$4 sm:$0xff]  }
  0x85   : > { %3579 = vmatprep.subr.bf16.mxu0 %v4931_v15  ;;  %v5015_v15 = vld [vmem:[%s6770_s1 + $0x8d4] ss:$8 sps:$4 sm:$0xff]  }
  0x86   : > { %3171 = vmatmul.mubr.bf16.vlgmr.msra.gmra.mrb[0].mxu1 %v4920_v16  ;;  %v5010_v16 = vld [vmem:[%s6770_s1 + $0x2d0] ss:$8 sps:$4 sm:$0xff]  }
  0x87   : > { %3549 = vmatmul.mubr.bf16.vlgmr.msra.gmra.mrb[0].mxu0 %v4926_v18  ;;  %3202 = vmatpush1.bf16.msra.mxu1 %v4923_v17  ;;  %v5013_v17 = vld [vmem:[%s6770_s1 + $0x8d0] ss:$8 sps:$4 sm:$0xff]   ;;  %v5020_v18 = vld [vmem:[%s6770_s1 + $0x2e4] ss:$8 sps:$4 sm:$0xff]  }
  0x88   : > { %3580 = vmatpush1.bf16.msra.mxu0 %v4929_v19  ;;  %3203 = vmatprep.subr.bf16.mxu1 %v4934_v20  ;;  %v5025_v19 = vld [vmem:[%s6770_s1 + $0x8e4] ss:$8 sps:$4 sm:$0xff]   ;;  %v5018_v20 = vld [vmem:[%s6770_s1 + $0x2e0] ss:$8 sps:$4 sm:$0xff]  }
  0x89   : > { %3581 = vmatprep.subr.bf16.mxu0 %v4937_v21  ;;  %3180 = vmatprep.mubr.bf16.mxu1 %v4998_v22  ;;  %v5023_v21 = vld [vmem:[%s6770_s1 + $0x8e0] ss:$8 sps:$4 sm:$0xff]   ;;  %v5030_v22 = vld [vmem:[%s6770_s1 + $0x2f4] ss:$8 sps:$4 sm:$0xff]  }
  0x8a   : > { %3558 = vmatprep.mubr.bf16.mxu0 %v5003_v23  ;;  %v5033_v23 = vld [vmem:[%s6770_s1 + $0x8f4] ss:$8 sps:$4 sm:$0xff]  }
  0x8b   : > { %3204 = vmatpush1.bf16.msra.mxu1 %v4932_v24  ;;  %v5028_v24 = vld [vmem:[%s6770_s1 + $0x2f0] ss:$8 sps:$4 sm:$0xff]  }
  0x8c   : > { %3582 = vmatpush1.bf16.msra.mxu0 %v4935_v25  ;;  %3205 = vmatprep.subr.bf16.mxu1 %v4940_v26  ;;  %v5031_v25 = vld [vmem:[%s6770_s1 + $0x8f0] ss:$8 sps:$4 sm:$0xff]   ;;  %v5039_v26 = vld [vmem:[%s6770_s1 + $0x304] ss:$8 sps:$4 sm:$0xff]  }
  0x8d   : > { %3583 = vmatprep.subr.bf16.mxu0 %v4943_v27  ;;  %v5045_v27 = vld [vmem:[%s6770_s1 + $0x904] ss:$8 sps:$4 sm:$0xff]  }
  0x8e   : > { %3181 = vmatmul.mubr.bf16.gmra.mrb[4].mxu1 %v5008_v30  ;;  %v5040_v30 = vld [vmem:[%s5606_s12 + $0x40] ss:$100 sps:$4 sm:$0xff]  }
  0x8f   : > { %3559 = vmatmul.mubr.bf16.gmra.mrb[4].mxu0 %v5009_v31  ;;  %3206 = vmatpush1.bf16.msra.mxu1 %v4938_v28  ;;  %v5034_v28 = vld [vmem:[%s5606_s12 + $0x10] ss:$100 sps:$4 sm:$0xff]   ;;  %v5043_v31 = vld [vmem:[%s6770_s1 + $0x900] ss:$8 sps:$4 sm:$0xff]  }
  0x90   : > { %3584 = vmatpush1.bf16.msra.mxu0 %v4941_v29  ;;  %3207 = vmatprep.subr.bf16.mxu1 %v4946_v32  ;;  %v5037_v29 = vld [vmem:[%s6770_s1 + $0x300] ss:$8 sps:$4 sm:$0xff]   ;;  %v5048_v32 = vld [vmem:[%s6770_s1 + $0x314] ss:$8 sps:$4 sm:$0xff]  }
  0x91   : > { %3585 = vmatprep.subr.bf16.mxu0 %v4949_v33  ;;  %3190 = vmatprep.mubr.bf16.mxu1 %v5016_v34  ;;  %v5051_v33 = vld [vmem:[%s6770_s1 + $0x914] ss:$8 sps:$4 sm:$0xff]  }
  0x92   : > { %3568 = vmatprep.mubr.bf16.mxu0 %v5021_v35  ;;  %v5112_v34 = vld [vmem:[%s5606_s12 + $0xdc] ss:$100 sps:$4 sm:$0xff]   ;;  %v5117_v35 = vld [vmem:[%s5606_s12 + $0x10c] ss:$100 sps:$4 sm:$0xff]  }
  0x93   : > { %3208 = vmatpush1.bf16.msra.mxu1 %v4944_v36  ;;  %v5046_v36 = vld [vmem:[%s6770_s1 + $0x310] ss:$8 sps:$4 sm:$0xff]  }
  0x94   : > { %3586 = vmatpush1.bf16.msra.mxu0 %v4947_v37  ;;  %3209 = vmatprep.subr.bf16.mxu1 %v4952_v38  ;;  %v5049_v37 = vld [vmem:[%s6770_s1 + $0x910] ss:$8 sps:$4 sm:$0xff]   ;;  %v5054_v38 = vld [vmem:[%s6770_s1 + $0x324] ss:$8 sps:$4 sm:$0xff]  }
  0x95   : > { %3587 = vmatprep.subr.bf16.mxu0 %v4955_v39  ;;  %v5057_v39 = vld [vmem:[%s6770_s1 + $0x924] ss:$8 sps:$4 sm:$0xff]  }
  0x96   : > { %3191 = vmatmul.mubr.bf16.gmra.mrb[8].mxu1 %v5026_v42  ;;  %v5122_v42 = vld [vmem:[%s5606_s12 + $0xd8] ss:$100 sps:$4 sm:$0xff]  }
  0x97   : > { %3569 = vmatmul.mubr.bf16.gmra.mrb[8].mxu0 %v5027_v43  ;;  %3210 = vmatpush1.bf16.msra.mxu1 %v4950_v40  ;;  %v5052_v40 = vld [vmem:[%s6770_s1 + $0x320] ss:$8 sps:$4 sm:$0xff]  }
  0x98   : > { %3588 = vmatpush1.bf16.msra.mxu0 %v4953_v41  ;;  %3211 = vmatprep.subr.bf16.mxu1 %v4958_v44  ;;  %v5055_v41 = vld [vmem:[%s6770_s1 + $0x920] ss:$8 sps:$4 sm:$0xff]   ;;  %v5060_v44 = vld [vmem:[%s6770_s1 + $0x334] ss:$8 sps:$4 sm:$0xff]  }
  0x99   : > { %3589 = vmatprep.subr.bf16.mxu0 %v4961_v45  ;;  %3233 = vmatprep.mubr.bf16.mxu1 %v5036_v47  ;;  %v5123_v43 = vld [vmem:[%s5606_s12 + $0x108] ss:$100 sps:$4 sm:$0xff]   ;;  %v5063_v45 = vld [vmem:[%s6770_s1 + $0x934] ss:$8 sps:$4 sm:$0xff]  }
  0x9a   : > { %3611 = vmatprep.mubr.bf16.mxu0 %v5042_v49  ;;  %v5135_v47 = vld [vmem:[%s5606_s12 + $0x1d4] ss:$100 sps:$4 sm:$0xff]  }
  0x9b   : > { %3212 = vmatpush1.bf16.msra.mxu1 %v4956_v46  ;;  %v5130_v46 = vld [vmem:[%s5606_s12 + $0x1a4] ss:$100 sps:$4 sm:$0xff]   ;;  %v5061_v49 = vld [vmem:[%s6770_s1 + $0x930] ss:$8 sps:$4 sm:$0xff]  }
  0x9c   : > { %3590 = vmatpush1.bf16.msra.mxu0 %v4959_v48  ;;  %3213 = vmatprep.subr.bf16.mxu1 %v4964_v50  ;;  %v5058_v48 = vld [vmem:[%s6770_s1 + $0x330] ss:$8 sps:$4 sm:$0xff]   ;;  %v5066_v50 = vld [vmem:[%s6770_s1 + $0x344] ss:$8 sps:$4 sm:$0xff]  }
  0x9d   : > { %3591 = vmatprep.subr.bf16.mxu0 %v4967_v51  ;;  %v5069_v51 = vld [vmem:[%s6770_s1 + $0x944] ss:$8 sps:$4 sm:$0xff]  }
  0x9f   : > { %3214 = vmatpush1.bf16.msra.mxu1 %v4962_v52  ;;  %v5064_v52 = vld [vmem:[%s6770_s1 + $0x340] ss:$8 sps:$4 sm:$0xff]  }
  0xa0   : > { %3592 = vmatpush1.bf16.msra.mxu0 %v4965_v53  ;;  %3215 = vmatprep.subr.bf16.mxu1 %v4970_v54  ;;  %v5067_v53 = vld [vmem:[%s6770_s1 + $0x940] ss:$8 sps:$4 sm:$0xff]  }
  0xa1   : > { %3593 = vmatprep.subr.bf16.mxu0 %v4973_v55  ;;  %v5140_v54 = vld [vmem:[%s5606_s12 + $0x1a0] ss:$100 sps:$4 sm:$0xff]   ;;  %v5141_v55 = vld [vmem:[%s5606_s12 + $0x1d0] ss:$100 sps:$4 sm:$0xff]  }
  0xa3   : > { %3216 = vmatpush1.bf16.msra.mxu1 %v4968_v56  ;;  %v5072_v56 = vld [vmem:[%s6770_s1 + $0x354] ss:$8 sps:$4 sm:$0xff]  }
  0xa4   : > { %3594 = vmatpush1.bf16.msra.mxu0 %v4971_v57  ;;  %3217 = vmatprep.subr.bf16.mxu1 %v4976_v58  ;;  %v5075_v57 = vld [vmem:[%s6770_s1 + $0x954] ss:$8 sps:$4 sm:$0xff]  }
  0xa5   : > { %3595 = vmatprep.subr.bf16.mxu0 %v4979_v59  ;;  %v5150_v58 = vld [vmem:[%s5606_s12 + $0x1c] ss:$100 sps:$4 sm:$0xff]   ;;  %v5156_v59 = vld [vmem:[%s5606_s12 + $0x4c] ss:$100 sps:$4 sm:$0xff]  }
  0xa7   : > { %3218 = vmatpush1.bf16.msra.mxu1 %v4974_v60  ;;  %v5070_v60 = vld [vmem:[%s6770_s1 + $0x350] ss:$8 sps:$4 sm:$0xff]  }
  0xa8   : > { %3596 = vmatpush1.bf16.msra.mxu0 %v4977_v61  ;;  %3219 = vmatprep.subr.bf16.mxu1 %v4982_v62  ;;  %v5073_v61 = vld [vmem:[%s6770_s1 + $0x950] ss:$8 sps:$4 sm:$0xff]   ;;  %v5078_v62 = vld [vmem:[%s6770_s1 + $0x364] ss:$8 sps:$4 sm:$0xff]  }
  0xa9   : > { %3597 = vmatprep.subr.bf16.mxu0 %v4985_v63  ;;  %v5081_v63 = vld [vmem:[%s6770_s1 + $0x964] ss:$8 sps:$4 sm:$0xff]  }
  0xab   : > { %3220 = vmatpush1.bf16.msra.mxu1 %v4980_v0  ;;  %v5076_v0 = vld [vmem:[%s6770_s1 + $0x360] ss:$8 sps:$4 sm:$0xff]  }
  0xac   : > { %3598 = vmatpush1.bf16.msra.mxu0 %v4983_v1  ;;  %3221 = vmatprep.subr.bf16.mxu1 %v4988_v2  ;;  %v5079_v1 = vld [vmem:[%s6770_s1 + $0x960] ss:$8 sps:$4 sm:$0xff]   ;;  %v5084_v2 = vld [vmem:[%s6770_s1 + $0x374] ss:$8 sps:$4 sm:$0xff]  }
  0xad   : > { %3599 = vmatprep.subr.bf16.mxu0 %v4991_v3  ;;  %v5087_v3 = vld [vmem:[%s6770_s1 + $0x974] ss:$8 sps:$4 sm:$0xff]  }
  0xaf   : > { %3222 = vmatpush1.bf16.msra.mxu1 %v4986_v4  ;;  %v5082_v4 = vld [vmem:[%s6770_s1 + $0x370] ss:$8 sps:$4 sm:$0xff]  }
  0xb0   : > { %3600 = vmatpush1.bf16.msra.mxu0 %v4989_v5  ;;  %3223 = vmatprep.subr.bf16.mxu1 %v4994_v6  ;;  %v5085_v5 = vld [vmem:[%s6770_s1 + $0x970] ss:$8 sps:$4 sm:$0xff]   ;;  %v5090_v6 = vld [vmem:[%s6770_s1 + $0x384] ss:$8 sps:$4 sm:$0xff]  }
  0xb1   : > { %3601 = vmatprep.subr.bf16.mxu0 %v4997_v7  ;;  %v5093_v7 = vld [vmem:[%s6770_s1 + $0x984] ss:$8 sps:$4 sm:$0xff]  }
  0xb3   : > { %3224 = vmatpush1.bf16.msra.mxu1 %v4992_v8  ;;  %v5088_v8 = vld [vmem:[%s6770_s1 + $0x380] ss:$8 sps:$4 sm:$0xff]  }
  0xb4   : > { %3602 = vmatpush1.bf16.msra.mxu0 %v4995_v9  ;;  %3225 = vmatprep.subr.bf16.mxu1 %v5002_v10  ;;  %v5091_v9 = vld [vmem:[%s6770_s1 + $0x980] ss:$8 sps:$4 sm:$0xff]   ;;  %v5096_v10 = vld [vmem:[%s6770_s1 + $0x394] ss:$8 sps:$4 sm:$0xff]  }
  0xb5   : > { %3603 = vmatprep.subr.bf16.mxu0 %v5007_v11  ;;  %v5099_v11 = vld [vmem:[%s6770_s1 + $0x994] ss:$8 sps:$4 sm:$0xff]  }
  0xb7   : > { %3226 = vmatpush1.bf16.msra.mxu1 %v5000_v12  ;;  %v5094_v12 = vld [vmem:[%s6770_s1 + $0x390] ss:$8 sps:$4 sm:$0xff]  }
  0xb8   : > { %3604 = vmatpush1.bf16.msra.mxu0 %v5005_v13  ;;  %3227 = vmatprep.subr.bf16.mxu1 %v5012_v14  ;;  %v5097_v13 = vld [vmem:[%s6770_s1 + $0x990] ss:$8 sps:$4 sm:$0xff]   ;;  %v5102_v14 = vld [vmem:[%s6770_s1 + $0x3a4] ss:$8 sps:$4 sm:$0xff]  }
  0xb9   : > { %3605 = vmatprep.subr.bf16.mxu0 %v5015_v15  ;;  %v5105_v15 = vld [vmem:[%s6770_s1 + $0x9a4] ss:$8 sps:$4 sm:$0xff]  }
  0xbb   : > { %3228 = vmatpush1.bf16.msra.mxu1 %v5010_v16  ;;  %v5100_v16 = vld [vmem:[%s6770_s1 + $0x3a0] ss:$8 sps:$4 sm:$0xff]  }
  0xbc   : > { %3606 = vmatpush1.bf16.msra.mxu0 %v5013_v17  ;;  %3229 = vmatprep.subr.bf16.mxu1 %v5020_v18  ;;  %v5103_v17 = vld [vmem:[%s6770_s1 + $0x9a0] ss:$8 sps:$4 sm:$0xff]   ;;  %v5108_v18 = vld [vmem:[%s6770_s1 + $0x3b4] ss:$8 sps:$4 sm:$0xff]  }
  0xbd   : > { %3607 = vmatprep.subr.bf16.mxu0 %v5025_v19  ;;  %v5111_v19 = vld [vmem:[%s6770_s1 + $0x9b4] ss:$8 sps:$4 sm:$0xff]  }
  0xbf   : > { %3230 = vmatpush1.bf16.msra.mxu1 %v5018_v20  ;;  %v5106_v20 = vld [vmem:[%s6770_s1 + $0x3b0] ss:$8 sps:$4 sm:$0xff]  }
  0xc0   : > { %3608 = vmatpush1.bf16.msra.mxu0 %v5023_v21  ;;  %3231 = vmatprep.subr.bf16.mxu1 %v5030_v22  ;;  %v5109_v21 = vld [vmem:[%s6770_s1 + $0x9b0] ss:$8 sps:$4 sm:$0xff]   ;;  %v5116_v22 = vld [vmem:[%s6770_s1 + $0x3c4] ss:$8 sps:$4 sm:$0xff]  }
  0xc1   : > { %3609 = vmatprep.subr.bf16.mxu0 %v5033_v23  ;;  %v5121_v23 = vld [vmem:[%s6770_s1 + $0x9c4] ss:$8 sps:$4 sm:$0xff]  }
  0xc3   : > { %3232 = vmatpush1.bf16.msra.mxu1 %v5028_v24  ;;  %v5114_v24 = vld [vmem:[%s6770_s1 + $0x3c0] ss:$8 sps:$4 sm:$0xff]  }
  0xc4   : > { %3610 = vmatpush1.bf16.msra.mxu0 %v5031_v25  ;;  %3264 = vmatprep.subr.bf16.mxu1 %v5039_v26  ;;  %v5119_v25 = vld [vmem:[%s6770_s1 + $0x9c0] ss:$8 sps:$4 sm:$0xff]   ;;  %v5126_v26 = vld [vmem:[%s6770_s1 + $0x3d4] ss:$8 sps:$4 sm:$0xff]  }
  0xc5   : > { %3642 = vmatprep.subr.bf16.mxu0 %v5045_v27  ;;  %v5129_v27 = vld [vmem:[%s6770_s1 + $0x9d4] ss:$8 sps:$4 sm:$0xff]  }
  0xc6   : > { %3234 = vmatmul.mubr.bf16.vlgmr.msra.gmra.mrb[0].mxu1 %v5034_v28  ;;  %v5124_v28 = vld [vmem:[%s6770_s1 + $0x3d0] ss:$8 sps:$4 sm:$0xff]  }
  0xc7   : > { %3612 = vmatmul.mubr.bf16.vlgmr.msra.gmra.mrb[0].mxu0 %v5040_v30  ;;  %3265 = vmatpush1.bf16.msra.mxu1 %v5037_v29  ;;  %v5127_v29 = vld [vmem:[%s6770_s1 + $0x9d0] ss:$8 sps:$4 sm:$0xff]   ;;  %v5134_v30 = vld [vmem:[%s6770_s1 + $0x3e4] ss:$8 sps:$4 sm:$0xff]  }
  0xc8   : > { %3643 = vmatpush1.bf16.msra.mxu0 %v5043_v31  ;;  %3266 = vmatprep.subr.bf16.mxu1 %v5048_v32  ;;  %v5139_v31 = vld [vmem:[%s6770_s1 + $0x9e4] ss:$8 sps:$4 sm:$0xff]   ;;  %v5132_v32 = vld [vmem:[%s6770_s1 + $0x3e0] ss:$8 sps:$4 sm:$0xff]  }
  0xc9   : > { %3644 = vmatprep.subr.bf16.mxu0 %v5051_v33  ;;  %3243 = vmatprep.mubr.bf16.mxu1 %v5112_v34  ;;  %v5137_v33 = vld [vmem:[%s6770_s1 + $0x9e0] ss:$8 sps:$4 sm:$0xff]   ;;  %v5144_v34 = vld [vmem:[%s6770_s1 + $0x3f4] ss:$8 sps:$4 sm:$0xff]  }
  0xca   : > { %3621 = vmatprep.mubr.bf16.mxu0 %v5117_v35  ;;  %v5147_v35 = vld [vmem:[%s6770_s1 + $0x9f4] ss:$8 sps:$4 sm:$0xff]  }
  0xcb   : > { %3267 = vmatpush1.bf16.msra.mxu1 %v5046_v36  ;;  %v5142_v36 = vld [vmem:[%s6770_s1 + $0x3f0] ss:$8 sps:$4 sm:$0xff]  }
  0xcc   : > { %3645 = vmatpush1.bf16.msra.mxu0 %v5049_v37  ;;  %3268 = vmatprep.subr.bf16.mxu1 %v5054_v38  ;;  %v5145_v37 = vld [vmem:[%s6770_s1 + $0x9f0] ss:$8 sps:$4 sm:$0xff]   ;;  %v5153_v38 = vld [vmem:[%s6770_s1 + $0x404] ss:$8 sps:$4 sm:$0xff]  }
  0xcd   : > { %3646 = vmatprep.subr.bf16.mxu0 %v5057_v39  ;;  %v5159_v39 = vld [vmem:[%s6770_s1 + $0xa04] ss:$8 sps:$4 sm:$0xff]  }
  0xce   : > { %3244 = vmatmul.mubr.bf16.gmra.mrb[4].mxu1 %v5122_v42  ;;  %v5154_v42 = vld [vmem:[%s5606_s12 + $0x48] ss:$100 sps:$4 sm:$0xff]  }
  0xcf   : > { %3622 = vmatmul.mubr.bf16.gmra.mrb[4].mxu0 %v5123_v43  ;;  %3269 = vmatpush1.bf16.msra.mxu1 %v5052_v40  ;;  %v5148_v40 = vld [vmem:[%s5606_s12 + $0x18] ss:$100 sps:$4 sm:$0xff]   ;;  %v5157_v43 = vld [vmem:[%s6770_s1 + $0xa00] ss:$8 sps:$4 sm:$0xff]  }
  0xd0   : > { %3647 = vmatpush1.bf16.msra.mxu0 %v5055_v41  ;;  %3270 = vmatprep.subr.bf16.mxu1 %v5060_v44  ;;  %v5151_v41 = vld [vmem:[%s6770_s1 + $0x400] ss:$8 sps:$4 sm:$0xff]   ;;  %v5162_v44 = vld [vmem:[%s6770_s1 + $0x414] ss:$8 sps:$4 sm:$0xff]  }
  0xd1   : > { %3648 = vmatprep.subr.bf16.mxu0 %v5063_v45  ;;  %3253 = vmatprep.mubr.bf16.mxu1 %v5130_v46  ;;  %v5165_v45 = vld [vmem:[%s6770_s1 + $0xa14] ss:$8 sps:$4 sm:$0xff]   ;;  %v5226_v46 = vld [vmem:[%s5606_s12 + $0xe4] ss:$100 sps:$4 sm:$0xff]  }
  0xd2   : > { %3631 = vmatprep.mubr.bf16.mxu0 %v5135_v47  ;;  %v5231_v47 = vld [vmem:[%s5606_s12 + $0x114] ss:$100 sps:$4 sm:$0xff]  }
  0xd3   : > { %3271 = vmatpush1.bf16.msra.mxu1 %v5058_v48  ;;  %v5160_v48 = vld [vmem:[%s6770_s1 + $0x410] ss:$8 sps:$4 sm:$0xff]  }
  0xd4   : > { %3649 = vmatpush1.bf16.msra.mxu0 %v5061_v49  ;;  %3272 = vmatprep.subr.bf16.mxu1 %v5066_v50  ;;  %v5163_v49 = vld [vmem:[%s6770_s1 + $0xa10] ss:$8 sps:$4 sm:$0xff]   ;;  %v5168_v50 = vld [vmem:[%s6770_s1 + $0x424] ss:$8 sps:$4 sm:$0xff]  }
  0xd5   : > { %3650 = vmatprep.subr.bf16.mxu0 %v5069_v51  ;;  %v5171_v51 = vld [vmem:[%s6770_s1 + $0xa24] ss:$8 sps:$4 sm:$0xff]  }
  0xd6   : > { %3254 = vmatmul.mubr.bf16.gmra.mrb[8].mxu1 %v5140_v54  ;;  %v5236_v54 = vld [vmem:[%s5606_s12 + $0xe0] ss:$100 sps:$4 sm:$0xff]  }
  0xd7   : > { %3632 = vmatmul.mubr.bf16.gmra.mrb[8].mxu0 %v5141_v55  ;;  %3273 = vmatpush1.bf16.msra.mxu1 %v5064_v52  ;;  %v5166_v52 = vld [vmem:[%s6770_s1 + $0x420] ss:$8 sps:$4 sm:$0xff]   ;;  %v5237_v55 = vld [vmem:[%s5606_s12 + $0x110] ss:$100 sps:$4 sm:$0xff]  }
  0xd8   : > { %3651 = vmatpush1.bf16.msra.mxu0 %v5067_v53  ;;  %3274 = vmatprep.subr.bf16.mxu1 %v5072_v56  ;;  %v5169_v53 = vld [vmem:[%s6770_s1 + $0xa20] ss:$8 sps:$4 sm:$0xff]   ;;  %v5174_v56 = vld [vmem:[%s6770_s1 + $0x434] ss:$8 sps:$4 sm:$0xff]  }
  0xd9   : > { %3652 = vmatprep.subr.bf16.mxu0 %v5075_v57  ;;  %3296 = vmatprep.mubr.bf16.mxu1 %v5150_v58  ;;  %v5177_v57 = vld [vmem:[%s6770_s1 + $0xa34] ss:$8 sps:$4 sm:$0xff]   ;;  %v5244_v58 = vld [vmem:[%s5606_s12 + $0x1ac] ss:$100 sps:$4 sm:$0xff]  }
  0xda   : > { %3674 = vmatprep.mubr.bf16.mxu0 %v5156_v59  ;;  %v5249_v59 = vld [vmem:[%s5606_s12 + $0x1dc] ss:$100 sps:$4 sm:$0xff]  }
  0xdb   : > { %3275 = vmatpush1.bf16.msra.mxu1 %v5070_v60  ;;  %v5172_v60 = vld [vmem:[%s6770_s1 + $0x430] ss:$8 sps:$4 sm:$0xff]  }
  0xdc   : > { %3653 = vmatpush1.bf16.msra.mxu0 %v5073_v61  ;;  %3276 = vmatprep.subr.bf16.mxu1 %v5078_v62  ;;  %v5175_v61 = vld [vmem:[%s6770_s1 + $0xa30] ss:$8 sps:$4 sm:$0xff]   ;;  %v5180_v62 = vld [vmem:[%s6770_s1 + $0x444] ss:$8 sps:$4 sm:$0xff]  }
  0xdd   : > { %3654 = vmatprep.subr.bf16.mxu0 %v5081_v63  ;;  %v5183_v63 = vld [vmem:[%s6770_s1 + $0xa44] ss:$8 sps:$4 sm:$0xff]  }
  0xdf   : > { %3277 = vmatpush1.bf16.msra.mxu1 %v5076_v0  ;;  %v5178_v0 = vld [vmem:[%s6770_s1 + $0x440] ss:$8 sps:$4 sm:$0xff]  }
  0xe0   : > { %3655 = vmatpush1.bf16.msra.mxu0 %v5079_v1  ;;  %3278 = vmatprep.subr.bf16.mxu1 %v5084_v2  ;;  %v5181_v1 = vld [vmem:[%s6770_s1 + $0xa40] ss:$8 sps:$4 sm:$0xff]  }
  0xe1   : > { %3656 = vmatprep.subr.bf16.mxu0 %v5087_v3  ;;  %v5254_v2 = vld [vmem:[%s5606_s12 + $0x1a8] ss:$100 sps:$4 sm:$0xff]   ;;  %v5255_v3 = vld [vmem:[%s5606_s12 + $0x1d8] ss:$100 sps:$4 sm:$0xff]  }
  0xe3   : > { %3279 = vmatpush1.bf16.msra.mxu1 %v5082_v4  ;;  %v5186_v4 = vld [vmem:[%s6770_s1 + $0x454] ss:$8 sps:$4 sm:$0xff]  }
  0xe4   : > { %3657 = vmatpush1.bf16.msra.mxu0 %v5085_v5  ;;  %3280 = vmatprep.subr.bf16.mxu1 %v5090_v6  ;;  %v5189_v5 = vld [vmem:[%s6770_s1 + $0xa54] ss:$8 sps:$4 sm:$0xff]   ;;  %v5264_v6 = vld [vmem:[%s5606_s12 + $0x24] ss:$100 sps:$4 sm:$0xff]  }
  0xe5   : > { %3658 = vmatprep.subr.bf16.mxu0 %v5093_v7  ;;  %v5270_v7 = vld [vmem:[%s5606_s12 + $0x54] ss:$100 sps:$4 sm:$0xff]  }
  0xe7   : > { %3281 = vmatpush1.bf16.msra.mxu1 %v5088_v8  ;;  %v5184_v8 = vld [vmem:[%s6770_s1 + $0x450] ss:$8 sps:$4 sm:$0xff]  }
  0xe8   : > { %3659 = vmatpush1.bf16.msra.mxu0 %v5091_v9  ;;  %3282 = vmatprep.subr.bf16.mxu1 %v5096_v10  ;;  %v5187_v9 = vld [vmem:[%s6770_s1 + $0xa50] ss:$8 sps:$4 sm:$0xff]   ;;  %v5192_v10 = vld [vmem:[%s6770_s1 + $0x464] ss:$8 sps:$4 sm:$0xff]  }
  0xe9   : > { %3660 = vmatprep.subr.bf16.mxu0 %v5099_v11  ;;  %v5195_v11 = vld [vmem:[%s6770_s1 + $0xa64] ss:$8 sps:$4 sm:$0xff]  }
  0xeb   : > { %3283 = vmatpush1.bf16.msra.mxu1 %v5094_v12  ;;  %v5190_v12 = vld [vmem:[%s6770_s1 + $0x460] ss:$8 sps:$4 sm:$0xff]  }
  0xec   : > { %3661 = vmatpush1.bf16.msra.mxu0 %v5097_v13  ;;  %3284 = vmatprep.subr.bf16.mxu1 %v5102_v14  ;;  %v5193_v13 = vld [vmem:[%s6770_s1 + $0xa60] ss:$8 sps:$4 sm:$0xff]   ;;  %v5198_v14 = vld [vmem:[%s6770_s1 + $0x474] ss:$8 sps:$4 sm:$0xff]  }
  0xed   : > { %3662 = vmatprep.subr.bf16.mxu0 %v5105_v15  ;;  %v5201_v15 = vld [vmem:[%s6770_s1 + $0xa74] ss:$8 sps:$4 sm:$0xff]  }
  0xef   : > { %3285 = vmatpush1.bf16.msra.mxu1 %v5100_v16  ;;  %v5196_v16 = vld [vmem:[%s6770_s1 + $0x470] ss:$8 sps:$4 sm:$0xff]  }
  0xf0   : > { %3663 = vmatpush1.bf16.msra.mxu0 %v5103_v17  ;;  %3286 = vmatprep.subr.bf16.mxu1 %v5108_v18  ;;  %v5199_v17 = vld [vmem:[%s6770_s1 + $0xa70] ss:$8 sps:$4 sm:$0xff]   ;;  %v5204_v18 = vld [vmem:[%s6770_s1 + $0x484] ss:$8 sps:$4 sm:$0xff]  }
  0xf1   : > { %3664 = vmatprep.subr.bf16.mxu0 %v5111_v19  ;;  %v5207_v19 = vld [vmem:[%s6770_s1 + $0xa84] ss:$8 sps:$4 sm:$0xff]  }
  0xf3   : > { %3287 = vmatpush1.bf16.msra.mxu1 %v5106_v20  ;;  %v5202_v20 = vld [vmem:[%s6770_s1 + $0x480] ss:$8 sps:$4 sm:$0xff]  }
  0xf4   : > { %3665 = vmatpush1.bf16.msra.mxu0 %v5109_v21  ;;  %3288 = vmatprep.subr.bf16.mxu1 %v5116_v22  ;;  %v5205_v21 = vld [vmem:[%s6770_s1 + $0xa80] ss:$8 sps:$4 sm:$0xff]   ;;  %v5210_v22 = vld [vmem:[%s6770_s1 + $0x494] ss:$8 sps:$4 sm:$0xff]  }
  0xf5   : > { %3666 = vmatprep.subr.bf16.mxu0 %v5121_v23  ;;  %v5213_v23 = vld [vmem:[%s6770_s1 + $0xa94] ss:$8 sps:$4 sm:$0xff]  }
  0xf7   : > { %3289 = vmatpush1.bf16.msra.mxu1 %v5114_v24  ;;  %v5208_v24 = vld [vmem:[%s6770_s1 + $0x490] ss:$8 sps:$4 sm:$0xff]  }
  0xf8   : > { %3667 = vmatpush1.bf16.msra.mxu0 %v5119_v25  ;;  %3290 = vmatprep.subr.bf16.mxu1 %v5126_v26  ;;  %v5211_v25 = vld [vmem:[%s6770_s1 + $0xa90] ss:$8 sps:$4 sm:$0xff]   ;;  %v5216_v26 = vld [vmem:[%s6770_s1 + $0x4a4] ss:$8 sps:$4 sm:$0xff]  }
  0xf9   : > { %3668 = vmatprep.subr.bf16.mxu0 %v5129_v27  ;;  %v5219_v27 = vld [vmem:[%s6770_s1 + $0xaa4] ss:$8 sps:$4 sm:$0xff]  }
  0xfb   : > { %3291 = vmatpush1.bf16.msra.mxu1 %v5124_v28  ;;  %v5214_v28 = vld [vmem:[%s6770_s1 + $0x4a0] ss:$8 sps:$4 sm:$0xff]  }
  0xfc   : > { %3669 = vmatpush1.bf16.msra.mxu0 %v5127_v29  ;;  %3292 = vmatprep.subr.bf16.mxu1 %v5134_v30  ;;  %v5217_v29 = vld [vmem:[%s6770_s1 + $0xaa0] ss:$8 sps:$4 sm:$0xff]   ;;  %v5222_v30 = vld [vmem:[%s6770_s1 + $0x4b4] ss:$8 sps:$4 sm:$0xff]  }
  0xfd   : > { %3670 = vmatprep.subr.bf16.mxu0 %v5139_v31  ;;  %v5225_v31 = vld [vmem:[%s6770_s1 + $0xab4] ss:$8 sps:$4 sm:$0xff]  }
  0xff   : > { %3293 = vmatpush1.bf16.msra.mxu1 %v5132_v32  ;;  %v5220_v32 = vld [vmem:[%s6770_s1 + $0x4b0] ss:$8 sps:$4 sm:$0xff]  }
 0x100   : > { %3671 = vmatpush1.bf16.msra.mxu0 %v5137_v33  ;;  %3294 = vmatprep.subr.bf16.mxu1 %v5144_v34  ;;  %v5223_v33 = vld [vmem:[%s6770_s1 + $0xab0] ss:$8 sps:$4 sm:$0xff]   ;;  %v5230_v34 = vld [vmem:[%s6770_s1 + $0x4c4] ss:$8 sps:$4 sm:$0xff]  }
 0x101   : > { %3672 = vmatprep.subr.bf16.mxu0 %v5147_v35  ;;  %v5235_v35 = vld [vmem:[%s6770_s1 + $0xac4] ss:$8 sps:$4 sm:$0xff]  }
 0x103   : > { %3295 = vmatpush1.bf16.msra.mxu1 %v5142_v36  ;;  %v5228_v36 = vld [vmem:[%s6770_s1 + $0x4c0] ss:$8 sps:$4 sm:$0xff]  }
 0x104   : > { %3673 = vmatpush1.bf16.msra.mxu0 %v5145_v37  ;;  %3327 = vmatprep.subr.bf16.mxu1 %v5153_v38  ;;  %v5233_v37 = vld [vmem:[%s6770_s1 + $0xac0] ss:$8 sps:$4 sm:$0xff]   ;;  %v5240_v38 = vld [vmem:[%s6770_s1 + $0x4d4] ss:$8 sps:$4 sm:$0xff]  }
 0x105   : > { %3705 = vmatprep.subr.bf16.mxu0 %v5159_v39  ;;  %v5243_v39 = vld [vmem:[%s6770_s1 + $0xad4] ss:$8 sps:$4 sm:$0xff]  }
 0x106   : > { %3297 = vmatmul.mubr.bf16.vlgmr.msra.gmra.mrb[0].mxu1 %v5148_v40  ;;  %v5238_v40 = vld [vmem:[%s6770_s1 + $0x4d0] ss:$8 sps:$4 sm:$0xff]  }
 0x107   : > { %3675 = vmatmul.mubr.bf16.vlgmr.msra.gmra.mrb[0].mxu0 %v5154_v42  ;;  %3328 = vmatpush1.bf16.msra.mxu1 %v5151_v41  ;;  %v5241_v41 = vld [vmem:[%s6770_s1 + $0xad0] ss:$8 sps:$4 sm:$0xff]   ;;  %v5248_v42 = vld [vmem:[%s6770_s1 + $0x4e4] ss:$8 sps:$4 sm:$0xff]  }
 0x108   : > { %3706 = vmatpush1.bf16.msra.mxu0 %v5157_v43  ;;  %3329 = vmatprep.subr.bf16.mxu1 %v5162_v44  ;;  %v5253_v43 = vld [vmem:[%s6770_s1 + $0xae4] ss:$8 sps:$4 sm:$0xff]   ;;  %v5246_v44 = vld [vmem:[%s6770_s1 + $0x4e0] ss:$8 sps:$4 sm:$0xff]  }
 0x109   : > { %3707 = vmatprep.subr.bf16.mxu0 %v5165_v45  ;;  %3306 = vmatprep.mubr.bf16.mxu1 %v5226_v46  ;;  %v5251_v45 = vld [vmem:[%s6770_s1 + $0xae0] ss:$8 sps:$4 sm:$0xff]   ;;  %v5258_v46 = vld [vmem:[%s6770_s1 + $0x4f4] ss:$8 sps:$4 sm:$0xff]  }
 0x10a   : > { %3684 = vmatprep.mubr.bf16.mxu0 %v5231_v47  ;;  %v5261_v47 = vld [vmem:[%s6770_s1 + $0xaf4] ss:$8 sps:$4 sm:$0xff]  }
 0x10b   : > { %3330 = vmatpush1.bf16.msra.mxu1 %v5160_v48  ;;  %v5256_v48 = vld [vmem:[%s6770_s1 + $0x4f0] ss:$8 sps:$4 sm:$0xff]  }
 0x10c   : > { %3708 = vmatpush1.bf16.msra.mxu0 %v5163_v49  ;;  %3331 = vmatprep.subr.bf16.mxu1 %v5168_v50  ;;  %v5259_v49 = vld [vmem:[%s6770_s1 + $0xaf0] ss:$8 sps:$4 sm:$0xff]   ;;  %v5267_v50 = vld [vmem:[%s6770_s1 + $0x504] ss:$8 sps:$4 sm:$0xff]  }
 0x10d   : > { %3709 = vmatprep.subr.bf16.mxu0 %v5171_v51  ;;  %v5273_v51 = vld [vmem:[%s6770_s1 + $0xb04] ss:$8 sps:$4 sm:$0xff]  }
 0x10e   : > { %3307 = vmatmul.mubr.bf16.gmra.mrb[4].mxu1 %v5236_v54  ;;  %v5265_v54 = vld [vmem:[%s6770_s1 + $0x500] ss:$8 sps:$4 sm:$0xff]  }
 0x10f   : > { %3685 = vmatmul.mubr.bf16.gmra.mrb[4].mxu0 %v5237_v55  ;;  %3332 = vmatpush1.bf16.msra.mxu1 %v5166_v52  ;;  %v5262_v52 = vld [vmem:[%s5606_s12 + $0x20] ss:$100 sps:$4 sm:$0xff]  }
 0x110   : > { %3710 = vmatpush1.bf16.msra.mxu0 %v5169_v53  ;;  %3333 = vmatprep.subr.bf16.mxu1 %v5174_v56  ;;  %v5268_v53 = vld [vmem:[%s5606_s12 + $0x50] ss:$100 sps:$4 sm:$0xff]   ;;  %v5271_v55 = vld [vmem:[%s6770_s1 + $0xb00] ss:$8 sps:$4 sm:$0xff]  }
 0x111   : > { %3711 = vmatprep.subr.bf16.mxu0 %v5177_v57  ;;  %3316 = vmatprep.mubr.bf16.mxu1 %v5244_v58  ;;  %v5276_v56 = vld [vmem:[%s6770_s1 + $0x514] ss:$8 sps:$4 sm:$0xff]   ;;  %v5340_v58 = vld [vmem:[%s5606_s12 + $0xec] ss:$100 sps:$4 sm:$0xff]  }
 0x112   : > { %3694 = vmatprep.mubr.bf16.mxu0 %v5249_v59  ;;  %v5279_v57 = vld [vmem:[%s6770_s1 + $0xb14] ss:$8 sps:$4 sm:$0xff]  }
 0x113   : > { %3334 = vmatpush1.bf16.msra.mxu1 %v5172_v60  ;;  %v5342_v59 = vld [vmem:[%s5606_s12 + $0x11c] ss:$100 sps:$4 sm:$0xff]   ;;  %v5274_v60 = vld [vmem:[%s6770_s1 + $0x510] ss:$8 sps:$4 sm:$0xff]  }
 0x114   : > { %3712 = vmatpush1.bf16.msra.mxu0 %v5175_v61  ;;  %3335 = vmatprep.subr.bf16.mxu1 %v5180_v62  ;;  %v5277_v61 = vld [vmem:[%s6770_s1 + $0xb10] ss:$8 sps:$4 sm:$0xff]   ;;  %v5282_v62 = vld [vmem:[%s6770_s1 + $0x524] ss:$8 sps:$4 sm:$0xff]  }
 0x115   : > { %3713 = vmatprep.subr.bf16.mxu0 %v5183_v63  ;;  %v5285_v63 = vld [vmem:[%s6770_s1 + $0xb24] ss:$8 sps:$4 sm:$0xff]  }
 0x116   : > { %3317 = vmatmul.mubr.bf16.gmra.mrb[8].mxu1 %v5254_v2  ;;  %v5280_v2 = vld [vmem:[%s6770_s1 + $0x520] ss:$8 sps:$4 sm:$0xff]  }
 0x117   : > { %3695 = vmatmul.mubr.bf16.gmra.mrb[8].mxu0 %v5255_v3  ;;  %3336 = vmatpush1.bf16.msra.mxu1 %v5178_v0  ;;  %v5344_v0 = vld [vmem:[%s5606_s12 + $0xe8] ss:$100 sps:$4 sm:$0xff]  }
 0x118   : > { %3714 = vmatpush1.bf16.msra.mxu0 %v5181_v1  ;;  %3337 = vmatprep.subr.bf16.mxu1 %v5186_v4  ;;  %v5348_v1 = vld [vmem:[%s5606_s12 + $0x118] ss:$100 sps:$4 sm:$0xff]   ;;  %v5283_v3 = vld [vmem:[%s6770_s1 + $0xb20] ss:$8 sps:$4 sm:$0xff]  }
 0x119   : > { %3715 = vmatprep.subr.bf16.mxu0 %v5189_v5  ;;  %3359 = vmatprep.mubr.bf16.mxu1 %v5264_v6  ;;  %v5288_v4 = vld [vmem:[%s6770_s1 + $0x534] ss:$8 sps:$4 sm:$0xff]  }
 0x11a   : > { %3737 = vmatprep.mubr.bf16.mxu0 %v5270_v7  ;;  %v5291_v5 = vld [vmem:[%s6770_s1 + $0xb34] ss:$8 sps:$4 sm:$0xff]   ;;  %v5360_v7 = vld [vmem:[%s5606_s12 + $0x1e4] ss:$100 sps:$4 sm:$0xff]  }
 0x11b   : > { %3338 = vmatpush1.bf16.msra.mxu1 %v5184_v8  ;;  %v5358_v6 = vld [vmem:[%s5606_s12 + $0x1b4] ss:$100 sps:$4 sm:$0xff]  }
 0x11c   : > { %3716 = vmatpush1.bf16.msra.mxu0 %v5187_v9  ;;  %3339 = vmatprep.subr.bf16.mxu1 %v5192_v10  ;;  %v5286_v8 = vld [vmem:[%s6770_s1 + $0x530] ss:$8 sps:$4 sm:$0xff]   ;;  %v5294_v10 = vld [vmem:[%s6770_s1 + $0x544] ss:$8 sps:$4 sm:$0xff]  }
 0x11d   : > { %3717 = vmatprep.subr.bf16.mxu0 %v5195_v11  ;;  %v5289_v9 = vld [vmem:[%s6770_s1 + $0xb30] ss:$8 sps:$4 sm:$0xff]   ;;  %v5297_v11 = vld [vmem:[%s6770_s1 + $0xb44] ss:$8 sps:$4 sm:$0xff]  }
 0x11f   : > { %3340 = vmatpush1.bf16.msra.mxu1 %v5190_v12  ;;  %v5362_v12 = vld [vmem:[%s5606_s12 + $0x1b0] ss:$100 sps:$4 sm:$0xff]  }
 0x120   : > { %3718 = vmatpush1.bf16.msra.mxu0 %v5193_v13  ;;  %3341 = vmatprep.subr.bf16.mxu1 %v5198_v14  ;;  %v5366_v13 = vld [vmem:[%s5606_s12 + $0x1e0] ss:$100 sps:$4 sm:$0xff]  }
 0x121   : > { %3719 = vmatprep.subr.bf16.mxu0 %v5201_v15  ;;  %v5292_v14 = vld [vmem:[%s6770_s1 + $0x540] ss:$8 sps:$4 sm:$0xff]  }
 0x122   : > { %v5295_v15 = vld [vmem:[%s6770_s1 + $0xb40] ss:$8 sps:$4 sm:$0xff]  }
 0x123   : > { %3342 = vmatpush1.bf16.msra.mxu1 %v5196_v16  ;;  %v5300_v16 = vld [vmem:[%s6770_s1 + $0x554] ss:$8 sps:$4 sm:$0xff]  }
 0x124   : > { %3720 = vmatpush1.bf16.msra.mxu0 %v5199_v17  ;;  %3343 = vmatprep.subr.bf16.mxu1 %v5204_v18  ;;  %v5303_v17 = vld [vmem:[%s6770_s1 + $0xb54] ss:$8 sps:$4 sm:$0xff]   ;;  %v5378_v18 = vld [vmem:[%s5606_s12 + $0x2c] ss:$100 sps:$4 sm:$0xff]  }
 0x125   : > { %3721 = vmatprep.subr.bf16.mxu0 %v5207_v19  ;;  %v5381_v19 = vld [vmem:[%s5606_s12 + $0x5c] ss:$100 sps:$4 sm:$0xff]  }
 0x127   : > { %3344 = vmatpush1.bf16.msra.mxu1 %v5202_v20  ;;  %v5298_v20 = vld [vmem:[%s6770_s1 + $0x550] ss:$8 sps:$4 sm:$0xff]  }
 0x128   : > { %3722 = vmatpush1.bf16.msra.mxu0 %v5205_v21  ;;  %3345 = vmatprep.subr.bf16.mxu1 %v5210_v22  ;;  %v5301_v21 = vld [vmem:[%s6770_s1 + $0xb50] ss:$8 sps:$4 sm:$0xff]   ;;  %v5306_v22 = vld [vmem:[%s6770_s1 + $0x564] ss:$8 sps:$4 sm:$0xff]  }
 0x129   : > { %3723 = vmatprep.subr.bf16.mxu0 %v5213_v23  ;;  %v5309_v23 = vld [vmem:[%s6770_s1 + $0xb64] ss:$8 sps:$4 sm:$0xff]  }
 0x12b   : > { %3346 = vmatpush1.bf16.msra.mxu1 %v5208_v24  ;;  %v5304_v24 = vld [vmem:[%s6770_s1 + $0x560] ss:$8 sps:$4 sm:$0xff]  }
 0x12c   : > { %3724 = vmatpush1.bf16.msra.mxu0 %v5211_v25  ;;  %3347 = vmatprep.subr.bf16.mxu1 %v5216_v26  ;;  %v5307_v25 = vld [vmem:[%s6770_s1 + $0xb60] ss:$8 sps:$4 sm:$0xff]   ;;  %v5312_v26 = vld [vmem:[%s6770_s1 + $0x574] ss:$8 sps:$4 sm:$0xff]  }
 0x12d   : > { %3725 = vmatprep.subr.bf16.mxu0 %v5219_v27  ;;  %v5315_v27 = vld [vmem:[%s6770_s1 + $0xb74] ss:$8 sps:$4 sm:$0xff]  }
 0x12f   : > { %3348 = vmatpush1.bf16.msra.mxu1 %v5214_v28  ;;  %v5310_v28 = vld [vmem:[%s6770_s1 + $0x570] ss:$8 sps:$4 sm:$0xff]  }
 0x130   : > { %3726 = vmatpush1.bf16.msra.mxu0 %v5217_v29  ;;  %3349 = vmatprep.subr.bf16.mxu1 %v5222_v30  ;;  %v5313_v29 = vld [vmem:[%s6770_s1 + $0xb70] ss:$8 sps:$4 sm:$0xff]   ;;  %v5318_v30 = vld [vmem:[%s6770_s1 + $0x584] ss:$8 sps:$4 sm:$0xff]  }
 0x131   : > { %3727 = vmatprep.subr.bf16.mxu0 %v5225_v31  ;;  %v5321_v31 = vld [vmem:[%s6770_s1 + $0xb84] ss:$8 sps:$4 sm:$0xff]  }
 0x133   : > { %3350 = vmatpush1.bf16.msra.mxu1 %v5220_v32  ;;  %v5316_v32 = vld [vmem:[%s6770_s1 + $0x580] ss:$8 sps:$4 sm:$0xff]  }
 0x134   : > { %3728 = vmatpush1.bf16.msra.mxu0 %v5223_v33  ;;  %3351 = vmatprep.subr.bf16.mxu1 %v5230_v34  ;;  %v5319_v33 = vld [vmem:[%s6770_s1 + $0xb80] ss:$8 sps:$4 sm:$0xff]   ;;  %v5324_v34 = vld [vmem:[%s6770_s1 + $0x594] ss:$8 sps:$4 sm:$0xff]  }
 0x135   : > { %3729 = vmatprep.subr.bf16.mxu0 %v5235_v35  ;;  %v5327_v35 = vld [vmem:[%s6770_s1 + $0xb94] ss:$8 sps:$4 sm:$0xff]  }
 0x137   : > { %3352 = vmatpush1.bf16.msra.mxu1 %v5228_v36  ;;  %v5322_v36 = vld [vmem:[%s6770_s1 + $0x590] ss:$8 sps:$4 sm:$0xff]  }
 0x138   : > { %3730 = vmatpush1.bf16.msra.mxu0 %v5233_v37  ;;  %3353 = vmatprep.subr.bf16.mxu1 %v5240_v38  ;;  %v5325_v37 = vld [vmem:[%s6770_s1 + $0xb90] ss:$8 sps:$4 sm:$0xff]   ;;  %v5330_v38 = vld [vmem:[%s6770_s1 + $0x5a4] ss:$8 sps:$4 sm:$0xff]  }
 0x139   : > { %3731 = vmatprep.subr.bf16.mxu0 %v5243_v39  ;;  %v5333_v39 = vld [vmem:[%s6770_s1 + $0xba4] ss:$8 sps:$4 sm:$0xff]  }
 0x13b   : > { %3354 = vmatpush1.bf16.msra.mxu1 %v5238_v40  ;;  %v5328_v40 = vld [vmem:[%s6770_s1 + $0x5a0] ss:$8 sps:$4 sm:$0xff]  }
 0x13c   : > { %3732 = vmatpush1.bf16.msra.mxu0 %v5241_v41  ;;  %3355 = vmatprep.subr.bf16.mxu1 %v5248_v42  ;;  %v5331_v41 = vld [vmem:[%s6770_s1 + $0xba0] ss:$8 sps:$4 sm:$0xff]   ;;  %v5336_v42 = vld [vmem:[%s6770_s1 + $0x5b4] ss:$8 sps:$4 sm:$0xff]  }
 0x13d   : > { %3733 = vmatprep.subr.bf16.mxu0 %v5253_v43  ;;  %v5339_v43 = vld [vmem:[%s6770_s1 + $0xbb4] ss:$8 sps:$4 sm:$0xff]  }
 0x13f   : > { %3356 = vmatpush1.bf16.msra.mxu1 %v5246_v44  ;;  %v5334_v44 = vld [vmem:[%s6770_s1 + $0x5b0] ss:$8 sps:$4 sm:$0xff]  }
 0x140   : > { %3734 = vmatpush1.bf16.msra.mxu0 %v5251_v45  ;;  %3357 = vmatprep.subr.bf16.mxu1 %v5258_v46  ;;  %v5337_v45 = vld [vmem:[%s6770_s1 + $0xbb0] ss:$8 sps:$4 sm:$0xff]   ;;  %v5347_v46 = vld [vmem:[%s6770_s1 + $0x5c4] ss:$8 sps:$4 sm:$0xff]  }
 0x141   : > { %3735 = vmatprep.subr.bf16.mxu0 %v5261_v47  ;;  %v5351_v47 = vld [vmem:[%s6770_s1 + $0xbc4] ss:$8 sps:$4 sm:$0xff]  }
 0x143   : > { %3358 = vmatpush1.bf16.msra.mxu1 %v5256_v48  ;;  %v5345_v48 = vld [vmem:[%s6770_s1 + $0x5c0] ss:$8 sps:$4 sm:$0xff]  }
 0x144   : > { %3736 = vmatpush1.bf16.msra.mxu0 %v5259_v49  ;;  %3390 = vmatprep.subr.bf16.mxu1 %v5267_v50  ;;  %v5349_v49 = vld [vmem:[%s6770_s1 + $0xbc0] ss:$8 sps:$4 sm:$0xff]   ;;  %v5354_v50 = vld [vmem:[%s6770_s1 + $0x5d4] ss:$8 sps:$4 sm:$0xff]  }
 0x145   : > { %3768 = vmatprep.subr.bf16.mxu0 %v5273_v51  ;;  %v5357_v51 = vld [vmem:[%s6770_s1 + $0xbd4] ss:$8 sps:$4 sm:$0xff]  }
 0x146   : > { %3360 = vmatmul.mubr.bf16.vlgmr.msra.gmra.mrb[0].mxu1 %v5262_v52  ;;  %v5352_v52 = vld [vmem:[%s6770_s1 + $0x5d0] ss:$8 sps:$4 sm:$0xff]  }
 0x147   : > { %3738 = vmatmul.mubr.bf16.vlgmr.msra.gmra.mrb[0].mxu0 %v5268_v53  ;;  %3391 = vmatpush1.bf16.msra.mxu1 %v5265_v54  ;;  %v5355_v53 = vld [vmem:[%s6770_s1 + $0xbd0] ss:$8 sps:$4 sm:$0xff]   ;;  %v5365_v54 = vld [vmem:[%s6770_s1 + $0x5e4] ss:$8 sps:$4 sm:$0xff]  }
 0x148   : > { %3769 = vmatpush1.bf16.msra.mxu0 %v5271_v55  ;;  %3392 = vmatprep.subr.bf16.mxu1 %v5276_v56  ;;  %v5369_v55 = vld [vmem:[%s6770_s1 + $0xbe4] ss:$8 sps:$4 sm:$0xff]   ;;  %v5363_v56 = vld [vmem:[%s6770_s1 + $0x5e0] ss:$8 sps:$4 sm:$0xff]  }
 0x149   : > { %3770 = vmatprep.subr.bf16.mxu0 %v5279_v57  ;;  %3369 = vmatprep.mubr.bf16.mxu1 %v5340_v58  ;;  %v5367_v57 = vld [vmem:[%s6770_s1 + $0xbe0] ss:$8 sps:$4 sm:$0xff]   ;;  %v5372_v58 = vld [vmem:[%s6770_s1 + $0x5f4] ss:$8 sps:$4 sm:$0xff]  }
 0x14a   : > { %3747 = vmatprep.mubr.bf16.mxu0 %v5342_v59  ;;  %v5375_v59 = vld [vmem:[%s6770_s1 + $0xbf4] ss:$8 sps:$4 sm:$0xff]  }
 0x14b   : > { %3393 = vmatpush1.bf16.msra.mxu1 %v5274_v60  ;;  %v5370_v60 = vld [vmem:[%s6770_s1 + $0x5f0] ss:$8 sps:$4 sm:$0xff]  }
 0x14c   : > { %3771 = vmatpush1.bf16.msra.mxu0 %v5277_v61  ;;  %3394 = vmatprep.subr.bf16.mxu1 %v5282_v62  ;;  %v5373_v61 = vld [vmem:[%s6770_s1 + $0xbf0] ss:$8 sps:$4 sm:$0xff]   ;;  %v5384_v62 = vld [vmem:[%s6770_s1 + $0xc04] ss:$8 sps:$4 sm:$0xff]  }
 0x14d   : > { %3772 = vmatprep.subr.bf16.mxu0 %v5285_v63  ;;  %v5376_v63 = vld [vmem:[%s5606_s12 + $0x28] ss:$100 sps:$4 sm:$0xff]  }
 0x14e   : > { %3370 = vmatmul.mubr.bf16.gmra.mrb[4].mxu1 %v5344_v0  ;;  %v5379_v0 = vld [vmem:[%s5606_s12 + $0x58] ss:$100 sps:$4 sm:$0xff]  }
 0x14f   : > { %3748 = vmatmul.mubr.bf16.gmra.mrb[4].mxu0 %v5348_v1  ;;  %3395 = vmatpush1.bf16.msra.mxu1 %v5280_v2  ;;  %v5382_v1 = vld [vmem:[%s6770_s1 + $0xc00] ss:$8 sps:$4 sm:$0xff]   ;;  %v5387_v2 = vld [vmem:[%s6770_s1 + $0xc14] ss:$8 sps:$4 sm:$0xff]  }
 0x150   : > { %3773 = vmatpush1.bf16.msra.mxu0 %v5283_v3  ;;  %3396 = vmatprep.subr.bf16.mxu1 %v5288_v4  ;;  %v5388_v3 = vld [vmem:[%s5606_s12 + $0xf4] ss:$100 sps:$4 sm:$0xff]   ;;  %v5390_v4 = vld [vmem:[%s5606_s12 + $0x124] ss:$100 sps:$4 sm:$0xff]  }
 0x151   : > { %3774 = vmatprep.subr.bf16.mxu0 %v5291_v5  ;;  %3379 = vmatprep.mubr.bf16.mxu1 %v5358_v6  ;;  %v5385_v5 = vld [vmem:[%s6770_s1 + $0xc10] ss:$8 sps:$4 sm:$0xff]   ;;  %v5396_v6 = vld [vmem:[%s6770_s1 + $0xc24] ss:$8 sps:$4 sm:$0xff]  }
 0x152   : > { %3757 = vmatprep.mubr.bf16.mxu0 %v5360_v7  ;;  %v5392_v7 = vld [vmem:[%s5606_s12 + $0xf0] ss:$100 sps:$4 sm:$0xff]  }
 0x153   : > { %3397 = vmatpush1.bf16.msra.mxu1 %v5286_v8  ;;  %v5393_v8 = vld [vmem:[%s5606_s12 + $0x120] ss:$100 sps:$4 sm:$0xff]  }
 0x154   : > { %3775 = vmatpush1.bf16.msra.mxu0 %v5289_v9  ;;  %3398 = vmatprep.subr.bf16.mxu1 %v5294_v10  ;;  %v5394_v9 = vld [vmem:[%s6770_s1 + $0xc20] ss:$8 sps:$4 sm:$0xff]   ;;  %v5399_v10 = vld [vmem:[%s6770_s1 + $0xc34] ss:$8 sps:$4 sm:$0xff]  }
 0x155   : > { %3776 = vmatprep.subr.bf16.mxu0 %v5297_v11  ;;  %v5400_v11 = vld [vmem:[%s5606_s12 + $0x1bc] ss:$100 sps:$4 sm:$0xff]  }
 0x156   : > { %3380 = vmatmul.mubr.bf16.gmra.mrb[8].mxu1 %v5362_v12  ;;  %v5402_v12 = vld [vmem:[%s5606_s12 + $0x1ec] ss:$100 sps:$4 sm:$0xff]  }
 0x157   : > { %3758 = vmatmul.mubr.bf16.gmra.mrb[8].mxu0 %v5366_v13  ;;  %3399 = vmatpush1.bf16.msra.mxu1 %v5292_v14  ;;  %v5397_v13 = vld [vmem:[%s6770_s1 + $0xc30] ss:$8 sps:$4 sm:$0xff]   ;;  %v5408_v14 = vld [vmem:[%s6770_s1 + $0xc44] ss:$8 sps:$4 sm:$0xff]  }
 0x158   : > { %3777 = vmatpush1.bf16.msra.mxu0 %v5295_v15  ;;  %3400 = vmatprep.subr.bf16.mxu1 %v5300_v16  ;;  %v5404_v15 = vld [vmem:[%s5606_s12 + $0x1b8] ss:$100 sps:$4 sm:$0xff]   ;;  %v5405_v16 = vld [vmem:[%s5606_s12 + $0x1e8] ss:$100 sps:$4 sm:$0xff]  }
 0x159   : > { %3778 = vmatprep.subr.bf16.mxu0 %v5303_v17  ;;  %3422 = vmatprep.mubr.bf16.mxu1 %v5378_v18  ;;  %v5406_v17 = vld [vmem:[%s6770_s1 + $0xc40] ss:$8 sps:$4 sm:$0xff]   ;;  %v5411_v18 = vld [vmem:[%s6770_s1 + $0xc54] ss:$8 sps:$4 sm:$0xff]  }
 0x15a   : > { %3800 = vmatprep.mubr.bf16.mxu0 %v5381_v19  ;;  %v5409_v19 = vld [vmem:[%s6770_s1 + $0xc50] ss:$8 sps:$4 sm:$0xff]  }
 0x15b   : > { %3401 = vmatpush1.bf16.msra.mxu1 %v5298_v20  ;;  %v5414_v20 = vld [vmem:[%s6770_s1 + $0xc64] ss:$8 sps:$4 sm:$0xff]  }
 0x15c   : > { %3779 = vmatpush1.bf16.msra.mxu0 %v5301_v21  ;;  %3402 = vmatprep.subr.bf16.mxu1 %v5306_v22  ;;  %v5429_v21 = vmov 0   ;;  %v5412_v22 = vld [vmem:[%s6770_s1 + $0xc60] ss:$8 sps:$4 sm:$0xff]  }
 0x15d   : > { %3780 = vmatprep.subr.bf16.mxu0 %v5309_v23  ;;  %v5417_v23 = vld [vmem:[%s6770_s1 + $0xc74] ss:$8 sps:$4 sm:$0xff]  }
 0x15f   : > { %3403 = vmatpush1.bf16.msra.mxu1 %v5304_v24  ;;  %v5415_v24 = vld [vmem:[%s6770_s1 + $0xc70] ss:$8 sps:$4 sm:$0xff]  }
 0x160   : > { %3781 = vmatpush1.bf16.msra.mxu0 %v5307_v25  ;;  %3404 = vmatprep.subr.bf16.mxu1 %v5312_v26  ;;  %v5418_v25 = vld [vmem:[%s5606_s12 + $0x60] ss:$100 sps:$4 sm:$0xff]   ;;  %v5419_v26 = vld [vmem:[%s5606_s12 + $0x128] ss:$100 sps:$4 sm:$0xff]  }
 0x161   : > { %3782 = vmatprep.subr.bf16.mxu0 %v5315_v27  ;;  %v5420_v27 = vld [vmem:[%s5606_s12 + $0x1f0] ss:$100 sps:$4 sm:$0xff]  }
 0x163   : > { %3405 = vmatpush1.bf16.msra.mxu1 %v5310_v28  ;;  %v687_v28 = vlaneseq }
 0x164   : > { %3783 = vmatpush1.bf16.msra.mxu0 %v5313_v29  ;;  %3406 = vmatprep.subr.bf16.mxu1 %v5318_v30 }
 0x165   : > { %3784 = vmatprep.subr.bf16.mxu0 %v5321_v31  ;;  %v688_v29 = vshrl.u32 %v687_v28, 7 }
 0x167   : > { %3407 = vmatpush1.bf16.msra.mxu1 %v5316_v32 }
 0x168   : > { %3785 = vmatpush1.bf16.msra.mxu0 %v5319_v33  ;;  %3408 = vmatprep.subr.bf16.mxu1 %v5324_v34  ;;  %v689_v33 = vsub.s32 0, %v688_v29 }
 0x169   : > { %3786 = vmatprep.subr.bf16.mxu0 %v5327_v35  ;;  %v685_v35 = vld [vmem:[%s6771_s2] sm:$0x3] }
 0x16b   : > { %3409 = vmatpush1.bf16.msra.mxu1 %v5322_v36  ;;  %v693_v36 = vsub.s32 1, %v688_v29 }
 0x16c   : > { %3787 = vmatpush1.bf16.msra.mxu0 %v5325_v37  ;;  %3410 = vmatprep.subr.bf16.mxu1 %v5330_v38  ;;  %v690_v37 = vrot.slane %v685_v35, %v689_v33 }
 0x16d   : > { %3788 = vmatprep.subr.bf16.mxu0 %v5333_v39  ;;  %v694_v38 = vrot.slane %v685_v35, %v693_v36 }
 0x16f   : > { %3411 = vmatpush1.bf16.msra.mxu1 %v5328_v40 }
 0x170   : > { %3789 = vmatpush1.bf16.msra.mxu0 %v5331_v41  ;;  %3412 = vmatprep.subr.bf16.mxu1 %v5336_v42 }
 0x171   : > { %3790 = vmatprep.subr.bf16.mxu0 %v5339_v43 }
 0x173   : > { %3413 = vmatpush1.bf16.msra.mxu1 %v5334_v44 }
 0x174   : > { %3791 = vmatpush1.bf16.msra.mxu0 %v5337_v45  ;;  %3414 = vmatprep.subr.bf16.mxu1 %v5347_v46 }
 0x175   : > { %3792 = vmatprep.subr.bf16.mxu0 %v5351_v47 }
 0x177   : > { %3415 = vmatpush1.bf16.msra.mxu1 %v5345_v48 }
 0x178   : > { %3793 = vmatpush1.bf16.msra.mxu0 %v5349_v49  ;;  %3416 = vmatprep.subr.bf16.mxu1 %v5354_v50 }
 0x179   : > { %3794 = vmatprep.subr.bf16.mxu0 %v5357_v51 }
 0x17b   : > { %3417 = vmatpush1.bf16.msra.mxu1 %v5352_v52 }
 0x17c   : > { %3795 = vmatpush1.bf16.msra.mxu0 %v5355_v53  ;;  %3418 = vmatprep.subr.bf16.mxu1 %v5365_v54 }
 0x17d   : > { %3796 = vmatprep.subr.bf16.mxu0 %v5369_v55 }
 0x17f   : > { %3419 = vmatpush1.bf16.msra.mxu1 %v5363_v56 }
 0x180   : > { %3797 = vmatpush1.bf16.msra.mxu0 %v5367_v57  ;;  %3420 = vmatprep.subr.bf16.mxu1 %v5372_v58 }
 0x181   : > { %3798 = vmatprep.subr.bf16.mxu0 %v5375_v59 }
 0x183   : > { %3421 = vmatpush1.bf16.msra.mxu1 %v5370_v60 }
 0x184   : > { %3799 = vmatpush1.bf16.msra.mxu0 %v5373_v61  ;;  %4528 = vmatprep.subr.bf16.mxu1 %v5384_v62 }
 0x185   : > { %3831 = vmatprep.subr.bf16.mxu0 %v5384_v62 }
 0x186   : > { %3423 = vmatmul.mubr.bf16.vlgmr.msra.gmra.mrb[0].mxu1 %v5376_v63 }
 0x187   : > { %3801 = vmatmul.mubr.bf16.vlgmr.msra.gmra.mrb[0].mxu0 %v5379_v0  ;;  %4536 = vmatpush1.bf16.msra.mxu1 %v5382_v1 }
 0x188   : > { %3832 = vmatpush1.bf16.msra.mxu0 %v5382_v1  ;;  %4529 = vmatprep.subr.bf16.mxu1 %v5387_v2 }
 0x189   : > { %3833 = vmatprep.subr.bf16.mxu0 %v5387_v2  ;;  %3432 = vmatprep.mubr.bf16.mxu1 %v5388_v3 }
 0x18a   : > { %3810 = vmatprep.mubr.bf16.mxu0 %v5390_v4 }
 0x18b   : > { %4537 = vmatpush1.bf16.msra.mxu1 %v5385_v5 }
 0x18c   : > { %3834 = vmatpush1.bf16.msra.mxu0 %v5385_v5  ;;  %4530 = vmatprep.subr.bf16.mxu1 %v5396_v6 }
 0x18d   : > { %3835 = vmatprep.subr.bf16.mxu0 %v5396_v6 }
 0x18e   : > { %3433 = vmatmul.mubr.bf16.gmra.mrb[4].mxu1 %v5392_v7  ;;  %v3906_v7 = vld [vmem:[%s6772_s3] sm:$0x3] }
 0x18f   : > { %3811 = vmatmul.mubr.bf16.gmra.mrb[4].mxu0 %v5393_v8  ;;  %4538 = vmatpush1.bf16.msra.mxu1 %v5394_v9 }
 0x190   : > { %3836 = vmatpush1.bf16.msra.mxu0 %v5394_v9  ;;  %4531 = vmatprep.subr.bf16.mxu1 %v5399_v10 }
 0x191   : > { %3837 = vmatprep.subr.bf16.mxu0 %v5399_v10  ;;  %3442 = vmatprep.mubr.bf16.mxu1 %v5400_v11 }
 0x192   : > { %3820 = vmatprep.mubr.bf16.mxu0 %v5402_v12 }
 0x193   : > { %4539 = vmatpush1.bf16.msra.mxu1 %v5397_v13 }
 0x194   : > { %3838 = vmatpush1.bf16.msra.mxu0 %v5397_v13  ;;  %4532 = vmatprep.subr.bf16.mxu1 %v5408_v14 }
 0x195   : > { %3839 = vmatprep.subr.bf16.mxu0 %v5408_v14  ;;  %v3911_v14 = vrot.slane %v3906_v7, %v689_v33 }
 0x196   : > { %3443 = vmatmul.mubr.bf16.gmra.mrb[8].mxu1 %v5404_v15 }
 0x197   : > { %3821 = vmatmul.mubr.bf16.gmra.mrb[8].mxu0 %v5405_v16  ;;  %4540 = vmatpush1.bf16.msra.mxu1 %v5406_v17 }
 0x198   : > { %3840 = vmatpush1.bf16.msra.mxu0 %v5406_v17  ;;  %4533 = vmatprep.subr.bf16.mxu1 %v5411_v18 }
 0x199   : > { %3841 = vmatprep.subr.bf16.mxu0 %v5411_v18  ;;  %3863 = vmatprep.mubr.bf16.mxu0 %v5429_v21 }
 0x19a   : > { %3873 = vmatprep.mubr.bf16.mxu1 %v5429_v21 }
 0x19b   : > { %4541 = vmatpush1.bf16.msra.mxu1 %v5409_v19 }
 0x19c   : > { %3842 = vmatpush1.bf16.msra.mxu0 %v5409_v19  ;;  %4534 = vmatprep.subr.bf16.mxu1 %v5414_v20 }
 0x19d   : > { %3843 = vmatprep.subr.bf16.mxu0 %v5414_v20  ;;  %v3915_v20 = vrot.slane %v3906_v7, %v693_v36 }
 0x19f   : > { %4542 = vmatpush1.bf16.msra.mxu1 %v5412_v22 }
 0x1a0   : > { %3844 = vmatpush1.bf16.msra.mxu0 %v5412_v22  ;;  %4535 = vmatprep.subr.bf16.mxu1 %v5417_v23 }
 0x1a1   : > { %3845 = vmatprep.subr.bf16.mxu0 %v5417_v23 }
 0x1a3   : > { %4543 = vmatpush1.bf16.msra.mxu1 %v5415_v24 }
 0x1a4   : > { %3846 = vmatpush1.bf16.msra.mxu0 %v5415_v24 }
 0x1a6   : > { %3874 = vmatmul.mubr.bf16.vlgmr.msra.gmra.mrb[12].mxu1 %v5419_v26 }
 0x1a7   : > { %3864 = vmatmul.mubr.bf16.vlgmr.msra.gmra.mrb[0].mxu0 %v5418_v25  ;;  %3883 = vmatprep.mubr.bf16.mxu1 %v5429_v21 }
 0x1ae   : > { %3884 = vmatmul.mubr.bf16.gmra.mrb[16].mxu1 %v5420_v27 }
 0x259   : > { %v3424_v30 = vpop.f32.mrb[0].mxu1 }
 0x25a   : > { %v3426_v31 = vpop.f32.mrb[1].mxu1  ;;  %v4544_v8 = vadd.f32 %v3424_v30, %v690_v37 }
 0x25b   : > { %v3428_v32 = vpop.f32.mrb[2].mxu1  ;;  %v4546_v9 = vadd.f32 %v3426_v31, %v694_v38 }
 0x25c   : > { %v3430_v34 = vpop.f32.mrb[3].mxu1  ;;  %v4548_v12 = vadd.f32 %v3428_v32, %v690_v37 }
 0x25d   : > { %v4550_v18 = vadd.f32 %v3430_v34, %v694_v38 }
 0x261   : > { %v3434_v39 = vpop.f32.mrb[4].mxu1 }
 0x262   : > { %v3812_v40 = vpop.f32.mrb[4].mxu0  ;;  %v4552_v41 = vadd.f32 %v3434_v39, %v690_v37  ;;  %v3436_v42 = vpop.f32.mrb[5].mxu1 }
 0x263   : > { %v3814_v43 = vpop.f32.mrb[5].mxu0  ;;  %v4555_v44 = vadd.f32 %v3436_v42, %v694_v38  ;;  %v3438_v45 = vpop.f32.mrb[6].mxu1 }
 0x264   : > { %v3816_v46 = vpop.f32.mrb[6].mxu0  ;;  %v4553_v47 = vadd.f32 %v4552_v41, %v3812_v40  ;;  %v4558_v48 = vadd.f32 %v3438_v45, %v690_v37  ;;  %v3440_v49 = vpop.f32.mrb[7].mxu1 }
 0x265   : > { %v3818_v50 = vpop.f32.mrb[7].mxu0  ;;  %v4556_v51 = vadd.f32 %v4555_v44, %v3814_v43  ;;  %v4561_v52 = vadd.f32 %v3440_v49, %v694_v38 }
 0x266   : > { %v4559_v53 = vadd.f32 %v4558_v48, %v3816_v46 }
 0x267   : > { %v4562_v54 = vadd.f32 %v4561_v52, %v3818_v50 }
 0x269   : > { %v3444_v55 = vpop.f32.mrb[8].mxu1 }
 0x26a   : > { %v3822_v56 = vpop.f32.mrb[8].mxu0  ;;  %v4564_v57 = vadd.f32 %v3444_v55, %v690_v37  ;;  %v3446_v58 = vpop.f32.mrb[9].mxu1 }
 0x26b   : > { %v3824_v59 = vpop.f32.mrb[9].mxu0  ;;  %v4567_v60 = vadd.f32 %v3446_v58, %v694_v38  ;;  %v3448_v61 = vpop.f32.mrb[10].mxu1 }
 0x26c   : > { %v3826_v62 = vpop.f32.mrb[10].mxu0  ;;  %v4565_v63 = vadd.f32 %v4564_v57, %v3822_v56  ;;  %v4570_v0 = vadd.f32 %v3448_v61, %v690_v37  ;;  %v3450_v1 = vpop.f32.mrb[11].mxu1 }
 0x26d   : > { %v3828_v2 = vpop.f32.mrb[11].mxu0  ;;  %v4568_v3 = vadd.f32 %v4567_v60, %v3824_v59  ;;  %v4573_v4 = vadd.f32 %v3450_v1, %v694_v38 }
 0x26e   : > { %v4571_v5 = vadd.f32 %v4570_v0, %v3826_v62 }
 0x26f   : > { %v4574_v6 = vadd.f32 %v4573_v4, %v3828_v2 }
 0x279   : > { %v3875_v11 = vpop.f32.mrb[12].mxu1 }
 0x27a   : > { %v3865_v10 = vpop.f32.mrb[0].mxu0  ;;  %v4554_v15 = vadd.f32 %v4553_v47, %v3875_v11  ;;  %v3877_v17 = vpop.f32.mrb[13].mxu1 }
 0x27b   : > { %v4545_v13 = vadd.f32 %v4544_v8, %v3865_v10  ;;  %v3867_v16 = vpop.f32.mrb[1].mxu0  ;;  %v4557_v21 = vadd.f32 %v4556_v51, %v3877_v17  ;;  %v3879_v23 = vpop.f32.mrb[14].mxu1 }
 0x27c   : > { %v4547_v19 = vadd.f32 %v4546_v9, %v3867_v16  ;;  %v3869_v22 = vpop.f32.mrb[2].mxu0  ;;  %v3898_v25 = vmax.f32 %v4554_v15, 0.0  ;;  %v4560_v27 = vadd.f32 %v4559_v53, %v3879_v23  ;;  %v3881_v29 = vpop.f32.mrb[15].mxu1 }
 0x27d   : > { %v3894_v24 = vmax.f32 %v4545_v13, 0.0  ;;  %v4549_v26 = vadd.f32 %v4548_v12, %v3869_v22  ;;  %v3871_v28 = vpop.f32.mrb[3].mxu0  ;;  %v3899_v31 = vmax.f32 %v4557_v21, 0.0  ;;  %v4563_v33 = vadd.f32 %v4562_v54, %v3881_v29 }
 0x27e   : > { %v3895_v30 = vmax.f32 %v4547_v19, 0.0  ;;  %v4551_v32 = vadd.f32 %v4550_v18, %v3871_v28  ;;  %v3922_v37 = vadd.f32 %v3911_v14, %v3898_v25  ;;  %v3900_v34 = vmax.f32 %v4560_v27, 0.0 }
 0x27f   : > { %v3918_v35 = vadd.f32 %v3911_v14, %v3894_v24  ;;  %v3896_v39 = vmax.f32 %v4549_v26, 0.0  ;;  %v3923_v36 = vadd.f32 %v3915_v20, %v3899_v31  ;;  %v3901_v41 = vmax.f32 %v4563_v33, 0.0 }
 0x280   : > { %v3919_v38 = vadd.f32 %v3915_v20, %v3895_v30  ;;  %v3897_v40 = vmax.f32 %v4551_v32, 0.0  ;;  %v3924_v43 = vadd.f32 %v3911_v14, %v3900_v34 }
 0x281   : > { %v3920_v42 = vadd.f32 %v3911_v14, %v3896_v39  ;;  %v4524_v45 = vpack.c.bf16 %v3923_v36, %v3922_v37  ;;  %v3925_v47 = vadd.f32 %v3915_v20, %v3901_v41  ;;  %v3885_v48 = vpop.f32.mrb[16].mxu1 }
 0x282   : > { %v4522_v44 = vpack.c.bf16 %v3919_v38, %v3918_v35  ;;  %v3921_v46 = vadd.f32 %v3915_v20, %v3897_v40  ;;  %v4566_v49 = vadd.f32 %v4565_v63, %v3885_v48  ;;  %v3887_v50 = vpop.f32.mrb[17].mxu1 }
 0x283   : > { %3968 = vst [vmem:[%s6758_s18 + $0x10] sm:$0xff] %v4524_v45  ;;  %v4525_v52 = vpack.c.bf16 %v3925_v47, %v3924_v43  ;;  %v4569_v53 = vadd.f32 %v4568_v3, %v3887_v50  ;;  %v3889_v54 = vpop.f32.mrb[18].mxu1 }
 0x284   : > { %3966 = vst [vmem:[%s6758_s18] sm:$0xff] %v4522_v44  ;;  %v4523_v51 = vpack.c.bf16 %v3921_v46, %v3920_v42  ;;  %v3902_v55 = vmax.f32 %v4566_v49, 0.0  ;;  %v4572_v56 = vadd.f32 %v4571_v5, %v3889_v54  ;;  %v3891_v57 = vpop.f32.mrb[19].mxu1 }
 0x285   : > { %3969 = vst [vmem:[%s6758_s18 + $0x18] sm:$0xff] %v4525_v52  ;;  %v3903_v58 = vmax.f32 %v4569_v53, 0.0  ;;  %v4575_v59 = vadd.f32 %v4574_v6, %v3891_v57 }
 0x286   : > { %3967 = vst [vmem:[%s6758_s18 + $0x8] sm:$0xff] %v4523_v51  ;;  %v3926_v60 = vadd.f32 %v3911_v14, %v3902_v55  ;;  %v3904_v61 = vmax.f32 %v4572_v56, 0.0 }
 0x287   : > { %v3927_v62 = vadd.f32 %v3915_v20, %v3903_v58  ;;  %v3905_v63 = vmax.f32 %v4575_v59, 0.0 }
 0x288   : > { %v3928_v0 = vadd.f32 %v3911_v14, %v3904_v61 }
 0x289   : > { %v4526_v1 = vpack.c.bf16 %v3927_v62, %v3926_v60  ;;  %v3929_v2 = vadd.f32 %v3915_v20, %v3905_v63 }
 0x28b   : > { %3970 = vst [vmem:[%s6758_s18 + $0x20] sm:$0xff] %v4526_v1  ;;  %v4527_v4 = vpack.c.bf16 %v3929_v2, %v3928_v0 }
 0x28d   : > { %3971 = vst [vmem:[%s6758_s18 + $0x28] sm:$0xff] %v4527_v4 }
 0x28e PF: > { %s14_s15 = sadd.s32 1, %s5427_s15  }
 0x28f   : > { %p11_p4 = scmp.ge.s32.totalorder %s14_s15, 4  }
 0x291   :  { %13 = sbr.rel (!%p11_p4) target bundleno = 1 (0x1), region = 66 }

// kernel: cnn_forward.13
= control target key start
LH: loop header
LB: loop body
LE: loop exit
PB: predicated region body
PF: predicated region fallthrough
CT: control target
= control target key end

     0   :  { %s10594_s1 = inlined_call_operand.vmem [shape: bf16[9216,128], index: 1, kind: input, shape index: {}]   ;;  %s10595_s0 = inlined_call_operand.vmem [shape: bf16[16,9216], index: 0, kind: input, shape index: {}]   ;;  %s10596_s2 = inlined_call_operand.vmem [shape: f32[1,128], index: 2, kind: input, shape index: {}]   ;;  %s10597_s3 = inlined_call_operand.vmem [shape: f32[16,128], index: 3, kind: output, shape index: {}]  }
   0x1   :  { %v7985_v0 = vld [vmem:[%s10594_s1 + $0x40] sm:$0xff]   ;;  %v7989_v4 = vld [vmem:[%s10594_s1 + $0x48] sm:$0xff]   ;;  %v7993_v8 = vld [vmem:[%s10594_s1 + $0x50] sm:$0xff]  }
   0x2   :  { %v7986_v1 = vld [vmem:[%s10594_s1 + $0xc0] sm:$0xff]   ;;  %7193 = vmatprep.subr.bf16.mxu0 %v7985_v0  ;;  %v7990_v5 = vld [vmem:[%s10594_s1 + $0xc8] sm:$0xff]   ;;  %v7994_v9 = vld [vmem:[%s10594_s1 + $0xd0] sm:$0xff]  }
   0x3   :  { %v7987_v2 = vld [vmem:[%s10594_s1] sm:$0xff]   ;;  %7215 = vmatprep.subr.bf16.mxu1 %v7986_v1  ;;  %v7991_v6 = vld [vmem:[%s10594_s1 + $0x8] sm:$0xff]   ;;  %v7995_v10 = vld [vmem:[%s10594_s1 + $0x10] sm:$0xff]  }
   0x4   :  { %v7988_v3 = vld [vmem:[%s10594_s1 + $0x80] sm:$0xff]   ;;  %7194 = vmatpush3.bf16.msra.mxu0 %v7987_v2  ;;  %v7992_v7 = vld [vmem:[%s10594_s1 + $0x88] sm:$0xff]   ;;  %v7996_v11 = vld [vmem:[%s10594_s1 + $0x90] sm:$0xff]  }
   0x5   :  { %7216 = vmatpush3.bf16.msra.mxu1 %v7988_v3  ;;  %7195 = vmatprep.subr.bf16.mxu0 %v7989_v4  ;;  %v7997_v12 = vld [vmem:[%s10594_s1 + $0x58] sm:$0xff]   ;;  %v8001_v16 = vld [vmem:[%s10594_s1 + $0x60] sm:$0xff]   ;;  %v8005_v20 = vld [vmem:[%s10594_s1 + $0x68] sm:$0xff]  }
   0x6   :  { %7217 = vmatprep.subr.bf16.mxu1 %v7990_v5  ;;  %v7998_v13 = vld [vmem:[%s10594_s1 + $0xd8] sm:$0xff]   ;;  %v8002_v17 = vld [vmem:[%s10594_s1 + $0xe0] sm:$0xff]   ;;  %v8006_v21 = vld [vmem:[%s10594_s1 + $0xe8] sm:$0xff]  }
   0x7   :  { %v7999_v14 = vld [vmem:[%s10594_s1 + $0x18] sm:$0xff]   ;;  %v8003_v18 = vld [vmem:[%s10594_s1 + $0x20] sm:$0xff]   ;;  %v8007_v22 = vld [vmem:[%s10594_s1 + $0x28] sm:$0xff]  }
   0x8   :  { %7196 = vmatpush3.bf16.msra.mxu0 %v7991_v6  ;;  %v8000_v15 = vld [vmem:[%s10594_s1 + $0x98] sm:$0xff]   ;;  %v8004_v19 = vld [vmem:[%s10594_s1 + $0xa0] sm:$0xff]   ;;  %v8008_v23 = vld [vmem:[%s10594_s1 + $0xa8] sm:$0xff]  }
   0x9   :  { %7218 = vmatpush3.bf16.msra.mxu1 %v7992_v7  ;;  %7197 = vmatprep.subr.bf16.mxu0 %v7993_v8  ;;  %v8009_v24 = vld [vmem:[%s10594_s1 + $0x70] sm:$0xff]   ;;  %v8013_v28 = vld [vmem:[%s10594_s1 + $0x78] sm:$0xff]   ;;  %v15_v32 = vld [vmem:[%s10595_s0] sm:$0xff] }
   0xa   :  { %7219 = vmatprep.subr.bf16.mxu1 %v7994_v9  ;;  %v8010_v25 = vld [vmem:[%s10594_s1 + $0xf0] sm:$0xff]   ;;  %v8014_v29 = vld [vmem:[%s10594_s1 + $0xf8] sm:$0xff]   ;;  %v51_v33 = vld [vmem:[%s10595_s0 + $0x120] sm:$0xff] }
   0xb   :  { %v8011_v26 = vld [vmem:[%s10594_s1 + $0x30] sm:$0xff]   ;;  %v8015_v30 = vld [vmem:[%s10594_s1 + $0x38] sm:$0xff]   ;;  %v16_v34 = vld [vmem:[%s10595_s0 + $0x8] sm:$0xff]  ;;  %v6545_v35 = vcombine.low %v15_v32, %v51_v33  ;;  %v6546_v36 = vcombine.high %v15_v32, %v51_v33 }
   0xc   :  { %7198 = vmatpush3.bf16.msra.mxu0 %v7995_v10  ;;  %v8012_v27 = vld [vmem:[%s10594_s1 + $0xb0] sm:$0xff]   ;;  %v8016_v31 = vld [vmem:[%s10594_s1 + $0xb8] sm:$0xff]   ;;  %v52_v37 = vld [vmem:[%s10595_s0 + $0x128] sm:$0xff] }
   0xd   :  { %7220 = vmatpush3.bf16.msra.mxu1 %v7996_v11  ;;  %7199 = vmatprep.subr.bf16.mxu0 %v7997_v12  ;;  %v6547_v38 = vcombine.low %v16_v34, %v52_v37  ;;  %v6548_v39 = vcombine.high %v16_v34, %v52_v37  ;;  %v8017_v40 = vld [vmem:[%s10594_s1 + $0x140] sm:$0xff]   ;;  %v8021_v44 = vld [vmem:[%s10594_s1 + $0x148] sm:$0xff]   ;;  %v8025_v48 = vld [vmem:[%s10594_s1 + $0x150] sm:$0xff]  }
   0xe   :  { %7221 = vmatprep.subr.bf16.mxu1 %v7998_v13  ;;  %5094 = vmatprep.mubr.bf16.mxu0 %v6546_v36  ;;  %v8018_v41 = vld [vmem:[%s10594_s1 + $0x1c0] sm:$0xff]   ;;  %v8022_v45 = vld [vmem:[%s10594_s1 + $0x1c8] sm:$0xff]   ;;  %v8026_v49 = vld [vmem:[%s10594_s1 + $0x1d0] sm:$0xff]  }
   0xf   :  { %5135 = vmatprep.mubr.bf16.mxu1 %v6548_v39  ;;  %v8019_v42 = vld [vmem:[%s10594_s1 + $0x100] sm:$0xff]   ;;  %v8023_v46 = vld [vmem:[%s10594_s1 + $0x108] sm:$0xff]   ;;  %v8027_v50 = vld [vmem:[%s10594_s1 + $0x110] sm:$0xff]  }
  0x10   :  { %7200 = vmatpush3.bf16.msra.mxu0 %v7999_v14  ;;  %v8020_v43 = vld [vmem:[%s10594_s1 + $0x180] sm:$0xff]   ;;  %v8024_v47 = vld [vmem:[%s10594_s1 + $0x188] sm:$0xff]   ;;  %v8028_v51 = vld [vmem:[%s10594_s1 + $0x190] sm:$0xff]  }
  0x11   :  { %7222 = vmatpush3.bf16.msra.mxu1 %v8000_v15  ;;  %7201 = vmatprep.subr.bf16.mxu0 %v8001_v16  ;;  %v8029_v52 = vld [vmem:[%s10594_s1 + $0x158] sm:$0xff]   ;;  %v8033_v56 = vld [vmem:[%s10594_s1 + $0x160] sm:$0xff]   ;;  %v8037_v60 = vld [vmem:[%s10594_s1 + $0x168] sm:$0xff]  }
  0x12   :  { %7223 = vmatprep.subr.bf16.mxu1 %v8002_v17  ;;  %v8030_v53 = vld [vmem:[%s10594_s1 + $0x1d8] sm:$0xff]   ;;  %v8034_v57 = vld [vmem:[%s10594_s1 + $0x1e0] sm:$0xff]   ;;  %v8038_v61 = vld [vmem:[%s10594_s1 + $0x1e8] sm:$0xff]  }
  0x13   :  { %v8031_v54 = vld [vmem:[%s10594_s1 + $0x118] sm:$0xff]   ;;  %v8035_v58 = vld [vmem:[%s10594_s1 + $0x120] sm:$0xff]   ;;  %v8039_v62 = vld [vmem:[%s10594_s1 + $0x128] sm:$0xff]  }
  0x14   :  { %7202 = vmatpush3.bf16.msra.mxu0 %v8003_v18  ;;  %v8032_v55 = vld [vmem:[%s10594_s1 + $0x198] sm:$0xff]   ;;  %v8036_v59 = vld [vmem:[%s10594_s1 + $0x1a0] sm:$0xff]   ;;  %v8040_v63 = vld [vmem:[%s10594_s1 + $0x1a8] sm:$0xff]  }
  0x15   :  { %7224 = vmatpush3.bf16.msra.mxu1 %v8004_v19  ;;  %7203 = vmatprep.subr.bf16.mxu0 %v8005_v20  ;;  %v8041_v0 = vld [vmem:[%s10594_s1 + $0x170] sm:$0xff]   ;;  %v8045_v4 = vld [vmem:[%s10594_s1 + $0x178] sm:$0xff]   ;;  %v8049_v16 = vld [vmem:[%s10594_s1 + $0x240] sm:$0xff]  }
  0x16   :  { %7225 = vmatprep.subr.bf16.mxu1 %v8006_v21  ;;  %v8042_v1 = vld [vmem:[%s10594_s1 + $0x1f0] sm:$0xff]   ;;  %v8046_v5 = vld [vmem:[%s10594_s1 + $0x1f8] sm:$0xff]   ;;  %v8050_v17 = vld [vmem:[%s10594_s1 + $0x2c0] sm:$0xff]  }
  0x17   :  { %v8043_v2 = vld [vmem:[%s10594_s1 + $0x130] sm:$0xff]   ;;  %v8047_v6 = vld [vmem:[%s10594_s1 + $0x138] sm:$0xff]   ;;  %v8051_v18 = vld [vmem:[%s10594_s1 + $0x200] sm:$0xff]  }
  0x18   :  { %7204 = vmatpush3.bf16.msra.mxu0 %v8007_v22  ;;  %v8044_v3 = vld [vmem:[%s10594_s1 + $0x1b0] sm:$0xff]   ;;  %v8048_v7 = vld [vmem:[%s10594_s1 + $0x1b8] sm:$0xff]   ;;  %v8052_v19 = vld [vmem:[%s10594_s1 + $0x280] sm:$0xff]  }
  0x19   :  { %7226 = vmatpush3.bf16.msra.mxu1 %v8008_v23  ;;  %7205 = vmatprep.subr.bf16.mxu0 %v8009_v24  ;;  %v17_v8 = vld [vmem:[%s10595_s0 + $0x10] sm:$0xff]  ;;  %v18_v12 = vld [vmem:[%s10595_s0 + $0x18] sm:$0xff]  ;;  %v8053_v20 = vld [vmem:[%s10594_s1 + $0x248] sm:$0xff]  }
  0x1a   :  { %7227 = vmatprep.subr.bf16.mxu1 %v8010_v25  ;;  %v53_v9 = vld [vmem:[%s10595_s0 + $0x130] sm:$0xff]  ;;  %v54_v13 = vld [vmem:[%s10595_s0 + $0x138] sm:$0xff]  ;;  %v8054_v21 = vld [vmem:[%s10594_s1 + $0x2c8] sm:$0xff]  }
  0x1b   :  { %v6549_v10 = vcombine.low %v17_v8, %v53_v9  ;;  %v6550_v11 = vcombine.high %v17_v8, %v53_v9  ;;  %v6551_v14 = vcombine.low %v18_v12, %v54_v13  ;;  %v6552_v15 = vcombine.high %v18_v12, %v54_v13  ;;  %v8055_v22 = vld [vmem:[%s10594_s1 + $0x208] sm:$0xff]   ;;  %v8057_v24 = vld [vmem:[%s10594_s1 + $0x250] sm:$0xff]   ;;  %v8065_v32 = vld [vmem:[%s10594_s1 + $0x260] sm:$0xff]  }
  0x1c   :  { %7206 = vmatpush3.bf16.msra.mxu0 %v8011_v26  ;;  %v8056_v23 = vld [vmem:[%s10594_s1 + $0x288] sm:$0xff]   ;;  %v8058_v25 = vld [vmem:[%s10594_s1 + $0x2d0] sm:$0xff]   ;;  %v8066_v33 = vld [vmem:[%s10594_s1 + $0x2e0] sm:$0xff]  }
  0x1d   :  { %7228 = vmatpush3.bf16.msra.mxu1 %v8012_v27  ;;  %7207 = vmatprep.subr.bf16.mxu0 %v8013_v28  ;;  %v8059_v26 = vld [vmem:[%s10594_s1 + $0x210] sm:$0xff]   ;;  %v8061_v28 = vld [vmem:[%s10594_s1 + $0x258] sm:$0xff]   ;;  %v8067_v34 = vld [vmem:[%s10594_s1 + $0x220] sm:$0xff]  }
  0x1e   :  { %7229 = vmatprep.subr.bf16.mxu1 %v8014_v29  ;;  %v8060_v27 = vld [vmem:[%s10594_s1 + $0x290] sm:$0xff]   ;;  %v8062_v29 = vld [vmem:[%s10594_s1 + $0x2d8] sm:$0xff]   ;;  %v8069_v36 = vld [vmem:[%s10594_s1 + $0x268] sm:$0xff]  }
  0x1f   :  { %v8070_v37 = vld [vmem:[%s10594_s1 + $0x2e8] sm:$0xff]   ;;  %v8097_v8 = vld [vmem:[%s10594_s1 + $0x360] sm:$0xff]  }
  0x20   :  { %7208 = vmatpush3.bf16.msra.mxu0 %v8015_v30  ;;  %v8063_v30 = vld [vmem:[%s10594_s1 + $0x218] sm:$0xff]   ;;  %v8072_v39 = vld [vmem:[%s10594_s1 + $0x2a8] sm:$0xff]   ;;  %v8098_v9 = vld [vmem:[%s10594_s1 + $0x3e0] sm:$0xff]  }
  0x21   :  { %7230 = vmatpush3.bf16.msra.mxu1 %v8016_v31  ;;  %7237 = vmatprep.subr.bf16.mxu0 %v8017_v40  ;;  %v8064_v31 = vld [vmem:[%s10594_s1 + $0x298] sm:$0xff]   ;;  %v8073_v40 = vld [vmem:[%s10594_s1 + $0x270] sm:$0xff]   ;;  %v8101_v12 = vld [vmem:[%s10594_s1 + $0x368] sm:$0xff]  }
  0x22   :  { %7259 = vmatprep.subr.bf16.mxu1 %v8018_v41  ;;  %v8074_v41 = vld [vmem:[%s10594_s1 + $0x2f0] sm:$0xff]   ;;  %v8102_v13 = vld [vmem:[%s10594_s1 + $0x3e8] sm:$0xff]  }
  0x23   :  { %5095 = vmatmul.mubr.bf16.vlgmr.msra.gmra.mrb[0].mxu0 %v6545_v35  ;;  %v8068_v35 = vld [vmem:[%s10594_s1 + $0x2a0] sm:$0xff]  }
  0x24   :  { %5136 = vmatmul.mubr.bf16.vlgmr.msra.gmra.mrb[0].mxu1 %v6547_v38  ;;  %7238 = vmatpush3.bf16.msra.mxu0 %v8019_v42  ;;  %v8071_v38 = vld [vmem:[%s10594_s1 + $0x228] sm:$0xff]   ;;  %v8075_v42 = vld [vmem:[%s10594_s1 + $0x230] sm:$0xff]  }
  0x25   :  { %7260 = vmatpush3.bf16.msra.mxu1 %v8020_v43  ;;  %7239 = vmatprep.subr.bf16.mxu0 %v8021_v44  ;;  %v8076_v43 = vld [vmem:[%s10594_s1 + $0x2b0] sm:$0xff]   ;;  %v8077_v44 = vld [vmem:[%s10594_s1 + $0x278] sm:$0xff]  }
  0x26   :  { %7261 = vmatprep.subr.bf16.mxu1 %v8022_v45  ;;  %5176 = vmatprep.mubr.bf16.mxu0 %v6550_v11  ;;  %v8078_v45 = vld [vmem:[%s10594_s1 + $0x2f8] sm:$0xff]   ;;  %v8100_v11 = vld [vmem:[%s10594_s1 + $0x3a0] sm:$0xff]  }
  0x27   :  { %5217 = vmatprep.mubr.bf16.mxu1 %v6552_v15  ;;  %v8104_v15 = vld [vmem:[%s10594_s1 + $0x3a8] sm:$0xff]  }
  0x28   :  { %7240 = vmatpush3.bf16.msra.mxu0 %v8023_v46  ;;  %v8079_v46 = vld [vmem:[%s10594_s1 + $0x238] sm:$0xff]  }
  0x29   :  { %7262 = vmatpush3.bf16.msra.mxu1 %v8024_v47  ;;  %7241 = vmatprep.subr.bf16.mxu0 %v8025_v48  ;;  %v8080_v47 = vld [vmem:[%s10594_s1 + $0x2b8] sm:$0xff]   ;;  %v19_v48 = vld [vmem:[%s10595_s0 + $0x20] sm:$0xff] }
  0x2a   :  { %7263 = vmatprep.subr.bf16.mxu1 %v8026_v49  ;;  %v55_v49 = vld [vmem:[%s10595_s0 + $0x140] sm:$0xff] }
  0x2c   :  { %7242 = vmatpush3.bf16.msra.mxu0 %v8027_v50  ;;  %v20_v50 = vld [vmem:[%s10595_s0 + $0x28] sm:$0xff] }
  0x2d   :  { %7264 = vmatpush3.bf16.msra.mxu1 %v8028_v51  ;;  %7243 = vmatprep.subr.bf16.mxu0 %v8029_v52  ;;  %v56_v51 = vld [vmem:[%s10595_s0 + $0x148] sm:$0xff]  ;;  %v6553_v52 = vcombine.low %v19_v48, %v55_v49 }
  0x2e   :  { %7265 = vmatprep.subr.bf16.mxu1 %v8030_v53  ;;  %v6554_v53 = vcombine.high %v19_v48, %v55_v49  ;;  %v8129_v48 = vld [vmem:[%s10594_s1 + $0x460] sm:$0xff]  }
  0x2f   :  { %v8130_v49 = vld [vmem:[%s10594_s1 + $0x4e0] sm:$0xff]  }
  0x30   :  { %7244 = vmatpush3.bf16.msra.mxu0 %v8031_v54  ;;  %v6555_v54 = vcombine.low %v20_v50, %v56_v51 }
  0x31   :  { %7266 = vmatpush3.bf16.msra.mxu1 %v8032_v55  ;;  %7245 = vmatprep.subr.bf16.mxu0 %v8033_v56  ;;  %v6556_v55 = vcombine.high %v20_v50, %v56_v51  ;;  %v8081_v56 = vld [vmem:[%s10594_s1 + $0x340] sm:$0xff]  }
  0x32   :  { %7267 = vmatprep.subr.bf16.mxu1 %v8034_v57  ;;  %v8082_v57 = vld [vmem:[%s10594_s1 + $0x3c0] sm:$0xff]  }
  0x33   :  { %v8131_v50 = vld [vmem:[%s10594_s1 + $0x420] sm:$0xff]  }
  0x34   :  { %7246 = vmatpush3.bf16.msra.mxu0 %v8035_v58  ;;  %v8083_v58 = vld [vmem:[%s10594_s1 + $0x300] sm:$0xff]  }
  0x35   :  { %7268 = vmatpush3.bf16.msra.mxu1 %v8036_v59  ;;  %7247 = vmatprep.subr.bf16.mxu0 %v8037_v60  ;;  %v8084_v59 = vld [vmem:[%s10594_s1 + $0x380] sm:$0xff]   ;;  %v8085_v60 = vld [vmem:[%s10594_s1 + $0x348] sm:$0xff]  }
  0x36   :  { %7269 = vmatprep.subr.bf16.mxu1 %v8038_v61  ;;  %v8086_v61 = vld [vmem:[%s10594_s1 + $0x3c8] sm:$0xff]   ;;  %v8132_v51 = vld [vmem:[%s10594_s1 + $0x4a0] sm:$0xff]  }
  0x38   :  { %7248 = vmatpush3.bf16.msra.mxu0 %v8039_v62  ;;  %v8087_v62 = vld [vmem:[%s10594_s1 + $0x308] sm:$0xff]  }
  0x39   :  { %7270 = vmatpush3.bf16.msra.mxu1 %v8040_v63  ;;  %7249 = vmatprep.subr.bf16.mxu0 %v8041_v0  ;;  %v8088_v63 = vld [vmem:[%s10594_s1 + $0x388] sm:$0xff]   ;;  %v8089_v0 = vld [vmem:[%s10594_s1 + $0x350] sm:$0xff]  }
  0x3a   :  { %7271 = vmatprep.subr.bf16.mxu1 %v8042_v1  ;;  %v8090_v1 = vld [vmem:[%s10594_s1 + $0x3d0] sm:$0xff]  }
  0x3c   :  { %7250 = vmatpush3.bf16.msra.mxu0 %v8043_v2  ;;  %v8091_v2 = vld [vmem:[%s10594_s1 + $0x310] sm:$0xff]  }
  0x3d   :  { %7272 = vmatpush3.bf16.msra.mxu1 %v8044_v3  ;;  %7251 = vmatprep.subr.bf16.mxu0 %v8045_v4  ;;  %v8092_v3 = vld [vmem:[%s10594_s1 + $0x390] sm:$0xff]   ;;  %v8093_v4 = vld [vmem:[%s10594_s1 + $0x358] sm:$0xff]  }
  0x3e   :  { %7273 = vmatprep.subr.bf16.mxu1 %v8046_v5  ;;  %v8094_v5 = vld [vmem:[%s10594_s1 + $0x3d8] sm:$0xff]  }
  0x40   :  { %7252 = vmatpush3.bf16.msra.mxu0 %v8047_v6  ;;  %v8095_v6 = vld [vmem:[%s10594_s1 + $0x318] sm:$0xff]  }
  0x41   :  { %7274 = vmatpush3.bf16.msra.mxu1 %v8048_v7  ;;  %7281 = vmatprep.subr.bf16.mxu0 %v8049_v16  ;;  %v8096_v7 = vld [vmem:[%s10594_s1 + $0x398] sm:$0xff]   ;;  %v8105_v16 = vld [vmem:[%s10594_s1 + $0x370] sm:$0xff]  }
  0x42   :  { %7303 = vmatprep.subr.bf16.mxu1 %v8050_v17  ;;  %v8106_v17 = vld [vmem:[%s10594_s1 + $0x3f0] sm:$0xff]  }
  0x43   :  { %5177 = vmatmul.mubr.bf16.vlgmr.msra.gmra.mrb[4].mxu0 %v6549_v10  ;;  %v8099_v10 = vld [vmem:[%s10594_s1 + $0x320] sm:$0xff]  }
  0x44   :  { %5218 = vmatmul.mubr.bf16.vlgmr.msra.gmra.mrb[4].mxu1 %v6551_v14  ;;  %7282 = vmatpush3.bf16.msra.mxu0 %v8051_v18  ;;  %v8103_v14 = vld [vmem:[%s10594_s1 + $0x328] sm:$0xff]   ;;  %v8107_v18 = vld [vmem:[%s10594_s1 + $0x330] sm:$0xff]  }
  0x45   :  { %7304 = vmatpush3.bf16.msra.mxu1 %v8052_v19  ;;  %7283 = vmatprep.subr.bf16.mxu0 %v8053_v20  ;;  %v8108_v19 = vld [vmem:[%s10594_s1 + $0x3b0] sm:$0xff]   ;;  %v8109_v20 = vld [vmem:[%s10594_s1 + $0x378] sm:$0xff]  }
  0x46   :  { %7305 = vmatprep.subr.bf16.mxu1 %v8054_v21  ;;  %5258 = vmatprep.mubr.bf16.mxu0 %v6554_v53  ;;  %v8110_v21 = vld [vmem:[%s10594_s1 + $0x3f8] sm:$0xff]   ;;  %v8134_v53 = vld [vmem:[%s10594_s1 + $0x4e8] sm:$0xff]  }
  0x47   :  { %5299 = vmatprep.mubr.bf16.mxu1 %v6556_v55  ;;  %v8136_v55 = vld [vmem:[%s10594_s1 + $0x4a8] sm:$0xff]  }
  0x48   :  { %7284 = vmatpush3.bf16.msra.mxu0 %v8055_v22  ;;  %v8111_v22 = vld [vmem:[%s10594_s1 + $0x338] sm:$0xff]  }
  0x49   :  { %7306 = vmatpush3.bf16.msra.mxu1 %v8056_v23  ;;  %7285 = vmatprep.subr.bf16.mxu0 %v8057_v24  ;;  %v8112_v23 = vld [vmem:[%s10594_s1 + $0x3b8] sm:$0xff]   ;;  %v21_v24 = vld [vmem:[%s10595_s0 + $0x30] sm:$0xff] }
  0x4a   :  { %7307 = vmatprep.subr.bf16.mxu1 %v8058_v25  ;;  %v57_v25 = vld [vmem:[%s10595_s0 + $0x150] sm:$0xff] }
  0x4c   :  { %7286 = vmatpush3.bf16.msra.mxu0 %v8059_v26  ;;  %v22_v26 = vld [vmem:[%s10595_s0 + $0x38] sm:$0xff] }
  0x4d   :  { %7308 = vmatpush3.bf16.msra.mxu1 %v8060_v27  ;;  %7287 = vmatprep.subr.bf16.mxu0 %v8061_v28  ;;  %v6557_v27 = vcombine.low %v21_v24, %v57_v25  ;;  %v6558_v28 = vcombine.high %v21_v24, %v57_v25  ;;  %v8161_v24 = vld [vmem:[%s10594_s1 + $0x560] sm:$0xff]  }
  0x4e   :  { %7309 = vmatprep.subr.bf16.mxu1 %v8062_v29  ;;  %v58_v29 = vld [vmem:[%s10595_s0 + $0x158] sm:$0xff]  ;;  %v8162_v25 = vld [vmem:[%s10594_s1 + $0x5e0] sm:$0xff]  }
  0x50   :  { %7288 = vmatpush3.bf16.msra.mxu0 %v8063_v30  ;;  %v6559_v30 = vcombine.low %v22_v26, %v58_v29 }
  0x51   :  { %7310 = vmatpush3.bf16.msra.mxu1 %v8064_v31  ;;  %7289 = vmatprep.subr.bf16.mxu0 %v8065_v32  ;;  %v6560_v31 = vcombine.high %v22_v26, %v58_v29  ;;  %v8113_v32 = vld [vmem:[%s10594_s1 + $0x440] sm:$0xff]   ;;  %v8166_v29 = vld [vmem:[%s10594_s1 + $0x5e8] sm:$0xff]  }
  0x52   :  { %7311 = vmatprep.subr.bf16.mxu1 %v8066_v33  ;;  %v8114_v33 = vld [vmem:[%s10594_s1 + $0x4c0] sm:$0xff]  }
  0x53   :  { %v8163_v26 = vld [vmem:[%s10594_s1 + $0x520] sm:$0xff]  }
  0x54   :  { %7290 = vmatpush3.bf16.msra.mxu0 %v8067_v34  ;;  %v8115_v34 = vld [vmem:[%s10594_s1 + $0x400] sm:$0xff]  }
  0x55   :  { %7312 = vmatpush3.bf16.msra.mxu1 %v8068_v35  ;;  %7291 = vmatprep.subr.bf16.mxu0 %v8069_v36  ;;  %v8116_v35 = vld [vmem:[%s10594_s1 + $0x480] sm:$0xff]   ;;  %v8117_v36 = vld [vmem:[%s10594_s1 + $0x448] sm:$0xff]  }
  0x56   :  { %7313 = vmatprep.subr.bf16.mxu1 %v8070_v37  ;;  %v8118_v37 = vld [vmem:[%s10594_s1 + $0x4c8] sm:$0xff]  }
  0x58   :  { %7292 = vmatpush3.bf16.msra.mxu0 %v8071_v38  ;;  %v8119_v38 = vld [vmem:[%s10594_s1 + $0x408] sm:$0xff]  }
  0x59   :  { %7314 = vmatpush3.bf16.msra.mxu1 %v8072_v39  ;;  %7293 = vmatprep.subr.bf16.mxu0 %v8073_v40  ;;  %v8120_v39 = vld [vmem:[%s10594_s1 + $0x488] sm:$0xff]   ;;  %v8121_v40 = vld [vmem:[%s10594_s1 + $0x450] sm:$0xff]  }
  0x5a   :  { %7315 = vmatprep.subr.bf16.mxu1 %v8074_v41  ;;  %v8122_v41 = vld [vmem:[%s10594_s1 + $0x4d0] sm:$0xff]  }
  0x5c   :  { %7294 = vmatpush3.bf16.msra.mxu0 %v8075_v42  ;;  %v8123_v42 = vld [vmem:[%s10594_s1 + $0x410] sm:$0xff]  }
  0x5d   :  { %7316 = vmatpush3.bf16.msra.mxu1 %v8076_v43  ;;  %7295 = vmatprep.subr.bf16.mxu0 %v8077_v44  ;;  %v8124_v43 = vld [vmem:[%s10594_s1 + $0x490] sm:$0xff]   ;;  %v8125_v44 = vld [vmem:[%s10594_s1 + $0x458] sm:$0xff]  }
  0x5e   :  { %7317 = vmatprep.subr.bf16.mxu1 %v8078_v45  ;;  %v8126_v45 = vld [vmem:[%s10594_s1 + $0x4d8] sm:$0xff]  }
  0x60   :  { %7296 = vmatpush3.bf16.msra.mxu0 %v8079_v46  ;;  %v8127_v46 = vld [vmem:[%s10594_s1 + $0x418] sm:$0xff]  }
  0x61   :  { %7318 = vmatpush3.bf16.msra.mxu1 %v8080_v47  ;;  %7325 = vmatprep.subr.bf16.mxu0 %v8081_v56  ;;  %v8128_v47 = vld [vmem:[%s10594_s1 + $0x498] sm:$0xff]   ;;  %v8137_v56 = vld [vmem:[%s10594_s1 + $0x470] sm:$0xff]  }
  0x62   :  { %7347 = vmatprep.subr.bf16.mxu1 %v8082_v57  ;;  %v8138_v57 = vld [vmem:[%s10594_s1 + $0x4f0] sm:$0xff]  }
  0x63   :  { %5259 = vmatmul.mubr.bf16.vlgmr.msra.gmra.mrb[8].mxu0 %v6553_v52  ;;  %v8133_v52 = vld [vmem:[%s10594_s1 + $0x468] sm:$0xff]  }
  0x64   :  { %5300 = vmatmul.mubr.bf16.vlgmr.msra.gmra.mrb[8].mxu1 %v6555_v54  ;;  %7326 = vmatpush3.bf16.msra.mxu0 %v8083_v58  ;;  %v8135_v54 = vld [vmem:[%s10594_s1 + $0x428] sm:$0xff]   ;;  %v8139_v58 = vld [vmem:[%s10594_s1 + $0x430] sm:$0xff]  }
  0x65   :  { %7348 = vmatpush3.bf16.msra.mxu1 %v8084_v59  ;;  %7327 = vmatprep.subr.bf16.mxu0 %v8085_v60  ;;  %v8140_v59 = vld [vmem:[%s10594_s1 + $0x4b0] sm:$0xff]   ;;  %v8141_v60 = vld [vmem:[%s10594_s1 + $0x478] sm:$0xff]  }
  0x66   :  { %7349 = vmatprep.subr.bf16.mxu1 %v8086_v61  ;;  %5340 = vmatprep.mubr.bf16.mxu0 %v6558_v28  ;;  %v8142_v61 = vld [vmem:[%s10594_s1 + $0x4f8] sm:$0xff]   ;;  %v8165_v28 = vld [vmem:[%s10594_s1 + $0x568] sm:$0xff]  }
  0x67   :  { %5381 = vmatprep.mubr.bf16.mxu1 %v6560_v31  ;;  %v8168_v31 = vld [vmem:[%s10594_s1 + $0x5a8] sm:$0xff]  }
  0x68   :  { %7328 = vmatpush3.bf16.msra.mxu0 %v8087_v62  ;;  %v8143_v62 = vld [vmem:[%s10594_s1 + $0x438] sm:$0xff]  }
  0x69   :  { %7350 = vmatpush3.bf16.msra.mxu1 %v8088_v63  ;;  %7329 = vmatprep.subr.bf16.mxu0 %v8089_v0  ;;  %v8144_v63 = vld [vmem:[%s10594_s1 + $0x4b8] sm:$0xff]   ;;  %v23_v0 = vld [vmem:[%s10595_s0 + $0x40] sm:$0xff] }
  0x6a   :  { %7351 = vmatprep.subr.bf16.mxu1 %v8090_v1  ;;  %v59_v1 = vld [vmem:[%s10595_s0 + $0x160] sm:$0xff] }
  0x6c   :  { %7330 = vmatpush3.bf16.msra.mxu0 %v8091_v2  ;;  %v6561_v2 = vcombine.low %v23_v0, %v59_v1 }
  0x6d   :  { %7352 = vmatpush3.bf16.msra.mxu1 %v8092_v3  ;;  %7331 = vmatprep.subr.bf16.mxu0 %v8093_v4  ;;  %v6562_v3 = vcombine.high %v23_v0, %v59_v1  ;;  %v24_v4 = vld [vmem:[%s10595_s0 + $0x48] sm:$0xff]  ;;  %v8193_v0 = vld [vmem:[%s10594_s1 + $0x660] sm:$0xff]  }
  0x6e   :  { %7353 = vmatprep.subr.bf16.mxu1 %v8094_v5  ;;  %v60_v5 = vld [vmem:[%s10595_s0 + $0x168] sm:$0xff]  ;;  %v8194_v1 = vld [vmem:[%s10594_s1 + $0x6e0] sm:$0xff]  }
  0x70   :  { %7332 = vmatpush3.bf16.msra.mxu0 %v8095_v6  ;;  %v6563_v6 = vcombine.low %v24_v4, %v60_v5 }
  0x71   :  { %7354 = vmatpush3.bf16.msra.mxu1 %v8096_v7  ;;  %7333 = vmatprep.subr.bf16.mxu0 %v8097_v8  ;;  %v6564_v7 = vcombine.high %v24_v4, %v60_v5  ;;  %v8145_v8 = vld [vmem:[%s10594_s1 + $0x540] sm:$0xff]   ;;  %v8197_v4 = vld [vmem:[%s10594_s1 + $0x668] sm:$0xff]  }
  0x72   :  { %7355 = vmatprep.subr.bf16.mxu1 %v8098_v9  ;;  %v8146_v9 = vld [vmem:[%s10594_s1 + $0x5c0] sm:$0xff]   ;;  %v8198_v5 = vld [vmem:[%s10594_s1 + $0x6e8] sm:$0xff]  }
  0x74   :  { %7334 = vmatpush3.bf16.msra.mxu0 %v8099_v10  ;;  %v8147_v10 = vld [vmem:[%s10594_s1 + $0x500] sm:$0xff]  }
  0x75   :  { %7356 = vmatpush3.bf16.msra.mxu1 %v8100_v11  ;;  %7335 = vmatprep.subr.bf16.mxu0 %v8101_v12  ;;  %v8148_v11 = vld [vmem:[%s10594_s1 + $0x580] sm:$0xff]   ;;  %v8149_v12 = vld [vmem:[%s10594_s1 + $0x548] sm:$0xff]  }
  0x76   :  { %7357 = vmatprep.subr.bf16.mxu1 %v8102_v13  ;;  %v8150_v13 = vld [vmem:[%s10594_s1 + $0x5c8] sm:$0xff]  }
  0x78   :  { %7336 = vmatpush3.bf16.msra.mxu0 %v8103_v14  ;;  %v8151_v14 = vld [vmem:[%s10594_s1 + $0x508] sm:$0xff]  }
  0x79   :  { %7358 = vmatpush3.bf16.msra.mxu1 %v8104_v15  ;;  %7337 = vmatprep.subr.bf16.mxu0 %v8105_v16  ;;  %v8152_v15 = vld [vmem:[%s10594_s1 + $0x588] sm:$0xff]   ;;  %v8153_v16 = vld [vmem:[%s10594_s1 + $0x550] sm:$0xff]  }
  0x7a   :  { %7359 = vmatprep.subr.bf16.mxu1 %v8106_v17  ;;  %v8154_v17 = vld [vmem:[%s10594_s1 + $0x5d0] sm:$0xff]  }
  0x7c   :  { %7338 = vmatpush3.bf16.msra.mxu0 %v8107_v18  ;;  %v8155_v18 = vld [vmem:[%s10594_s1 + $0x510] sm:$0xff]  }
  0x7d   :  { %7360 = vmatpush3.bf16.msra.mxu1 %v8108_v19  ;;  %7339 = vmatprep.subr.bf16.mxu0 %v8109_v20  ;;  %v8156_v19 = vld [vmem:[%s10594_s1 + $0x590] sm:$0xff]   ;;  %v8157_v20 = vld [vmem:[%s10594_s1 + $0x558] sm:$0xff]  }
  0x7e   :  { %7361 = vmatprep.subr.bf16.mxu1 %v8110_v21  ;;  %v8158_v21 = vld [vmem:[%s10594_s1 + $0x5d8] sm:$0xff]  }
  0x80   :  { %7340 = vmatpush3.bf16.msra.mxu0 %v8111_v22  ;;  %v8159_v22 = vld [vmem:[%s10594_s1 + $0x518] sm:$0xff]  }
  0x81   :  { %7362 = vmatpush3.bf16.msra.mxu1 %v8112_v23  ;;  %7369 = vmatprep.subr.bf16.mxu0 %v8113_v32  ;;  %v8160_v23 = vld [vmem:[%s10594_s1 + $0x598] sm:$0xff]   ;;  %v8169_v32 = vld [vmem:[%s10594_s1 + $0x570] sm:$0xff]  }
  0x82   :  { %7391 = vmatprep.subr.bf16.mxu1 %v8114_v33  ;;  %v8170_v33 = vld [vmem:[%s10594_s1 + $0x5f0] sm:$0xff]  }
  0x83   :  { %5341 = vmatmul.mubr.bf16.vlgmr.msra.gmra.mrb[12].mxu0 %v6557_v27  ;;  %v8164_v27 = vld [vmem:[%s10594_s1 + $0x5a0] sm:$0xff]  }
  0x84   :  { %5382 = vmatmul.mubr.bf16.vlgmr.msra.gmra.mrb[12].mxu1 %v6559_v30  ;;  %7370 = vmatpush3.bf16.msra.mxu0 %v8115_v34  ;;  %v8167_v30 = vld [vmem:[%s10594_s1 + $0x528] sm:$0xff]   ;;  %v8171_v34 = vld [vmem:[%s10594_s1 + $0x530] sm:$0xff]  }
  0x85   :  { %7392 = vmatpush3.bf16.msra.mxu1 %v8116_v35  ;;  %7371 = vmatprep.subr.bf16.mxu0 %v8117_v36  ;;  %v8172_v35 = vld [vmem:[%s10594_s1 + $0x5b0] sm:$0xff]   ;;  %v8173_v36 = vld [vmem:[%s10594_s1 + $0x578] sm:$0xff]  }
  0x86   :  { %7393 = vmatprep.subr.bf16.mxu1 %v8118_v37  ;;  %5422 = vmatprep.mubr.bf16.mxu0 %v6562_v3  ;;  %v8174_v37 = vld [vmem:[%s10594_s1 + $0x5f8] sm:$0xff]   ;;  %v8196_v3 = vld [vmem:[%s10594_s1 + $0x6a0] sm:$0xff]  }
  0x87   :  { %5463 = vmatprep.mubr.bf16.mxu1 %v6564_v7  ;;  %v8200_v7 = vld [vmem:[%s10594_s1 + $0x6a8] sm:$0xff]  }
  0x88   :  { %7372 = vmatpush3.bf16.msra.mxu0 %v8119_v38  ;;  %v8175_v38 = vld [vmem:[%s10594_s1 + $0x538] sm:$0xff]  }
  0x89   :  { %7394 = vmatpush3.bf16.msra.mxu1 %v8120_v39  ;;  %7373 = vmatprep.subr.bf16.mxu0 %v8121_v40  ;;  %v8176_v39 = vld [vmem:[%s10594_s1 + $0x5b8] sm:$0xff]   ;;  %v25_v40 = vld [vmem:[%s10595_s0 + $0x50] sm:$0xff] }
  0x8a   :  { %7395 = vmatprep.subr.bf16.mxu1 %v8122_v41  ;;  %v61_v41 = vld [vmem:[%s10595_s0 + $0x170] sm:$0xff] }
  0x8c   :  { %7374 = vmatpush3.bf16.msra.mxu0 %v8123_v42  ;;  %v26_v42 = vld [vmem:[%s10595_s0 + $0x58] sm:$0xff] }
  0x8d   :  { %7396 = vmatpush3.bf16.msra.mxu1 %v8124_v43  ;;  %7375 = vmatprep.subr.bf16.mxu0 %v8125_v44  ;;  %v62_v43 = vld [vmem:[%s10595_s0 + $0x178] sm:$0xff]  ;;  %v6565_v44 = vcombine.low %v25_v40, %v61_v41 }
  0x8e   :  { %7397 = vmatprep.subr.bf16.mxu1 %v8126_v45  ;;  %v6566_v45 = vcombine.high %v25_v40, %v61_v41  ;;  %v8224_v41 = vld [vmem:[%s10594_s1 + $0x798] sm:$0xff]  }
  0x90   :  { %7376 = vmatpush3.bf16.msra.mxu0 %v8127_v46  ;;  %v6567_v46 = vcombine.low %v26_v42, %v62_v43 }
  0x91   :  { %7398 = vmatpush3.bf16.msra.mxu1 %v8128_v47  ;;  %7377 = vmatprep.subr.bf16.mxu0 %v8129_v48  ;;  %v6568_v47 = vcombine.high %v26_v42, %v62_v43  ;;  %v8177_v48 = vld [vmem:[%s10594_s1 + $0x640] sm:$0xff]  }
  0x92   :  { %7399 = vmatprep.subr.bf16.mxu1 %v8130_v49  ;;  %v8178_v49 = vld [vmem:[%s10594_s1 + $0x6c0] sm:$0xff]  }
  0x93   :  { %v8225_v43 = vld [vmem:[%s10594_s1 + $0x760] sm:$0xff]  }
  0x94   :  { %7378 = vmatpush3.bf16.msra.mxu0 %v8131_v50  ;;  %v8179_v50 = vld [vmem:[%s10594_s1 + $0x600] sm:$0xff]  }
  0x95   :  { %7400 = vmatpush3.bf16.msra.mxu1 %v8132_v51  ;;  %7379 = vmatprep.subr.bf16.mxu0 %v8133_v52  ;;  %v8180_v51 = vld [vmem:[%s10594_s1 + $0x680] sm:$0xff]   ;;  %v8181_v52 = vld [vmem:[%s10594_s1 + $0x648] sm:$0xff]  }
  0x96   :  { %7401 = vmatprep.subr.bf16.mxu1 %v8134_v53  ;;  %v8182_v53 = vld [vmem:[%s10594_s1 + $0x6c8] sm:$0xff]  }
  0x98   :  { %7380 = vmatpush3.bf16.msra.mxu0 %v8135_v54  ;;  %v8183_v54 = vld [vmem:[%s10594_s1 + $0x608] sm:$0xff]  }
  0x99   :  { %7402 = vmatpush3.bf16.msra.mxu1 %v8136_v55  ;;  %7381 = vmatprep.subr.bf16.mxu0 %v8137_v56  ;;  %v8184_v55 = vld [vmem:[%s10594_s1 + $0x688] sm:$0xff]   ;;  %v8185_v56 = vld [vmem:[%s10594_s1 + $0x650] sm:$0xff]  }
  0x9a   :  { %7403 = vmatprep.subr.bf16.mxu1 %v8138_v57  ;;  %v8186_v57 = vld [vmem:[%s10594_s1 + $0x6d0] sm:$0xff]  }
  0x9c   :  { %7382 = vmatpush3.bf16.msra.mxu0 %v8139_v58  ;;  %v8187_v58 = vld [vmem:[%s10594_s1 + $0x610] sm:$0xff]  }
  0x9d   :  { %7404 = vmatpush3.bf16.msra.mxu1 %v8140_v59  ;;  %7383 = vmatprep.subr.bf16.mxu0 %v8141_v60  ;;  %v8188_v59 = vld [vmem:[%s10594_s1 + $0x690] sm:$0xff]   ;;  %v8189_v60 = vld [vmem:[%s10594_s1 + $0x658] sm:$0xff]  }
  0x9e   :  { %7405 = vmatprep.subr.bf16.mxu1 %v8142_v61  ;;  %v8190_v61 = vld [vmem:[%s10594_s1 + $0x6d8] sm:$0xff]  }
  0xa0   :  { %7384 = vmatpush3.bf16.msra.mxu0 %v8143_v62  ;;  %v8191_v62 = vld [vmem:[%s10594_s1 + $0x618] sm:$0xff]  }
  0xa1   :  { %7406 = vmatpush3.bf16.msra.mxu1 %v8144_v63  ;;  %7413 = vmatprep.subr.bf16.mxu0 %v8145_v8  ;;  %v8192_v63 = vld [vmem:[%s10594_s1 + $0x698] sm:$0xff]   ;;  %v8201_v8 = vld [vmem:[%s10594_s1 + $0x670] sm:$0xff]  }
  0xa2   :  { %7435 = vmatprep.subr.bf16.mxu1 %v8146_v9  ;;  %v8202_v9 = vld [vmem:[%s10594_s1 + $0x6f0] sm:$0xff]  }
  0xa3   :  { %5423 = vmatmul.mubr.bf16.vlgmr.msra.gmra.mrb[16].mxu0 %v6561_v2  ;;  %v8195_v2 = vld [vmem:[%s10594_s1 + $0x620] sm:$0xff]  }
  0xa4   :  { %5464 = vmatmul.mubr.bf16.vlgmr.msra.gmra.mrb[16].mxu1 %v6563_v6  ;;  %7414 = vmatpush3.bf16.msra.mxu0 %v8147_v10  ;;  %v8199_v6 = vld [vmem:[%s10594_s1 + $0x628] sm:$0xff]   ;;  %v8203_v10 = vld [vmem:[%s10594_s1 + $0x630] sm:$0xff]  }
  0xa5   :  { %7436 = vmatpush3.bf16.msra.mxu1 %v8148_v11  ;;  %7415 = vmatprep.subr.bf16.mxu0 %v8149_v12  ;;  %v8204_v11 = vld [vmem:[%s10594_s1 + $0x6b0] sm:$0xff]   ;;  %v8205_v12 = vld [vmem:[%s10594_s1 + $0x678] sm:$0xff]  }
  0xa6   :  { %7437 = vmatprep.subr.bf16.mxu1 %v8150_v13  ;;  %5504 = vmatprep.mubr.bf16.mxu0 %v6566_v45  ;;  %v8206_v13 = vld [vmem:[%s10594_s1 + $0x6f8] sm:$0xff]  }
  0xa7   :  { %5545 = vmatprep.mubr.bf16.mxu1 %v6568_v47 }
  0xa8   :  { %7416 = vmatpush3.bf16.msra.mxu0 %v8151_v14  ;;  %v8207_v14 = vld [vmem:[%s10594_s1 + $0x638] sm:$0xff]  }
  0xa9   :  { %7438 = vmatpush3.bf16.msra.mxu1 %v8152_v15  ;;  %7417 = vmatprep.subr.bf16.mxu0 %v8153_v16  ;;  %v8208_v15 = vld [vmem:[%s10594_s1 + $0x6b8] sm:$0xff]   ;;  %v27_v16 = vld [vmem:[%s10595_s0 + $0x60] sm:$0xff] }
  0xaa   :  { %7439 = vmatprep.subr.bf16.mxu1 %v8154_v17  ;;  %v63_v17 = vld [vmem:[%s10595_s0 + $0x180] sm:$0xff] }
  0xac   :  { %7418 = vmatpush3.bf16.msra.mxu0 %v8155_v18  ;;  %v28_v18 = vld [vmem:[%s10595_s0 + $0x68] sm:$0xff] }
  0xad   :  { %7440 = vmatpush3.bf16.msra.mxu1 %v8156_v19  ;;  %7419 = vmatprep.subr.bf16.mxu0 %v8157_v20  ;;  %v6569_v19 = vcombine.low %v27_v16, %v63_v17  ;;  %v6570_v20 = vcombine.high %v27_v16, %v63_v17  ;;  %v8241_v17 = vld [vmem:[%s10594_s1 + $0x840] sm:$0xff]  }
  0xae   :  { %7441 = vmatprep.subr.bf16.mxu1 %v8158_v21  ;;  %v64_v21 = vld [vmem:[%s10595_s0 + $0x188] sm:$0xff] }
  0xb0   :  { %7420 = vmatpush3.bf16.msra.mxu0 %v8159_v22  ;;  %v6571_v22 = vcombine.low %v28_v18, %v64_v21 }
  0xb1   :  { %7442 = vmatpush3.bf16.msra.mxu1 %v8160_v23  ;;  %7421 = vmatprep.subr.bf16.mxu0 %v8161_v24  ;;  %v6572_v23 = vcombine.high %v28_v18, %v64_v21  ;;  %v8209_v24 = vld [vmem:[%s10594_s1 + $0x740] sm:$0xff]   ;;  %v8245_v21 = vld [vmem:[%s10594_s1 + $0x848] sm:$0xff]  }
  0xb2   :  { %7443 = vmatprep.subr.bf16.mxu1 %v8162_v25  ;;  %v8210_v25 = vld [vmem:[%s10594_s1 + $0x7c0] sm:$0xff]  }
  0xb3   :  { %v8242_v18 = vld [vmem:[%s10594_s1 + $0x8c0] sm:$0xff]  }
  0xb4   :  { %7422 = vmatpush3.bf16.msra.mxu0 %v8163_v26  ;;  %v8211_v26 = vld [vmem:[%s10594_s1 + $0x700] sm:$0xff]  }
  0xb5   :  { %7444 = vmatpush3.bf16.msra.mxu1 %v8164_v27  ;;  %7423 = vmatprep.subr.bf16.mxu0 %v8165_v28  ;;  %v8212_v27 = vld [vmem:[%s10594_s1 + $0x780] sm:$0xff]   ;;  %v8213_v28 = vld [vmem:[%s10594_s1 + $0x748] sm:$0xff]  }
  0xb6   :  { %7445 = vmatprep.subr.bf16.mxu1 %v8166_v29  ;;  %v8214_v29 = vld [vmem:[%s10594_s1 + $0x7c8] sm:$0xff]  }
  0xb8   :  { %7424 = vmatpush3.bf16.msra.mxu0 %v8167_v30  ;;  %v8215_v30 = vld [vmem:[%s10594_s1 + $0x708] sm:$0xff]  }
  0xb9   :  { %7446 = vmatpush3.bf16.msra.mxu1 %v8168_v31  ;;  %7425 = vmatprep.subr.bf16.mxu0 %v8169_v32  ;;  %v8216_v31 = vld [vmem:[%s10594_s1 + $0x788] sm:$0xff]   ;;  %v8217_v32 = vld [vmem:[%s10594_s1 + $0x750] sm:$0xff]  }
  0xba   :  { %7447 = vmatprep.subr.bf16.mxu1 %v8170_v33  ;;  %v8218_v33 = vld [vmem:[%s10594_s1 + $0x7d0] sm:$0xff]  }
  0xbc   :  { %7426 = vmatpush3.bf16.msra.mxu0 %v8171_v34  ;;  %v8219_v34 = vld [vmem:[%s10594_s1 + $0x710] sm:$0xff]  }
  0xbd   :  { %7448 = vmatpush3.bf16.msra.mxu1 %v8172_v35  ;;  %7427 = vmatprep.subr.bf16.mxu0 %v8173_v36  ;;  %v8220_v35 = vld [vmem:[%s10594_s1 + $0x790] sm:$0xff]   ;;  %v8221_v36 = vld [vmem:[%s10594_s1 + $0x758] sm:$0xff]  }
  0xbe   :  { %7449 = vmatprep.subr.bf16.mxu1 %v8174_v37  ;;  %v8222_v37 = vld [vmem:[%s10594_s1 + $0x7d8] sm:$0xff]  }
  0xc0   :  { %7428 = vmatpush3.bf16.msra.mxu0 %v8175_v38 }
  0xc1   :  { %7450 = vmatpush3.bf16.msra.mxu1 %v8176_v39  ;;  %7457 = vmatprep.subr.bf16.mxu0 %v8177_v48  ;;  %v8223_v39 = vld [vmem:[%s10594_s1 + $0x718] sm:$0xff]  }
  0xc2   :  { %7479 = vmatprep.subr.bf16.mxu1 %v8178_v49  ;;  %v8227_v49 = vld [vmem:[%s10594_s1 + $0x720] sm:$0xff]  }
  0xc3   :  { %5505 = vmatmul.mubr.bf16.vlgmr.msra.gmra.mrb[20].mxu0 %v6565_v44 }
  0xc4   :  { %5546 = vmatmul.mubr.bf16.vlgmr.msra.gmra.mrb[20].mxu1 %v6567_v46  ;;  %7458 = vmatpush3.bf16.msra.mxu0 %v8179_v50  ;;  %v8226_v46 = vld [vmem:[%s10594_s1 + $0x7e0] sm:$0xff]  }
  0xc5   :  { %7480 = vmatpush3.bf16.msra.mxu1 %v8180_v51  ;;  %7459 = vmatprep.subr.bf16.mxu0 %v8181_v52  ;;  %v8228_v51 = vld [vmem:[%s10594_s1 + $0x7a0] sm:$0xff]  }
  0xc6   :  { %7481 = vmatprep.subr.bf16.mxu1 %v8182_v53  ;;  %5586 = vmatprep.mubr.bf16.mxu0 %v6570_v20  ;;  %v6544_v52 = vld [vmem:[%s10596_s2] ss:$0 sm:$0xff] }
  0xc7   :  { %5627 = vmatprep.mubr.bf16.mxu1 %v6572_v23  ;;  %v8244_v20 = vld [vmem:[%s10594_s1 + $0x880] sm:$0xff]   ;;  %v8247_v23 = vld [vmem:[%s10594_s1 + $0x808] sm:$0xff]  }
  0xc8   :  { %7460 = vmatpush3.bf16.msra.mxu0 %v8183_v54 }
  0xc9   :  { %7482 = vmatpush3.bf16.msra.mxu1 %v8184_v55  ;;  %7461 = vmatprep.subr.bf16.mxu0 %v8185_v56  ;;  %v8229_v55 = vld [vmem:[%s10594_s1 + $0x768] sm:$0xff]  }
  0xca   :  { %7483 = vmatprep.subr.bf16.mxu1 %v8186_v57 }
  0xcc   :  { %7462 = vmatpush3.bf16.msra.mxu0 %v8187_v58  ;;  %v8230_v58 = vld [vmem:[%s10594_s1 + $0x7e8] sm:$0xff]  }
  0xcd   :  { %7484 = vmatpush3.bf16.msra.mxu1 %v8188_v59  ;;  %7463 = vmatprep.subr.bf16.mxu0 %v8189_v60 }
  0xce   :  { %7485 = vmatprep.subr.bf16.mxu1 %v8190_v61  ;;  %v8231_v61 = vld [vmem:[%s10594_s1 + $0x728] sm:$0xff]  }
  0xd0   :  { %7464 = vmatpush3.bf16.msra.mxu0 %v8191_v62 }
  0xd1   :  { %7486 = vmatpush3.bf16.msra.mxu1 %v8192_v63  ;;  %7465 = vmatprep.subr.bf16.mxu0 %v8193_v0  ;;  %v8232_v63 = vld [vmem:[%s10594_s1 + $0x7a8] sm:$0xff]  }
  0xd2   :  { %7487 = vmatprep.subr.bf16.mxu1 %v8194_v1  ;;  %v8233_v1 = vld [vmem:[%s10594_s1 + $0x770] sm:$0xff]  }
  0xd4   :  { %7466 = vmatpush3.bf16.msra.mxu0 %v8195_v2  ;;  %v8234_v2 = vld [vmem:[%s10594_s1 + $0x7f0] sm:$0xff]  }
  0xd5   :  { %7488 = vmatpush3.bf16.msra.mxu1 %v8196_v3  ;;  %7467 = vmatprep.subr.bf16.mxu0 %v8197_v4  ;;  %v8235_v3 = vld [vmem:[%s10594_s1 + $0x730] sm:$0xff]  }
  0xd6   :  { %7489 = vmatprep.subr.bf16.mxu1 %v8198_v5  ;;  %v8236_v4 = vld [vmem:[%s10594_s1 + $0x7b0] sm:$0xff]   ;;  %v8237_v5 = vld [vmem:[%s10594_s1 + $0x778] sm:$0xff]  }
  0xd8   :  { %7468 = vmatpush3.bf16.msra.mxu0 %v8199_v6  ;;  %v8238_v6 = vld [vmem:[%s10594_s1 + $0x7f8] sm:$0xff]  }
  0xd9   :  { %7490 = vmatpush3.bf16.msra.mxu1 %v8200_v7  ;;  %7469 = vmatprep.subr.bf16.mxu0 %v8201_v8  ;;  %v8239_v7 = vld [vmem:[%s10594_s1 + $0x738] sm:$0xff]  }
  0xda   :  { %7491 = vmatprep.subr.bf16.mxu1 %v8202_v9  ;;  %v8240_v8 = vld [vmem:[%s10594_s1 + $0x7b8] sm:$0xff]   ;;  %v29_v9 = vld [vmem:[%s10595_s0 + $0x70] sm:$0xff] }
  0xdc   :  { %7470 = vmatpush3.bf16.msra.mxu0 %v8203_v10  ;;  %v65_v10 = vld [vmem:[%s10595_s0 + $0x190] sm:$0xff] }
  0xdd   :  { %7492 = vmatpush3.bf16.msra.mxu1 %v8204_v11  ;;  %7471 = vmatprep.subr.bf16.mxu0 %v8205_v12  ;;  %v30_v11 = vld [vmem:[%s10595_s0 + $0x78] sm:$0xff] }
  0xde   :  { %7493 = vmatprep.subr.bf16.mxu1 %v8206_v13  ;;  %v66_v12 = vld [vmem:[%s10595_s0 + $0x198] sm:$0xff]  ;;  %v6573_v13 = vcombine.low %v29_v9, %v65_v10 }
  0xdf   :  { %v6576_v16 = vcombine.high %v30_v11, %v66_v12 }
  0xe0   :  { %7472 = vmatpush3.bf16.msra.mxu0 %v8207_v14  ;;  %v6574_v14 = vcombine.high %v29_v9, %v65_v10  ;;  %v8273_v9 = vld [vmem:[%s10594_s1 + $0x940] sm:$0xff]  }
  0xe1   :  { %7494 = vmatpush3.bf16.msra.mxu1 %v8208_v15  ;;  %7501 = vmatprep.subr.bf16.mxu0 %v8209_v24  ;;  %v6575_v15 = vcombine.low %v30_v11, %v66_v12  ;;  %v8248_v24 = vld [vmem:[%s10594_s1 + $0x888] sm:$0xff]   ;;  %v8274_v10 = vld [vmem:[%s10594_s1 + $0x9c0] sm:$0xff]  }
  0xe2   :  { %7523 = vmatprep.subr.bf16.mxu1 %v8210_v25  ;;  %v8249_v25 = vld [vmem:[%s10594_s1 + $0x850] sm:$0xff]   ;;  %v8275_v11 = vld [vmem:[%s10594_s1 + $0x900] sm:$0xff]  }
  0xe3   :  { %5587 = vmatmul.mubr.bf16.vlgmr.msra.gmra.mrb[24].mxu0 %v6569_v19  ;;  %v8243_v19 = vld [vmem:[%s10594_s1 + $0x800] sm:$0xff]  }
  0xe4   :  { %5628 = vmatmul.mubr.bf16.vlgmr.msra.gmra.mrb[24].mxu1 %v6571_v22  ;;  %7502 = vmatpush3.bf16.msra.mxu0 %v8211_v26  ;;  %v8246_v22 = vld [vmem:[%s10594_s1 + $0x8c8] sm:$0xff]   ;;  %v8250_v26 = vld [vmem:[%s10594_s1 + $0x8d0] sm:$0xff]   ;;  %v8276_v12 = vld [vmem:[%s10594_s1 + $0x980] sm:$0xff]  }
  0xe5   :  { %7524 = vmatpush3.bf16.msra.mxu1 %v8212_v27  ;;  %7503 = vmatprep.subr.bf16.mxu0 %v8213_v28  ;;  %v8251_v27 = vld [vmem:[%s10594_s1 + $0x810] sm:$0xff]  }
  0xe6   :  { %7525 = vmatprep.subr.bf16.mxu1 %v8214_v29  ;;  %5668 = vmatprep.mubr.bf16.mxu0 %v6574_v14  ;;  %v8252_v28 = vld [vmem:[%s10594_s1 + $0x890] sm:$0xff]   ;;  %v8253_v29 = vld [vmem:[%s10594_s1 + $0x858] sm:$0xff]   ;;  %v8278_v14 = vld [vmem:[%s10594_s1 + $0x9c8] sm:$0xff]  }
  0xe7   :  { %5709 = vmatprep.mubr.bf16.mxu1 %v6576_v16  ;;  %v8280_v16 = vld [vmem:[%s10594_s1 + $0x988] sm:$0xff]  }
  0xe8   :  { %7504 = vmatpush3.bf16.msra.mxu0 %v8215_v30  ;;  %v8254_v30 = vld [vmem:[%s10594_s1 + $0x8d8] sm:$0xff]  }
  0xe9   :  { %7526 = vmatpush3.bf16.msra.mxu1 %v8216_v31  ;;  %7505 = vmatprep.subr.bf16.mxu0 %v8217_v32  ;;  %v8255_v32 = vld [vmem:[%s10594_s1 + $0x818] sm:$0xff]  }
  0xea   :  { %7527 = vmatprep.subr.bf16.mxu1 %v8218_v33 }
  0xec   :  { %7506 = vmatpush3.bf16.msra.mxu0 %v8219_v34  ;;  %v8256_v34 = vld [vmem:[%s10594_s1 + $0x898] sm:$0xff]  }
  0xed   :  { %7528 = vmatpush3.bf16.msra.mxu1 %v8220_v35  ;;  %7507 = vmatprep.subr.bf16.mxu0 %v8221_v36  ;;  %v8257_v36 = vld [vmem:[%s10594_s1 + $0x860] sm:$0xff]  }
  0xee   :  { %7529 = vmatprep.subr.bf16.mxu1 %v8222_v37 }
  0xf0   :  { %7508 = vmatpush3.bf16.msra.mxu0 %v8223_v39  ;;  %v8258_v39 = vld [vmem:[%s10594_s1 + $0x8e0] sm:$0xff]  }
  0xf1   :  { %7530 = vmatpush3.bf16.msra.mxu1 %v8224_v41  ;;  %7509 = vmatprep.subr.bf16.mxu0 %v8225_v43 }
  0xf2   :  { %7531 = vmatprep.subr.bf16.mxu1 %v8226_v46 }
  0xf4   :  { %7510 = vmatpush3.bf16.msra.mxu0 %v8227_v49 }
  0xf5   :  { %7532 = vmatpush3.bf16.msra.mxu1 %v8228_v51  ;;  %7511 = vmatprep.subr.bf16.mxu0 %v8229_v55  ;;  %v8262_v51 = vld [vmem:[%s10594_s1 + $0x8e8] sm:$0xff]  }
  0xf6   :  { %v7209_v38 = vpop.f32.mrb[0].mxu0  ;;  %7533 = vmatprep.subr.bf16.mxu1 %v8230_v58  ;;  %v8264_v55 = vld [vmem:[%s10594_s1 + $0x8a8] sm:$0xff]   ;;  %v8266_v58 = vld [vmem:[%s10594_s1 + $0x8f0] sm:$0xff]  }
  0xf7   :  { %v7231_v40 = vpop.f32.mrb[0].mxu1  ;;  %v7210_v42 = vpop.f32.mrb[1].mxu0 }
  0xf8   :  { %v7211_v44 = vadd.f32 %v7210_v42, %v7209_v38  ;;  %v7232_v45 = vpop.f32.mrb[1].mxu1  ;;  %v7212_v48 = vpop.f32.mrb[2].mxu0  ;;  %7512 = vmatpush3.bf16.msra.mxu0 %v8231_v61  ;;  %v8259_v42 = vld [vmem:[%s10594_s1 + $0x820] sm:$0xff]   ;;  %v8269_v61 = vld [vmem:[%s10594_s1 + $0x878] sm:$0xff]  }
  0xf9   :  { %v7233_v47 = vadd.f32 %v7232_v45, %v7231_v40  ;;  %v7234_v50 = vpop.f32.mrb[2].mxu1  ;;  %v7213_v53 = vpop.f32.mrb[3].mxu0  ;;  %7534 = vmatpush3.bf16.msra.mxu1 %v8232_v63  ;;  %7513 = vmatprep.subr.bf16.mxu0 %v8233_v1  ;;  %v8260_v45 = vld [vmem:[%s10594_s1 + $0x8a0] sm:$0xff]   ;;  %v8271_v63 = vld [vmem:[%s10594_s1 + $0x838] sm:$0xff]  }
  0xfa   :  { %v5097_v54 = vadd.f32 %v7211_v44, %v6544_v52  ;;  %v7214_v56 = vadd.f32 %v7213_v53, %v7212_v48  ;;  %v7235_v57 = vpop.f32.mrb[3].mxu1  ;;  %7535 = vmatprep.subr.bf16.mxu1 %v8234_v2  ;;  %v8261_v48 = vld [vmem:[%s10594_s1 + $0x868] sm:$0xff]   ;;  %v31_v1 = vld [vmem:[%s10595_s0 + $0x80] sm:$0xff] }
  0xfb   :  { %v7236_v59 = vadd.f32 %v7235_v57, %v7234_v50  ;;  %v8263_v53 = vld [vmem:[%s10594_s1 + $0x828] sm:$0xff]   ;;  %v8265_v57 = vld [vmem:[%s10594_s1 + $0x870] sm:$0xff]   ;;  %v67_v2 = vld [vmem:[%s10595_s0 + $0x1a0] sm:$0xff] }
  0xfc   :  { %v9406_v60 = vadd.f32 %v7233_v47, %v5097_v54  ;;  %v5100_v62 = vadd.f32 %v7214_v56, %v6544_v52  ;;  %7514 = vmatpush3.bf16.msra.mxu0 %v8235_v3  ;;  %v32_v3 = vld [vmem:[%s10595_s0 + $0x88] sm:$0xff] }
  0xfd   :  { %7536 = vmatpush3.bf16.msra.mxu1 %v8236_v4  ;;  %7515 = vmatprep.subr.bf16.mxu0 %v8237_v5  ;;  %v6577_v4 = vcombine.low %v31_v1, %v67_v2  ;;  %v6578_v5 = vcombine.high %v31_v1, %v67_v2  ;;  %v8305_v1 = vld [vmem:[%s10594_s1 + $0xa40] sm:$0xff]  }
  0xfe   :  { %v9414_v0 = vadd.f32 %v7236_v59, %v5100_v62  ;;  %7537 = vmatprep.subr.bf16.mxu1 %v8238_v6  ;;  %v8267_v59 = vld [vmem:[%s10594_s1 + $0x830] sm:$0xff]   ;;  %v8270_v62 = vld [vmem:[%s10594_s1 + $0x8f8] sm:$0xff]   ;;  %v68_v6 = vld [vmem:[%s10595_s0 + $0x1a8] sm:$0xff] }
  0xff   :  { %v8306_v2 = vld [vmem:[%s10594_s1 + $0xac0] sm:$0xff]  }
 0x100   :  { %7516 = vmatpush3.bf16.msra.mxu0 %v8239_v7  ;;  %v6579_v7 = vcombine.low %v32_v3, %v68_v6 }
 0x101   :  { %7538 = vmatpush3.bf16.msra.mxu1 %v8240_v8  ;;  %7545 = vmatprep.subr.bf16.mxu0 %v8241_v17  ;;  %v6580_v8 = vcombine.high %v32_v3, %v68_v6  ;;  %v8281_v17 = vld [vmem:[%s10594_s1 + $0x950] sm:$0xff]   ;;  %v8307_v3 = vld [vmem:[%s10594_s1 + $0xa00] sm:$0xff]   ;;  %v8310_v6 = vld [vmem:[%s10594_s1 + $0xac8] sm:$0xff]  }
 0x102   :  { %7567 = vmatprep.subr.bf16.mxu1 %v8242_v18  ;;  %v8282_v18 = vld [vmem:[%s10594_s1 + $0x9d0] sm:$0xff]  }
 0x103   :  { %5669 = vmatmul.mubr.bf16.vlgmr.msra.gmra.mrb[28].mxu0 %v6573_v13  ;;  %v8277_v13 = vld [vmem:[%s10594_s1 + $0x948] sm:$0xff]  }
 0x104   :  { %5710 = vmatmul.mubr.bf16.vlgmr.msra.gmra.mrb[28].mxu1 %v6575_v15  ;;  %7546 = vmatpush3.bf16.msra.mxu0 %v8243_v19  ;;  %v8279_v15 = vld [vmem:[%s10594_s1 + $0x908] sm:$0xff]   ;;  %v8283_v19 = vld [vmem:[%s10594_s1 + $0x910] sm:$0xff]  }
 0x105   :  { %7568 = vmatpush3.bf16.msra.mxu1 %v8244_v20  ;;  %7547 = vmatprep.subr.bf16.mxu0 %v8245_v21  ;;  %v8284_v20 = vld [vmem:[%s10594_s1 + $0x990] sm:$0xff]   ;;  %v8285_v21 = vld [vmem:[%s10594_s1 + $0x958] sm:$0xff]  }
 0x106   :  { %7569 = vmatprep.subr.bf16.mxu1 %v8246_v22  ;;  %5750 = vmatprep.mubr.bf16.mxu0 %v6578_v5  ;;  %v8286_v22 = vld [vmem:[%s10594_s1 + $0x9d8] sm:$0xff]   ;;  %v8309_v5 = vld [vmem:[%s10594_s1 + $0xa48] sm:$0xff]  }
 0x107   :  { %5791 = vmatprep.mubr.bf16.mxu1 %v6580_v8  ;;  %v8312_v8 = vld [vmem:[%s10594_s1 + $0xa88] sm:$0xff]  }
 0x108   :  { %7548 = vmatpush3.bf16.msra.mxu0 %v8247_v23 }
 0x109   :  { %7570 = vmatpush3.bf16.msra.mxu1 %v8248_v24  ;;  %7549 = vmatprep.subr.bf16.mxu0 %v8249_v25  ;;  %v8287_v24 = vld [vmem:[%s10594_s1 + $0x918] sm:$0xff]  }
 0x10a   :  { %7571 = vmatprep.subr.bf16.mxu1 %v8250_v26  ;;  %v8288_v26 = vld [vmem:[%s10594_s1 + $0x998] sm:$0xff]  }
 0x10c   :  { %7550 = vmatpush3.bf16.msra.mxu0 %v8251_v27 }
 0x10d   :  { %7572 = vmatpush3.bf16.msra.mxu1 %v8252_v28  ;;  %7551 = vmatprep.subr.bf16.mxu0 %v8253_v29  ;;  %v8289_v28 = vld [vmem:[%s10594_s1 + $0x960] sm:$0xff]  }
 0x10e   :  { %7573 = vmatprep.subr.bf16.mxu1 %v8254_v30 }
 0x110   :  { %7552 = vmatpush3.bf16.msra.mxu0 %v8255_v32 }
 0x111   :  { %7574 = vmatpush3.bf16.msra.mxu1 %v8256_v34  ;;  %7553 = vmatprep.subr.bf16.mxu0 %v8257_v36  ;;  %v8291_v34 = vld [vmem:[%s10594_s1 + $0x920] sm:$0xff]  }
 0x112   :  { %7575 = vmatprep.subr.bf16.mxu1 %v8258_v39 }
 0x114   :  { %7554 = vmatpush3.bf16.msra.mxu0 %v8259_v42 }
 0x115   :  { %7576 = vmatpush3.bf16.msra.mxu1 %v8260_v45  ;;  %7555 = vmatprep.subr.bf16.mxu0 %v8261_v48  ;;  %v8295_v45 = vld [vmem:[%s10594_s1 + $0x928] sm:$0xff]  }
 0x116   :  { %v7253_v31 = vpop.f32.mrb[4].mxu0  ;;  %7577 = vmatprep.subr.bf16.mxu1 %v8262_v51  ;;  %v8299_v51 = vld [vmem:[%s10594_s1 + $0x930] sm:$0xff]  }
 0x117   :  { %v7275_v33 = vpop.f32.mrb[4].mxu1  ;;  %v7254_v35 = vpop.f32.mrb[5].mxu0 }
 0x118   :  { %v7255_v37 = vadd.f32 %v7254_v35, %v7253_v31  ;;  %v7276_v38 = vpop.f32.mrb[5].mxu1  ;;  %v7256_v41 = vpop.f32.mrb[6].mxu0  ;;  %7556 = vmatpush3.bf16.msra.mxu0 %v8263_v53  ;;  %v8290_v31 = vld [vmem:[%s10594_s1 + $0x9e0] sm:$0xff]   ;;  %v8301_v53 = vld [vmem:[%s10594_s1 + $0x978] sm:$0xff]  }
 0x119   :  { %v7277_v40 = vadd.f32 %v7276_v38, %v7275_v33  ;;  %v7278_v44 = vpop.f32.mrb[6].mxu1  ;;  %v7257_v46 = vpop.f32.mrb[7].mxu0  ;;  %7578 = vmatpush3.bf16.msra.mxu1 %v8264_v55  ;;  %7557 = vmatprep.subr.bf16.mxu0 %v8265_v57  ;;  %v8303_v55 = vld [vmem:[%s10594_s1 + $0x938] sm:$0xff]   ;;  %v33_v57 = vld [vmem:[%s10595_s0 + $0x90] sm:$0xff] }
 0x11a   :  { %v5179_v43 = vadd.f32 %v7255_v37, %v9406_v60  ;;  %v7258_v49 = vadd.f32 %v7257_v46, %v7256_v41  ;;  %v7279_v50 = vpop.f32.mrb[7].mxu1  ;;  %7579 = vmatprep.subr.bf16.mxu1 %v8266_v58  ;;  %v8268_v60 = vld [vmem:[%s10594_s1 + $0x8b0] sm:$0xff]   ;;  %v8292_v37 = vld [vmem:[%s10594_s1 + $0x9a0] sm:$0xff]  }
 0x11b   :  { %v7280_v52 = vadd.f32 %v7279_v50, %v7278_v44  ;;  %v8298_v50 = vld [vmem:[%s10594_s1 + $0x9f0] sm:$0xff]  }
 0x11c   :  { %v9513_v47 = vadd.f32 %v7277_v40, %v5179_v43  ;;  %v5182_v54 = vadd.f32 %v7258_v49, %v9414_v0  ;;  %7558 = vmatpush3.bf16.msra.mxu0 %v8267_v59  ;;  %v8272_v0 = vld [vmem:[%s10594_s1 + $0x8b8] sm:$0xff]   ;;  %v8293_v40 = vld [vmem:[%s10594_s1 + $0x968] sm:$0xff]   ;;  %v8297_v49 = vld [vmem:[%s10594_s1 + $0x970] sm:$0xff]  }
 0x11d   :  { %7580 = vmatpush3.bf16.msra.mxu1 %v8268_v60  ;;  %7559 = vmatprep.subr.bf16.mxu0 %v8269_v61  ;;  %v8294_v43 = vld [vmem:[%s10594_s1 + $0x9e8] sm:$0xff]   ;;  %v69_v58 = vld [vmem:[%s10595_s0 + $0x1b0] sm:$0xff]  ;;  %v34_v61 = vld [vmem:[%s10595_s0 + $0x98] sm:$0xff] }
 0x11e   :  { %v9528_v56 = vadd.f32 %v7280_v52, %v5182_v54  ;;  %7581 = vmatprep.subr.bf16.mxu1 %v8270_v62  ;;  %v8300_v52 = vld [vmem:[%s10594_s1 + $0x9b0] sm:$0xff]   ;;  %v8302_v54 = vld [vmem:[%s10594_s1 + $0x9f8] sm:$0xff]   ;;  %v6581_v59 = vcombine.low %v33_v57, %v69_v58  ;;  %v6582_v60 = vcombine.high %v33_v57, %v69_v58  ;;  %v8337_v57 = vld [vmem:[%s10594_s1 + $0xb40] sm:$0xff]  }
 0x11f   :  { %v70_v62 = vld [vmem:[%s10595_s0 + $0x1b8] sm:$0xff]  ;;  %v8338_v58 = vld [vmem:[%s10594_s1 + $0xbc0] sm:$0xff]  }
 0x120   :  { %7560 = vmatpush3.bf16.msra.mxu0 %v8271_v63  ;;  %v6583_v63 = vcombine.low %v34_v61, %v70_v62 }
 0x121   :  { %7582 = vmatpush3.bf16.msra.mxu1 %v8272_v0  ;;  %7589 = vmatprep.subr.bf16.mxu0 %v8273_v9  ;;  %v6584_v0 = vcombine.high %v34_v61, %v70_v62  ;;  %v8313_v9 = vld [vmem:[%s10594_s1 + $0xa50] sm:$0xff]   ;;  %v8341_v61 = vld [vmem:[%s10594_s1 + $0xb48] sm:$0xff]  }
 0x122   :  { %7611 = vmatprep.subr.bf16.mxu1 %v8274_v10  ;;  %v8314_v10 = vld [vmem:[%s10594_s1 + $0xad0] sm:$0xff]   ;;  %v8342_v62 = vld [vmem:[%s10594_s1 + $0xbc8] sm:$0xff]  }
 0x123   :  { %5751 = vmatmul.mubr.bf16.vlgmr.msra.gmra.mrb[32].mxu0 %v6577_v4  ;;  %v8308_v4 = vld [vmem:[%s10594_s1 + $0xa80] sm:$0xff]  }
 0x124   :  { %5792 = vmatmul.mubr.bf16.vlgmr.msra.gmra.mrb[32].mxu1 %v6579_v7  ;;  %7590 = vmatpush3.bf16.msra.mxu0 %v8275_v11  ;;  %v8311_v7 = vld [vmem:[%s10594_s1 + $0xa08] sm:$0xff]   ;;  %v8315_v11 = vld [vmem:[%s10594_s1 + $0xa10] sm:$0xff]  }
 0x125   :  { %7612 = vmatpush3.bf16.msra.mxu1 %v8276_v12  ;;  %7591 = vmatprep.subr.bf16.mxu0 %v8277_v13  ;;  %v8316_v12 = vld [vmem:[%s10594_s1 + $0xa90] sm:$0xff]   ;;  %v8317_v13 = vld [vmem:[%s10594_s1 + $0xa58] sm:$0xff]  }
 0x126   :  { %7613 = vmatprep.subr.bf16.mxu1 %v8278_v14  ;;  %5832 = vmatprep.mubr.bf16.mxu0 %v6582_v60  ;;  %v8318_v14 = vld [vmem:[%s10594_s1 + $0xad8] sm:$0xff]   ;;  %v8340_v60 = vld [vmem:[%s10594_s1 + $0xb80] sm:$0xff]  }
 0x127   :  { %5873 = vmatprep.mubr.bf16.mxu1 %v6584_v0  ;;  %v8344_v0 = vld [vmem:[%s10594_s1 + $0xb88] sm:$0xff]  }
 0x128   :  { %7592 = vmatpush3.bf16.msra.mxu0 %v8279_v15 }
 0x129   :  { %7614 = vmatpush3.bf16.msra.mxu1 %v8280_v16  ;;  %7593 = vmatprep.subr.bf16.mxu0 %v8281_v17  ;;  %v8319_v16 = vld [vmem:[%s10594_s1 + $0xa18] sm:$0xff]  }
 0x12a   :  { %7615 = vmatprep.subr.bf16.mxu1 %v8282_v18  ;;  %v8320_v18 = vld [vmem:[%s10594_s1 + $0xa98] sm:$0xff]  }
 0x12c   :  { %7594 = vmatpush3.bf16.msra.mxu0 %v8283_v19 }
 0x12d   :  { %7616 = vmatpush3.bf16.msra.mxu1 %v8284_v20  ;;  %7595 = vmatprep.subr.bf16.mxu0 %v8285_v21  ;;  %v8321_v20 = vld [vmem:[%s10594_s1 + $0xa60] sm:$0xff]  }
 0x12e   :  { %7617 = vmatprep.subr.bf16.mxu1 %v8286_v22 }
 0x130   :  { %7596 = vmatpush3.bf16.msra.mxu0 %v8287_v24 }
 0x131   :  { %7618 = vmatpush3.bf16.msra.mxu1 %v8288_v26  ;;  %7597 = vmatprep.subr.bf16.mxu0 %v8289_v28  ;;  %v8323_v26 = vld [vmem:[%s10594_s1 + $0xa20] sm:$0xff]  }
 0x132   :  { %7619 = vmatprep.subr.bf16.mxu1 %v8290_v31 }
 0x134   :  { %7598 = vmatpush3.bf16.msra.mxu0 %v8291_v34 }
 0x135   :  { %7620 = vmatpush3.bf16.msra.mxu1 %v8292_v37  ;;  %7599 = vmatprep.subr.bf16.mxu0 %v8293_v40  ;;  %v8327_v37 = vld [vmem:[%s10594_s1 + $0xa28] sm:$0xff]  }
 0x136   :  { %v7297_v23 = vpop.f32.mrb[8].mxu0  ;;  %7621 = vmatprep.subr.bf16.mxu1 %v8294_v43  ;;  %v8331_v43 = vld [vmem:[%s10594_s1 + $0xa30] sm:$0xff]  }
 0x137   :  { %v7319_v25 = vpop.f32.mrb[8].mxu1  ;;  %v7298_v27 = vpop.f32.mrb[9].mxu0 }
 0x138   :  { %v7299_v29 = vadd.f32 %v7298_v27, %v7297_v23  ;;  %v7320_v30 = vpop.f32.mrb[9].mxu1  ;;  %v7300_v33 = vpop.f32.mrb[10].mxu0  ;;  %7600 = vmatpush3.bf16.msra.mxu0 %v8295_v45  ;;  %v8322_v23 = vld [vmem:[%s10594_s1 + $0xae0] sm:$0xff]   ;;  %v8333_v45 = vld [vmem:[%s10594_s1 + $0xa78] sm:$0xff]  }
 0x139   :  { %v7321_v32 = vadd.f32 %v7320_v30, %v7319_v25  ;;  %v7322_v36 = vpop.f32.mrb[10].mxu1  ;;  %v7301_v38 = vpop.f32.mrb[11].mxu0  ;;  %7601 = vmatprep.subr.bf16.mxu0 %v8297_v49  ;;  %v35_v49 = vld [vmem:[%s10595_s0 + $0xa0] sm:$0xff] }
 0x13a   :  { %v5261_v35 = vadd.f32 %v7299_v29, %v9513_v47  ;;  %v7302_v41 = vadd.f32 %v7301_v38, %v7300_v33  ;;  %v7323_v42 = vpop.f32.mrb[11].mxu1  ;;  %v8296_v47 = vld [vmem:[%s10594_s1 + $0x9a8] sm:$0xff]   ;;  %v8324_v29 = vld [vmem:[%s10594_s1 + $0xaa0] sm:$0xff]  }
 0x13b   :  { %v7324_v44 = vadd.f32 %v7323_v42, %v7322_v36  ;;  %7622 = vmatpush3.bf16.msra.mxu1 %v8296_v47  ;;  %v8330_v42 = vld [vmem:[%s10594_s1 + $0xaf0] sm:$0xff]   ;;  %v8335_v47 = vld [vmem:[%s10594_s1 + $0xa38] sm:$0xff]  }
 0x13c   :  { %v9627_v39 = vadd.f32 %v7321_v32, %v5261_v35  ;;  %v5264_v46 = vadd.f32 %v7302_v41, %v9528_v56  ;;  %7623 = vmatprep.subr.bf16.mxu1 %v8298_v50  ;;  %7602 = vmatpush3.bf16.msra.mxu0 %v8299_v51  ;;  %v8304_v56 = vld [vmem:[%s10594_s1 + $0x9b8] sm:$0xff]   ;;  %v8325_v32 = vld [vmem:[%s10594_s1 + $0xa68] sm:$0xff]   ;;  %v8329_v41 = vld [vmem:[%s10594_s1 + $0xa70] sm:$0xff]  }
 0x13d   :  { %7603 = vmatprep.subr.bf16.mxu0 %v8301_v53  ;;  %v8326_v35 = vld [vmem:[%s10594_s1 + $0xae8] sm:$0xff]   ;;  %v71_v50 = vld [vmem:[%s10595_s0 + $0x1c0] sm:$0xff] }
 0x13e   :  { %v9642_v48 = vadd.f32 %v7324_v44, %v5264_v46  ;;  %v8332_v44 = vld [vmem:[%s10594_s1 + $0xab0] sm:$0xff]   ;;  %v8334_v46 = vld [vmem:[%s10594_s1 + $0xaf8] sm:$0xff]   ;;  %v36_v51 = vld [vmem:[%s10595_s0 + $0xa8] sm:$0xff]  ;;  %v6585_v53 = vcombine.low %v35_v49, %v71_v50 }
 0x13f   :  { %7624 = vmatpush3.bf16.msra.mxu1 %v8300_v52  ;;  %v72_v52 = vld [vmem:[%s10595_s0 + $0x1c8] sm:$0xff] }
 0x140   :  { %7625 = vmatprep.subr.bf16.mxu1 %v8302_v54  ;;  %7604 = vmatpush3.bf16.msra.mxu0 %v8303_v55  ;;  %v6586_v54 = vcombine.high %v35_v49, %v71_v50  ;;  %v6587_v55 = vcombine.low %v36_v51, %v72_v52  ;;  %v8369_v49 = vld [vmem:[%s10594_s1 + $0xc40] sm:$0xff]  }
 0x141   :  { %7633 = vmatprep.subr.bf16.mxu0 %v8305_v1  ;;  %v8345_v1 = vld [vmem:[%s10594_s1 + $0xb50] sm:$0xff]   ;;  %v8370_v50 = vld [vmem:[%s10594_s1 + $0xcc0] sm:$0xff]  }
 0x143   :  { %7626 = vmatpush3.bf16.msra.mxu1 %v8304_v56  ;;  %5833 = vmatmul.mubr.bf16.vlgmr.msra.gmra.mrb[36].mxu0 %v6581_v59  ;;  %v6588_v56 = vcombine.high %v36_v51, %v72_v52  ;;  %v8339_v59 = vld [vmem:[%s10594_s1 + $0xb00] sm:$0xff]  }
 0x144   :  { %7655 = vmatprep.subr.bf16.mxu1 %v8306_v2  ;;  %7634 = vmatpush3.bf16.msra.mxu0 %v8307_v3  ;;  %v8346_v2 = vld [vmem:[%s10594_s1 + $0xbd0] sm:$0xff]   ;;  %v8371_v51 = vld [vmem:[%s10594_s1 + $0xc00] sm:$0xff]  }
 0x145   :  { %7635 = vmatprep.subr.bf16.mxu0 %v8309_v5  ;;  %5914 = vmatprep.mubr.bf16.mxu0 %v6586_v54  ;;  %v8347_v3 = vld [vmem:[%s10594_s1 + $0xb10] sm:$0xff]   ;;  %v8349_v5 = vld [vmem:[%s10594_s1 + $0xb58] sm:$0xff]   ;;  %v8372_v52 = vld [vmem:[%s10594_s1 + $0xc80] sm:$0xff]  }
 0x146   :  { %5874 = vmatmul.mubr.bf16.vlgmr.msra.gmra.mrb[36].mxu1 %v6583_v63  ;;  %v8343_v63 = vld [vmem:[%s10594_s1 + $0xb08] sm:$0xff]  }
 0x147   :  { %7656 = vmatpush3.bf16.msra.mxu1 %v8308_v4  ;;  %5955 = vmatprep.mubr.bf16.mxu1 %v6588_v56  ;;  %v8348_v4 = vld [vmem:[%s10594_s1 + $0xb90] sm:$0xff]   ;;  %v8374_v54 = vld [vmem:[%s10594_s1 + $0xcc8] sm:$0xff]  }
 0x148   :  { %7657 = vmatprep.subr.bf16.mxu1 %v8310_v6  ;;  %7636 = vmatpush3.bf16.msra.mxu0 %v8311_v7  ;;  %v8350_v6 = vld [vmem:[%s10594_s1 + $0xbd8] sm:$0xff]   ;;  %v8376_v56 = vld [vmem:[%s10594_s1 + $0xc88] sm:$0xff]  }
 0x149   :  { %7637 = vmatprep.subr.bf16.mxu0 %v8313_v9 }
 0x14b   :  { %7658 = vmatpush3.bf16.msra.mxu1 %v8312_v8  ;;  %v8351_v8 = vld [vmem:[%s10594_s1 + $0xb18] sm:$0xff]  }
 0x14c   :  { %7659 = vmatprep.subr.bf16.mxu1 %v8314_v10  ;;  %7638 = vmatpush3.bf16.msra.mxu0 %v8315_v11  ;;  %v8352_v10 = vld [vmem:[%s10594_s1 + $0xb98] sm:$0xff]  }
 0x14d   :  { %7639 = vmatprep.subr.bf16.mxu0 %v8317_v13 }
 0x14f   :  { %7660 = vmatpush3.bf16.msra.mxu1 %v8316_v12  ;;  %v8353_v12 = vld [vmem:[%s10594_s1 + $0xb60] sm:$0xff]  }
 0x150   :  { %7661 = vmatprep.subr.bf16.mxu1 %v8318_v14  ;;  %7640 = vmatpush3.bf16.msra.mxu0 %v8319_v16 }
 0x151   :  { %7641 = vmatprep.subr.bf16.mxu0 %v8321_v20 }
 0x153   :  { %7662 = vmatpush3.bf16.msra.mxu1 %v8320_v18  ;;  %v8355_v18 = vld [vmem:[%s10594_s1 + $0xb20] sm:$0xff]  }
 0x154   :  { %7663 = vmatprep.subr.bf16.mxu1 %v8322_v23  ;;  %7642 = vmatpush3.bf16.msra.mxu0 %v8323_v26 }
 0x155   :  { %7643 = vmatprep.subr.bf16.mxu0 %v8325_v32 }
 0x156   :  { %v7341_v15 = vpop.f32.mrb[12].mxu0 }
 0x157   :  { %v7363_v17 = vpop.f32.mrb[12].mxu1  ;;  %v7342_v19 = vpop.f32.mrb[13].mxu0  ;;  %7664 = vmatpush3.bf16.msra.mxu1 %v8324_v29  ;;  %v8359_v29 = vld [vmem:[%s10594_s1 + $0xb28] sm:$0xff]  }
 0x158   :  { %v7343_v21 = vadd.f32 %v7342_v19, %v7341_v15  ;;  %v7364_v22 = vpop.f32.mrb[13].mxu1  ;;  %v7344_v25 = vpop.f32.mrb[14].mxu0  ;;  %7665 = vmatprep.subr.bf16.mxu1 %v8326_v35  ;;  %7644 = vmatpush3.bf16.msra.mxu0 %v8327_v37  ;;  %v8354_v15 = vld [vmem:[%s10594_s1 + $0xbe0] sm:$0xff]   ;;  %v8363_v35 = vld [vmem:[%s10594_s1 + $0xb30] sm:$0xff]   ;;  %v8365_v37 = vld [vmem:[%s10594_s1 + $0xb78] sm:$0xff]  }
 0x159   :  { %v7365_v24 = vadd.f32 %v7364_v22, %v7363_v17  ;;  %v7366_v28 = vpop.f32.mrb[14].mxu1  ;;  %v7345_v30 = vpop.f32.mrb[15].mxu0  ;;  %7645 = vmatprep.subr.bf16.mxu0 %v8329_v41  ;;  %v37_v41 = vld [vmem:[%s10595_s0 + $0xb0] sm:$0xff] }
 0x15a   :  { %v5343_v27 = vadd.f32 %v7343_v21, %v9627_v39  ;;  %v7346_v33 = vadd.f32 %v7345_v30, %v7344_v25  ;;  %v7367_v34 = vpop.f32.mrb[15].mxu1  ;;  %v8328_v39 = vld [vmem:[%s10594_s1 + $0xaa8] sm:$0xff]   ;;  %v8356_v21 = vld [vmem:[%s10594_s1 + $0xba0] sm:$0xff]  }
 0x15b   :  { %v7368_v36 = vadd.f32 %v7367_v34, %v7366_v28  ;;  %7666 = vmatpush3.bf16.msra.mxu1 %v8328_v39  ;;  %v8362_v34 = vld [vmem:[%s10594_s1 + $0xbf0] sm:$0xff]   ;;  %v8367_v39 = vld [vmem:[%s10594_s1 + $0xb38] sm:$0xff]  }
 0x15c   :  { %v9741_v31 = vadd.f32 %v7365_v24, %v5343_v27  ;;  %v5346_v38 = vadd.f32 %v7346_v33, %v9642_v48  ;;  %7667 = vmatprep.subr.bf16.mxu1 %v8330_v42  ;;  %7646 = vmatpush3.bf16.msra.mxu0 %v8331_v43  ;;  %v8336_v48 = vld [vmem:[%s10594_s1 + $0xab8] sm:$0xff]   ;;  %v8357_v24 = vld [vmem:[%s10594_s1 + $0xb68] sm:$0xff]   ;;  %v8361_v33 = vld [vmem:[%s10594_s1 + $0xb70] sm:$0xff]  }
 0x15d   :  { %7647 = vmatprep.subr.bf16.mxu0 %v8333_v45  ;;  %v8358_v27 = vld [vmem:[%s10594_s1 + $0xbe8] sm:$0xff]   ;;  %v73_v42 = vld [vmem:[%s10595_s0 + $0x1d0] sm:$0xff]  ;;  %v38_v43 = vld [vmem:[%s10595_s0 + $0xb8] sm:$0xff] }
 0x15e   :  { %v9756_v40 = vadd.f32 %v7368_v36, %v5346_v38  ;;  %v8364_v36 = vld [vmem:[%s10594_s1 + $0xbb0] sm:$0xff]   ;;  %v8366_v38 = vld [vmem:[%s10594_s1 + $0xbf8] sm:$0xff]   ;;  %v6590_v45 = vcombine.high %v37_v41, %v73_v42 }
 0x15f   :  { %7668 = vmatpush3.bf16.msra.mxu1 %v8332_v44  ;;  %v6589_v44 = vcombine.low %v37_v41, %v73_v42  ;;  %v8401_v41 = vld [vmem:[%s10594_s1 + $0xd40] sm:$0xff]  }
 0x160   :  { %7669 = vmatprep.subr.bf16.mxu1 %v8334_v46  ;;  %7648 = vmatpush3.bf16.msra.mxu0 %v8335_v47  ;;  %v74_v46 = vld [vmem:[%s10595_s0 + $0x1d8] sm:$0xff]  ;;  %v8402_v42 = vld [vmem:[%s10594_s1 + $0xdc0] sm:$0xff]  }
 0x161   :  { %7677 = vmatprep.subr.bf16.mxu0 %v8337_v57  ;;  %v6591_v47 = vcombine.low %v38_v43, %v74_v46  ;;  %v8377_v57 = vld [vmem:[%s10594_s1 + $0xc50] sm:$0xff]  }
 0x163   :  { %7670 = vmatpush3.bf16.msra.mxu1 %v8336_v48  ;;  %5915 = vmatmul.mubr.bf16.vlgmr.msra.gmra.mrb[40].mxu0 %v6585_v53  ;;  %v6592_v48 = vcombine.high %v38_v43, %v74_v46  ;;  %v8373_v53 = vld [vmem:[%s10594_s1 + $0xc48] sm:$0xff]   ;;  %v8403_v43 = vld [vmem:[%s10594_s1 + $0xd00] sm:$0xff]  }
 0x164   :  { %7699 = vmatprep.subr.bf16.mxu1 %v8338_v58  ;;  %7678 = vmatpush3.bf16.msra.mxu0 %v8339_v59  ;;  %v8378_v58 = vld [vmem:[%s10594_s1 + $0xcd0] sm:$0xff]   ;;  %v8406_v46 = vld [vmem:[%s10594_s1 + $0xdc8] sm:$0xff]  }
 0x165   :  { %7679 = vmatprep.subr.bf16.mxu0 %v8341_v61  ;;  %5996 = vmatprep.mubr.bf16.mxu0 %v6590_v45  ;;  %v8379_v59 = vld [vmem:[%s10594_s1 + $0xc10] sm:$0xff]   ;;  %v8381_v61 = vld [vmem:[%s10594_s1 + $0xc58] sm:$0xff]   ;;  %v8405_v45 = vld [vmem:[%s10594_s1 + $0xd48] sm:$0xff]  }
 0x166   :  { %5956 = vmatmul.mubr.bf16.vlgmr.msra.gmra.mrb[40].mxu1 %v6587_v55  ;;  %v8375_v55 = vld [vmem:[%s10594_s1 + $0xc08] sm:$0xff]  }
 0x167   :  { %7700 = vmatpush3.bf16.msra.mxu1 %v8340_v60  ;;  %6037 = vmatprep.mubr.bf16.mxu1 %v6592_v48  ;;  %v8380_v60 = vld [vmem:[%s10594_s1 + $0xc90] sm:$0xff]   ;;  %v8408_v48 = vld [vmem:[%s10594_s1 + $0xd88] sm:$0xff]  }
 0x168   :  { %7701 = vmatprep.subr.bf16.mxu1 %v8342_v62  ;;  %7680 = vmatpush3.bf16.msra.mxu0 %v8343_v63  ;;  %v8382_v62 = vld [vmem:[%s10594_s1 + $0xcd8] sm:$0xff]  }
 0x169   :  { %7681 = vmatprep.subr.bf16.mxu0 %v8345_v1 }
 0x16b   :  { %7702 = vmatpush3.bf16.msra.mxu1 %v8344_v0  ;;  %v8383_v0 = vld [vmem:[%s10594_s1 + $0xc18] sm:$0xff]  }
 0x16c   :  { %7703 = vmatprep.subr.bf16.mxu1 %v8346_v2  ;;  %7682 = vmatpush3.bf16.msra.mxu0 %v8347_v3  ;;  %v8384_v2 = vld [vmem:[%s10594_s1 + $0xc98] sm:$0xff]  }
 0x16d   :  { %7683 = vmatprep.subr.bf16.mxu0 %v8349_v5 }
 0x16f   :  { %7704 = vmatpush3.bf16.msra.mxu1 %v8348_v4  ;;  %v8385_v4 = vld [vmem:[%s10594_s1 + $0xc60] sm:$0xff]  }
 0x170   :  { %7705 = vmatprep.subr.bf16.mxu1 %v8350_v6  ;;  %7684 = vmatpush3.bf16.msra.mxu0 %v8351_v8 }
 0x171   :  { %7685 = vmatprep.subr.bf16.mxu0 %v8353_v12 }
 0x173   :  { %7706 = vmatpush3.bf16.msra.mxu1 %v8352_v10  ;;  %v8387_v10 = vld [vmem:[%s10594_s1 + $0xc20] sm:$0xff]  }
 0x174   :  { %7707 = vmatprep.subr.bf16.mxu1 %v8354_v15  ;;  %7686 = vmatpush3.bf16.msra.mxu0 %v8355_v18 }
 0x175   :  { %7687 = vmatprep.subr.bf16.mxu0 %v8357_v24 }
 0x176   :  { %v7385_v7 = vpop.f32.mrb[16].mxu0 }
 0x177   :  { %v7407_v9 = vpop.f32.mrb[16].mxu1  ;;  %v7386_v11 = vpop.f32.mrb[17].mxu0  ;;  %7708 = vmatpush3.bf16.msra.mxu1 %v8356_v21  ;;  %v8391_v21 = vld [vmem:[%s10594_s1 + $0xc28] sm:$0xff]  }
 0x178   :  { %v7387_v13 = vadd.f32 %v7386_v11, %v7385_v7  ;;  %v7408_v14 = vpop.f32.mrb[17].mxu1  ;;  %v7388_v17 = vpop.f32.mrb[18].mxu0  ;;  %7709 = vmatprep.subr.bf16.mxu1 %v8358_v27  ;;  %7688 = vmatpush3.bf16.msra.mxu0 %v8359_v29  ;;  %v8386_v7 = vld [vmem:[%s10594_s1 + $0xce0] sm:$0xff]   ;;  %v8395_v27 = vld [vmem:[%s10594_s1 + $0xc30] sm:$0xff]   ;;  %v8397_v29 = vld [vmem:[%s10594_s1 + $0xc78] sm:$0xff]  }
 0x179   :  { %v7409_v16 = vadd.f32 %v7408_v14, %v7407_v9  ;;  %v7410_v20 = vpop.f32.mrb[18].mxu1  ;;  %v7389_v22 = vpop.f32.mrb[19].mxu0  ;;  %7689 = vmatprep.subr.bf16.mxu0 %v8361_v33  ;;  %v39_v33 = vld [vmem:[%s10595_s0 + $0xc0] sm:$0xff] }
 0x17a   :  { %v5425_v19 = vadd.f32 %v7387_v13, %v9741_v31  ;;  %v7390_v25 = vadd.f32 %v7389_v22, %v7388_v17  ;;  %v7411_v26 = vpop.f32.mrb[19].mxu1  ;;  %v8360_v31 = vld [vmem:[%s10594_s1 + $0xba8] sm:$0xff]   ;;  %v8388_v13 = vld [vmem:[%s10594_s1 + $0xca0] sm:$0xff]  }
 0x17b   :  { %v7412_v28 = vadd.f32 %v7411_v26, %v7410_v20  ;;  %7710 = vmatpush3.bf16.msra.mxu1 %v8360_v31  ;;  %v8394_v26 = vld [vmem:[%s10594_s1 + $0xcf0] sm:$0xff]   ;;  %v8399_v31 = vld [vmem:[%s10594_s1 + $0xc38] sm:$0xff]  }
 0x17c   :  { %v9855_v23 = vadd.f32 %v7409_v16, %v5425_v19  ;;  %v5428_v30 = vadd.f32 %v7390_v25, %v9756_v40  ;;  %7711 = vmatprep.subr.bf16.mxu1 %v8362_v34  ;;  %7690 = vmatpush3.bf16.msra.mxu0 %v8363_v35  ;;  %v8368_v40 = vld [vmem:[%s10594_s1 + $0xbb8] sm:$0xff]   ;;  %v8389_v16 = vld [vmem:[%s10594_s1 + $0xc68] sm:$0xff]   ;;  %v8393_v25 = vld [vmem:[%s10594_s1 + $0xc70] sm:$0xff]  }
 0x17d   :  { %7691 = vmatprep.subr.bf16.mxu0 %v8365_v37  ;;  %v8390_v19 = vld [vmem:[%s10594_s1 + $0xce8] sm:$0xff]   ;;  %v75_v34 = vld [vmem:[%s10595_s0 + $0x1e0] sm:$0xff] }
 0x17e   :  { %v9870_v32 = vadd.f32 %v7412_v28, %v5428_v30  ;;  %v8396_v28 = vld [vmem:[%s10594_s1 + $0xcb0] sm:$0xff]   ;;  %v8398_v30 = vld [vmem:[%s10594_s1 + $0xcf8] sm:$0xff]   ;;  %v6593_v35 = vcombine.low %v39_v33, %v75_v34  ;;  %v40_v37 = vld [vmem:[%s10595_s0 + $0xc8] sm:$0xff] }
 0x17f   :  { %7712 = vmatpush3.bf16.msra.mxu1 %v8364_v36  ;;  %v6594_v36 = vcombine.high %v39_v33, %v75_v34  ;;  %v8433_v33 = vld [vmem:[%s10594_s1 + $0xe40] sm:$0xff]  }
 0x180   :  { %7713 = vmatprep.subr.bf16.mxu1 %v8366_v38  ;;  %7692 = vmatpush3.bf16.msra.mxu0 %v8367_v39  ;;  %v76_v38 = vld [vmem:[%s10595_s0 + $0x1e8] sm:$0xff]  ;;  %v8434_v34 = vld [vmem:[%s10594_s1 + $0xec0] sm:$0xff]  }
 0x181   :  { %7721 = vmatprep.subr.bf16.mxu0 %v8369_v49  ;;  %v6595_v39 = vcombine.low %v40_v37, %v76_v38  ;;  %v8409_v49 = vld [vmem:[%s10594_s1 + $0xd50] sm:$0xff]  }
 0x183   :  { %7714 = vmatpush3.bf16.msra.mxu1 %v8368_v40  ;;  %5997 = vmatmul.mubr.bf16.vlgmr.msra.gmra.mrb[44].mxu0 %v6589_v44  ;;  %v6596_v40 = vcombine.high %v40_v37, %v76_v38  ;;  %v8404_v44 = vld [vmem:[%s10594_s1 + $0xd80] sm:$0xff]   ;;  %v8437_v37 = vld [vmem:[%s10594_s1 + $0xe48] sm:$0xff]  }
 0x184   :  { %7743 = vmatprep.subr.bf16.mxu1 %v8370_v50  ;;  %7722 = vmatpush3.bf16.msra.mxu0 %v8371_v51  ;;  %v8410_v50 = vld [vmem:[%s10594_s1 + $0xdd0] sm:$0xff]   ;;  %v8438_v38 = vld [vmem:[%s10594_s1 + $0xec8] sm:$0xff]  }
 0x185   :  { %7723 = vmatprep.subr.bf16.mxu0 %v8373_v53  ;;  %6078 = vmatprep.mubr.bf16.mxu0 %v6594_v36  ;;  %v8411_v51 = vld [vmem:[%s10594_s1 + $0xd10] sm:$0xff]   ;;  %v8413_v53 = vld [vmem:[%s10594_s1 + $0xd58] sm:$0xff]   ;;  %v8436_v36 = vld [vmem:[%s10594_s1 + $0xe80] sm:$0xff]  }
 0x186   :  { %6038 = vmatmul.mubr.bf16.vlgmr.msra.gmra.mrb[44].mxu1 %v6591_v47  ;;  %v8407_v47 = vld [vmem:[%s10594_s1 + $0xd08] sm:$0xff]  }
 0x187   :  { %7744 = vmatpush3.bf16.msra.mxu1 %v8372_v52  ;;  %6119 = vmatprep.mubr.bf16.mxu1 %v6596_v40  ;;  %v8412_v52 = vld [vmem:[%s10594_s1 + $0xd90] sm:$0xff]   ;;  %v8440_v40 = vld [vmem:[%s10594_s1 + $0xe88] sm:$0xff]  }
 0x188   :  { %7745 = vmatprep.subr.bf16.mxu1 %v8374_v54  ;;  %7724 = vmatpush3.bf16.msra.mxu0 %v8375_v55  ;;  %v8414_v54 = vld [vmem:[%s10594_s1 + $0xdd8] sm:$0xff]  }
 0x189   :  { %7725 = vmatprep.subr.bf16.mxu0 %v8377_v57 }
 0x18b   :  { %7746 = vmatpush3.bf16.msra.mxu1 %v8376_v56  ;;  %v8415_v56 = vld [vmem:[%s10594_s1 + $0xd18] sm:$0xff]  }
 0x18c   :  { %7747 = vmatprep.subr.bf16.mxu1 %v8378_v58  ;;  %7726 = vmatpush3.bf16.msra.mxu0 %v8379_v59  ;;  %v8416_v58 = vld [vmem:[%s10594_s1 + $0xd98] sm:$0xff]  }
 0x18d   :  { %7727 = vmatprep.subr.bf16.mxu0 %v8381_v61 }
 0x18f   :  { %7748 = vmatpush3.bf16.msra.mxu1 %v8380_v60  ;;  %v8417_v60 = vld [vmem:[%s10594_s1 + $0xd60] sm:$0xff]  }
 0x190   :  { %7749 = vmatprep.subr.bf16.mxu1 %v8382_v62  ;;  %7728 = vmatpush3.bf16.msra.mxu0 %v8383_v0 }
 0x191   :  { %7729 = vmatprep.subr.bf16.mxu0 %v8385_v4 }
 0x193   :  { %7750 = vmatpush3.bf16.msra.mxu1 %v8384_v2  ;;  %v8419_v2 = vld [vmem:[%s10594_s1 + $0xd20] sm:$0xff]  }
 0x194   :  { %7751 = vmatprep.subr.bf16.mxu1 %v8386_v7  ;;  %7730 = vmatpush3.bf16.msra.mxu0 %v8387_v10 }
 0x195   :  { %7731 = vmatprep.subr.bf16.mxu0 %v8389_v16 }
 0x196   :  { %v7429_v63 = vpop.f32.mrb[20].mxu0 }
 0x197   :  { %v7451_v1 = vpop.f32.mrb[20].mxu1  ;;  %v7430_v3 = vpop.f32.mrb[21].mxu0  ;;  %7752 = vmatpush3.bf16.msra.mxu1 %v8388_v13  ;;  %v8423_v13 = vld [vmem:[%s10594_s1 + $0xd28] sm:$0xff]  }
 0x198   :  { %v7431_v5 = vadd.f32 %v7430_v3, %v7429_v63  ;;  %v7452_v6 = vpop.f32.mrb[21].mxu1  ;;  %v7432_v9 = vpop.f32.mrb[22].mxu0  ;;  %7753 = vmatprep.subr.bf16.mxu1 %v8390_v19  ;;  %7732 = vmatpush3.bf16.msra.mxu0 %v8391_v21  ;;  %v8418_v63 = vld [vmem:[%s10594_s1 + $0xde0] sm:$0xff]   ;;  %v8427_v19 = vld [vmem:[%s10594_s1 + $0xd30] sm:$0xff]   ;;  %v8429_v21 = vld [vmem:[%s10594_s1 + $0xd78] sm:$0xff]  }
 0x199   :  { %v7453_v8 = vadd.f32 %v7452_v6, %v7451_v1  ;;  %v7454_v12 = vpop.f32.mrb[22].mxu1  ;;  %v7433_v14 = vpop.f32.mrb[23].mxu0  ;;  %7733 = vmatprep.subr.bf16.mxu0 %v8393_v25  ;;  %v41_v25 = vld [vmem:[%s10595_s0 + $0xd0] sm:$0xff] }
 0x19a   :  { %v5507_v11 = vadd.f32 %v7431_v5, %v9855_v23  ;;  %v7434_v17 = vadd.f32 %v7433_v14, %v7432_v9  ;;  %v7455_v18 = vpop.f32.mrb[23].mxu1  ;;  %v8392_v23 = vld [vmem:[%s10594_s1 + $0xca8] sm:$0xff]   ;;  %v8420_v5 = vld [vmem:[%s10594_s1 + $0xda0] sm:$0xff]  }
 0x19b   :  { %v7456_v20 = vadd.f32 %v7455_v18, %v7454_v12  ;;  %7754 = vmatpush3.bf16.msra.mxu1 %v8392_v23  ;;  %v8426_v18 = vld [vmem:[%s10594_s1 + $0xdf0] sm:$0xff]   ;;  %v8431_v23 = vld [vmem:[%s10594_s1 + $0xd38] sm:$0xff]  }
 0x19c   :  { %v9969_v15 = vadd.f32 %v7453_v8, %v5507_v11  ;;  %v5510_v22 = vadd.f32 %v7434_v17, %v9870_v32  ;;  %7755 = vmatprep.subr.bf16.mxu1 %v8394_v26  ;;  %7734 = vmatpush3.bf16.msra.mxu0 %v8395_v27  ;;  %v8400_v32 = vld [vmem:[%s10594_s1 + $0xcb8] sm:$0xff]   ;;  %v8421_v8 = vld [vmem:[%s10594_s1 + $0xd68] sm:$0xff]   ;;  %v8425_v17 = vld [vmem:[%s10594_s1 + $0xd70] sm:$0xff]  }
 0x19d   :  { %7735 = vmatprep.subr.bf16.mxu0 %v8397_v29  ;;  %v8422_v11 = vld [vmem:[%s10594_s1 + $0xde8] sm:$0xff]   ;;  %v77_v26 = vld [vmem:[%s10595_s0 + $0x1f0] sm:$0xff]  ;;  %v42_v27 = vld [vmem:[%s10595_s0 + $0xd8] sm:$0xff] }
 0x19e   :  { %v9984_v24 = vadd.f32 %v7456_v20, %v5510_v22  ;;  %v8428_v20 = vld [vmem:[%s10594_s1 + $0xdb0] sm:$0xff]   ;;  %v8430_v22 = vld [vmem:[%s10594_s1 + $0xdf8] sm:$0xff]   ;;  %v6597_v29 = vcombine.low %v41_v25, %v77_v26 }
 0x19f   :  { %7756 = vmatpush3.bf16.msra.mxu1 %v8396_v28  ;;  %v78_v28 = vld [vmem:[%s10595_s0 + $0x1f8] sm:$0xff] }
 0x1a0   :  { %7757 = vmatprep.subr.bf16.mxu1 %v8398_v30  ;;  %7736 = vmatpush3.bf16.msra.mxu0 %v8399_v31  ;;  %v6598_v30 = vcombine.high %v41_v25, %v77_v26  ;;  %v6599_v31 = vcombine.low %v42_v27, %v78_v28  ;;  %v8465_v25 = vld [vmem:[%s10594_s1 + $0xf40] sm:$0xff]  }
 0x1a1   :  { %7765 = vmatprep.subr.bf16.mxu0 %v8401_v41  ;;  %v8441_v41 = vld [vmem:[%s10594_s1 + $0xe50] sm:$0xff]   ;;  %v8466_v26 = vld [vmem:[%s10594_s1 + $0xfc0] sm:$0xff]  }
 0x1a3   :  { %7758 = vmatpush3.bf16.msra.mxu1 %v8400_v32  ;;  %6079 = vmatmul.mubr.bf16.vlgmr.msra.gmra.mrb[48].mxu0 %v6593_v35  ;;  %v6600_v32 = vcombine.high %v42_v27, %v78_v28  ;;  %v8435_v35 = vld [vmem:[%s10594_s1 + $0xe00] sm:$0xff]  }
 0x1a4   :  { %7787 = vmatprep.subr.bf16.mxu1 %v8402_v42  ;;  %7766 = vmatpush3.bf16.msra.mxu0 %v8403_v43  ;;  %v8442_v42 = vld [vmem:[%s10594_s1 + $0xed0] sm:$0xff]   ;;  %v8467_v27 = vld [vmem:[%s10594_s1 + $0xf00] sm:$0xff]  }
 0x1a5   :  { %7767 = vmatprep.subr.bf16.mxu0 %v8405_v45  ;;  %6160 = vmatprep.mubr.bf16.mxu0 %v6598_v30  ;;  %v8443_v43 = vld [vmem:[%s10594_s1 + $0xe10] sm:$0xff]   ;;  %v8445_v45 = vld [vmem:[%s10594_s1 + $0xe58] sm:$0xff]   ;;  %v8468_v28 = vld [vmem:[%s10594_s1 + $0xf80] sm:$0xff]  }
 0x1a6   :  { %6120 = vmatmul.mubr.bf16.vlgmr.msra.gmra.mrb[48].mxu1 %v6595_v39  ;;  %v8439_v39 = vld [vmem:[%s10594_s1 + $0xe08] sm:$0xff]  }
 0x1a7   :  { %7788 = vmatpush3.bf16.msra.mxu1 %v8404_v44  ;;  %6201 = vmatprep.mubr.bf16.mxu1 %v6600_v32  ;;  %v8444_v44 = vld [vmem:[%s10594_s1 + $0xe90] sm:$0xff]   ;;  %v8470_v30 = vld [vmem:[%s10594_s1 + $0xfc8] sm:$0xff]  }
 0x1a8   :  { %7789 = vmatprep.subr.bf16.mxu1 %v8406_v46  ;;  %7768 = vmatpush3.bf16.msra.mxu0 %v8407_v47  ;;  %v8446_v46 = vld [vmem:[%s10594_s1 + $0xed8] sm:$0xff]   ;;  %v8472_v32 = vld [vmem:[%s10594_s1 + $0xf88] sm:$0xff]  }
 0x1a9   :  { %7769 = vmatprep.subr.bf16.mxu0 %v8409_v49  ;;  %v8447_v47 = vld [vmem:[%s10594_s1 + $0xe18] sm:$0xff]  }
 0x1aa   :  { %v8448_v49 = vld [vmem:[%s10594_s1 + $0xe98] sm:$0xff]  }
 0x1ab   :  { %7790 = vmatpush3.bf16.msra.mxu1 %v8408_v48 }
 0x1ac   :  { %7791 = vmatprep.subr.bf16.mxu1 %v8410_v50  ;;  %7770 = vmatpush3.bf16.msra.mxu0 %v8411_v51  ;;  %v8449_v51 = vld [vmem:[%s10594_s1 + $0xe60] sm:$0xff]  }
 0x1ad   :  { %7771 = vmatprep.subr.bf16.mxu0 %v8413_v53  ;;  %v8450_v53 = vld [vmem:[%s10594_s1 + $0xee0] sm:$0xff]  }
 0x1af   :  { %7792 = vmatpush3.bf16.msra.mxu1 %v8412_v52 }
 0x1b0   :  { %7793 = vmatprep.subr.bf16.mxu1 %v8414_v54  ;;  %7772 = vmatpush3.bf16.msra.mxu0 %v8415_v56  ;;  %v8451_v56 = vld [vmem:[%s10594_s1 + $0xe20] sm:$0xff]  }
 0x1b1   :  { %7773 = vmatprep.subr.bf16.mxu0 %v8417_v60 }
 0x1b3   :  { %7794 = vmatpush3.bf16.msra.mxu1 %v8416_v58 }
 0x1b4   :  { %7795 = vmatprep.subr.bf16.mxu1 %v8418_v63  ;;  %7774 = vmatpush3.bf16.msra.mxu0 %v8419_v2 }
 0x1b5   :  { %7775 = vmatprep.subr.bf16.mxu0 %v8421_v8  ;;  %v8457_v8 = vld [vmem:[%s10594_s1 + $0xe70] sm:$0xff]  }
 0x1b6   :  { %v7473_v55 = vpop.f32.mrb[24].mxu0 }
 0x1b7   :  { %v7495_v57 = vpop.f32.mrb[24].mxu1  ;;  %v7474_v59 = vpop.f32.mrb[25].mxu0  ;;  %7796 = vmatpush3.bf16.msra.mxu1 %v8420_v5 }
 0x1b8   :  { %v7475_v61 = vadd.f32 %v7474_v59, %v7473_v55  ;;  %v7496_v62 = vpop.f32.mrb[25].mxu1  ;;  %v7476_v1 = vpop.f32.mrb[26].mxu0  ;;  %7797 = vmatprep.subr.bf16.mxu1 %v8422_v11  ;;  %7776 = vmatpush3.bf16.msra.mxu0 %v8423_v13  ;;  %v8452_v59 = vld [vmem:[%s10594_s1 + $0xea0] sm:$0xff]   ;;  %v8459_v11 = vld [vmem:[%s10594_s1 + $0xe30] sm:$0xff]   ;;  %v8461_v13 = vld [vmem:[%s10594_s1 + $0xe78] sm:$0xff]  }
 0x1b9   :  { %v7497_v0 = vadd.f32 %v7496_v62, %v7495_v57  ;;  %v7498_v4 = vpop.f32.mrb[26].mxu1  ;;  %v7477_v6 = vpop.f32.mrb[27].mxu0  ;;  %7777 = vmatprep.subr.bf16.mxu0 %v8425_v17  ;;  %v8453_v62 = vld [vmem:[%s10594_s1 + $0xe68] sm:$0xff]   ;;  %v43_v17 = vld [vmem:[%s10595_s0 + $0xe0] sm:$0xff] }
 0x1ba   :  { %v5589_v3 = vadd.f32 %v7475_v61, %v9969_v15  ;;  %v7478_v9 = vadd.f32 %v7477_v6, %v7476_v1  ;;  %v7499_v10 = vpop.f32.mrb[27].mxu1  ;;  %v8424_v15 = vld [vmem:[%s10594_s1 + $0xda8] sm:$0xff]  }
 0x1bb   :  { %v7500_v12 = vadd.f32 %v7499_v10, %v7498_v4  ;;  %7798 = vmatpush3.bf16.msra.mxu1 %v8424_v15  ;;  %v8454_v1 = vld [vmem:[%s10594_s1 + $0xee8] sm:$0xff]   ;;  %v8458_v10 = vld [vmem:[%s10594_s1 + $0xef0] sm:$0xff]   ;;  %v8463_v15 = vld [vmem:[%s10594_s1 + $0xe38] sm:$0xff]  }
 0x1bc   :  { %v10083_v7 = vadd.f32 %v7497_v0, %v5589_v3  ;;  %v5592_v14 = vadd.f32 %v7478_v9, %v9984_v24  ;;  %7799 = vmatprep.subr.bf16.mxu1 %v8426_v18  ;;  %7778 = vmatpush3.bf16.msra.mxu0 %v8427_v19  ;;  %v8432_v24 = vld [vmem:[%s10594_s1 + $0xdb8] sm:$0xff]   ;;  %v8455_v4 = vld [vmem:[%s10594_s1 + $0xe28] sm:$0xff]   ;;  %v79_v18 = vld [vmem:[%s10595_s0 + $0x200] sm:$0xff] }
 0x1bd   :  { %7779 = vmatprep.subr.bf16.mxu0 %v8429_v21  ;;  %v8456_v6 = vld [vmem:[%s10594_s1 + $0xea8] sm:$0xff]   ;;  %v6602_v21 = vcombine.high %v43_v17, %v79_v18 }
 0x1be   :  { %v10098_v16 = vadd.f32 %v7500_v12, %v5592_v14  ;;  %v8460_v12 = vld [vmem:[%s10594_s1 + $0xeb0] sm:$0xff]   ;;  %v8462_v14 = vld [vmem:[%s10594_s1 + $0xef8] sm:$0xff]   ;;  %v44_v19 = vld [vmem:[%s10595_s0 + $0xe8] sm:$0xff] }
 0x1bf   :  { %7800 = vmatpush3.bf16.msra.mxu1 %v8428_v20  ;;  %v6601_v20 = vcombine.low %v43_v17, %v79_v18  ;;  %v8497_v17 = vld [vmem:[%s10594_s1 + $0x1040] sm:$0xff]  }
 0x1c0   :  { %7801 = vmatprep.subr.bf16.mxu1 %v8430_v22  ;;  %7780 = vmatpush3.bf16.msra.mxu0 %v8431_v23  ;;  %v80_v22 = vld [vmem:[%s10595_s0 + $0x208] sm:$0xff]  ;;  %v8498_v18 = vld [vmem:[%s10594_s1 + $0x10c0] sm:$0xff]  }
 0x1c1   :  { %7809 = vmatprep.subr.bf16.mxu0 %v8433_v33  ;;  %v6603_v23 = vcombine.low %v44_v19, %v80_v22  ;;  %v8473_v33 = vld [vmem:[%s10594_s1 + $0xf50] sm:$0xff]  }
 0x1c3   :  { %7802 = vmatpush3.bf16.msra.mxu1 %v8432_v24  ;;  %6161 = vmatmul.mubr.bf16.vlgmr.msra.gmra.mrb[52].mxu0 %v6597_v29  ;;  %v6604_v24 = vcombine.high %v44_v19, %v80_v22  ;;  %v8469_v29 = vld [vmem:[%s10594_s1 + $0xf48] sm:$0xff]   ;;  %v8499_v19 = vld [vmem:[%s10594_s1 + $0x1000] sm:$0xff]  }
 0x1c4   :  { %7831 = vmatprep.subr.bf16.mxu1 %v8434_v34  ;;  %7810 = vmatpush3.bf16.msra.mxu0 %v8435_v35  ;;  %v8474_v34 = vld [vmem:[%s10594_s1 + $0xfd0] sm:$0xff]   ;;  %v8502_v22 = vld [vmem:[%s10594_s1 + $0x10c8] sm:$0xff]  }
 0x1c5   :  { %7811 = vmatprep.subr.bf16.mxu0 %v8437_v37  ;;  %6242 = vmatprep.mubr.bf16.mxu0 %v6602_v21  ;;  %v8475_v35 = vld [vmem:[%s10594_s1 + $0xf10] sm:$0xff]   ;;  %v8477_v37 = vld [vmem:[%s10594_s1 + $0xf58] sm:$0xff]   ;;  %v8501_v21 = vld [vmem:[%s10594_s1 + $0x1048] sm:$0xff]  }
 0x1c6   :  { %6202 = vmatmul.mubr.bf16.vlgmr.msra.gmra.mrb[52].mxu1 %v6599_v31  ;;  %v8471_v31 = vld [vmem:[%s10594_s1 + $0xf08] sm:$0xff]  }
 0x1c7   :  { %7832 = vmatpush3.bf16.msra.mxu1 %v8436_v36  ;;  %6283 = vmatprep.mubr.bf16.mxu1 %v6604_v24  ;;  %v8476_v36 = vld [vmem:[%s10594_s1 + $0xf90] sm:$0xff]   ;;  %v8504_v24 = vld [vmem:[%s10594_s1 + $0x1088] sm:$0xff]  }
 0x1c8   :  { %7833 = vmatprep.subr.bf16.mxu1 %v8438_v38  ;;  %7812 = vmatpush3.bf16.msra.mxu0 %v8439_v39  ;;  %v8478_v38 = vld [vmem:[%s10594_s1 + $0xfd8] sm:$0xff]  }
 0x1c9   :  { %7813 = vmatprep.subr.bf16.mxu0 %v8441_v41 }
 0x1cb   :  { %7834 = vmatpush3.bf16.msra.mxu1 %v8440_v40  ;;  %v8479_v40 = vld [vmem:[%s10594_s1 + $0xf18] sm:$0xff]  }
 0x1cc   :  { %7835 = vmatprep.subr.bf16.mxu1 %v8442_v42  ;;  %7814 = vmatpush3.bf16.msra.mxu0 %v8443_v43  ;;  %v8480_v42 = vld [vmem:[%s10594_s1 + $0xf98] sm:$0xff]  }
 0x1cd   :  { %7815 = vmatprep.subr.bf16.mxu0 %v8445_v45 }
 0x1cf   :  { %7836 = vmatpush3.bf16.msra.mxu1 %v8444_v44  ;;  %v8481_v44 = vld [vmem:[%s10594_s1 + $0xf60] sm:$0xff]  }
 0x1d0   :  { %7837 = vmatprep.subr.bf16.mxu1 %v8446_v46  ;;  %7816 = vmatpush3.bf16.msra.mxu0 %v8447_v47  ;;  %v8482_v47 = vld [vmem:[%s10594_s1 + $0xfe0] sm:$0xff]  }
 0x1d1   :  { %7817 = vmatprep.subr.bf16.mxu0 %v8449_v51 }
 0x1d3   :  { %7838 = vmatpush3.bf16.msra.mxu1 %v8448_v49 }
 0x1d4   :  { %7839 = vmatprep.subr.bf16.mxu1 %v8450_v53  ;;  %7818 = vmatpush3.bf16.msra.mxu0 %v8451_v56  ;;  %v8484_v53 = vld [vmem:[%s10594_s1 + $0xfa0] sm:$0xff]   ;;  %v8485_v56 = vld [vmem:[%s10594_s1 + $0xf68] sm:$0xff]  }
 0x1d5   :  { %7819 = vmatprep.subr.bf16.mxu0 %v8453_v62 }
 0x1d6   :  { %v7517_v48 = vpop.f32.mrb[28].mxu0 }
 0x1d7   :  { %v7539_v50 = vpop.f32.mrb[28].mxu1  ;;  %v7518_v52 = vpop.f32.mrb[29].mxu0  ;;  %7840 = vmatpush3.bf16.msra.mxu1 %v8452_v59  ;;  %v8486_v59 = vld [vmem:[%s10594_s1 + $0xfe8] sm:$0xff]  }
 0x1d8   :  { %v7519_v54 = vadd.f32 %v7518_v52, %v7517_v48  ;;  %v7540_v55 = vpop.f32.mrb[29].mxu1  ;;  %v7520_v58 = vpop.f32.mrb[30].mxu0  ;;  %7841 = vmatprep.subr.bf16.mxu1 %v8454_v1  ;;  %7820 = vmatpush3.bf16.msra.mxu0 %v8455_v4  ;;  %v8489_v1 = vld [vmem:[%s10594_s1 + $0xf70] sm:$0xff]  }
 0x1d9   :  { %v7541_v57 = vadd.f32 %v7540_v55, %v7539_v50  ;;  %v7542_v61 = vpop.f32.mrb[30].mxu1  ;;  %v7521_v63 = vpop.f32.mrb[31].mxu0  ;;  %7821 = vmatprep.subr.bf16.mxu0 %v8457_v8  ;;  %v8483_v50 = vld [vmem:[%s10594_s1 + $0xf20] sm:$0xff]   ;;  %v8492_v4 = vld [vmem:[%s10594_s1 + $0xfb0] sm:$0xff]   ;;  %v8496_v8 = vld [vmem:[%s10594_s1 + $0xfb8] sm:$0xff]  }
 0x1da   :  { %v5671_v60 = vadd.f32 %v7519_v54, %v10083_v7  ;;  %v7522_v2 = vadd.f32 %v7521_v63, %v7520_v58  ;;  %v7543_v3 = vpop.f32.mrb[31].mxu1  ;;  %v8488_v63 = vld [vmem:[%s10594_s1 + $0xfa8] sm:$0xff]  }
 0x1db   :  { %v7544_v5 = vadd.f32 %v7543_v3, %v7542_v61  ;;  %7842 = vmatpush3.bf16.msra.mxu1 %v8456_v6  ;;  %v8487_v61 = vld [vmem:[%s10594_s1 + $0xf28] sm:$0xff]   ;;  %v8491_v3 = vld [vmem:[%s10594_s1 + $0xf30] sm:$0xff]   ;;  %v8494_v6 = vld [vmem:[%s10594_s1 + $0xff8] sm:$0xff]  }
 0x1dc   :  { %v10200_v0 = vadd.f32 %v7541_v57, %v5671_v60  ;;  %v5674_v7 = vadd.f32 %v7522_v2, %v10098_v16  ;;  %7843 = vmatprep.subr.bf16.mxu1 %v8458_v10  ;;  %7822 = vmatpush3.bf16.msra.mxu0 %v8459_v11  ;;  %v8464_v16 = vld [vmem:[%s10594_s1 + $0xeb8] sm:$0xff]   ;;  %v8490_v2 = vld [vmem:[%s10594_s1 + $0xff0] sm:$0xff]  }
 0x1dd   :  { %7823 = vmatprep.subr.bf16.mxu0 %v8461_v13  ;;  %v81_v10 = vld [vmem:[%s10595_s0 + $0x210] sm:$0xff]  ;;  %v46_v13 = vld [vmem:[%s10595_s0 + $0xf8] sm:$0xff] }
 0x1de   :  { %v10215_v9 = vadd.f32 %v7544_v5, %v5674_v7  ;;  %v8493_v5 = vld [vmem:[%s10594_s1 + $0xf78] sm:$0xff]  }
 0x1df   :  { %7844 = vmatpush3.bf16.msra.mxu1 %v8460_v12  ;;  %v8495_v7 = vld [vmem:[%s10594_s1 + $0xf38] sm:$0xff]  }
 0x1e0   :  { %7845 = vmatprep.subr.bf16.mxu1 %v8462_v14  ;;  %7824 = vmatpush3.bf16.msra.mxu0 %v8463_v15  ;;  %v82_v14 = vld [vmem:[%s10595_s0 + $0x218] sm:$0xff] }
 0x1e1   :  { %7853 = vmatprep.subr.bf16.mxu0 %v8465_v25  ;;  %v6607_v15 = vcombine.low %v46_v13, %v82_v14  ;;  %v8505_v25 = vld [vmem:[%s10594_s1 + $0x1050] sm:$0xff]  }
 0x1e3   :  { %7846 = vmatpush3.bf16.msra.mxu1 %v8464_v16  ;;  %6243 = vmatmul.mubr.bf16.vlgmr.msra.gmra.mrb[56].mxu0 %v6601_v20  ;;  %v6608_v16 = vcombine.high %v46_v13, %v82_v14  ;;  %v8500_v20 = vld [vmem:[%s10594_s1 + $0x1080] sm:$0xff]   ;;  %v8533_v13 = vld [vmem:[%s10594_s1 + $0x1148] sm:$0xff]  }
 0x1e4   :  { %7875 = vmatprep.subr.bf16.mxu1 %v8466_v26  ;;  %7854 = vmatpush3.bf16.msra.mxu0 %v8467_v27  ;;  %v8506_v26 = vld [vmem:[%s10594_s1 + $0x10d0] sm:$0xff]   ;;  %v8534_v14 = vld [vmem:[%s10594_s1 + $0x11c8] sm:$0xff]  }
 0x1e5   :  { %7855 = vmatprep.subr.bf16.mxu0 %v8469_v29  ;;  %v8507_v27 = vld [vmem:[%s10594_s1 + $0x1010] sm:$0xff]   ;;  %v8509_v29 = vld [vmem:[%s10594_s1 + $0x1058] sm:$0xff]  }
 0x1e6   :  { %6284 = vmatmul.mubr.bf16.vlgmr.msra.gmra.mrb[56].mxu1 %v6603_v23  ;;  %v8503_v23 = vld [vmem:[%s10594_s1 + $0x1008] sm:$0xff]  }
 0x1e7   :  { %7876 = vmatpush3.bf16.msra.mxu1 %v8468_v28  ;;  %6365 = vmatprep.mubr.bf16.mxu1 %v6608_v16  ;;  %v8508_v28 = vld [vmem:[%s10594_s1 + $0x1090] sm:$0xff]   ;;  %v8536_v16 = vld [vmem:[%s10594_s1 + $0x1188] sm:$0xff]  }
 0x1e8   :  { %7877 = vmatprep.subr.bf16.mxu1 %v8470_v30  ;;  %7856 = vmatpush3.bf16.msra.mxu0 %v8471_v31  ;;  %v8510_v30 = vld [vmem:[%s10594_s1 + $0x10d8] sm:$0xff]  }
 0x1e9   :  { %7857 = vmatprep.subr.bf16.mxu0 %v8473_v33 }
 0x1eb   :  { %7878 = vmatpush3.bf16.msra.mxu1 %v8472_v32  ;;  %v8511_v32 = vld [vmem:[%s10594_s1 + $0x1018] sm:$0xff]  }
 0x1ec   :  { %7879 = vmatprep.subr.bf16.mxu1 %v8474_v34  ;;  %7858 = vmatpush3.bf16.msra.mxu0 %v8475_v35  ;;  %v8512_v34 = vld [vmem:[%s10594_s1 + $0x1098] sm:$0xff]  }
 0x1ed   :  { %7859 = vmatprep.subr.bf16.mxu0 %v8477_v37 }
 0x1ef   :  { %7880 = vmatpush3.bf16.msra.mxu1 %v8476_v36  ;;  %v8513_v36 = vld [vmem:[%s10594_s1 + $0x1060] sm:$0xff]  }
 0x1f0   :  { %7881 = vmatprep.subr.bf16.mxu1 %v8478_v38  ;;  %7860 = vmatpush3.bf16.msra.mxu0 %v8479_v40 }
 0x1f1   :  { %7861 = vmatprep.subr.bf16.mxu0 %v8481_v44 }
 0x1f3   :  { %7882 = vmatpush3.bf16.msra.mxu1 %v8480_v42  ;;  %v8515_v42 = vld [vmem:[%s10594_s1 + $0x1020] sm:$0xff]  }
 0x1f4   :  { %7883 = vmatprep.subr.bf16.mxu1 %v8482_v47  ;;  %7862 = vmatpush3.bf16.msra.mxu0 %v8483_v50 }
 0x1f5   :  { %7863 = vmatprep.subr.bf16.mxu0 %v8485_v56 }
 0x1f6   :  { %v7561_v39 = vpop.f32.mrb[32].mxu0 }
 0x1f7   :  { %v7583_v41 = vpop.f32.mrb[32].mxu1  ;;  %v7562_v43 = vpop.f32.mrb[33].mxu0  ;;  %7884 = vmatpush3.bf16.msra.mxu1 %v8484_v53  ;;  %v8519_v53 = vld [vmem:[%s10594_s1 + $0x1028] sm:$0xff]  }
 0x1f8   :  { %v7563_v45 = vadd.f32 %v7562_v43, %v7561_v39  ;;  %v7584_v46 = vpop.f32.mrb[33].mxu1  ;;  %v7564_v49 = vpop.f32.mrb[34].mxu0  ;;  %7885 = vmatprep.subr.bf16.mxu1 %v8486_v59  ;;  %7864 = vmatpush3.bf16.msra.mxu0 %v8487_v61  ;;  %v8514_v39 = vld [vmem:[%s10594_s1 + $0x10e0] sm:$0xff]   ;;  %v8523_v59 = vld [vmem:[%s10594_s1 + $0x1030] sm:$0xff]   ;;  %v8525_v61 = vld [vmem:[%s10594_s1 + $0x1078] sm:$0xff]  }
 0x1f9   :  { %v7585_v48 = vadd.f32 %v7584_v46, %v7583_v41  ;;  %v7586_v52 = vpop.f32.mrb[34].mxu1  ;;  %v7565_v54 = vpop.f32.mrb[35].mxu0  ;;  %7865 = vmatprep.subr.bf16.mxu0 %v8489_v1  ;;  %v47_v1 = vld [vmem:[%s10595_s0 + $0x100] sm:$0xff] }
 0x1fa   :  { %v5753_v51 = vadd.f32 %v7563_v45, %v10200_v0  ;;  %v7566_v57 = vadd.f32 %v7565_v54, %v7564_v49  ;;  %v7587_v58 = vpop.f32.mrb[35].mxu1  ;;  %v8516_v45 = vld [vmem:[%s10594_s1 + $0x10a0] sm:$0xff]  }
 0x1fb   :  { %v7588_v60 = vadd.f32 %v7587_v58, %v7586_v52  ;;  %7886 = vmatpush3.bf16.msra.mxu1 %v8488_v63  ;;  %v8522_v58 = vld [vmem:[%s10594_s1 + $0x10f0] sm:$0xff]   ;;  %v8527_v63 = vld [vmem:[%s10594_s1 + $0x1038] sm:$0xff]  }
 0x1fc   :  { %v10311_v55 = vadd.f32 %v7585_v48, %v5753_v51  ;;  %v5756_v62 = vadd.f32 %v7566_v57, %v10215_v9  ;;  %7887 = vmatprep.subr.bf16.mxu1 %v8490_v2  ;;  %7866 = vmatpush3.bf16.msra.mxu0 %v8491_v3  ;;  %v45_v9 = vld [vmem:[%s10595_s0 + $0xf0] sm:$0xff]  ;;  %v8517_v48 = vld [vmem:[%s10594_s1 + $0x1068] sm:$0xff]   ;;  %v83_v2 = vld [vmem:[%s10595_s0 + $0x220] sm:$0xff] }
 0x1fd   :  { %7867 = vmatprep.subr.bf16.mxu0 %v8493_v5  ;;  %v6605_v11 = vcombine.low %v45_v9, %v81_v10  ;;  %v6606_v12 = vcombine.high %v45_v9, %v81_v10  ;;  %v8518_v51 = vld [vmem:[%s10594_s1 + $0x10e8] sm:$0xff]   ;;  %v8521_v57 = vld [vmem:[%s10594_s1 + $0x1070] sm:$0xff]   ;;  %v6609_v5 = vcombine.low %v47_v1, %v83_v2  ;;  %v8529_v9 = vld [vmem:[%s10594_s1 + $0x1140] sm:$0xff]  }
 0x1fe   :  { %v10326_v0 = vadd.f32 %v7588_v60, %v5756_v62  ;;  %v8524_v60 = vld [vmem:[%s10594_s1 + $0x10b0] sm:$0xff]   ;;  %v8526_v62 = vld [vmem:[%s10594_s1 + $0x10f8] sm:$0xff]   ;;  %v48_v3 = vld [vmem:[%s10595_s0 + $0x108] sm:$0xff] }
 0x1ff   :  { %7888 = vmatpush3.bf16.msra.mxu1 %v8492_v4  ;;  %6324 = vmatprep.mubr.bf16.mxu0 %v6606_v12  ;;  %v84_v4 = vld [vmem:[%s10595_s0 + $0x228] sm:$0xff]  ;;  %v8530_v10 = vld [vmem:[%s10594_s1 + $0x11c0] sm:$0xff]  }
 0x200   :  { %7889 = vmatprep.subr.bf16.mxu1 %v8494_v6  ;;  %7868 = vmatpush3.bf16.msra.mxu0 %v8495_v7  ;;  %v6610_v6 = vcombine.high %v47_v1, %v83_v2  ;;  %v6611_v7 = vcombine.low %v48_v3, %v84_v4  ;;  %v8532_v12 = vld [vmem:[%s10594_s1 + $0x1180] sm:$0xff]  }
 0x201   :  { %7897 = vmatprep.subr.bf16.mxu0 %v8497_v17  ;;  %v8537_v17 = vld [vmem:[%s10594_s1 + $0x1150] sm:$0xff]  }
 0x203   :  { %7890 = vmatpush3.bf16.msra.mxu1 %v8496_v8  ;;  %6325 = vmatmul.mubr.bf16.vlgmr.msra.gmra.mrb[60].mxu0 %v6605_v11  ;;  %v6612_v8 = vcombine.high %v48_v3, %v84_v4  ;;  %v8531_v11 = vld [vmem:[%s10594_s1 + $0x1100] sm:$0xff]  }
 0x204   :  { %7919 = vmatprep.subr.bf16.mxu1 %v8498_v18  ;;  %7898 = vmatpush3.bf16.msra.mxu0 %v8499_v19  ;;  %v8538_v18 = vld [vmem:[%s10594_s1 + $0x11d0] sm:$0xff]  }
 0x205   :  { %7899 = vmatprep.subr.bf16.mxu0 %v8501_v21  ;;  %6406 = vmatprep.mubr.bf16.mxu0 %v6610_v6  ;;  %v8539_v19 = vld [vmem:[%s10594_s1 + $0x1110] sm:$0xff]   ;;  %v8541_v21 = vld [vmem:[%s10594_s1 + $0x1158] sm:$0xff]  }
 0x206   :  { %6366 = vmatmul.mubr.bf16.vlgmr.msra.gmra.mrb[60].mxu1 %v6607_v15  ;;  %v8535_v15 = vld [vmem:[%s10594_s1 + $0x1108] sm:$0xff]  }
 0x207   :  { %7920 = vmatpush3.bf16.msra.mxu1 %v8500_v20  ;;  %6447 = vmatprep.mubr.bf16.mxu1 %v6612_v8  ;;  %v8540_v20 = vld [vmem:[%s10594_s1 + $0x1190] sm:$0xff]  }
 0x208   :  { %7921 = vmatprep.subr.bf16.mxu1 %v8502_v22  ;;  %7900 = vmatpush3.bf16.msra.mxu0 %v8503_v23  ;;  %v8542_v22 = vld [vmem:[%s10594_s1 + $0x11d8] sm:$0xff]  }
 0x209   :  { %7901 = vmatprep.subr.bf16.mxu0 %v8505_v25  ;;  %v8543_v23 = vld [vmem:[%s10594_s1 + $0x1118] sm:$0xff]  }
 0x20a   :  { %v8544_v25 = vld [vmem:[%s10594_s1 + $0x1198] sm:$0xff]  }
 0x20b   :  { %7922 = vmatpush3.bf16.msra.mxu1 %v8504_v24 }
 0x20c   :  { %7923 = vmatprep.subr.bf16.mxu1 %v8506_v26  ;;  %7902 = vmatpush3.bf16.msra.mxu0 %v8507_v27  ;;  %v8545_v27 = vld [vmem:[%s10594_s1 + $0x1160] sm:$0xff]  }
 0x20d   :  { %7903 = vmatprep.subr.bf16.mxu0 %v8509_v29  ;;  %v8546_v29 = vld [vmem:[%s10594_s1 + $0x11e0] sm:$0xff]  }
 0x20f   :  { %7924 = vmatpush3.bf16.msra.mxu1 %v8508_v28 }
 0x210   :  { %7925 = vmatprep.subr.bf16.mxu1 %v8510_v30  ;;  %7904 = vmatpush3.bf16.msra.mxu0 %v8511_v32  ;;  %v8547_v32 = vld [vmem:[%s10594_s1 + $0x1120] sm:$0xff]  }
 0x211   :  { %7905 = vmatprep.subr.bf16.mxu0 %v8513_v36 }
 0x213   :  { %7926 = vmatpush3.bf16.msra.mxu1 %v8512_v34 }
 0x214   :  { %7927 = vmatprep.subr.bf16.mxu1 %v8514_v39  ;;  %7906 = vmatpush3.bf16.msra.mxu0 %v8515_v42 }
 0x215   :  { %7907 = vmatprep.subr.bf16.mxu0 %v8517_v48  ;;  %v8553_v48 = vld [vmem:[%s10594_s1 + $0x1170] sm:$0xff]  }
 0x216   :  { %v7605_v31 = vpop.f32.mrb[36].mxu0 }
 0x217   :  { %v7606_v35 = vpop.f32.mrb[37].mxu0  ;;  %7928 = vmatpush3.bf16.msra.mxu1 %v8516_v45 }
 0x218   :  { %v7607_v37 = vadd.f32 %v7606_v35, %v7605_v31  ;;  %v7608_v41 = vpop.f32.mrb[38].mxu0  ;;  %7929 = vmatprep.subr.bf16.mxu1 %v8518_v51  ;;  %7908 = vmatpush3.bf16.msra.mxu0 %v8519_v53  ;;  %v8548_v35 = vld [vmem:[%s10594_s1 + $0x11a0] sm:$0xff]   ;;  %v8555_v51 = vld [vmem:[%s10594_s1 + $0x1130] sm:$0xff]   ;;  %v8557_v53 = vld [vmem:[%s10594_s1 + $0x1178] sm:$0xff]  }
 0x219   :  { %v7627_v33 = vpop.f32.mrb[36].mxu1  ;;  %v7609_v46 = vpop.f32.mrb[39].mxu0  ;;  %7909 = vmatprep.subr.bf16.mxu0 %v8521_v57  ;;  %v49_v57 = vld [vmem:[%s10595_s0 + $0x110] sm:$0xff] }
 0x21a   :  { %v7628_v38 = vpop.f32.mrb[37].mxu1  ;;  %v5835_v43 = vadd.f32 %v7607_v37, %v10311_v55  ;;  %v7610_v49 = vadd.f32 %v7609_v46, %v7608_v41  ;;  %v8520_v55 = vld [vmem:[%s10594_s1 + $0x10a8] sm:$0xff]  }
 0x21b   :  { %v7629_v40 = vadd.f32 %v7628_v38, %v7627_v33  ;;  %v7630_v44 = vpop.f32.mrb[38].mxu1  ;;  %7930 = vmatpush3.bf16.msra.mxu1 %v8520_v55  ;;  %v8549_v38 = vld [vmem:[%s10594_s1 + $0x1168] sm:$0xff]   ;;  %v8559_v55 = vld [vmem:[%s10594_s1 + $0x1138] sm:$0xff]  }
 0x21c   :  { %v7631_v50 = vpop.f32.mrb[39].mxu1  ;;  %v5838_v54 = vadd.f32 %v7610_v49, %v10326_v0  ;;  %7931 = vmatprep.subr.bf16.mxu1 %v8522_v58  ;;  %7910 = vmatpush3.bf16.msra.mxu0 %v8523_v59  ;;  %v8528_v0 = vld [vmem:[%s10594_s1 + $0x10b8] sm:$0xff]   ;;  %v8550_v41 = vld [vmem:[%s10594_s1 + $0x11e8] sm:$0xff]   ;;  %v85_v58 = vld [vmem:[%s10595_s0 + $0x230] sm:$0xff] }
 0x21d   :  { %v10425_v47 = vadd.f32 %v7629_v40, %v5835_v43  ;;  %v7632_v52 = vadd.f32 %v7631_v50, %v7630_v44  ;;  %7911 = vmatprep.subr.bf16.mxu0 %v8525_v61  ;;  %v8551_v44 = vld [vmem:[%s10594_s1 + $0x1128] sm:$0xff]   ;;  %v8554_v50 = vld [vmem:[%s10594_s1 + $0x11f0] sm:$0xff]   ;;  %v50_v59 = vld [vmem:[%s10595_s0 + $0x118] sm:$0xff]  ;;  %v6614_v61 = vcombine.high %v49_v57, %v85_v58 }
 0x21e   :  { %v8552_v46 = vld [vmem:[%s10594_s1 + $0x11a8] sm:$0xff]  }
 0x21f   :  { %v10440_v56 = vadd.f32 %v7632_v52, %v5838_v54  ;;  %7932 = vmatpush3.bf16.msra.mxu1 %v8524_v60  ;;  %v8556_v52 = vld [vmem:[%s10594_s1 + $0x11b0] sm:$0xff]   ;;  %v8558_v54 = vld [vmem:[%s10594_s1 + $0x11f8] sm:$0xff]   ;;  %v6613_v60 = vcombine.low %v49_v57, %v85_v58 }
 0x220   :  { %7933 = vmatprep.subr.bf16.mxu1 %v8526_v62  ;;  %7912 = vmatpush3.bf16.msra.mxu0 %v8527_v63  ;;  %v86_v62 = vld [vmem:[%s10595_s0 + $0x238] sm:$0xff] }
 0x221   :  { %7941 = vmatprep.subr.bf16.mxu0 %v8529_v9  ;;  %v6615_v63 = vcombine.low %v50_v59, %v86_v62 }
 0x223   :  { %7934 = vmatpush3.bf16.msra.mxu1 %v8528_v0  ;;  %6407 = vmatmul.mubr.bf16.vlgmr.msra.gmra.mrb[64].mxu0 %v6609_v5  ;;  %v6616_v0 = vcombine.high %v50_v59, %v86_v62 }
 0x224   :  { %7963 = vmatprep.subr.bf16.mxu1 %v8530_v10  ;;  %7942 = vmatpush3.bf16.msra.mxu0 %v8531_v11 }
 0x225   :  { %7943 = vmatprep.subr.bf16.mxu0 %v8533_v13  ;;  %6488 = vmatprep.mubr.bf16.mxu0 %v6614_v61 }
 0x226   :  { %6448 = vmatmul.mubr.bf16.vlgmr.msra.gmra.mrb[64].mxu1 %v6611_v7 }
 0x227   :  { %7964 = vmatpush3.bf16.msra.mxu1 %v8532_v12  ;;  %6529 = vmatprep.mubr.bf16.mxu1 %v6616_v0 }
 0x228   :  { %7965 = vmatprep.subr.bf16.mxu1 %v8534_v14  ;;  %7944 = vmatpush3.bf16.msra.mxu0 %v8535_v15 }
 0x229   :  { %7945 = vmatprep.subr.bf16.mxu0 %v8537_v17 }
 0x22b   :  { %7966 = vmatpush3.bf16.msra.mxu1 %v8536_v16 }
 0x22c   :  { %7967 = vmatprep.subr.bf16.mxu1 %v8538_v18  ;;  %7946 = vmatpush3.bf16.msra.mxu0 %v8539_v19 }
 0x22d   :  { %7947 = vmatprep.subr.bf16.mxu0 %v8541_v21 }
 0x22f   :  { %7968 = vmatpush3.bf16.msra.mxu1 %v8540_v20 }
 0x230   :  { %7969 = vmatprep.subr.bf16.mxu1 %v8542_v22  ;;  %7948 = vmatpush3.bf16.msra.mxu0 %v8543_v23 }
 0x231   :  { %7949 = vmatprep.subr.bf16.mxu0 %v8545_v27 }
 0x233   :  { %7970 = vmatpush3.bf16.msra.mxu1 %v8544_v25 }
 0x234   :  { %7971 = vmatprep.subr.bf16.mxu1 %v8546_v29  ;;  %7950 = vmatpush3.bf16.msra.mxu0 %v8547_v32 }
 0x235   :  { %7951 = vmatprep.subr.bf16.mxu0 %v8549_v38 }
 0x236   :  { %v7649_v24 = vpop.f32.mrb[40].mxu0 }
 0x237   :  { %v7650_v28 = vpop.f32.mrb[41].mxu0  ;;  %7972 = vmatpush3.bf16.msra.mxu1 %v8548_v35 }
 0x238   :  { %v7651_v30 = vadd.f32 %v7650_v28, %v7649_v24  ;;  %v7652_v34 = vpop.f32.mrb[42].mxu0  ;;  %7973 = vmatprep.subr.bf16.mxu1 %v8550_v41  ;;  %7952 = vmatpush3.bf16.msra.mxu0 %v8551_v44 }
 0x239   :  { %v7671_v26 = vpop.f32.mrb[40].mxu1  ;;  %v7653_v39 = vpop.f32.mrb[43].mxu0  ;;  %7953 = vmatprep.subr.bf16.mxu0 %v8553_v48 }
 0x23a   :  { %v7672_v31 = vpop.f32.mrb[41].mxu1  ;;  %v5917_v36 = vadd.f32 %v7651_v30, %v10425_v47  ;;  %v7654_v42 = vadd.f32 %v7653_v39, %v7652_v34 }
 0x23b   :  { %v7673_v33 = vadd.f32 %v7672_v31, %v7671_v26  ;;  %v7674_v37 = vpop.f32.mrb[42].mxu1  ;;  %7974 = vmatpush3.bf16.msra.mxu1 %v8552_v46 }
 0x23c   :  { %v7675_v43 = vpop.f32.mrb[43].mxu1  ;;  %v5920_v47 = vadd.f32 %v7654_v42, %v10440_v56  ;;  %7975 = vmatprep.subr.bf16.mxu1 %v8554_v50  ;;  %7954 = vmatpush3.bf16.msra.mxu0 %v8555_v51  ;;  %v8560_v56 = vld [vmem:[%s10594_s1 + $0x11b8] sm:$0xff]  }
 0x23d   :  { %v5958_v40 = vadd.f32 %v7673_v33, %v5917_v36  ;;  %v7676_v45 = vadd.f32 %v7675_v43, %v7674_v37  ;;  %7955 = vmatprep.subr.bf16.mxu0 %v8557_v53 }
 0x23f   :  { %v5961_v49 = vadd.f32 %v7676_v45, %v5920_v47  ;;  %7976 = vmatpush3.bf16.msra.mxu1 %v8556_v52 }
 0x240   :  { %7977 = vmatprep.subr.bf16.mxu1 %v8558_v54  ;;  %7956 = vmatpush3.bf16.msra.mxu0 %v8559_v55 }
 0x243   :  { %7978 = vmatpush3.bf16.msra.mxu1 %v8560_v56  ;;  %6489 = vmatmul.mubr.bf16.vlgmr.msra.gmra.mrb[68].mxu0 %v6613_v60 }
 0x246   :  { %6530 = vmatmul.mubr.bf16.vlgmr.msra.gmra.mrb[68].mxu1 %v6615_v63 }
 0x256   :  { %v7693_v1 = vpop.f32.mrb[44].mxu0 }
 0x257   :  { %v7694_v3 = vpop.f32.mrb[45].mxu0 }
 0x258   :  { %v7695_v4 = vadd.f32 %v7694_v3, %v7693_v1  ;;  %v7696_v6 = vpop.f32.mrb[46].mxu0 }
 0x259   :  { %v7715_v2 = vpop.f32.mrb[44].mxu1  ;;  %v7697_v9 = vpop.f32.mrb[47].mxu0 }
 0x25a   :  { %v7716_v5 = vpop.f32.mrb[45].mxu1  ;;  %v5999_v10 = vadd.f32 %v7695_v4, %v5958_v40  ;;  %v7698_v11 = vadd.f32 %v7697_v9, %v7696_v6 }
 0x25b   :  { %v7717_v7 = vadd.f32 %v7716_v5, %v7715_v2  ;;  %v7718_v8 = vpop.f32.mrb[46].mxu1 }
 0x25c   :  { %v7719_v12 = vpop.f32.mrb[47].mxu1  ;;  %v6002_v15 = vadd.f32 %v7698_v11, %v5961_v49 }
 0x25d   :  { %v7720_v13 = vadd.f32 %v7719_v12, %v7718_v8  ;;  %v6040_v14 = vadd.f32 %v7717_v7, %v5999_v10 }
 0x25f   :  { %v6043_v16 = vadd.f32 %v7720_v13, %v6002_v15 }
 0x276   :  { %v7737_v17 = vpop.f32.mrb[48].mxu0 }
 0x277   :  { %v7738_v19 = vpop.f32.mrb[49].mxu0 }
 0x278   :  { %v7739_v20 = vadd.f32 %v7738_v19, %v7737_v17  ;;  %v7740_v22 = vpop.f32.mrb[50].mxu0 }
 0x279   :  { %v7759_v18 = vpop.f32.mrb[48].mxu1  ;;  %v7741_v25 = vpop.f32.mrb[51].mxu0 }
 0x27a   :  { %v7760_v21 = vpop.f32.mrb[49].mxu1  ;;  %v6081_v26 = vadd.f32 %v7739_v20, %v6040_v14  ;;  %v7742_v27 = vadd.f32 %v7741_v25, %v7740_v22 }
 0x27b   :  { %v7761_v23 = vadd.f32 %v7760_v21, %v7759_v18  ;;  %v7762_v24 = vpop.f32.mrb[50].mxu1 }
 0x27c   :  { %v7763_v28 = vpop.f32.mrb[51].mxu1  ;;  %v6084_v31 = vadd.f32 %v7742_v27, %v6043_v16 }
 0x27d   :  { %v7764_v29 = vadd.f32 %v7763_v28, %v7762_v24  ;;  %v6122_v30 = vadd.f32 %v7761_v23, %v6081_v26 }
 0x27f   :  { %v6125_v32 = vadd.f32 %v7764_v29, %v6084_v31 }
 0x296   :  { %v7781_v33 = vpop.f32.mrb[52].mxu0 }
 0x297   :  { %v7782_v35 = vpop.f32.mrb[53].mxu0 }
 0x298   :  { %v7783_v37 = vadd.f32 %v7782_v35, %v7781_v33  ;;  %v7784_v39 = vpop.f32.mrb[54].mxu0 }
 0x299   :  { %v7803_v34 = vpop.f32.mrb[52].mxu1  ;;  %v7785_v41 = vpop.f32.mrb[55].mxu0 }
 0x29a   :  { %v7804_v36 = vpop.f32.mrb[53].mxu1  ;;  %v6163_v43 = vadd.f32 %v7783_v37, %v6122_v30  ;;  %v7786_v44 = vadd.f32 %v7785_v41, %v7784_v39 }
 0x29b   :  { %v7805_v38 = vadd.f32 %v7804_v36, %v7803_v34  ;;  %v7806_v40 = vpop.f32.mrb[54].mxu1 }
 0x29c   :  { %v7807_v42 = vpop.f32.mrb[55].mxu1  ;;  %v6166_v47 = vadd.f32 %v7786_v44, %v6125_v32 }
 0x29d   :  { %v7808_v45 = vadd.f32 %v7807_v42, %v7806_v40  ;;  %v6204_v46 = vadd.f32 %v7805_v38, %v6163_v43 }
 0x29f   :  { %v6207_v48 = vadd.f32 %v7808_v45, %v6166_v47 }
 0x2b6   :  { %v7825_v49 = vpop.f32.mrb[56].mxu0 }
 0x2b7   :  { %v7826_v51 = vpop.f32.mrb[57].mxu0 }
 0x2b8   :  { %v7827_v52 = vadd.f32 %v7826_v51, %v7825_v49  ;;  %v7828_v54 = vpop.f32.mrb[58].mxu0 }
 0x2b9   :  { %v7847_v50 = vpop.f32.mrb[56].mxu1  ;;  %v7829_v57 = vpop.f32.mrb[59].mxu0 }
 0x2ba   :  { %v7848_v53 = vpop.f32.mrb[57].mxu1  ;;  %v6245_v58 = vadd.f32 %v7827_v52, %v6204_v46  ;;  %v7830_v59 = vadd.f32 %v7829_v57, %v7828_v54 }
 0x2bb   :  { %v7849_v55 = vadd.f32 %v7848_v53, %v7847_v50  ;;  %v7850_v56 = vpop.f32.mrb[58].mxu1 }
 0x2bc   :  { %v7851_v60 = vpop.f32.mrb[59].mxu1  ;;  %v6248_v63 = vadd.f32 %v7830_v59, %v6207_v48 }
 0x2bd   :  { %v7852_v61 = vadd.f32 %v7851_v60, %v7850_v56  ;;  %v6286_v62 = vadd.f32 %v7849_v55, %v6245_v58 }
 0x2bf   :  { %v6289_v0 = vadd.f32 %v7852_v61, %v6248_v63 }
 0x2d6   :  { %v7869_v1 = vpop.f32.mrb[60].mxu0 }
 0x2d7   :  { %v7870_v3 = vpop.f32.mrb[61].mxu0 }
 0x2d8   :  { %v7871_v4 = vadd.f32 %v7870_v3, %v7869_v1  ;;  %v7872_v6 = vpop.f32.mrb[62].mxu0 }
 0x2d9   :  { %v7891_v2 = vpop.f32.mrb[60].mxu1  ;;  %v7873_v9 = vpop.f32.mrb[63].mxu0 }
 0x2da   :  { %v7892_v5 = vpop.f32.mrb[61].mxu1  ;;  %v6327_v10 = vadd.f32 %v7871_v4, %v6286_v62  ;;  %v7874_v11 = vadd.f32 %v7873_v9, %v7872_v6 }
 0x2db   :  { %v7893_v7 = vadd.f32 %v7892_v5, %v7891_v2  ;;  %v7894_v8 = vpop.f32.mrb[62].mxu1 }
 0x2dc   :  { %v7895_v12 = vpop.f32.mrb[63].mxu1  ;;  %v6330_v15 = vadd.f32 %v7874_v11, %v6289_v0 }
 0x2dd   :  { %v7896_v13 = vadd.f32 %v7895_v12, %v7894_v8  ;;  %v6368_v14 = vadd.f32 %v7893_v7, %v6327_v10 }
 0x2df   :  { %v6371_v16 = vadd.f32 %v7896_v13, %v6330_v15 }
 0x2f6   :  { %v7913_v17 = vpop.f32.mrb[64].mxu0 }
 0x2f7   :  { %v7914_v19 = vpop.f32.mrb[65].mxu0 }
 0x2f8   :  { %v7915_v21 = vadd.f32 %v7914_v19, %v7913_v17  ;;  %v7916_v23 = vpop.f32.mrb[66].mxu0 }
 0x2f9   :  { %v7935_v18 = vpop.f32.mrb[64].mxu1  ;;  %v7917_v25 = vpop.f32.mrb[67].mxu0 }
 0x2fa   :  { %v7936_v20 = vpop.f32.mrb[65].mxu1  ;;  %v6409_v27 = vadd.f32 %v7915_v21, %v6368_v14  ;;  %v7918_v28 = vadd.f32 %v7917_v25, %v7916_v23 }
 0x2fb   :  { %v7937_v22 = vadd.f32 %v7936_v20, %v7935_v18  ;;  %v7938_v24 = vpop.f32.mrb[66].mxu1 }
 0x2fc   :  { %v7939_v26 = vpop.f32.mrb[67].mxu1  ;;  %v6412_v31 = vadd.f32 %v7918_v28, %v6371_v16 }
 0x2fd   :  { %v7940_v29 = vadd.f32 %v7939_v26, %v7938_v24  ;;  %v6450_v30 = vadd.f32 %v7937_v22, %v6409_v27 }
 0x2ff   :  { %v6453_v32 = vadd.f32 %v7940_v29, %v6412_v31 }
 0x316   :  { %v7957_v33 = vpop.f32.mrb[68].mxu0 }
 0x317   :  { %v7958_v35 = vpop.f32.mrb[69].mxu0 }
 0x318   :  { %v7959_v36 = vadd.f32 %v7958_v35, %v7957_v33  ;;  %v7960_v38 = vpop.f32.mrb[70].mxu0 }
 0x319   :  { %v7979_v34 = vpop.f32.mrb[68].mxu1  ;;  %v7961_v41 = vpop.f32.mrb[71].mxu0 }
 0x31a   :  { %v7980_v37 = vpop.f32.mrb[69].mxu1  ;;  %v6491_v42 = vadd.f32 %v7959_v36, %v6450_v30  ;;  %v7962_v43 = vadd.f32 %v7961_v41, %v7960_v38 }
 0x31b   :  { %v7981_v39 = vadd.f32 %v7980_v37, %v7979_v34  ;;  %v7982_v40 = vpop.f32.mrb[70].mxu1 }
 0x31c   :  { %v7983_v44 = vpop.f32.mrb[71].mxu1  ;;  %v6494_v47 = vadd.f32 %v7962_v43, %v6453_v32 }
 0x31d   :  { %v7984_v45 = vadd.f32 %v7983_v44, %v7982_v40  ;;  %v6532_v46 = vadd.f32 %v7981_v39, %v6491_v42 }
 0x31f   :  { %6538 = vst [vmem:[%s10597_s3] sm:$0xff] %v6532_v46  ;;  %v6535_v48 = vadd.f32 %v7984_v45, %v6494_v47 }
 0x321   :  { %6539 = vst [vmem:[%s10597_s3 + $0x8] sm:$0xff] %v6535_v48 }

</bundles_post_ra>
